<compile_context>
chip_gen: v5e
topology: v5e:2x2
jax: 0.10.0
libtpu: 0.0.40
codegen_flags: <defaults>
</compile_context>

<pallas_src>
import numpy as np

import jax
import jax.numpy as jnp
from jax.experimental import pallas as pl
from jax.experimental.pallas import tpu as pltpu


# Constants implied by the module (fc1 = 16*16*32 => 32x32 input, 3->32 chans).
_C1 = 3           # conv1 in/out channels
_C = 32           # conv2/3/4 channels
_HO = 16          # spatial size after the stride-2 conv2
_HW = _HO * _HO   # 256 pixels per image on the 16x16 grid

# conv1 source-block selection: full-res offset o = p + k - 1 in {-1,0,1,2}
# maps to (16-grid shift d, parity plane q) = (o >> 1, o & 1).
_SEL = ((-1, 1), (0, 0), (0, 1), (1, 0))


def _blockernet_kernel(
    x_ref,      # (12, nb*256) f32  parity-plane input, rows = (qh, qw, cin)
    a_ref,      # (nb, A) f32
    w1_ref,     # (12, 48) bf16     conv1 effective weight
    b1_ref,     # (12, 1) f32       conv1 bias expanded over (ph, pw)
    w2_ref,     # (32, 12) bf16     conv2 weight, cols = (ci, kh, kw)
    b2_ref,     # (32, 1) f32
    w3_ref,     # (32, 288) bf16    conv3 weight, cols = (kh, kw, ci)
    b3_ref,     # (32, 1) f32
    w4_ref,     # (32, 288) bf16
    b4_ref,     # (32, 1) f32
    w1fc_hbm,   # ANY (8192, ISZ) bf16   fc1 weight, DMA'd manually
    b1fc_ref,   # (1, ISZ) f32
    w2fc_ref,   # (ISZ, HSZ) f32
    b2fc_ref,   # (1, HSZ) f32
    w3h_ref,    # (HSZ, HS2) f32    fc3 rows multiplying h
    w3a_ref,    # (A, HS2) f32      fc3 rows multiplying a
    b3fc_ref,   # (1, HS2) f32
    w4fc_ref,   # (HS2, 1) f32
    b4fc_ref,   # (1, 1) f32
    o_ref,      # (nb, 1) f32
    w1fc_vmem,  # scratch VMEM (8192, ISZ) bf16
    dma_sem):   # DMA semaphore (1,)
    nl = x_ref.shape[1]
    nb = a_ref.shape[0]

    # ---- kick off the fc1 weight DMA so it overlaps with the conv stack ---
    w1fc_copy = pltpu.make_async_copy(w1fc_hbm, w1fc_vmem, dma_sem.at[0])
    w1fc_copy.start()

    # ---- zero-pad boundary masks for 3x3/pad-1 taps on the 16x16 grid -----
    lane = jax.lax.broadcasted_iota(jnp.int32, (1, nl), 1)
    wo = lane & (_HO - 1)
    ho = (lane >> 4) & (_HO - 1)
    masks = {}
    for dh in (-1, 0, 1):
        for dw in (-1, 0, 1):
            if (dh, dw) == (0, 0):
                continue
            ok = ((ho >= -dh) & (ho <= _HO - 1 - dh) &
                  (wo >= -dw) & (wo <= _HO - 1 - dw))
            masks[(dh, dw)] = ok.astype(jnp.float32)

    def shift(v, dh, dw):
        # out[:, p(b,ho,wo)] = v[:, p(b,ho+dh,wo+dw)], zero outside the image.
        s = dh * _HO + dw
        if s != 0:
            v = pltpu.roll(v, (-s) % nl, axis=1)      # XLU lane rotate
        if (dh, dw) != (0, 0):
            v = v * masks[(dh, dw)]                   # f32 VPU mask (v5e-safe)
        return v

    # ---- conv1 (3x3, pad 1, 3->3) as ONE MXU matmul on the parity planes --
    blocks = []
    for dh, qh in _SEL:
        for dw, qw in _SEL:
            r0 = (qh * 2 + qw) * _C1
            blocks.append(shift(x_ref[r0:r0 + _C1, :], dh, dw))
    lhs1 = jnp.concatenate(blocks, axis=0).astype(jnp.bfloat16)      # (48, nl)
    y1 = jnp.dot(w1_ref[...], lhs1, preferred_element_type=jnp.float32)
    y1 = jnp.maximum(y1 + b1_ref[...], 0.0)                          # (12, nl)

    # ---- conv2 (2x2, stride 2, 3->32): one (32,12)@(12,nl) bf16 matmul ----
    y2 = jnp.dot(w2_ref[...], y1.astype(jnp.bfloat16),
                 preferred_element_type=jnp.float32)
    y2 = jnp.maximum(y2 + b2_ref[...], 0.0)                          # (32, nl)

    # ---- conv3 / conv4 (3x3, pad 1, 32->32): ONE K=288 bf16 matmul each ---
    def conv3x3(y, w_ref, b_ref):
        taps = [shift(y, t // 3 - 1, t % 3 - 1).astype(jnp.bfloat16)
                for t in range(9)]
        lhs = jnp.concatenate(taps, axis=0)                          # (288,nl)
        out = jnp.dot(w_ref[...], lhs, preferred_element_type=jnp.float32)
        return jnp.maximum(out + b_ref[...], 0.0)

    y3 = conv3x3(y2, w3_ref, b3_ref)
    y4 = conv3x3(y3, w4_ref, b4_ref)                                 # (32, nl)

    # ---- fc1: one lane->sublane repack + ONE (nb,8192)@(8192,ISZ) matmul --
    w1fc_copy.wait()
    chan_blocks = []
    for c in range(_C):
        rows = [y4[c:c + 1, b * _HW:(b + 1) * _HW] for b in range(nb)]
        chan_blocks.append(rows[0] if nb == 1
                           else jnp.concatenate(rows, axis=0))       # (nb,256)
    flat = jnp.concatenate(chan_blocks, axis=1).astype(jnp.bfloat16)  # (nb,8192)
    h = jnp.dot(flat, w1fc_vmem[...], preferred_element_type=jnp.float32)
    h = jnp.maximum(h + b1fc_ref[...], 0.0)                          # (nb, ISZ)

    # ---- fc2 / concat-free fc3 / fc4 + sigmoid (tiny M=nb, kept in f32) ---
    h = jnp.maximum(
        jnp.dot(h, w2fc_ref[...], preferred_element_type=jnp.float32)
        + b2fc_ref[...], 0.0)                                        # (nb, HSZ)
    z = (jnp.dot(h, w3h_ref[...], preferred_element_type=jnp.float32)
         + jnp.dot(a_ref[...], w3a_ref[...], preferred_element_type=jnp.float32)
         + b3fc_ref[...])
    z = jnp.maximum(z, 0.0)                                          # (nb, HS2)
    logits = (jnp.dot(z, w4fc_ref[...], preferred_element_type=jnp.float32)
              + b4fc_ref[...])                                       # (nb, 1)
    o_ref[...] = 1.0 / (1.0 + jnp.exp(-logits))


def _full(shape):
    n = len(shape)
    return pl.BlockSpec(shape, lambda *_: (0,) * n)


def blocker_net_forward(kp, x, a):
    nb = x.shape[0]
    nl = nb * _HW
    act = a.shape[1]
    isz = kp["f1b"].shape[1]
    hsz = kp["f2b"].shape[1]
    hs2 = kp["f3b"].shape[1]

    # Only XLA-side prep: NCHW -> stride-2 parity planes, channel-major, with
    # the 16x16 spatial flattened onto lanes (lane = b*256 + ho*16 + wo).
    xs2d = x.reshape(nb, _C1, _HO, 2, _HO, 2)
    xs2d = xs2d.transpose(3, 5, 1, 0, 2, 4).reshape(4 * _C1, nl)

    return pl.pallas_call(
        _blockernet_kernel,
        out_shape=jax.ShapeDtypeStruct((nb, 1), jnp.float32),
        grid=(1,),
        in_specs=[
            _full((4 * _C1, nl)),                      # x parity planes
            _full((nb, act)),                          # a
            _full((4 * _C1, 16 * _C1)),                # conv1 eff. w (bf16)
            _full((4 * _C1, 1)),                       # conv1 bias (expanded)
            _full((_C, 4 * _C1)),                      # conv2 w (bf16)
            _full((_C, 1)),                            # conv2 b
            _full((_C, 9 * _C)),                       # conv3 w (bf16)
            _full((_C, 1)),                            # conv3 b
            _full((_C, 9 * _C)),                       # conv4 w (bf16)
            _full((_C, 1)),                            # conv4 b
            pl.BlockSpec(memory_space=pl.ANY),         # fc1 w (bf16, HBM)
            _full((1, isz)),                           # fc1 b
            _full((isz, hsz)),                         # fc2 w
            _full((1, hsz)),                           # fc2 b
            _full((hsz, hs2)),                         # fc3 w (h rows)
            _full((act, hs2)),                         # fc3 w (a rows)
            _full((1, hs2)),                           # fc3 b
            _full((hs2, 1)),                           # fc4 w
            _full((1, 1)),                             # fc4 b
        ],
        out_specs=_full((nb, 1)),
        scratch_shapes=[
            pltpu.VMEM((_C * _HW, isz), jnp.bfloat16),   # fc1 weight landing
            pltpu.SemaphoreType.DMA((1,)),
        ],
        compiler_params=pltpu.CompilerParams(
            dimension_semantics=("arbitrary",),
            # Real footprint ~4 MiB (2 MiB fc1 weight + activations); 16 MiB
            # leaves compiler scratch headroom, well inside v7x's 64 MiB VMEM.
            vmem_limit_bytes=16 * 1024 * 1024,
        ),
    )(xs2d, a,
      kp["c1w"], kp["c1b"], kp["c2w"], kp["c2b"], kp["c3w"], kp["c3b"],
      kp["c4w"], kp["c4b"], kp["f1w"], kp["f1b"], kp["f2w"], kp["f2b"],
      kp["f3wh"], kp["f3wa"], kp["f3b"], kp["f4w"], kp["f4b"])


# ----------------------------------------------------------------------------
# Parameters (deterministic synthetic init, PyTorch-like uniform fan-in scale)
# ----------------------------------------------------------------------------
def init_params(key, intermediate_size, hidden_size, hidden_size2):
    ks = jax.random.split(key, 16)

    def u(k, shape, fan_in):
        bound = float(fan_in) ** -0.5
        return jax.random.uniform(k, shape, jnp.float32, -bound, bound)

    p = {}
    p["conv1_w"] = u(ks[0], (3, 3, 3, 3), 3 * 3 * 3)     # (Cout, Cin, KH, KW)
    p["conv1_b"] = u(ks[1], (3,), 3 * 3 * 3)
    p["conv2_w"] = u(ks[2], (32, 3, 2, 2), 2 * 2 * 3)
    p["conv2_b"] = u(ks[3], (32,), 2 * 2 * 3)
    p["conv3_w"] = u(ks[4], (32, 32, 3, 3), 3 * 3 * 32)
    p["conv3_b"] = u(ks[5], (32,), 3 * 3 * 32)
    p["conv4_w"] = u(ks[6], (32, 32, 3, 3), 3 * 3 * 32)
    p["conv4_b"] = u(ks[7], (32,), 3 * 3 * 32)
    p["fc1_w"] = u(ks[8], (16 * 16 * 32, intermediate_size), 16 * 16 * 32)
    p["fc1_b"] = u(ks[9], (intermediate_size,), 16 * 16 * 32)
    p["fc2_w"] = u(ks[10], (intermediate_size, hidden_size), intermediate_size)
    p["fc2_b"] = u(ks[11], (hidden_size,), intermediate_size)
    p["fc3_w"] = u(ks[12], (hidden_size2, hidden_size2), hidden_size2)
    p["fc3_b"] = u(ks[13], (hidden_size2,), hidden_size2)
    p["fc4_w"] = u(ks[14], (hidden_size2, 1), hidden_size2)
    p["fc4_b"] = u(ks[15], (1,), hidden_size2)
    return p


def pack_params(p, hidden_size):
    """Repack PyTorch-layout parameters into the kernel's layouts (one-time)."""
    isz = p["fc1_w"].shape[1]

    # conv1 as one MXU matmul: effective weight mapping the 16 (dh,qh)x(dw,qw)
    # shifted 3-channel source blocks (48 LHS rows) to the 12 (co,ph,pw) rows.
    w1 = np.asarray(p["conv1_w"], np.float32)            # (co, ci, kh, kw)
    w1eff = np.zeros((4 * _C1, 16 * _C1), np.float32)    # (12, 48)
    for co in range(_C1):
        for ph in range(2):
            for pw in range(2):
                r = co * 4 + ph * 2 + pw
                for kh in range(3):
                    for kw in range(3):
                        col_blk = (ph + kh) * 4 + (pw + kw)
                        for ci in range(_C1):
                            w1eff[r, col_blk * _C1 + ci] = w1[co, ci, kh, kw]
    b1e = np.repeat(np.asarray(p["conv1_b"], np.float32), 4).reshape(12, 1)

    def conv9(w):   # (32,32,3,3) -> (32, 288) bf16, cols ordered (kh, kw, ci)
        w = np.transpose(np.asarray(w, np.float32), (0, 2, 3, 1))
        return jnp.asarray(w.reshape(_C, 9 * _C), jnp.bfloat16)

    return {
        "c1w": jnp.asarray(w1eff, jnp.bfloat16),                      # (12,48)
        "c1b": jnp.asarray(b1e),                                      # (12,1)
        "c2w": p["conv2_w"].reshape(_C, 4 * _C1).astype(jnp.bfloat16),
        "c2b": p["conv2_b"].reshape(_C, 1),
        "c3w": conv9(p["conv3_w"]),
        "c3b": p["conv3_b"].reshape(_C, 1),
        "c4w": conv9(p["conv4_w"]),
        "c4b": p["conv4_b"].reshape(_C, 1),
        "f1w": p["fc1_w"].astype(jnp.bfloat16),                       # (8192,ISZ)
        "f1b": p["fc1_b"].reshape(1, -1),
        "f2w": p["fc2_w"],
        "f2b": p["fc2_b"].reshape(1, -1),
        "f3wh": p["fc3_w"][:hidden_size],
        "f3wa": p["fc3_w"][hidden_size:],
        "f3b": p["fc3_b"].reshape(1, -1),
        "f4w": p["fc4_w"],
        "f4b": p["fc4_b"].reshape(1, -1),
    }


def _reference_forward(p, x, a):
    """Pure-JAX f32 reference of BlockerNet.forward (for the tolerance test)."""
    def conv(v, w, b, stride, pad):
        y = jax.lax.conv_general_dilated(
            v, w, window_strides=(stride, stride),
            padding=[(pad, pad), (pad, pad)],
            dimension_numbers=("NCHW", "OIHW", "NCHW"))
        return y + b.reshape(1, -1, 1, 1)

    relu = lambda v: jnp.maximum(v, 0.0)
    out = relu(conv(x, p["conv1_w"], p["conv1_b"], 1, 1))
    out = relu(conv(out, p["conv2_w"], p["conv2_b"], 2, 0))
    out = relu(conv(out, p["conv3_w"], p["conv3_b"], 1, 1))
    out = relu(conv(out, p["conv4_w"], p["conv4_b"], 1, 1))
    out = out.reshape(out.shape[0], -1)
    out = relu(out @ p["fc1_w"] + p["fc1_b"])
    h = relu(out @ p["fc2_w"] + p["fc2_b"])
    z = relu(jnp.concatenate([h, a], axis=1) @ p["fc3_w"] + p["fc3_b"])
    logits = z @ p["fc4_w"] + p["fc4_b"]
    return jax.nn.sigmoid(logits)


if __name__ == "__main__":
    intermediate_size = 128
    hidden_size = 64
    action_dim = 64
    hidden_size2 = hidden_size + action_dim   # fc3 input = cat([h, a], 1)

    key = jax.random.PRNGKey(0)
    kx, ka, kparam = jax.random.split(key, 3)

    params = init_params(kparam, intermediate_size, hidden_size, hidden_size2)
    packed = pack_params(params, hidden_size)

    x = jax.random.normal(kx, (2, 3, 32, 32), jnp.float32)   # NCHW, like PyTorch
    a = jax.random.normal(ka, (2, action_dim), jnp.float32)

    out = jax.jit(blocker_net_forward)(packed, x, a)
    out = jax.block_until_ready(out)
    assert out.shape == (2, 1)
    assert bool(jnp.all(jnp.isfinite(out)))
    assert bool(jnp.all((out >= 0.0) & (out <= 1.0)))        # sigmoid range

    # Tolerance test vs. the pure-JAX f32 reference (bf16 MXU operands keep
    # the sigmoid outputs within a comfortable margin of this bound).
    ref = _reference_forward(params, x, a)
    assert float(jnp.max(jnp.abs(out - ref))) < 5e-2

    print("KERNEL_OK")
</pallas_src>

<mosaic_0001>
module attributes {stable_mosaic.version = 11 : i64} {
  func.func @_blockernet_kernel(%arg0: i32, %arg1: memref<12x512xf32, #tpu.memory_space<vmem>>, %arg2: memref<2x64xf32, #tpu.memory_space<vmem>>, %arg3: memref<12x48xbf16, #tpu.memory_space<vmem>>, %arg4: memref<12x1xf32, #tpu.memory_space<vmem>>, %arg5: memref<32x12xbf16, #tpu.memory_space<vmem>>, %arg6: memref<32x1xf32, #tpu.memory_space<vmem>>, %arg7: memref<32x288xbf16, #tpu.memory_space<vmem>>, %arg8: memref<32x1xf32, #tpu.memory_space<vmem>>, %arg9: memref<32x288xbf16, #tpu.memory_space<vmem>>, %arg10: memref<32x1xf32, #tpu.memory_space<vmem>>, %arg11: memref<8192x128xbf16, #tpu.memory_space<any>>, %arg12: memref<1x128xf32, #tpu.memory_space<vmem>>, %arg13: memref<128x64xf32, #tpu.memory_space<vmem>>, %arg14: memref<1x64xf32, #tpu.memory_space<vmem>>, %arg15: memref<64x128xf32, #tpu.memory_space<vmem>>, %arg16: memref<64x128xf32, #tpu.memory_space<vmem>>, %arg17: memref<1x128xf32, #tpu.memory_space<vmem>>, %arg18: memref<128x1xf32, #tpu.memory_space<vmem>>, %arg19: memref<1x1xf32, #tpu.memory_space<vmem>>, %arg20: memref<2x1xf32, #tpu.memory_space<vmem>>, %arg21: memref<8192x128xbf16, #tpu.memory_space<vmem>>, %arg22: memref<1x!tpu.dma_semaphore, #tpu.memory_space<semaphore_mem>>) attributes {dimension_semantics = [#tpu.dimension_semantics<arbitrary>], iteration_bounds = array<i64: 1>, scalar_prefetch = 0 : i64, scratch_operands = 2 : i64, tpu.core_type = #tpu.core_type<tc>, window_params = [{pipeline_mode = #tpu.pipeline_mode<synchronous>, transform_indices = @transform_0, window_bounds = array<i64: 12, 512>}, {pipeline_mode = #tpu.pipeline_mode<synchronous>, transform_indices = @transform_1, window_bounds = array<i64: 2, 64>}, {pipeline_mode = #tpu.pipeline_mode<synchronous>, transform_indices = @transform_2, window_bounds = array<i64: 12, 48>}, {pipeline_mode = #tpu.pipeline_mode<synchronous>, transform_indices = @transform_3, window_bounds = array<i64: 12, 1>}, {pipeline_mode = #tpu.pipeline_mode<synchronous>, transform_indices = @transform_4, window_bounds = array<i64: 32, 12>}, {pipeline_mode = #tpu.pipeline_mode<synchronous>, transform_indices = @transform_5, window_bounds = array<i64: 32, 1>}, {pipeline_mode = #tpu.pipeline_mode<synchronous>, transform_indices = @transform_6, window_bounds = array<i64: 32, 288>}, {pipeline_mode = #tpu.pipeline_mode<synchronous>, transform_indices = @transform_7, window_bounds = array<i64: 32, 1>}, {pipeline_mode = #tpu.pipeline_mode<synchronous>, transform_indices = @transform_8, window_bounds = array<i64: 32, 288>}, {pipeline_mode = #tpu.pipeline_mode<synchronous>, transform_indices = @transform_9, window_bounds = array<i64: 32, 1>}, {}, {pipeline_mode = #tpu.pipeline_mode<synchronous>, transform_indices = @transform_11, window_bounds = array<i64: 1, 128>}, {pipeline_mode = #tpu.pipeline_mode<synchronous>, transform_indices = @transform_12, window_bounds = array<i64: 128, 64>}, {pipeline_mode = #tpu.pipeline_mode<synchronous>, transform_indices = @transform_13, window_bounds = array<i64: 1, 64>}, {pipeline_mode = #tpu.pipeline_mode<synchronous>, transform_indices = @transform_14, window_bounds = array<i64: 64, 128>}, {pipeline_mode = #tpu.pipeline_mode<synchronous>, transform_indices = @transform_15, window_bounds = array<i64: 64, 128>}, {pipeline_mode = #tpu.pipeline_mode<synchronous>, transform_indices = @transform_16, window_bounds = array<i64: 1, 128>}, {pipeline_mode = #tpu.pipeline_mode<synchronous>, transform_indices = @transform_17, window_bounds = array<i64: 128, 1>}, {pipeline_mode = #tpu.pipeline_mode<synchronous>, transform_indices = @transform_18, window_bounds = array<i64: 1, 1>}, {pipeline_mode = #tpu.pipeline_mode<synchronous>, transform_indices = @transform_19, window_bounds = array<i64: 2, 1>}]} {
    %c0_i32 = arith.constant 0 : i32
    %0 = tpu.memref_slice %arg22[%c0_i32] : memref<1x!tpu.dma_semaphore, #tpu.memory_space<semaphore_mem>> -> memref<1x!tpu.dma_semaphore, #tpu.memory_space<semaphore_mem>>
    %1 = tpu.memref_squeeze %0 : memref<1x!tpu.dma_semaphore, #tpu.memory_space<semaphore_mem>> -> memref<!tpu.dma_semaphore, #tpu.memory_space<semaphore_mem>>
    tpu.enqueue_dma source(%arg11 : memref<8192x128xbf16, #tpu.memory_space<any>>) target(%arg21 : memref<8192x128xbf16, #tpu.memory_space<vmem>>) target_semaphore(%1 : memref<!tpu.dma_semaphore, #tpu.memory_space<semaphore_mem>>)
    %2 = tpu.iota {dimensions = array<i32: 1>} : vector<1x512xi32>
    %c15_i32 = arith.constant 15 : i32
    %3 = vector.broadcast %c15_i32 : i32 to vector<1x512xi32>
    %4 = arith.andi %2, %3 : vector<1x512xi32>
    %c4_i32 = arith.constant 4 : i32
    %5 = vector.broadcast %c4_i32 : i32 to vector<1x512xi32>
    %6 = arith.shrsi %2, %5 : vector<1x512xi32>
    %c15_i32_0 = arith.constant 15 : i32
    %7 = vector.broadcast %c15_i32_0 : i32 to vector<1x512xi32>
    %8 = arith.andi %6, %7 : vector<1x512xi32>
    %c1_i32 = arith.constant 1 : i32
    %9 = vector.broadcast %c1_i32 : i32 to vector<1x512xi32>
    %10 = arith.cmpi sge, %8, %9 : vector<1x512xi32>
    %c16_i32 = arith.constant 16 : i32
    %11 = vector.broadcast %c16_i32 : i32 to vector<1x512xi32>
    %12 = arith.cmpi sle, %8, %11 : vector<1x512xi32>
    %13 = arith.andi %10, %12 : vector<1x512xi1>
    %c1_i32_1 = arith.constant 1 : i32
    %14 = vector.broadcast %c1_i32_1 : i32 to vector<1x512xi32>
    %15 = arith.cmpi sge, %4, %14 : vector<1x512xi32>
    %16 = arith.andi %13, %15 : vector<1x512xi1>
    %c16_i32_2 = arith.constant 16 : i32
    %17 = vector.broadcast %c16_i32_2 : i32 to vector<1x512xi32>
    %18 = arith.cmpi sle, %4, %17 : vector<1x512xi32>
    %19 = arith.andi %16, %18 : vector<1x512xi1>
    %20 = arith.extui %19 : vector<1x512xi1> to vector<1x512xi32>
    %21 = arith.sitofp %20 : vector<1x512xi32> to vector<1x512xf32>
    %c1_i32_3 = arith.constant 1 : i32
    %22 = vector.broadcast %c1_i32_3 : i32 to vector<1x512xi32>
    %23 = arith.cmpi sge, %8, %22 : vector<1x512xi32>
    %c16_i32_4 = arith.constant 16 : i32
    %24 = vector.broadcast %c16_i32_4 : i32 to vector<1x512xi32>
    %25 = arith.cmpi sle, %8, %24 : vector<1x512xi32>
    %26 = arith.andi %23, %25 : vector<1x512xi1>
    %c0_i32_5 = arith.constant 0 : i32
    %27 = vector.broadcast %c0_i32_5 : i32 to vector<1x512xi32>
    %28 = arith.cmpi sge, %4, %27 : vector<1x512xi32>
    %29 = arith.andi %26, %28 : vector<1x512xi1>
    %c15_i32_6 = arith.constant 15 : i32
    %30 = vector.broadcast %c15_i32_6 : i32 to vector<1x512xi32>
    %31 = arith.cmpi sle, %4, %30 : vector<1x512xi32>
    %32 = arith.andi %29, %31 : vector<1x512xi1>
    %33 = arith.extui %32 : vector<1x512xi1> to vector<1x512xi32>
    %34 = arith.sitofp %33 : vector<1x512xi32> to vector<1x512xf32>
    %c1_i32_7 = arith.constant 1 : i32
    %35 = vector.broadcast %c1_i32_7 : i32 to vector<1x512xi32>
    %36 = arith.cmpi sge, %8, %35 : vector<1x512xi32>
    %c16_i32_8 = arith.constant 16 : i32
    %37 = vector.broadcast %c16_i32_8 : i32 to vector<1x512xi32>
    %38 = arith.cmpi sle, %8, %37 : vector<1x512xi32>
    %39 = arith.andi %36, %38 : vector<1x512xi1>
    %c-1_i32 = arith.constant -1 : i32
    %40 = vector.broadcast %c-1_i32 : i32 to vector<1x512xi32>
    %41 = arith.cmpi sge, %4, %40 : vector<1x512xi32>
    %42 = arith.andi %39, %41 : vector<1x512xi1>
    %c14_i32 = arith.constant 14 : i32
    %43 = vector.broadcast %c14_i32 : i32 to vector<1x512xi32>
    %44 = arith.cmpi sle, %4, %43 : vector<1x512xi32>
    %45 = arith.andi %42, %44 : vector<1x512xi1>
    %46 = arith.extui %45 : vector<1x512xi1> to vector<1x512xi32>
    %47 = arith.sitofp %46 : vector<1x512xi32> to vector<1x512xf32>
    %c0_i32_9 = arith.constant 0 : i32
    %48 = vector.broadcast %c0_i32_9 : i32 to vector<1x512xi32>
    %49 = arith.cmpi sge, %8, %48 : vector<1x512xi32>
    %c15_i32_10 = arith.constant 15 : i32
    %50 = vector.broadcast %c15_i32_10 : i32 to vector<1x512xi32>
    %51 = arith.cmpi sle, %8, %50 : vector<1x512xi32>
    %52 = arith.andi %49, %51 : vector<1x512xi1>
    %c1_i32_11 = arith.constant 1 : i32
    %53 = vector.broadcast %c1_i32_11 : i32 to vector<1x512xi32>
    %54 = arith.cmpi sge, %4, %53 : vector<1x512xi32>
    %55 = arith.andi %52, %54 : vector<1x512xi1>
    %c16_i32_12 = arith.constant 16 : i32
    %56 = vector.broadcast %c16_i32_12 : i32 to vector<1x512xi32>
    %57 = arith.cmpi sle, %4, %56 : vector<1x512xi32>
    %58 = arith.andi %55, %57 : vector<1x512xi1>
    %59 = arith.extui %58 : vector<1x512xi1> to vector<1x512xi32>
    %60 = arith.sitofp %59 : vector<1x512xi32> to vector<1x512xf32>
    %c0_i32_13 = arith.constant 0 : i32
    %61 = vector.broadcast %c0_i32_13 : i32 to vector<1x512xi32>
    %62 = arith.cmpi sge, %8, %61 : vector<1x512xi32>
    %c15_i32_14 = arith.constant 15 : i32
    %63 = vector.broadcast %c15_i32_14 : i32 to vector<1x512xi32>
    %64 = arith.cmpi sle, %8, %63 : vector<1x512xi32>
    %65 = arith.andi %62, %64 : vector<1x512xi1>
    %c-1_i32_15 = arith.constant -1 : i32
    %66 = vector.broadcast %c-1_i32_15 : i32 to vector<1x512xi32>
    %67 = arith.cmpi sge, %4, %66 : vector<1x512xi32>
    %68 = arith.andi %65, %67 : vector<1x512xi1>
    %c14_i32_16 = arith.constant 14 : i32
    %69 = vector.broadcast %c14_i32_16 : i32 to vector<1x512xi32>
    %70 = arith.cmpi sle, %4, %69 : vector<1x512xi32>
    %71 = arith.andi %68, %70 : vector<1x512xi1>
    %72 = arith.extui %71 : vector<1x512xi1> to vector<1x512xi32>
    %73 = arith.sitofp %72 : vector<1x512xi32> to vector<1x512xf32>
    %c-1_i32_17 = arith.constant -1 : i32
    %74 = vector.broadcast %c-1_i32_17 : i32 to vector<1x512xi32>
    %75 = arith.cmpi sge, %8, %74 : vector<1x512xi32>
    %c14_i32_18 = arith.constant 14 : i32
    %76 = vector.broadcast %c14_i32_18 : i32 to vector<1x512xi32>
    %77 = arith.cmpi sle, %8, %76 : vector<1x512xi32>
    %78 = arith.andi %75, %77 : vector<1x512xi1>
    %c1_i32_19 = arith.constant 1 : i32
    %79 = vector.broadcast %c1_i32_19 : i32 to vector<1x512xi32>
    %80 = arith.cmpi sge, %4, %79 : vector<1x512xi32>
    %81 = arith.andi %78, %80 : vector<1x512xi1>
    %c16_i32_20 = arith.constant 16 : i32
    %82 = vector.broadcast %c16_i32_20 : i32 to vector<1x512xi32>
    %83 = arith.cmpi sle, %4, %82 : vector<1x512xi32>
    %84 = arith.andi %81, %83 : vector<1x512xi1>
    %85 = arith.extui %84 : vector<1x512xi1> to vector<1x512xi32>
    %86 = arith.sitofp %85 : vector<1x512xi32> to vector<1x512xf32>
    %c-1_i32_21 = arith.constant -1 : i32
    %87 = vector.broadcast %c-1_i32_21 : i32 to vector<1x512xi32>
    %88 = arith.cmpi sge, %8, %87 : vector<1x512xi32>
    %c14_i32_22 = arith.constant 14 : i32
    %89 = vector.broadcast %c14_i32_22 : i32 to vector<1x512xi32>
    %90 = arith.cmpi sle, %8, %89 : vector<1x512xi32>
    %91 = arith.andi %88, %90 : vector<1x512xi1>
    %c0_i32_23 = arith.constant 0 : i32
    %92 = vector.broadcast %c0_i32_23 : i32 to vector<1x512xi32>
    %93 = arith.cmpi sge, %4, %92 : vector<1x512xi32>
    %94 = arith.andi %91, %93 : vector<1x512xi1>
    %c15_i32_24 = arith.constant 15 : i32
    %95 = vector.broadcast %c15_i32_24 : i32 to vector<1x512xi32>
    %96 = arith.cmpi sle, %4, %95 : vector<1x512xi32>
    %97 = arith.andi %94, %96 : vector<1x512xi1>
    %98 = arith.extui %97 : vector<1x512xi1> to vector<1x512xi32>
    %99 = arith.sitofp %98 : vector<1x512xi32> to vector<1x512xf32>
    %c-1_i32_25 = arith.constant -1 : i32
    %100 = vector.broadcast %c-1_i32_25 : i32 to vector<1x512xi32>
    %101 = arith.cmpi sge, %8, %100 : vector<1x512xi32>
    %c14_i32_26 = arith.constant 14 : i32
    %102 = vector.broadcast %c14_i32_26 : i32 to vector<1x512xi32>
    %103 = arith.cmpi sle, %8, %102 : vector<1x512xi32>
    %104 = arith.andi %101, %103 : vector<1x512xi1>
    %c-1_i32_27 = arith.constant -1 : i32
    %105 = vector.broadcast %c-1_i32_27 : i32 to vector<1x512xi32>
    %106 = arith.cmpi sge, %4, %105 : vector<1x512xi32>
    %107 = arith.andi %104, %106 : vector<1x512xi1>
    %c14_i32_28 = arith.constant 14 : i32
    %108 = vector.broadcast %c14_i32_28 : i32 to vector<1x512xi32>
    %109 = arith.cmpi sle, %4, %108 : vector<1x512xi32>
    %110 = arith.andi %107, %109 : vector<1x512xi1>
    %111 = arith.extui %110 : vector<1x512xi1> to vector<1x512xi32>
    %112 = arith.sitofp %111 : vector<1x512xi32> to vector<1x512xf32>
    %c9 = arith.constant 9 : index
    %c0 = arith.constant 0 : index
    %113 = vector.load %arg1[%c9, %c0] : memref<12x512xf32, #tpu.memory_space<vmem>>, vector<3x512xf32>
    %c17_i32 = arith.constant 17 : i32
    %114 = tpu.dynamic_rotate %113 by %c17_i32 dim 1 : vector<3x512xf32>, i32 -> vector<3x512xf32>
    %115 = vector.broadcast %21 : vector<1x512xf32> to vector<3x512xf32>
    %116 = arith.mulf %114, %115 : vector<3x512xf32>
    %c6 = arith.constant 6 : index
    %c0_29 = arith.constant 0 : index
    %117 = vector.load %arg1[%c6, %c0_29] : memref<12x512xf32, #tpu.memory_space<vmem>>, vector<3x512xf32>
    %c16_i32_30 = arith.constant 16 : i32
    %118 = tpu.dynamic_rotate %117 by %c16_i32_30 dim 1 : vector<3x512xf32>, i32 -> vector<3x512xf32>
    %119 = vector.broadcast %34 : vector<1x512xf32> to vector<3x512xf32>
    %120 = arith.mulf %118, %119 : vector<3x512xf32>
    %c9_31 = arith.constant 9 : index
    %c0_32 = arith.constant 0 : index
    %121 = vector.load %arg1[%c9_31, %c0_32] : memref<12x512xf32, #tpu.memory_space<vmem>>, vector<3x512xf32>
    %c16_i32_33 = arith.constant 16 : i32
    %122 = tpu.dynamic_rotate %121 by %c16_i32_33 dim 1 : vector<3x512xf32>, i32 -> vector<3x512xf32>
    %123 = vector.broadcast %34 : vector<1x512xf32> to vector<3x512xf32>
    %124 = arith.mulf %122, %123 : vector<3x512xf32>
    %c6_34 = arith.constant 6 : index
    %c0_35 = arith.constant 0 : index
    %125 = vector.load %arg1[%c6_34, %c0_35] : memref<12x512xf32, #tpu.memory_space<vmem>>, vector<3x512xf32>
    %c15_i32_36 = arith.constant 15 : i32
    %126 = tpu.dynamic_rotate %125 by %c15_i32_36 dim 1 : vector<3x512xf32>, i32 -> vector<3x512xf32>
    %127 = vector.broadcast %47 : vector<1x512xf32> to vector<3x512xf32>
    %128 = arith.mulf %126, %127 : vector<3x512xf32>
    %c3 = arith.constant 3 : index
    %c0_37 = arith.constant 0 : index
    %129 = vector.load %arg1[%c3, %c0_37] : memref<12x512xf32, #tpu.memory_space<vmem>>, vector<3x512xf32>
    %c1_i32_38 = arith.constant 1 : i32
    %130 = tpu.dynamic_rotate %129 by %c1_i32_38 dim 1 : vector<3x512xf32>, i32 -> vector<3x512xf32>
    %131 = vector.broadcast %60 : vector<1x512xf32> to vector<3x512xf32>
    %132 = arith.mulf %130, %131 : vector<3x512xf32>
    %c0_39 = arith.constant 0 : index
    %c0_40 = arith.constant 0 : index
    %133 = vector.load %arg1[%c0_39, %c0_40] : memref<12x512xf32, #tpu.memory_space<vmem>>, vector<3x512xf32>
    %c3_41 = arith.constant 3 : index
    %c0_42 = arith.constant 0 : index
    %134 = vector.load %arg1[%c3_41, %c0_42] : memref<12x512xf32, #tpu.memory_space<vmem>>, vector<3x512xf32>
    %c0_43 = arith.constant 0 : index
    %c0_44 = arith.constant 0 : index
    %135 = vector.load %arg1[%c0_43, %c0_44] : memref<12x512xf32, #tpu.memory_space<vmem>>, vector<3x512xf32>
    %c511_i32 = arith.constant 511 : i32
    %136 = tpu.dynamic_rotate %135 by %c511_i32 dim 1 : vector<3x512xf32>, i32 -> vector<3x512xf32>
    %137 = vector.broadcast %73 : vector<1x512xf32> to vector<3x512xf32>
    %138 = arith.mulf %136, %137 : vector<3x512xf32>
    %c9_45 = arith.constant 9 : index
    %c0_46 = arith.constant 0 : index
    %139 = vector.load %arg1[%c9_45, %c0_46] : memref<12x512xf32, #tpu.memory_space<vmem>>, vector<3x512xf32>
    %c1_i32_47 = arith.constant 1 : i32
    %140 = tpu.dynamic_rotate %139 by %c1_i32_47 dim 1 : vector<3x512xf32>, i32 -> vector<3x512xf32>
    %141 = vector.broadcast %60 : vector<1x512xf32> to vector<3x512xf32>
    %142 = arith.mulf %140, %141 : vector<3x512xf32>
    %c6_48 = arith.constant 6 : index
    %c0_49 = arith.constant 0 : index
    %143 = vector.load %arg1[%c6_48, %c0_49] : memref<12x512xf32, #tpu.memory_space<vmem>>, vector<3x512xf32>
    %c9_50 = arith.constant 9 : index
    %c0_51 = arith.constant 0 : index
    %144 = vector.load %arg1[%c9_50, %c0_51] : memref<12x512xf32, #tpu.memory_space<vmem>>, vector<3x512xf32>
    %c6_52 = arith.constant 6 : index
    %c0_53 = arith.constant 0 : index
    %145 = vector.load %arg1[%c6_52, %c0_53] : memref<12x512xf32, #tpu.memory_space<vmem>>, vector<3x512xf32>
    %c511_i32_54 = arith.constant 511 : i32
    %146 = tpu.dynamic_rotate %145 by %c511_i32_54 dim 1 : vector<3x512xf32>, i32 -> vector<3x512xf32>
    %147 = vector.broadcast %73 : vector<1x512xf32> to vector<3x512xf32>
    %148 = arith.mulf %146, %147 : vector<3x512xf32>
    %c3_55 = arith.constant 3 : index
    %c0_56 = arith.constant 0 : index
    %149 = vector.load %arg1[%c3_55, %c0_56] : memref<12x512xf32, #tpu.memory_space<vmem>>, vector<3x512xf32>
    %c497_i32 = arith.constant 497 : i32
    %150 = tpu.dynamic_rotate %149 by %c497_i32 dim 1 : vector<3x512xf32>, i32 -> vector<3x512xf32>
    %151 = vector.broadcast %86 : vector<1x512xf32> to vector<3x512xf32>
    %152 = arith.mulf %150, %151 : vector<3x512xf32>
    %c0_57 = arith.constant 0 : index
    %c0_58 = arith.constant 0 : index
    %153 = vector.load %arg1[%c0_57, %c0_58] : memref<12x512xf32, #tpu.memory_space<vmem>>, vector<3x512xf32>
    %c496_i32 = arith.constant 496 : i32
    %154 = tpu.dynamic_rotate %153 by %c496_i32 dim 1 : vector<3x512xf32>, i32 -> vector<3x512xf32>
    %155 = vector.broadcast %99 : vector<1x512xf32> to vector<3x512xf32>
    %156 = arith.mulf %154, %155 : vector<3x512xf32>
    %c3_59 = arith.constant 3 : index
    %c0_60 = arith.constant 0 : index
    %157 = vector.load %arg1[%c3_59, %c0_60] : memref<12x512xf32, #tpu.memory_space<vmem>>, vector<3x512xf32>
    %c496_i32_61 = arith.constant 496 : i32
    %158 = tpu.dynamic_rotate %157 by %c496_i32_61 dim 1 : vector<3x512xf32>, i32 -> vector<3x512xf32>
    %159 = vector.broadcast %99 : vector<1x512xf32> to vector<3x512xf32>
    %160 = arith.mulf %158, %159 : vector<3x512xf32>
    %c0_62 = arith.constant 0 : index
    %c0_63 = arith.constant 0 : index
    %161 = vector.load %arg1[%c0_62, %c0_63] : memref<12x512xf32, #tpu.memory_space<vmem>>, vector<3x512xf32>
    %c495_i32 = arith.constant 495 : i32
    %162 = tpu.dynamic_rotate %161 by %c495_i32 dim 1 : vector<3x512xf32>, i32 -> vector<3x512xf32>
    %163 = vector.broadcast %112 : vector<1x512xf32> to vector<3x512xf32>
    %164 = arith.mulf %162, %163 : vector<3x512xf32>
    %165 = tpu.concatenate %116, %120, %124, %128, %132, %133, %134, %138, %142, %143, %144, %148, %152, %156, %160, %164 in 0 : vector<3x512xf32>, vector<3x512xf32>, vector<3x512xf32>, vector<3x512xf32>, vector<3x512xf32>, vector<3x512xf32>, vector<3x512xf32>, vector<3x512xf32>, vector<3x512xf32>, vector<3x512xf32>, vector<3x512xf32>, vector<3x512xf32>, vector<3x512xf32>, vector<3x512xf32>, vector<3x512xf32>, vector<3x512xf32> -> vector<48x512xf32>
    %166 = arith.truncf %165 : vector<48x512xf32> to vector<48x512xbf16>
    %c0_64 = arith.constant 0 : index
    %c0_65 = arith.constant 0 : index
    %167 = vector.load %arg3[%c0_64, %c0_65] : memref<12x48xbf16, #tpu.memory_space<vmem>>, vector<12x48xbf16>
    %cst = arith.constant dense<0.000000e+00> : vector<12x512xf32>
    %168 = tpu.matmul %167, %166, %cst {dimension_numbers = #tpu.dot_dimension_numbers<[1], [0], [0], [1], [0, 0, 1, 1], [], []>} : vector<12x48xbf16>, vector<48x512xbf16>, vector<12x512xf32> -> vector<12x512xf32>
    %c0_66 = arith.constant 0 : index
    %c0_67 = arith.constant 0 : index
    %169 = vector.load %arg4[%c0_66, %c0_67] : memref<12x1xf32, #tpu.memory_space<vmem>>, vector<12x1xf32>
    %170 = vector.broadcast %169 : vector<12x1xf32> to vector<12x512xf32>
    %171 = arith.addf %168, %170 : vector<12x512xf32>
    %cst_68 = arith.constant 0.000000e+00 : f32
    %172 = vector.broadcast %cst_68 : f32 to vector<12x512xf32>
    %173 = arith.maximumf %171, %172 : vector<12x512xf32>
    %c0_69 = arith.constant 0 : index
    %c0_70 = arith.constant 0 : index
    %174 = vector.load %arg5[%c0_69, %c0_70] : memref<32x12xbf16, #tpu.memory_space<vmem>>, vector<32x12xbf16>
    %175 = arith.truncf %173 : vector<12x512xf32> to vector<12x512xbf16>
    %cst_71 = arith.constant dense<0.000000e+00> : vector<32x512xf32>
    %176 = tpu.matmul %174, %175, %cst_71 {dimension_numbers = #tpu.dot_dimension_numbers<[1], [0], [0], [1], [0, 0, 1, 1], [], []>} : vector<32x12xbf16>, vector<12x512xbf16>, vector<32x512xf32> -> vector<32x512xf32>
    %c0_72 = arith.constant 0 : index
    %c0_73 = arith.constant 0 : index
    %177 = vector.load %arg6[%c0_72, %c0_73] : memref<32x1xf32, #tpu.memory_space<vmem>>, vector<32x1xf32>
    %178 = vector.broadcast %177 : vector<32x1xf32> to vector<32x512xf32>
    %179 = arith.addf %176, %178 : vector<32x512xf32>
    %cst_74 = arith.constant 0.000000e+00 : f32
    %180 = vector.broadcast %cst_74 : f32 to vector<32x512xf32>
    %181 = arith.maximumf %179, %180 : vector<32x512xf32>
    %c17_i32_75 = arith.constant 17 : i32
    %182 = tpu.dynamic_rotate %181 by %c17_i32_75 dim 1 : vector<32x512xf32>, i32 -> vector<32x512xf32>
    %183 = vector.broadcast %21 : vector<1x512xf32> to vector<32x512xf32>
    %184 = arith.mulf %182, %183 : vector<32x512xf32>
    %185 = arith.truncf %184 : vector<32x512xf32> to vector<32x512xbf16>
    %c16_i32_76 = arith.constant 16 : i32
    %186 = tpu.dynamic_rotate %181 by %c16_i32_76 dim 1 : vector<32x512xf32>, i32 -> vector<32x512xf32>
    %187 = vector.broadcast %34 : vector<1x512xf32> to vector<32x512xf32>
    %188 = arith.mulf %186, %187 : vector<32x512xf32>
    %189 = arith.truncf %188 : vector<32x512xf32> to vector<32x512xbf16>
    %c15_i32_77 = arith.constant 15 : i32
    %190 = tpu.dynamic_rotate %181 by %c15_i32_77 dim 1 : vector<32x512xf32>, i32 -> vector<32x512xf32>
    %191 = vector.broadcast %47 : vector<1x512xf32> to vector<32x512xf32>
    %192 = arith.mulf %190, %191 : vector<32x512xf32>
    %193 = arith.truncf %192 : vector<32x512xf32> to vector<32x512xbf16>
    %c1_i32_78 = arith.constant 1 : i32
    %194 = tpu.dynamic_rotate %181 by %c1_i32_78 dim 1 : vector<32x512xf32>, i32 -> vector<32x512xf32>
    %195 = vector.broadcast %60 : vector<1x512xf32> to vector<32x512xf32>
    %196 = arith.mulf %194, %195 : vector<32x512xf32>
    %197 = arith.truncf %196 : vector<32x512xf32> to vector<32x512xbf16>
    %198 = arith.truncf %181 : vector<32x512xf32> to vector<32x512xbf16>
    %c511_i32_79 = arith.constant 511 : i32
    %199 = tpu.dynamic_rotate %181 by %c511_i32_79 dim 1 : vector<32x512xf32>, i32 -> vector<32x512xf32>
    %200 = vector.broadcast %73 : vector<1x512xf32> to vector<32x512xf32>
    %201 = arith.mulf %199, %200 : vector<32x512xf32>
    %202 = arith.truncf %201 : vector<32x512xf32> to vector<32x512xbf16>
    %c497_i32_80 = arith.constant 497 : i32
    %203 = tpu.dynamic_rotate %181 by %c497_i32_80 dim 1 : vector<32x512xf32>, i32 -> vector<32x512xf32>
    %204 = vector.broadcast %86 : vector<1x512xf32> to vector<32x512xf32>
    %205 = arith.mulf %203, %204 : vector<32x512xf32>
    %206 = arith.truncf %205 : vector<32x512xf32> to vector<32x512xbf16>
    %c496_i32_81 = arith.constant 496 : i32
    %207 = tpu.dynamic_rotate %181 by %c496_i32_81 dim 1 : vector<32x512xf32>, i32 -> vector<32x512xf32>
    %208 = vector.broadcast %99 : vector<1x512xf32> to vector<32x512xf32>
    %209 = arith.mulf %207, %208 : vector<32x512xf32>
    %210 = arith.truncf %209 : vector<32x512xf32> to vector<32x512xbf16>
    %c495_i32_82 = arith.constant 495 : i32
    %211 = tpu.dynamic_rotate %181 by %c495_i32_82 dim 1 : vector<32x512xf32>, i32 -> vector<32x512xf32>
    %212 = vector.broadcast %112 : vector<1x512xf32> to vector<32x512xf32>
    %213 = arith.mulf %211, %212 : vector<32x512xf32>
    %214 = arith.truncf %213 : vector<32x512xf32> to vector<32x512xbf16>
    %215 = tpu.concatenate %185, %189, %193, %197, %198, %202, %206, %210, %214 in 0 : vector<32x512xbf16>, vector<32x512xbf16>, vector<32x512xbf16>, vector<32x512xbf16>, vector<32x512xbf16>, vector<32x512xbf16>, vector<32x512xbf16>, vector<32x512xbf16>, vector<32x512xbf16> -> vector<288x512xbf16>
    %c0_83 = arith.constant 0 : index
    %c0_84 = arith.constant 0 : index
    %216 = vector.load %arg7[%c0_83, %c0_84] : memref<32x288xbf16, #tpu.memory_space<vmem>>, vector<32x288xbf16>
    %cst_85 = arith.constant dense<0.000000e+00> : vector<32x512xf32>
    %217 = tpu.matmul %216, %215, %cst_85 {dimension_numbers = #tpu.dot_dimension_numbers<[1], [0], [0], [1], [0, 0, 1, 1], [], []>} : vector<32x288xbf16>, vector<288x512xbf16>, vector<32x512xf32> -> vector<32x512xf32>
    %c0_86 = arith.constant 0 : index
    %c0_87 = arith.constant 0 : index
    %218 = vector.load %arg8[%c0_86, %c0_87] : memref<32x1xf32, #tpu.memory_space<vmem>>, vector<32x1xf32>
    %219 = vector.broadcast %218 : vector<32x1xf32> to vector<32x512xf32>
    %220 = arith.addf %217, %219 : vector<32x512xf32>
    %cst_88 = arith.constant 0.000000e+00 : f32
    %221 = vector.broadcast %cst_88 : f32 to vector<32x512xf32>
    %222 = arith.maximumf %220, %221 : vector<32x512xf32>
    %c17_i32_89 = arith.constant 17 : i32
    %223 = tpu.dynamic_rotate %222 by %c17_i32_89 dim 1 : vector<32x512xf32>, i32 -> vector<32x512xf32>
    %224 = vector.broadcast %21 : vector<1x512xf32> to vector<32x512xf32>
    %225 = arith.mulf %223, %224 : vector<32x512xf32>
    %226 = arith.truncf %225 : vector<32x512xf32> to vector<32x512xbf16>
    %c16_i32_90 = arith.constant 16 : i32
    %227 = tpu.dynamic_rotate %222 by %c16_i32_90 dim 1 : vector<32x512xf32>, i32 -> vector<32x512xf32>
    %228 = vector.broadcast %34 : vector<1x512xf32> to vector<32x512xf32>
    %229 = arith.mulf %227, %228 : vector<32x512xf32>
    %230 = arith.truncf %229 : vector<32x512xf32> to vector<32x512xbf16>
    %c15_i32_91 = arith.constant 15 : i32
    %231 = tpu.dynamic_rotate %222 by %c15_i32_91 dim 1 : vector<32x512xf32>, i32 -> vector<32x512xf32>
    %232 = vector.broadcast %47 : vector<1x512xf32> to vector<32x512xf32>
    %233 = arith.mulf %231, %232 : vector<32x512xf32>
    %234 = arith.truncf %233 : vector<32x512xf32> to vector<32x512xbf16>
    %c1_i32_92 = arith.constant 1 : i32
    %235 = tpu.dynamic_rotate %222 by %c1_i32_92 dim 1 : vector<32x512xf32>, i32 -> vector<32x512xf32>
    %236 = vector.broadcast %60 : vector<1x512xf32> to vector<32x512xf32>
    %237 = arith.mulf %235, %236 : vector<32x512xf32>
    %238 = arith.truncf %237 : vector<32x512xf32> to vector<32x512xbf16>
    %239 = arith.truncf %222 : vector<32x512xf32> to vector<32x512xbf16>
    %c511_i32_93 = arith.constant 511 : i32
    %240 = tpu.dynamic_rotate %222 by %c511_i32_93 dim 1 : vector<32x512xf32>, i32 -> vector<32x512xf32>
    %241 = vector.broadcast %73 : vector<1x512xf32> to vector<32x512xf32>
    %242 = arith.mulf %240, %241 : vector<32x512xf32>
    %243 = arith.truncf %242 : vector<32x512xf32> to vector<32x512xbf16>
    %c497_i32_94 = arith.constant 497 : i32
    %244 = tpu.dynamic_rotate %222 by %c497_i32_94 dim 1 : vector<32x512xf32>, i32 -> vector<32x512xf32>
    %245 = vector.broadcast %86 : vector<1x512xf32> to vector<32x512xf32>
    %246 = arith.mulf %244, %245 : vector<32x512xf32>
    %247 = arith.truncf %246 : vector<32x512xf32> to vector<32x512xbf16>
    %c496_i32_95 = arith.constant 496 : i32
    %248 = tpu.dynamic_rotate %222 by %c496_i32_95 dim 1 : vector<32x512xf32>, i32 -> vector<32x512xf32>
    %249 = vector.broadcast %99 : vector<1x512xf32> to vector<32x512xf32>
    %250 = arith.mulf %248, %249 : vector<32x512xf32>
    %251 = arith.truncf %250 : vector<32x512xf32> to vector<32x512xbf16>
    %c495_i32_96 = arith.constant 495 : i32
    %252 = tpu.dynamic_rotate %222 by %c495_i32_96 dim 1 : vector<32x512xf32>, i32 -> vector<32x512xf32>
    %253 = vector.broadcast %112 : vector<1x512xf32> to vector<32x512xf32>
    %254 = arith.mulf %252, %253 : vector<32x512xf32>
    %255 = arith.truncf %254 : vector<32x512xf32> to vector<32x512xbf16>
    %256 = tpu.concatenate %226, %230, %234, %238, %239, %243, %247, %251, %255 in 0 : vector<32x512xbf16>, vector<32x512xbf16>, vector<32x512xbf16>, vector<32x512xbf16>, vector<32x512xbf16>, vector<32x512xbf16>, vector<32x512xbf16>, vector<32x512xbf16>, vector<32x512xbf16> -> vector<288x512xbf16>
    %c0_97 = arith.constant 0 : index
    %c0_98 = arith.constant 0 : index
    %257 = vector.load %arg9[%c0_97, %c0_98] : memref<32x288xbf16, #tpu.memory_space<vmem>>, vector<32x288xbf16>
    %cst_99 = arith.constant dense<0.000000e+00> : vector<32x512xf32>
    %258 = tpu.matmul %257, %256, %cst_99 {dimension_numbers = #tpu.dot_dimension_numbers<[1], [0], [0], [1], [0, 0, 1, 1], [], []>} : vector<32x288xbf16>, vector<288x512xbf16>, vector<32x512xf32> -> vector<32x512xf32>
    %c0_100 = arith.constant 0 : index
    %c0_101 = arith.constant 0 : index
    %259 = vector.load %arg10[%c0_100, %c0_101] : memref<32x1xf32, #tpu.memory_space<vmem>>, vector<32x1xf32>
    %260 = vector.broadcast %259 : vector<32x1xf32> to vector<32x512xf32>
    %261 = arith.addf %258, %260 : vector<32x512xf32>
    %cst_102 = arith.constant 0.000000e+00 : f32
    %262 = vector.broadcast %cst_102 : f32 to vector<32x512xf32>
    %263 = arith.maximumf %261, %262 : vector<32x512xf32>
    %c0_i32_103 = arith.constant 0 : i32
    %264 = tpu.memref_slice %arg22[%c0_i32_103] : memref<1x!tpu.dma_semaphore, #tpu.memory_space<semaphore_mem>> -> memref<1x!tpu.dma_semaphore, #tpu.memory_space<semaphore_mem>>
    %265 = tpu.memref_squeeze %264 : memref<1x!tpu.dma_semaphore, #tpu.memory_space<semaphore_mem>> -> memref<!tpu.dma_semaphore, #tpu.memory_space<semaphore_mem>>
    tpu.wait_dma2 semaphore(%265 : memref<!tpu.dma_semaphore, #tpu.memory_space<semaphore_mem>>) src(%arg11 : memref<8192x128xbf16, #tpu.memory_space<any>>) dst(%arg21 : memref<8192x128xbf16, #tpu.memory_space<vmem>>)
    %266 = vector.extract_strided_slice %263 {offsets = [0, 0], sizes = [1, 256], strides = [1, 1]} : vector<32x512xf32> to vector<1x256xf32>
    %267 = vector.extract_strided_slice %263 {offsets = [0, 256], sizes = [1, 256], strides = [1, 1]} : vector<32x512xf32> to vector<1x256xf32>
    %268 = tpu.concatenate %266, %267 in 0 : vector<1x256xf32>, vector<1x256xf32> -> vector<2x256xf32>
    %269 = vector.extract_strided_slice %263 {offsets = [1, 0], sizes = [1, 256], strides = [1, 1]} : vector<32x512xf32> to vector<1x256xf32>
    %270 = vector.extract_strided_slice %263 {offsets = [1, 256], sizes = [1, 256], strides = [1, 1]} : vector<32x512xf32> to vector<1x256xf32>
    %271 = tpu.concatenate %269, %270 in 0 : vector<1x256xf32>, vector<1x256xf32> -> vector<2x256xf32>
    %272 = vector.extract_strided_slice %263 {offsets = [2, 0], sizes = [1, 256], strides = [1, 1]} : vector<32x512xf32> to vector<1x256xf32>
    %273 = vector.extract_strided_slice %263 {offsets = [2, 256], sizes = [1, 256], strides = [1, 1]} : vector<32x512xf32> to vector<1x256xf32>
    %274 = tpu.concatenate %272, %273 in 0 : vector<1x256xf32>, vector<1x256xf32> -> vector<2x256xf32>
    %275 = vector.extract_strided_slice %263 {offsets = [3, 0], sizes = [1, 256], strides = [1, 1]} : vector<32x512xf32> to vector<1x256xf32>
    %276 = vector.extract_strided_slice %263 {offsets = [3, 256], sizes = [1, 256], strides = [1, 1]} : vector<32x512xf32> to vector<1x256xf32>
    %277 = tpu.concatenate %275, %276 in 0 : vector<1x256xf32>, vector<1x256xf32> -> vector<2x256xf32>
    %278 = vector.extract_strided_slice %263 {offsets = [4, 0], sizes = [1, 256], strides = [1, 1]} : vector<32x512xf32> to vector<1x256xf32>
    %279 = vector.extract_strided_slice %263 {offsets = [4, 256], sizes = [1, 256], strides = [1, 1]} : vector<32x512xf32> to vector<1x256xf32>
    %280 = tpu.concatenate %278, %279 in 0 : vector<1x256xf32>, vector<1x256xf32> -> vector<2x256xf32>
    %281 = vector.extract_strided_slice %263 {offsets = [5, 0], sizes = [1, 256], strides = [1, 1]} : vector<32x512xf32> to vector<1x256xf32>
    %282 = vector.extract_strided_slice %263 {offsets = [5, 256], sizes = [1, 256], strides = [1, 1]} : vector<32x512xf32> to vector<1x256xf32>
    %283 = tpu.concatenate %281, %282 in 0 : vector<1x256xf32>, vector<1x256xf32> -> vector<2x256xf32>
    %284 = vector.extract_strided_slice %263 {offsets = [6, 0], sizes = [1, 256], strides = [1, 1]} : vector<32x512xf32> to vector<1x256xf32>
    %285 = vector.extract_strided_slice %263 {offsets = [6, 256], sizes = [1, 256], strides = [1, 1]} : vector<32x512xf32> to vector<1x256xf32>
    %286 = tpu.concatenate %284, %285 in 0 : vector<1x256xf32>, vector<1x256xf32> -> vector<2x256xf32>
    %287 = vector.extract_strided_slice %263 {offsets = [7, 0], sizes = [1, 256], strides = [1, 1]} : vector<32x512xf32> to vector<1x256xf32>
    %288 = vector.extract_strided_slice %263 {offsets = [7, 256], sizes = [1, 256], strides = [1, 1]} : vector<32x512xf32> to vector<1x256xf32>
    %289 = tpu.concatenate %287, %288 in 0 : vector<1x256xf32>, vector<1x256xf32> -> vector<2x256xf32>
    %290 = vector.extract_strided_slice %263 {offsets = [8, 0], sizes = [1, 256], strides = [1, 1]} : vector<32x512xf32> to vector<1x256xf32>
    %291 = vector.extract_strided_slice %263 {offsets = [8, 256], sizes = [1, 256], strides = [1, 1]} : vector<32x512xf32> to vector<1x256xf32>
    %292 = tpu.concatenate %290, %291 in 0 : vector<1x256xf32>, vector<1x256xf32> -> vector<2x256xf32>
    %293 = vector.extract_strided_slice %263 {offsets = [9, 0], sizes = [1, 256], strides = [1, 1]} : vector<32x512xf32> to vector<1x256xf32>
    %294 = vector.extract_strided_slice %263 {offsets = [9, 256], sizes = [1, 256], strides = [1, 1]} : vector<32x512xf32> to vector<1x256xf32>
    %295 = tpu.concatenate %293, %294 in 0 : vector<1x256xf32>, vector<1x256xf32> -> vector<2x256xf32>
    %296 = vector.extract_strided_slice %263 {offsets = [10, 0], sizes = [1, 256], strides = [1, 1]} : vector<32x512xf32> to vector<1x256xf32>
    %297 = vector.extract_strided_slice %263 {offsets = [10, 256], sizes = [1, 256], strides = [1, 1]} : vector<32x512xf32> to vector<1x256xf32>
    %298 = tpu.concatenate %296, %297 in 0 : vector<1x256xf32>, vector<1x256xf32> -> vector<2x256xf32>
    %299 = vector.extract_strided_slice %263 {offsets = [11, 0], sizes = [1, 256], strides = [1, 1]} : vector<32x512xf32> to vector<1x256xf32>
    %300 = vector.extract_strided_slice %263 {offsets = [11, 256], sizes = [1, 256], strides = [1, 1]} : vector<32x512xf32> to vector<1x256xf32>
    %301 = tpu.concatenate %299, %300 in 0 : vector<1x256xf32>, vector<1x256xf32> -> vector<2x256xf32>
    %302 = vector.extract_strided_slice %263 {offsets = [12, 0], sizes = [1, 256], strides = [1, 1]} : vector<32x512xf32> to vector<1x256xf32>
    %303 = vector.extract_strided_slice %263 {offsets = [12, 256], sizes = [1, 256], strides = [1, 1]} : vector<32x512xf32> to vector<1x256xf32>
    %304 = tpu.concatenate %302, %303 in 0 : vector<1x256xf32>, vector<1x256xf32> -> vector<2x256xf32>
    %305 = vector.extract_strided_slice %263 {offsets = [13, 0], sizes = [1, 256], strides = [1, 1]} : vector<32x512xf32> to vector<1x256xf32>
    %306 = vector.extract_strided_slice %263 {offsets = [13, 256], sizes = [1, 256], strides = [1, 1]} : vector<32x512xf32> to vector<1x256xf32>
    %307 = tpu.concatenate %305, %306 in 0 : vector<1x256xf32>, vector<1x256xf32> -> vector<2x256xf32>
    %308 = vector.extract_strided_slice %263 {offsets = [14, 0], sizes = [1, 256], strides = [1, 1]} : vector<32x512xf32> to vector<1x256xf32>
    %309 = vector.extract_strided_slice %263 {offsets = [14, 256], sizes = [1, 256], strides = [1, 1]} : vector<32x512xf32> to vector<1x256xf32>
    %310 = tpu.concatenate %308, %309 in 0 : vector<1x256xf32>, vector<1x256xf32> -> vector<2x256xf32>
    %311 = vector.extract_strided_slice %263 {offsets = [15, 0], sizes = [1, 256], strides = [1, 1]} : vector<32x512xf32> to vector<1x256xf32>
    %312 = vector.extract_strided_slice %263 {offsets = [15, 256], sizes = [1, 256], strides = [1, 1]} : vector<32x512xf32> to vector<1x256xf32>
    %313 = tpu.concatenate %311, %312 in 0 : vector<1x256xf32>, vector<1x256xf32> -> vector<2x256xf32>
    %314 = vector.extract_strided_slice %263 {offsets = [16, 0], sizes = [1, 256], strides = [1, 1]} : vector<32x512xf32> to vector<1x256xf32>
    %315 = vector.extract_strided_slice %263 {offsets = [16, 256], sizes = [1, 256], strides = [1, 1]} : vector<32x512xf32> to vector<1x256xf32>
    %316 = tpu.concatenate %314, %315 in 0 : vector<1x256xf32>, vector<1x256xf32> -> vector<2x256xf32>
    %317 = vector.extract_strided_slice %263 {offsets = [17, 0], sizes = [1, 256], strides = [1, 1]} : vector<32x512xf32> to vector<1x256xf32>
    %318 = vector.extract_strided_slice %263 {offsets = [17, 256], sizes = [1, 256], strides = [1, 1]} : vector<32x512xf32> to vector<1x256xf32>
    %319 = tpu.concatenate %317, %318 in 0 : vector<1x256xf32>, vector<1x256xf32> -> vector<2x256xf32>
    %320 = vector.extract_strided_slice %263 {offsets = [18, 0], sizes = [1, 256], strides = [1, 1]} : vector<32x512xf32> to vector<1x256xf32>
    %321 = vector.extract_strided_slice %263 {offsets = [18, 256], sizes = [1, 256], strides = [1, 1]} : vector<32x512xf32> to vector<1x256xf32>
    %322 = tpu.concatenate %320, %321 in 0 : vector<1x256xf32>, vector<1x256xf32> -> vector<2x256xf32>
    %323 = vector.extract_strided_slice %263 {offsets = [19, 0], sizes = [1, 256], strides = [1, 1]} : vector<32x512xf32> to vector<1x256xf32>
    %324 = vector.extract_strided_slice %263 {offsets = [19, 256], sizes = [1, 256], strides = [1, 1]} : vector<32x512xf32> to vector<1x256xf32>
    %325 = tpu.concatenate %323, %324 in 0 : vector<1x256xf32>, vector<1x256xf32> -> vector<2x256xf32>
    %326 = vector.extract_strided_slice %263 {offsets = [20, 0], sizes = [1, 256], strides = [1, 1]} : vector<32x512xf32> to vector<1x256xf32>
    %327 = vector.extract_strided_slice %263 {offsets = [20, 256], sizes = [1, 256], strides = [1, 1]} : vector<32x512xf32> to vector<1x256xf32>
    %328 = tpu.concatenate %326, %327 in 0 : vector<1x256xf32>, vector<1x256xf32> -> vector<2x256xf32>
    %329 = vector.extract_strided_slice %263 {offsets = [21, 0], sizes = [1, 256], strides = [1, 1]} : vector<32x512xf32> to vector<1x256xf32>
    %330 = vector.extract_strided_slice %263 {offsets = [21, 256], sizes = [1, 256], strides = [1, 1]} : vector<32x512xf32> to vector<1x256xf32>
    %331 = tpu.concatenate %329, %330 in 0 : vector<1x256xf32>, vector<1x256xf32> -> vector<2x256xf32>
    %332 = vector.extract_strided_slice %263 {offsets = [22, 0], sizes = [1, 256], strides = [1, 1]} : vector<32x512xf32> to vector<1x256xf32>
    %333 = vector.extract_strided_slice %263 {offsets = [22, 256], sizes = [1, 256], strides = [1, 1]} : vector<32x512xf32> to vector<1x256xf32>
    %334 = tpu.concatenate %332, %333 in 0 : vector<1x256xf32>, vector<1x256xf32> -> vector<2x256xf32>
    %335 = vector.extract_strided_slice %263 {offsets = [23, 0], sizes = [1, 256], strides = [1, 1]} : vector<32x512xf32> to vector<1x256xf32>
    %336 = vector.extract_strided_slice %263 {offsets = [23, 256], sizes = [1, 256], strides = [1, 1]} : vector<32x512xf32> to vector<1x256xf32>
    %337 = tpu.concatenate %335, %336 in 0 : vector<1x256xf32>, vector<1x256xf32> -> vector<2x256xf32>
    %338 = vector.extract_strided_slice %263 {offsets = [24, 0], sizes = [1, 256], strides = [1, 1]} : vector<32x512xf32> to vector<1x256xf32>
    %339 = vector.extract_strided_slice %263 {offsets = [24, 256], sizes = [1, 256], strides = [1, 1]} : vector<32x512xf32> to vector<1x256xf32>
    %340 = tpu.concatenate %338, %339 in 0 : vector<1x256xf32>, vector<1x256xf32> -> vector<2x256xf32>
    %341 = vector.extract_strided_slice %263 {offsets = [25, 0], sizes = [1, 256], strides = [1, 1]} : vector<32x512xf32> to vector<1x256xf32>
    %342 = vector.extract_strided_slice %263 {offsets = [25, 256], sizes = [1, 256], strides = [1, 1]} : vector<32x512xf32> to vector<1x256xf32>
    %343 = tpu.concatenate %341, %342 in 0 : vector<1x256xf32>, vector<1x256xf32> -> vector<2x256xf32>
    %344 = vector.extract_strided_slice %263 {offsets = [26, 0], sizes = [1, 256], strides = [1, 1]} : vector<32x512xf32> to vector<1x256xf32>
    %345 = vector.extract_strided_slice %263 {offsets = [26, 256], sizes = [1, 256], strides = [1, 1]} : vector<32x512xf32> to vector<1x256xf32>
    %346 = tpu.concatenate %344, %345 in 0 : vector<1x256xf32>, vector<1x256xf32> -> vector<2x256xf32>
    %347 = vector.extract_strided_slice %263 {offsets = [27, 0], sizes = [1, 256], strides = [1, 1]} : vector<32x512xf32> to vector<1x256xf32>
    %348 = vector.extract_strided_slice %263 {offsets = [27, 256], sizes = [1, 256], strides = [1, 1]} : vector<32x512xf32> to vector<1x256xf32>
    %349 = tpu.concatenate %347, %348 in 0 : vector<1x256xf32>, vector<1x256xf32> -> vector<2x256xf32>
    %350 = vector.extract_strided_slice %263 {offsets = [28, 0], sizes = [1, 256], strides = [1, 1]} : vector<32x512xf32> to vector<1x256xf32>
    %351 = vector.extract_strided_slice %263 {offsets = [28, 256], sizes = [1, 256], strides = [1, 1]} : vector<32x512xf32> to vector<1x256xf32>
    %352 = tpu.concatenate %350, %351 in 0 : vector<1x256xf32>, vector<1x256xf32> -> vector<2x256xf32>
    %353 = vector.extract_strided_slice %263 {offsets = [29, 0], sizes = [1, 256], strides = [1, 1]} : vector<32x512xf32> to vector<1x256xf32>
    %354 = vector.extract_strided_slice %263 {offsets = [29, 256], sizes = [1, 256], strides = [1, 1]} : vector<32x512xf32> to vector<1x256xf32>
    %355 = tpu.concatenate %353, %354 in 0 : vector<1x256xf32>, vector<1x256xf32> -> vector<2x256xf32>
    %356 = vector.extract_strided_slice %263 {offsets = [30, 0], sizes = [1, 256], strides = [1, 1]} : vector<32x512xf32> to vector<1x256xf32>
    %357 = vector.extract_strided_slice %263 {offsets = [30, 256], sizes = [1, 256], strides = [1, 1]} : vector<32x512xf32> to vector<1x256xf32>
    %358 = tpu.concatenate %356, %357 in 0 : vector<1x256xf32>, vector<1x256xf32> -> vector<2x256xf32>
    %359 = vector.extract_strided_slice %263 {offsets = [31, 0], sizes = [1, 256], strides = [1, 1]} : vector<32x512xf32> to vector<1x256xf32>
    %360 = vector.extract_strided_slice %263 {offsets = [31, 256], sizes = [1, 256], strides = [1, 1]} : vector<32x512xf32> to vector<1x256xf32>
    %361 = tpu.concatenate %359, %360 in 0 : vector<1x256xf32>, vector<1x256xf32> -> vector<2x256xf32>
    %362 = tpu.concatenate %268, %271, %274, %277, %280, %283, %286, %289, %292, %295, %298, %301, %304, %307, %310, %313 in 1 : vector<2x256xf32>, vector<2x256xf32>, vector<2x256xf32>, vector<2x256xf32>, vector<2x256xf32>, vector<2x256xf32>, vector<2x256xf32>, vector<2x256xf32>, vector<2x256xf32>, vector<2x256xf32>, vector<2x256xf32>, vector<2x256xf32>, vector<2x256xf32>, vector<2x256xf32>, vector<2x256xf32>, vector<2x256xf32> -> vector<2x4096xf32>
    %363 = tpu.concatenate %316, %319, %322, %325, %328, %331, %334, %337, %340, %343, %346, %349, %352, %355, %358, %361 in 1 : vector<2x256xf32>, vector<2x256xf32>, vector<2x256xf32>, vector<2x256xf32>, vector<2x256xf32>, vector<2x256xf32>, vector<2x256xf32>, vector<2x256xf32>, vector<2x256xf32>, vector<2x256xf32>, vector<2x256xf32>, vector<2x256xf32>, vector<2x256xf32>, vector<2x256xf32>, vector<2x256xf32>, vector<2x256xf32> -> vector<2x4096xf32>
    %364 = tpu.concatenate %362, %363 in 1 : vector<2x4096xf32>, vector<2x4096xf32> -> vector<2x8192xf32>
    %365 = arith.truncf %364 : vector<2x8192xf32> to vector<2x8192xbf16>
    %c0_104 = arith.constant 0 : index
    %c0_105 = arith.constant 0 : index
    %366 = vector.load %arg21[%c0_104, %c0_105] : memref<8192x128xbf16, #tpu.memory_space<vmem>>, vector<8192x128xbf16>
    %cst_106 = arith.constant dense<0.000000e+00> : vector<2x128xf32>
    %367 = tpu.matmul %365, %366, %cst_106 {dimension_numbers = #tpu.dot_dimension_numbers<[1], [0], [0], [1], [0, 0, 1, 1], [], []>} : vector<2x8192xbf16>, vector<8192x128xbf16>, vector<2x128xf32> -> vector<2x128xf32>
    %c0_107 = arith.constant 0 : index
    %c0_108 = arith.constant 0 : index
    %368 = vector.load %arg12[%c0_107, %c0_108] : memref<1x128xf32, #tpu.memory_space<vmem>>, vector<1x128xf32>
    %369 = vector.broadcast %368 : vector<1x128xf32> to vector<2x128xf32>
    %370 = arith.addf %367, %369 : vector<2x128xf32>
    %cst_109 = arith.constant 0.000000e+00 : f32
    %371 = vector.broadcast %cst_109 : f32 to vector<2x128xf32>
    %372 = arith.maximumf %370, %371 : vector<2x128xf32>
    %c0_110 = arith.constant 0 : index
    %c0_111 = arith.constant 0 : index
    %373 = vector.load %arg13[%c0_110, %c0_111] : memref<128x64xf32, #tpu.memory_space<vmem>>, vector<128x64xf32>
    %cst_112 = arith.constant dense<0.000000e+00> : vector<2x64xf32>
    %374 = tpu.matmul %372, %373, %cst_112 {dimension_numbers = #tpu.dot_dimension_numbers<[1], [0], [0], [1], [0, 0, 1, 1], [], []>} : vector<2x128xf32>, vector<128x64xf32>, vector<2x64xf32> -> vector<2x64xf32>
    %c0_113 = arith.constant 0 : index
    %c0_114 = arith.constant 0 : index
    %375 = vector.load %arg14[%c0_113, %c0_114] : memref<1x64xf32, #tpu.memory_space<vmem>>, vector<1x64xf32>
    %376 = vector.broadcast %375 : vector<1x64xf32> to vector<2x64xf32>
    %377 = arith.addf %374, %376 : vector<2x64xf32>
    %cst_115 = arith.constant 0.000000e+00 : f32
    %378 = vector.broadcast %cst_115 : f32 to vector<2x64xf32>
    %379 = arith.maximumf %377, %378 : vector<2x64xf32>
    %c0_116 = arith.constant 0 : index
    %c0_117 = arith.constant 0 : index
    %380 = vector.load %arg15[%c0_116, %c0_117] : memref<64x128xf32, #tpu.memory_space<vmem>>, vector<64x128xf32>
    %cst_118 = arith.constant dense<0.000000e+00> : vector<2x128xf32>
    %381 = tpu.matmul %379, %380, %cst_118 {dimension_numbers = #tpu.dot_dimension_numbers<[1], [0], [0], [1], [0, 0, 1, 1], [], []>} : vector<2x64xf32>, vector<64x128xf32>, vector<2x128xf32> -> vector<2x128xf32>
    %c0_119 = arith.constant 0 : index
    %c0_120 = arith.constant 0 : index
    %382 = vector.load %arg2[%c0_119, %c0_120] : memref<2x64xf32, #tpu.memory_space<vmem>>, vector<2x64xf32>
    %c0_121 = arith.constant 0 : index
    %c0_122 = arith.constant 0 : index
    %383 = vector.load %arg16[%c0_121, %c0_122] : memref<64x128xf32, #tpu.memory_space<vmem>>, vector<64x128xf32>
    %cst_123 = arith.constant dense<0.000000e+00> : vector<2x128xf32>
    %384 = tpu.matmul %382, %383, %cst_123 {dimension_numbers = #tpu.dot_dimension_numbers<[1], [0], [0], [1], [0, 0, 1, 1], [], []>} : vector<2x64xf32>, vector<64x128xf32>, vector<2x128xf32> -> vector<2x128xf32>
    %385 = arith.addf %381, %384 : vector<2x128xf32>
    %c0_124 = arith.constant 0 : index
    %c0_125 = arith.constant 0 : index
    %386 = vector.load %arg17[%c0_124, %c0_125] : memref<1x128xf32, #tpu.memory_space<vmem>>, vector<1x128xf32>
    %387 = vector.broadcast %386 : vector<1x128xf32> to vector<2x128xf32>
    %388 = arith.addf %385, %387 : vector<2x128xf32>
    %cst_126 = arith.constant 0.000000e+00 : f32
    %389 = vector.broadcast %cst_126 : f32 to vector<2x128xf32>
    %390 = arith.maximumf %388, %389 : vector<2x128xf32>
    %c0_127 = arith.constant 0 : index
    %c0_128 = arith.constant 0 : index
    %391 = vector.load %arg18[%c0_127, %c0_128] : memref<128x1xf32, #tpu.memory_space<vmem>>, vector<128x1xf32>
    %cst_129 = arith.constant dense<0.000000e+00> : vector<2x1xf32>
    %392 = tpu.matmul %390, %391, %cst_129 {dimension_numbers = #tpu.dot_dimension_numbers<[1], [0], [0], [1], [0, 0, 1, 1], [], []>} : vector<2x128xf32>, vector<128x1xf32>, vector<2x1xf32> -> vector<2x1xf32>
    %c0_130 = arith.constant 0 : index
    %c0_131 = arith.constant 0 : index
    %393 = vector.load %arg19[%c0_130, %c0_131] : memref<1x1xf32, #tpu.memory_space<vmem>>, vector<1x1xf32>
    %394 = vector.broadcast %393 : vector<1x1xf32> to vector<2x1xf32>
    %395 = arith.addf %392, %394 : vector<2x1xf32>
    %cst_132 = arith.constant 0.000000e+00 : f32
    %396 = vector.broadcast %cst_132 : f32 to vector<2x1xf32>
    %397 = arith.subf %396, %395 : vector<2x1xf32>
    %398 = math.exp %397 : vector<2x1xf32>
    %cst_133 = arith.constant 1.000000e+00 : f32
    %399 = vector.broadcast %cst_133 : f32 to vector<2x1xf32>
    %400 = arith.addf %399, %398 : vector<2x1xf32>
    %cst_134 = arith.constant 1.000000e+00 : f32
    %401 = vector.broadcast %cst_134 : f32 to vector<2x1xf32>
    %402 = arith.divf %401, %400 : vector<2x1xf32>
    %c0_135 = arith.constant 0 : index
    %c0_136 = arith.constant 0 : index
    %403 = vector.load %arg20[%c0_135, %c0_136] : memref<2x1xf32, #tpu.memory_space<vmem>>, vector<2x1xf32>
    tpu.vector_store %arg20[%c0_135, %c0_136], %402 {strides = array<i32>} : memref<2x1xf32, #tpu.memory_space<vmem>>, vector<2x1xf32>,
    return
  }
  func.func @transform_0(%arg0: i32) -> (i32, i32) {
    %c0_i32 = arith.constant 0 : i32
    %c0_i32_0 = arith.constant 0 : i32
    %c0_i32_1 = arith.constant 0 : i32
    return %c0_i32, %c0_i32_0 : i32, i32
  }
  func.func @transform_1(%arg0: i32) -> (i32, i32) {
    %c0_i32 = arith.constant 0 : i32
    %c0_i32_0 = arith.constant 0 : i32
    %c0_i32_1 = arith.constant 0 : i32
    return %c0_i32, %c0_i32_0 : i32, i32
  }
  func.func @transform_2(%arg0: i32) -> (i32, i32) {
    %c0_i32 = arith.constant 0 : i32
    %c0_i32_0 = arith.constant 0 : i32
    %c0_i32_1 = arith.constant 0 : i32
    return %c0_i32, %c0_i32_0 : i32, i32
  }
  func.func @transform_3(%arg0: i32) -> (i32, i32) {
    %c0_i32 = arith.constant 0 : i32
    %c0_i32_0 = arith.constant 0 : i32
    %c0_i32_1 = arith.constant 0 : i32
    return %c0_i32, %c0_i32_0 : i32, i32
  }
  func.func @transform_4(%arg0: i32) -> (i32, i32) {
    %c0_i32 = arith.constant 0 : i32
    %c0_i32_0 = arith.constant 0 : i32
    %c0_i32_1 = arith.constant 0 : i32
    return %c0_i32, %c0_i32_0 : i32, i32
  }
  func.func @transform_5(%arg0: i32) -> (i32, i32) {
    %c0_i32 = arith.constant 0 : i32
    %c0_i32_0 = arith.constant 0 : i32
    %c0_i32_1 = arith.constant 0 : i32
    return %c0_i32, %c0_i32_0 : i32, i32
  }
  func.func @transform_6(%arg0: i32) -> (i32, i32) {
    %c0_i32 = arith.constant 0 : i32
    %c0_i32_0 = arith.constant 0 : i32
    %c0_i32_1 = arith.constant 0 : i32
    return %c0_i32, %c0_i32_0 : i32, i32
  }
  func.func @transform_7(%arg0: i32) -> (i32, i32) {
    %c0_i32 = arith.constant 0 : i32
    %c0_i32_0 = arith.constant 0 : i32
    %c0_i32_1 = arith.constant 0 : i32
    return %c0_i32, %c0_i32_0 : i32, i32
  }
  func.func @transform_8(%arg0: i32) -> (i32, i32) {
    %c0_i32 = arith.constant 0 : i32
    %c0_i32_0 = arith.constant 0 : i32
    %c0_i32_1 = arith.constant 0 : i32
    return %c0_i32, %c0_i32_0 : i32, i32
  }
  func.func @transform_9(%arg0: i32) -> (i32, i32) {
    %c0_i32 = arith.constant 0 : i32
    %c0_i32_0 = arith.constant 0 : i32
    %c0_i32_1 = arith.constant 0 : i32
    return %c0_i32, %c0_i32_0 : i32, i32
  }
  func.func @transform_11(%arg0: i32) -> (i32, i32) {
    %c0_i32 = arith.constant 0 : i32
    %c0_i32_0 = arith.constant 0 : i32
    %c0_i32_1 = arith.constant 0 : i32
    return %c0_i32, %c0_i32_0 : i32, i32
  }
  func.func @transform_12(%arg0: i32) -> (i32, i32) {
    %c0_i32 = arith.constant 0 : i32
    %c0_i32_0 = arith.constant 0 : i32
    %c0_i32_1 = arith.constant 0 : i32
    return %c0_i32, %c0_i32_0 : i32, i32
  }
  func.func @transform_13(%arg0: i32) -> (i32, i32) {
    %c0_i32 = arith.constant 0 : i32
    %c0_i32_0 = arith.constant 0 : i32
    %c0_i32_1 = arith.constant 0 : i32
    return %c0_i32, %c0_i32_0 : i32, i32
  }
  func.func @transform_14(%arg0: i32) -> (i32, i32) {
    %c0_i32 = arith.constant 0 : i32
    %c0_i32_0 = arith.constant 0 : i32
    %c0_i32_1 = arith.constant 0 : i32
    return %c0_i32, %c0_i32_0 : i32, i32
  }
  func.func @transform_15(%arg0: i32) -> (i32, i32) {
    %c0_i32 = arith.constant 0 : i32
    %c0_i32_0 = arith.constant 0 : i32
    %c0_i32_1 = arith.constant 0 : i32
    return %c0_i32, %c0_i32_0 : i32, i32
  }
  func.func @transform_16(%arg0: i32) -> (i32, i32) {
    %c0_i32 = arith.constant 0 : i32
    %c0_i32_0 = arith.constant 0 : i32
    %c0_i32_1 = arith.constant 0 : i32
    return %c0_i32, %c0_i32_0 : i32, i32
  }
  func.func @transform_17(%arg0: i32) -> (i32, i32) {
    %c0_i32 = arith.constant 0 : i32
    %c0_i32_0 = arith.constant 0 : i32
    %c0_i32_1 = arith.constant 0 : i32
    return %c0_i32, %c0_i32_0 : i32, i32
  }
  func.func @transform_18(%arg0: i32) -> (i32, i32) {
    %c0_i32 = arith.constant 0 : i32
    %c0_i32_0 = arith.constant 0 : i32
    %c0_i32_1 = arith.constant 0 : i32
    return %c0_i32, %c0_i32_0 : i32, i32
  }
  func.func @transform_19(%arg0: i32) -> (i32, i32) {
    %c0_i32 = arith.constant 0 : i32
    %c0_i32_0 = arith.constant 0 : i32
    %c0_i32_1 = arith.constant 0 : i32
    return %c0_i32, %c0_i32_0 : i32, i32
  }
}

</mosaic_0001>

<bundles_post_ra>
// kernel: blocker_net_forward.1
= control target key start
LH: loop header
LB: loop body
LE: loop exit
PB: predicated region body
PF: predicated region fallthrough
CT: control target
= control target key end

     0   :  { %vm19177_vm0 = vcmask 1041408   ;;  %s12781_s21 = smov 16   ;;  %s19126_s0 = inlined_call_operand.vmem [shape: f32[12,512], index: 0, kind: input, shape index: {}]   ;;  %s19127_s1 = inlined_call_operand.vmem [shape: f32[2,64], index: 1, kind: input, shape index: {}]   ;;  %s19128_s2 = inlined_call_operand.vmem [shape: bf16[12,48], index: 2, kind: input, shape index: {}]   ;;  %s19129_s3 = inlined_call_operand.vmem [shape: f32[12,1], index: 3, kind: input, shape index: {}]   ;;  %s19130_s4 = inlined_call_operand.vmem [shape: bf16[32,12], index: 4, kind: input, shape index: {}]   ;;  %s19131_s5 = inlined_call_operand.vmem [shape: f32[32,1], index: 5, kind: input, shape index: {}]   ;;  %s19132_s6 = inlined_call_operand.vmem [shape: bf16[32,288], index: 6, kind: input, shape index: {}]   ;;  %s19133_s7 = inlined_call_operand.vmem [shape: f32[32,1], index: 7, kind: input, shape index: {}]   ;;  %s19134_s8 = inlined_call_operand.vmem [shape: bf16[32,288], index: 8, kind: input, shape index: {}]   ;;  %s19135_s9 = inlined_call_operand.vmem [shape: f32[32,1], index: 9, kind: input, shape index: {}]   ;;  %s19136_s11 = inlined_call_operand.vmem [shape: f32[1,128], index: 11, kind: input, shape index: {}]   ;;  %s19137_s12 = inlined_call_operand.vmem [shape: f32[128,64], index: 12, kind: input, shape index: {}]   ;;  %s19138_s13 = inlined_call_operand.vmem [shape: f32[1,64], index: 13, kind: input, shape index: {}]   ;;  %s19139_s14 = inlined_call_operand.vmem [shape: f32[64,128], index: 14, kind: input, shape index: {}]   ;;  %s19140_s15 = inlined_call_operand.vmem [shape: f32[64,128], index: 15, kind: input, shape index: {}]   ;;  %s19141_s16 = inlined_call_operand.vmem [shape: f32[1,128], index: 16, kind: input, shape index: {}]   ;;  %s19142_s17 = inlined_call_operand.vmem [shape: f32[128,1], index: 17, kind: input, shape index: {}]   ;;  %s19143_s18 = inlined_call_operand.<no memory space> [shape: f32[1,1], index: 18, kind: input, shape index: {}]   ;;  %s19144_s19 = inlined_call_operand.vmem [shape: f32[2,1], index: 19, kind: output, shape index: {}]   ;;  %s19145_s10 = inlined_call_operand.vmem [shape: bf16[8192,128], index: 10, kind: input, shape index: {}]  }
   0x1   :  { %19458 = sst [smem:[#allocation127_spill]] %s19126_s0  ;;  %v24_v0 = vstv %s19143_s18  ;;  %v73_v1 = vld [vmem:[%s19145_s10] sm:$0xff]  ;;  %v75_v2 = vld [vmem:[%s19145_s10 + $0x8] sm:$0xff]  ;;  %v77_v3 = vld [vmem:[%s19145_s10 + $0x10] sm:$0xff]  ;;  %s12780_s18 = smov 17  }
   0x2   :  { %19459 = sst [smem:[#allocation128_spill]] %s19127_s1  ;;  %25 = vst [vmem:[#allocation4] sm:$0x1] %v24_v0  ;;  %v79_v4 = vld [vmem:[%s19145_s10 + $0x18] sm:$0xff]  ;;  %v81_v5 = vld [vmem:[%s19145_s10 + $0x20] sm:$0xff]  ;;  %v83_v6 = vld [vmem:[%s19145_s10 + $0x28] sm:$0xff] }
   0x3   :  { %19460 = sst [smem:[#allocation129_spill]] %s19128_s2  ;;  %74 = vst [vmem:[#allocation2 + $0xab0] sm:$0xff] %v73_v1  ;;  %v85_v7 = vld [vmem:[%s19145_s10 + $0x30] sm:$0xff]  ;;  %v87_v8 = vld [vmem:[%s19145_s10 + $0x38] sm:$0xff]  ;;  %v89_v9 = vld [vmem:[%s19145_s10 + $0x40] sm:$0xff] }
   0x4   :  { %19461 = sst [smem:[#allocation130_spill]] %s19129_s3  ;;  %76 = vst [vmem:[#allocation2 + $0xbb0] sm:$0xff] %v75_v2  ;;  %v91_v10 = vld [vmem:[%s19145_s10 + $0x48] sm:$0xff]  ;;  %v93_v11 = vld [vmem:[%s19145_s10 + $0x50] sm:$0xff]  ;;  %v95_v12 = vld [vmem:[%s19145_s10 + $0x58] sm:$0xff] }
   0x5   :  { %78 = vst [vmem:[#allocation2 + $0x4d8] sm:$0xff] %v77_v3  ;;  %v97_v13 = vld [vmem:[%s19145_s10 + $0x60] sm:$0xff]  ;;  %v99_v14 = vld [vmem:[%s19145_s10 + $0x68] sm:$0xff]  ;;  %v101_v15 = vld [vmem:[%s19145_s10 + $0x70] sm:$0xff]  ;;  %s19462_s1 = sld [smem:[#allocation127_spill]] }
   0x6   :  { %80 = vst [vmem:[#allocation2 + $0x818] sm:$0xff] %v79_v4  ;;  %v103_v16 = vld [vmem:[%s19145_s10 + $0x78] sm:$0xff]  ;;  %v105_v17 = vld [vmem:[%s19145_s10 + $0x80] sm:$0xff]  ;;  %v107_v18 = vld [vmem:[%s19145_s10 + $0x88] sm:$0xff] }
   0x7   :  { %82 = vst [vmem:[#allocation2 + $0xc50] sm:$0xff] %v81_v5  ;;  %v109_v19 = vld [vmem:[%s19145_s10 + $0x90] sm:$0xff]  ;;  %v111_v20 = vld [vmem:[%s19145_s10 + $0x98] sm:$0xff]  ;;  %v113_v21 = vld [vmem:[%s19145_s10 + $0xa0] sm:$0xff] }
   0x8   :  { %84 = vst [vmem:[#allocation2 + $0x810] sm:$0xff] %v83_v6  ;;  %v115_v22 = vld [vmem:[%s19145_s10 + $0xa8] sm:$0xff]  ;;  %v117_v23 = vld [vmem:[%s19145_s10 + $0xb0] sm:$0xff]  ;;  %v119_v24 = vld [vmem:[%s19145_s10 + $0xb8] sm:$0xff] }
   0x9   :  { %86 = vst [vmem:[#allocation2 + $0x770] sm:$0xff] %v85_v7  ;;  %v121_v25 = vld [vmem:[%s19145_s10 + $0xc0] sm:$0xff]  ;;  %v123_v26 = vld [vmem:[%s19145_s10 + $0xc8] sm:$0xff]  ;;  %v125_v27 = vld [vmem:[%s19145_s10 + $0xd0] sm:$0xff] }
   0xa   :  { %88 = vst [vmem:[#allocation2 + $0x338] sm:$0xff] %v87_v8  ;;  %v127_v28 = vld [vmem:[%s19145_s10 + $0xd8] sm:$0xff]  ;;  %v129_v29 = vld [vmem:[%s19145_s10 + $0xe0] sm:$0xff]  ;;  %v131_v30 = vld [vmem:[%s19145_s10 + $0xe8] sm:$0xff] }
   0xb   :  { %90 = vst [vmem:[#allocation2 + $0x450] sm:$0xff] %v89_v9  ;;  %v133_v31 = vld [vmem:[%s19145_s10 + $0xf0] sm:$0xff]  ;;  %v135_v32 = vld [vmem:[%s19145_s10 + $0xf8] sm:$0xff]  ;;  %v137_v33 = vld [vmem:[%s19145_s10 + $0x100] sm:$0xff] }
   0xc   :  { %92 = vst [vmem:[#allocation2 + $0xb88] sm:$0xff] %v91_v10  ;;  %v139_v34 = vld [vmem:[%s19145_s10 + $0x108] sm:$0xff]  ;;  %v141_v35 = vld [vmem:[%s19145_s10 + $0x110] sm:$0xff]  ;;  %v143_v36 = vld [vmem:[%s19145_s10 + $0x118] sm:$0xff] }
   0xd   :  { %94 = vst [vmem:[#allocation2 + $0x918] sm:$0xff] %v93_v11  ;;  %v145_v37 = vld [vmem:[%s19145_s10 + $0x120] sm:$0xff]  ;;  %v147_v38 = vld [vmem:[%s19145_s10 + $0x128] sm:$0xff]  ;;  %v149_v39 = vld [vmem:[%s19145_s10 + $0x130] sm:$0xff] }
   0xe   :  { %96 = vst [vmem:[#allocation2 + $0xd20] sm:$0xff] %v95_v12  ;;  %v151_v40 = vld [vmem:[%s19145_s10 + $0x138] sm:$0xff]  ;;  %v153_v41 = vld [vmem:[%s19145_s10 + $0x140] sm:$0xff]  ;;  %v155_v42 = vld [vmem:[%s19145_s10 + $0x148] sm:$0xff] }
   0xf   :  { %98 = vst [vmem:[#allocation2 + $0xca0] sm:$0xff] %v97_v13  ;;  %v157_v43 = vld [vmem:[%s19145_s10 + $0x150] sm:$0xff]  ;;  %v159_v44 = vld [vmem:[%s19145_s10 + $0x158] sm:$0xff]  ;;  %v161_v45 = vld [vmem:[%s19145_s10 + $0x160] sm:$0xff] }
  0x10   :  { %100 = vst [vmem:[#allocation2 + $0xb28] sm:$0xff] %v99_v14  ;;  %v163_v46 = vld [vmem:[%s19145_s10 + $0x168] sm:$0xff]  ;;  %v165_v47 = vld [vmem:[%s19145_s10 + $0x170] sm:$0xff]  ;;  %v167_v48 = vld [vmem:[%s19145_s10 + $0x178] sm:$0xff] }
  0x11   :  { %102 = vst [vmem:[#allocation2 + $0xd58] sm:$0xff] %v101_v15  ;;  %v169_v49 = vld [vmem:[%s19145_s10 + $0x180] sm:$0xff]  ;;  %v171_v50 = vld [vmem:[%s19145_s10 + $0x188] sm:$0xff]  ;;  %v173_v51 = vld [vmem:[%s19145_s10 + $0x190] sm:$0xff] }
  0x12   :  { %104 = vst [vmem:[#allocation2 + $0x510] sm:$0xff] %v103_v16  ;;  %v175_v52 = vld [vmem:[%s19145_s10 + $0x198] sm:$0xff]  ;;  %v177_v53 = vld [vmem:[%s19145_s10 + $0x1a0] sm:$0xff]  ;;  %v179_v54 = vld [vmem:[%s19145_s10 + $0x1a8] sm:$0xff] }
  0x13   :  { %106 = vst [vmem:[#allocation2 + $0x728] sm:$0xff] %v105_v17  ;;  %v181_v55 = vld [vmem:[%s19145_s10 + $0x1b0] sm:$0xff]  ;;  %v183_v56 = vld [vmem:[%s19145_s10 + $0x1b8] sm:$0xff]  ;;  %v185_v57 = vld [vmem:[%s19145_s10 + $0x1c0] sm:$0xff] }
  0x14   :  { %108 = vst [vmem:[#allocation2 + $0x6e8] sm:$0xff] %v107_v18  ;;  %v187_v58 = vld [vmem:[%s19145_s10 + $0x1c8] sm:$0xff]  ;;  %v189_v59 = vld [vmem:[%s19145_s10 + $0x1d0] sm:$0xff]  ;;  %v191_v60 = vld [vmem:[%s19145_s10 + $0x1d8] sm:$0xff] }
  0x15   :  { %110 = vst [vmem:[#allocation2 + $0x790] sm:$0xff] %v109_v19  ;;  %v193_v61 = vld [vmem:[%s19145_s10 + $0x1e0] sm:$0xff]  ;;  %v195_v62 = vld [vmem:[%s19145_s10 + $0x1e8] sm:$0xff]  ;;  %v197_v63 = vld [vmem:[%s19145_s10 + $0x1f0] sm:$0xff] }
  0x16   :  { %112 = vst [vmem:[#allocation2 + $0x340] sm:$0xff] %v111_v20  ;;  %v199_v0 = vld [vmem:[%s19145_s10 + $0x1f8] sm:$0xff]  ;;  %v201_v1 = vld [vmem:[%s19145_s10 + $0x200] sm:$0xff]  ;;  %v203_v2 = vld [vmem:[%s19145_s10 + $0x208] sm:$0xff] }
  0x17   :  { %114 = vst [vmem:[#allocation2 + $0x748] sm:$0xff] %v113_v21  ;;  %v205_v3 = vld [vmem:[%s19145_s10 + $0x210] sm:$0xff]  ;;  %v207_v4 = vld [vmem:[%s19145_s10 + $0x218] sm:$0xff]  ;;  %v209_v5 = vld [vmem:[%s19145_s10 + $0x220] sm:$0xff] }
  0x18   :  { %116 = vst [vmem:[#allocation2 + $0x830] sm:$0xff] %v115_v22  ;;  %v211_v6 = vld [vmem:[%s19145_s10 + $0x228] sm:$0xff]  ;;  %v213_v7 = vld [vmem:[%s19145_s10 + $0x230] sm:$0xff]  ;;  %v215_v8 = vld [vmem:[%s19145_s10 + $0x238] sm:$0xff] }
  0x19   :  { %118 = vst [vmem:[#allocation2 + $0xaf0] sm:$0xff] %v117_v23  ;;  %v217_v9 = vld [vmem:[%s19145_s10 + $0x240] sm:$0xff]  ;;  %v219_v10 = vld [vmem:[%s19145_s10 + $0x248] sm:$0xff]  ;;  %v221_v11 = vld [vmem:[%s19145_s10 + $0x250] sm:$0xff] }
  0x1a   :  { %120 = vst [vmem:[#allocation2 + $0x5b8] sm:$0xff] %v119_v24  ;;  %v223_v12 = vld [vmem:[%s19145_s10 + $0x258] sm:$0xff]  ;;  %v225_v13 = vld [vmem:[%s19145_s10 + $0x260] sm:$0xff]  ;;  %v227_v14 = vld [vmem:[%s19145_s10 + $0x268] sm:$0xff] }
  0x1b   :  { %122 = vst [vmem:[#allocation2 + $0x5c8] sm:$0xff] %v121_v25  ;;  %v229_v15 = vld [vmem:[%s19145_s10 + $0x270] sm:$0xff]  ;;  %v231_v16 = vld [vmem:[%s19145_s10 + $0x278] sm:$0xff]  ;;  %v233_v17 = vld [vmem:[%s19145_s10 + $0x280] sm:$0xff] }
  0x1c   :  { %124 = vst [vmem:[#allocation2 + $0xd78] sm:$0xff] %v123_v26  ;;  %v235_v18 = vld [vmem:[%s19145_s10 + $0x288] sm:$0xff]  ;;  %v237_v19 = vld [vmem:[%s19145_s10 + $0x290] sm:$0xff]  ;;  %v239_v20 = vld [vmem:[%s19145_s10 + $0x298] sm:$0xff] }
  0x1d   :  { %126 = vst [vmem:[#allocation2 + $0x3f8] sm:$0xff] %v125_v27  ;;  %v241_v21 = vld [vmem:[%s19145_s10 + $0x2a0] sm:$0xff]  ;;  %v243_v22 = vld [vmem:[%s19145_s10 + $0x2a8] sm:$0xff]  ;;  %v245_v23 = vld [vmem:[%s19145_s10 + $0x2b0] sm:$0xff] }
  0x1e   :  { %128 = vst [vmem:[#allocation2 + $0xf08] sm:$0xff] %v127_v28  ;;  %v247_v24 = vld [vmem:[%s19145_s10 + $0x2b8] sm:$0xff]  ;;  %v249_v25 = vld [vmem:[%s19145_s10 + $0x2c0] sm:$0xff]  ;;  %v251_v26 = vld [vmem:[%s19145_s10 + $0x2c8] sm:$0xff] }
  0x1f   :  { %130 = vst [vmem:[#allocation2 + $0xea0] sm:$0xff] %v129_v29  ;;  %v253_v27 = vld [vmem:[%s19145_s10 + $0x2d0] sm:$0xff]  ;;  %v255_v28 = vld [vmem:[%s19145_s10 + $0x2d8] sm:$0xff]  ;;  %v257_v29 = vld [vmem:[%s19145_s10 + $0x2e0] sm:$0xff] }
  0x20   :  { %132 = vst [vmem:[#allocation2 + $0xb78] sm:$0xff] %v131_v30  ;;  %v259_v30 = vld [vmem:[%s19145_s10 + $0x2e8] sm:$0xff] }
  0x21   :  { %134 = vst [vmem:[#allocation2 + $0x948] sm:$0xff] %v133_v31  ;;  %v261_v31 = vld [vmem:[%s19145_s10 + $0x2f0] sm:$0xff] }
  0x22   :  { %136 = vst [vmem:[#allocation2 + $0xbf8] sm:$0xff] %v135_v32  ;;  %v263_v32 = vld [vmem:[%s19145_s10 + $0x2f8] sm:$0xff] }
  0x23   :  { %138 = vst [vmem:[#allocation2 + $0x9d0] sm:$0xff] %v137_v33  ;;  %v265_v33 = vld [vmem:[%s19145_s10 + $0x300] sm:$0xff] }
  0x24   :  { %140 = vst [vmem:[#allocation2 + $0xa90] sm:$0xff] %v139_v34  ;;  %v267_v34 = vld [vmem:[%s19145_s10 + $0x308] sm:$0xff] }
  0x25   :  { %142 = vst [vmem:[#allocation2 + $0x910] sm:$0xff] %v141_v35  ;;  %v269_v35 = vld [vmem:[%s19145_s10 + $0x310] sm:$0xff] }
  0x26   :  { %144 = vst [vmem:[#allocation2 + $0xbd0] sm:$0xff] %v143_v36  ;;  %v271_v36 = vld [vmem:[%s19145_s10 + $0x318] sm:$0xff] }
  0x27   :  { %146 = vst [vmem:[#allocation2 + $0xd68] sm:$0xff] %v145_v37  ;;  %v273_v37 = vld [vmem:[%s19145_s10 + $0x320] sm:$0xff] }
  0x28   :  { %148 = vst [vmem:[#allocation2 + $0xbf0] sm:$0xff] %v147_v38  ;;  %v275_v38 = vld [vmem:[%s19145_s10 + $0x328] sm:$0xff] }
  0x29   :  { %150 = vst [vmem:[#allocation2 + $0x868] sm:$0xff] %v149_v39  ;;  %v277_v39 = vld [vmem:[%s19145_s10 + $0x330] sm:$0xff] }
  0x2a   :  { %152 = vst [vmem:[#allocation2 + $0xe30] sm:$0xff] %v151_v40  ;;  %v279_v40 = vld [vmem:[%s19145_s10 + $0x338] sm:$0xff] }
  0x2b   :  { %154 = vst [vmem:[#allocation2 + $0xcd8] sm:$0xff] %v153_v41  ;;  %v281_v41 = vld [vmem:[%s19145_s10 + $0x340] sm:$0xff] }
  0x2c   :  { %156 = vst [vmem:[#allocation2 + $0x18] sm:$0xff] %v155_v42  ;;  %v283_v42 = vld [vmem:[%s19145_s10 + $0x348] sm:$0xff] }
  0x2d   :  { %158 = vst [vmem:[#allocation2 + $0x528] sm:$0xff] %v157_v43  ;;  %v285_v43 = vld [vmem:[%s19145_s10 + $0x350] sm:$0xff] }
  0x2e   :  { %160 = vst [vmem:[#allocation2 + $0xfd8] sm:$0xff] %v159_v44  ;;  %v287_v44 = vld [vmem:[%s19145_s10 + $0x358] sm:$0xff] }
  0x2f   :  { %162 = vst [vmem:[#allocation2 + $0x420] sm:$0xff] %v161_v45  ;;  %v289_v45 = vld [vmem:[%s19145_s10 + $0x360] sm:$0xff] }
  0x30   :  { %164 = vst [vmem:[#allocation2 + $0x940] sm:$0xff] %v163_v46  ;;  %v291_v46 = vld [vmem:[%s19145_s10 + $0x368] sm:$0xff] }
  0x31   :  { %166 = vst [vmem:[#allocation2 + $0xed0] sm:$0xff] %v165_v47  ;;  %v293_v47 = vld [vmem:[%s19145_s10 + $0x370] sm:$0xff] }
  0x32   :  { %168 = vst [vmem:[#allocation2 + $0x160] sm:$0xff] %v167_v48  ;;  %v295_v48 = vld [vmem:[%s19145_s10 + $0x378] sm:$0xff] }
  0x33   :  { %170 = vst [vmem:[#allocation2 + $0x8e8] sm:$0xff] %v169_v49  ;;  %v297_v49 = vld [vmem:[%s19145_s10 + $0x380] sm:$0xff] }
  0x34   :  { %172 = vst [vmem:[#allocation2 + $0x8b0] sm:$0xff] %v171_v50  ;;  %v299_v50 = vld [vmem:[%s19145_s10 + $0x388] sm:$0xff] }
  0x35   :  { %174 = vst [vmem:[#allocation2 + $0x320] sm:$0xff] %v173_v51  ;;  %v301_v51 = vld [vmem:[%s19145_s10 + $0x390] sm:$0xff] }
  0x36   :  { %176 = vst [vmem:[#allocation2 + $0x700] sm:$0xff] %v175_v52  ;;  %v303_v52 = vld [vmem:[%s19145_s10 + $0x398] sm:$0xff] }
  0x37   :  { %178 = vst [vmem:[#allocation2 + $0x5f8] sm:$0xff] %v177_v53  ;;  %v305_v53 = vld [vmem:[%s19145_s10 + $0x3a0] sm:$0xff] }
  0x38   :  { %180 = vst [vmem:[#allocation2 + $0x620] sm:$0xff] %v179_v54  ;;  %v307_v54 = vld [vmem:[%s19145_s10 + $0x3a8] sm:$0xff] }
  0x39   :  { %182 = vst [vmem:[#allocation2 + $0x630] sm:$0xff] %v181_v55  ;;  %v309_v55 = vld [vmem:[%s19145_s10 + $0x3b0] sm:$0xff] }
  0x3a   :  { %184 = vst [vmem:[#allocation2 + $0x7a8] sm:$0xff] %v183_v56  ;;  %v311_v56 = vld [vmem:[%s19145_s10 + $0x3b8] sm:$0xff] }
  0x3b   :  { %186 = vst [vmem:[#allocation2 + $0x70] sm:$0xff] %v185_v57  ;;  %v313_v57 = vld [vmem:[%s19145_s10 + $0x3c0] sm:$0xff] }
  0x3c   :  { %188 = vst [vmem:[#allocation2 + $0x678] sm:$0xff] %v187_v58  ;;  %v315_v58 = vld [vmem:[%s19145_s10 + $0x3c8] sm:$0xff] }
  0x3d   :  { %190 = vst [vmem:[#allocation2 + $0xa88] sm:$0xff] %v189_v59  ;;  %v317_v59 = vld [vmem:[%s19145_s10 + $0x3d0] sm:$0xff] }
  0x3e   :  { %192 = vst [vmem:[#allocation2 + $0xb80] sm:$0xff] %v191_v60  ;;  %v319_v60 = vld [vmem:[%s19145_s10 + $0x3d8] sm:$0xff] }
  0x3f   :  { %194 = vst [vmem:[#allocation2 + $0xc58] sm:$0xff] %v193_v61  ;;  %v321_v61 = vld [vmem:[%s19145_s10 + $0x3e0] sm:$0xff] }
  0x40   :  { %196 = vst [vmem:[#allocation2 + $0x8d8] sm:$0xff] %v195_v62  ;;  %v323_v62 = vld [vmem:[%s19145_s10 + $0x3e8] sm:$0xff] }
  0x41   :  { %198 = vst [vmem:[#allocation2 + $0x9d8] sm:$0xff] %v197_v63  ;;  %v325_v63 = vld [vmem:[%s19145_s10 + $0x3f0] sm:$0xff] }
  0x42   :  { %200 = vst [vmem:[#allocation2 + $0x800] sm:$0xff] %v199_v0  ;;  %v327_v0 = vld [vmem:[%s19145_s10 + $0x3f8] sm:$0xff] }
  0x43   :  { %202 = vst [vmem:[#allocation2 + $0xe68] sm:$0xff] %v201_v1  ;;  %v329_v1 = vld [vmem:[%s19145_s10 + $0x400] sm:$0xff] }
  0x44   :  { %204 = vst [vmem:[#allocation2 + $0x6f0] sm:$0xff] %v203_v2  ;;  %v331_v2 = vld [vmem:[%s19145_s10 + $0x408] sm:$0xff] }
  0x45   :  { %206 = vst [vmem:[#allocation2 + $0xbe8] sm:$0xff] %v205_v3  ;;  %v333_v3 = vld [vmem:[%s19145_s10 + $0x410] sm:$0xff] }
  0x46   :  { %208 = vst [vmem:[#allocation2 + $0xd30] sm:$0xff] %v207_v4  ;;  %v335_v4 = vld [vmem:[%s19145_s10 + $0x418] sm:$0xff] }
  0x47   :  { %210 = vst [vmem:[#allocation2 + $0x358] sm:$0xff] %v209_v5  ;;  %v337_v5 = vld [vmem:[%s19145_s10 + $0x420] sm:$0xff] }
  0x48   :  { %212 = vst [vmem:[#allocation2 + $0x490] sm:$0xff] %v211_v6  ;;  %v339_v6 = vld [vmem:[%s19145_s10 + $0x428] sm:$0xff] }
  0x49   :  { %214 = vst [vmem:[#allocation2 + $0x488] sm:$0xff] %v213_v7  ;;  %v341_v7 = vld [vmem:[%s19145_s10 + $0x430] sm:$0xff] }
  0x4a   :  { %216 = vst [vmem:[#allocation2 + $0xd60] sm:$0xff] %v215_v8  ;;  %v343_v8 = vld [vmem:[%s19145_s10 + $0x438] sm:$0xff] }
  0x4b   :  { %218 = vst [vmem:[#allocation2 + $0xbd8] sm:$0xff] %v217_v9  ;;  %v345_v9 = vld [vmem:[%s19145_s10 + $0x440] sm:$0xff] }
  0x4c   :  { %220 = vst [vmem:[#allocation2 + $0x580] sm:$0xff] %v219_v10  ;;  %v347_v10 = vld [vmem:[%s19145_s10 + $0x448] sm:$0xff] }
  0x4d   :  { %222 = vst [vmem:[#allocation2 + $0x208] sm:$0xff] %v221_v11  ;;  %v349_v11 = vld [vmem:[%s19145_s10 + $0x450] sm:$0xff] }
  0x4e   :  { %224 = vst [vmem:[#allocation2 + $0x158] sm:$0xff] %v223_v12  ;;  %v351_v12 = vld [vmem:[%s19145_s10 + $0x458] sm:$0xff] }
  0x4f   :  { %226 = vst [vmem:[#allocation2 + $0xec8] sm:$0xff] %v225_v13  ;;  %v353_v13 = vld [vmem:[%s19145_s10 + $0x460] sm:$0xff] }
  0x50   :  { %228 = vst [vmem:[#allocation2 + $0xdb0] sm:$0xff] %v227_v14  ;;  %v355_v14 = vld [vmem:[%s19145_s10 + $0x468] sm:$0xff] }
  0x51   :  { %230 = vst [vmem:[#allocation2 + $0x660] sm:$0xff] %v229_v15  ;;  %v357_v15 = vld [vmem:[%s19145_s10 + $0x470] sm:$0xff] }
  0x52   :  { %232 = vst [vmem:[#allocation2 + $0x6d8] sm:$0xff] %v231_v16  ;;  %v359_v16 = vld [vmem:[%s19145_s10 + $0x478] sm:$0xff] }
  0x53   :  { %234 = vst [vmem:[#allocation2 + $0xbc8] sm:$0xff] %v233_v17  ;;  %v361_v17 = vld [vmem:[%s19145_s10 + $0x480] sm:$0xff] }
  0x54   :  { %236 = vst [vmem:[#allocation2 + $0xf38] sm:$0xff] %v235_v18  ;;  %v363_v18 = vld [vmem:[%s19145_s10 + $0x488] sm:$0xff] }
  0x55   :  { %238 = vst [vmem:[#allocation2 + $0x98] sm:$0xff] %v237_v19  ;;  %v365_v19 = vld [vmem:[%s19145_s10 + $0x490] sm:$0xff] }
  0x56   :  { %240 = vst [vmem:[#allocation2 + $0xa48] sm:$0xff] %v239_v20  ;;  %v367_v20 = vld [vmem:[%s19145_s10 + $0x498] sm:$0xff] }
  0x57   :  { %242 = vst [vmem:[#allocation2 + $0x1b8] sm:$0xff] %v241_v21  ;;  %v369_v21 = vld [vmem:[%s19145_s10 + $0x4a0] sm:$0xff] }
  0x58   :  { %244 = vst [vmem:[#allocation2 + $0x188] sm:$0xff] %v243_v22  ;;  %v371_v22 = vld [vmem:[%s19145_s10 + $0x4a8] sm:$0xff] }
  0x59   :  { %246 = vst [vmem:[#allocation2 + $0x650] sm:$0xff] %v245_v23  ;;  %v373_v23 = vld [vmem:[%s19145_s10 + $0x4b0] sm:$0xff] }
  0x5a   :  { %248 = vst [vmem:[#allocation2 + $0x90] sm:$0xff] %v247_v24  ;;  %v375_v24 = vld [vmem:[%s19145_s10 + $0x4b8] sm:$0xff] }
  0x5b   :  { %250 = vst [vmem:[#allocation2 + $0xdf0] sm:$0xff] %v249_v25  ;;  %v377_v25 = vld [vmem:[%s19145_s10 + $0x4c0] sm:$0xff] }
  0x5c   :  { %252 = vst [vmem:[#allocation2 + $0x9b0] sm:$0xff] %v251_v26  ;;  %v379_v26 = vld [vmem:[%s19145_s10 + $0x4c8] sm:$0xff] }
  0x5d   :  { %254 = vst [vmem:[#allocation2 + $0x180] sm:$0xff] %v253_v27  ;;  %v381_v27 = vld [vmem:[%s19145_s10 + $0x4d0] sm:$0xff] }
  0x5e   :  { %256 = vst [vmem:[#allocation2 + $0x288] sm:$0xff] %v255_v28  ;;  %v383_v28 = vld [vmem:[%s19145_s10 + $0x4d8] sm:$0xff] }
  0x5f   :  { %258 = vst [vmem:[#allocation2 + $0x8e0] sm:$0xff] %v257_v29  ;;  %v385_v29 = vld [vmem:[%s19145_s10 + $0x4e0] sm:$0xff] }
  0x60   :  { %260 = vst [vmem:[#allocation2 + $0xc00] sm:$0xff] %v259_v30  ;;  %v387_v30 = vld [vmem:[%s19145_s10 + $0x4e8] sm:$0xff] }
  0x61   :  { %262 = vst [vmem:[#allocation2 + $0x230] sm:$0xff] %v261_v31  ;;  %v389_v31 = vld [vmem:[%s19145_s10 + $0x4f0] sm:$0xff] }
  0x62   :  { %264 = vst [vmem:[#allocation2 + $0x2e0] sm:$0xff] %v263_v32  ;;  %v391_v32 = vld [vmem:[%s19145_s10 + $0x4f8] sm:$0xff] }
  0x63   :  { %266 = vst [vmem:[#allocation2 + $0x708] sm:$0xff] %v265_v33  ;;  %v393_v33 = vld [vmem:[%s19145_s10 + $0x500] sm:$0xff] }
  0x64   :  { %268 = vst [vmem:[#allocation2 + $0x428] sm:$0xff] %v267_v34  ;;  %v395_v34 = vld [vmem:[%s19145_s10 + $0x508] sm:$0xff] }
  0x65   :  { %270 = vst [vmem:[#allocation2 + $0xe48] sm:$0xff] %v269_v35  ;;  %v397_v35 = vld [vmem:[%s19145_s10 + $0x510] sm:$0xff] }
  0x66   :  { %272 = vst [vmem:[#allocation2 + $0xe80] sm:$0xff] %v271_v36  ;;  %v399_v36 = vld [vmem:[%s19145_s10 + $0x518] sm:$0xff] }
  0x67   :  { %274 = vst [vmem:[#allocation2 + $0x250] sm:$0xff] %v273_v37  ;;  %v401_v37 = vld [vmem:[%s19145_s10 + $0x520] sm:$0xff] }
  0x68   :  { %276 = vst [vmem:[#allocation2 + $0x380] sm:$0xff] %v275_v38  ;;  %v403_v38 = vld [vmem:[%s19145_s10 + $0x528] sm:$0xff] }
  0x69   :  { %278 = vst [vmem:[#allocation2 + $0xa58] sm:$0xff] %v277_v39  ;;  %v405_v39 = vld [vmem:[%s19145_s10 + $0x530] sm:$0xff] }
  0x6a   :  { %280 = vst [vmem:[#allocation2 + $0xae0] sm:$0xff] %v279_v40  ;;  %v407_v40 = vld [vmem:[%s19145_s10 + $0x538] sm:$0xff] }
  0x6b   :  { %282 = vst [vmem:[#allocation2 + $0xea8] sm:$0xff] %v281_v41  ;;  %v409_v41 = vld [vmem:[%s19145_s10 + $0x540] sm:$0xff] }
  0x6c   :  { %284 = vst [vmem:[#allocation2 + $0x9c0] sm:$0xff] %v283_v42  ;;  %v411_v42 = vld [vmem:[%s19145_s10 + $0x548] sm:$0xff] }
  0x6d   :  { %286 = vst [vmem:[#allocation2 + $0x418] sm:$0xff] %v285_v43  ;;  %v413_v43 = vld [vmem:[%s19145_s10 + $0x550] sm:$0xff] }
  0x6e   :  { %288 = vst [vmem:[#allocation2 + $0x410] sm:$0xff] %v287_v44  ;;  %v415_v44 = vld [vmem:[%s19145_s10 + $0x558] sm:$0xff] }
  0x6f   :  { %290 = vst [vmem:[#allocation2 + $0x760] sm:$0xff] %v289_v45  ;;  %v417_v45 = vld [vmem:[%s19145_s10 + $0x560] sm:$0xff] }
  0x70   :  { %292 = vst [vmem:[#allocation2 + $0x9e0] sm:$0xff] %v291_v46  ;;  %v419_v46 = vld [vmem:[%s19145_s10 + $0x568] sm:$0xff] }
  0x71   :  { %294 = vst [vmem:[#allocation2 + $0x100] sm:$0xff] %v293_v47  ;;  %v421_v47 = vld [vmem:[%s19145_s10 + $0x570] sm:$0xff] }
  0x72   :  { %296 = vst [vmem:[#allocation2 + $0x78] sm:$0xff] %v295_v48  ;;  %v423_v48 = vld [vmem:[%s19145_s10 + $0x578] sm:$0xff] }
  0x73   :  { %298 = vst [vmem:[#allocation2 + $0xec0] sm:$0xff] %v297_v49  ;;  %v425_v49 = vld [vmem:[%s19145_s10 + $0x580] sm:$0xff] }
  0x74   :  { %300 = vst [vmem:[#allocation2 + $0x438] sm:$0xff] %v299_v50  ;;  %v427_v50 = vld [vmem:[%s19145_s10 + $0x588] sm:$0xff] }
  0x75   :  { %302 = vst [vmem:[#allocation2 + $0xca8] sm:$0xff] %v301_v51  ;;  %v429_v51 = vld [vmem:[%s19145_s10 + $0x590] sm:$0xff] }
  0x76   :  { %304 = vst [vmem:[#allocation2 + $0xaf8] sm:$0xff] %v303_v52  ;;  %v431_v52 = vld [vmem:[%s19145_s10 + $0x598] sm:$0xff] }
  0x77   :  { %306 = vst [vmem:[#allocation2 + $0xa28] sm:$0xff] %v305_v53  ;;  %v433_v53 = vld [vmem:[%s19145_s10 + $0x5a0] sm:$0xff] }
  0x78   :  { %308 = vst [vmem:[#allocation2 + $0xa20] sm:$0xff] %v307_v54  ;;  %v435_v54 = vld [vmem:[%s19145_s10 + $0x5a8] sm:$0xff] }
  0x79   :  { %310 = vst [vmem:[#allocation2 + $0xd50] sm:$0xff] %v309_v55  ;;  %v437_v55 = vld [vmem:[%s19145_s10 + $0x5b0] sm:$0xff] }
  0x7a   :  { %312 = vst [vmem:[#allocation2 + $0xbb8] sm:$0xff] %v311_v56  ;;  %v439_v56 = vld [vmem:[%s19145_s10 + $0x5b8] sm:$0xff] }
  0x7b   :  { %314 = vst [vmem:[#allocation2 + $0x3d8] sm:$0xff] %v313_v57  ;;  %v441_v57 = vld [vmem:[%s19145_s10 + $0x5c0] sm:$0xff] }
  0x7c   :  { %316 = vst [vmem:[#allocation2 + $0x5e0] sm:$0xff] %v315_v58  ;;  %v443_v58 = vld [vmem:[%s19145_s10 + $0x5c8] sm:$0xff] }
  0x7d   :  { %318 = vst [vmem:[#allocation2 + $0x980] sm:$0xff] %v317_v59  ;;  %v445_v59 = vld [vmem:[%s19145_s10 + $0x5d0] sm:$0xff] }
  0x7e   :  { %320 = vst [vmem:[#allocation2 + $0x990] sm:$0xff] %v319_v60  ;;  %v447_v60 = vld [vmem:[%s19145_s10 + $0x5d8] sm:$0xff] }
  0x7f   :  { %322 = vst [vmem:[#allocation2 + $0xb10] sm:$0xff] %v321_v61  ;;  %v449_v61 = vld [vmem:[%s19145_s10 + $0x5e0] sm:$0xff] }
  0x80   :  { %324 = vst [vmem:[#allocation2 + $0x960] sm:$0xff] %v323_v62  ;;  %v451_v62 = vld [vmem:[%s19145_s10 + $0x5e8] sm:$0xff] }
  0x81   :  { %326 = vst [vmem:[#allocation2 + $0x310] sm:$0xff] %v325_v63  ;;  %v453_v63 = vld [vmem:[%s19145_s10 + $0x5f0] sm:$0xff] }
  0x82   :  { %328 = vst [vmem:[#allocation2 + $0xd8] sm:$0xff] %v327_v0  ;;  %v455_v0 = vld [vmem:[%s19145_s10 + $0x5f8] sm:$0xff] }
  0x83   :  { %330 = vst [vmem:[#allocation2 + $0x1c0] sm:$0xff] %v329_v1  ;;  %v457_v1 = vld [vmem:[%s19145_s10 + $0x600] sm:$0xff] }
  0x84   :  { %332 = vst [vmem:[#allocation2 + $0xac8] sm:$0xff] %v331_v2  ;;  %v459_v2 = vld [vmem:[%s19145_s10 + $0x608] sm:$0xff] }
  0x85   :  { %334 = vst [vmem:[#allocation2 + $0x820] sm:$0xff] %v333_v3  ;;  %v461_v3 = vld [vmem:[%s19145_s10 + $0x610] sm:$0xff] }
  0x86   :  { %336 = vst [vmem:[#allocation2 + $0x8c8] sm:$0xff] %v335_v4  ;;  %v463_v4 = vld [vmem:[%s19145_s10 + $0x618] sm:$0xff] }
  0x87   :  { %338 = vst [vmem:[#allocation2 + $0xe20] sm:$0xff] %v337_v5  ;;  %v465_v5 = vld [vmem:[%s19145_s10 + $0x620] sm:$0xff] }
  0x88   :  { %340 = vst [vmem:[#allocation2 + $0xb60] sm:$0xff] %v339_v6  ;;  %v467_v6 = vld [vmem:[%s19145_s10 + $0x628] sm:$0xff] }
  0x89   :  { %342 = vst [vmem:[#allocation2 + $0xed8] sm:$0xff] %v341_v7  ;;  %v469_v7 = vld [vmem:[%s19145_s10 + $0x630] sm:$0xff] }
  0x8a   :  { %344 = vst [vmem:[#allocation2 + $0xc80] sm:$0xff] %v343_v8  ;;  %v471_v8 = vld [vmem:[%s19145_s10 + $0x638] sm:$0xff] }
  0x8b   :  { %346 = vst [vmem:[#allocation2 + $0x950] sm:$0xff] %v345_v9  ;;  %v473_v9 = vld [vmem:[%s19145_s10 + $0x640] sm:$0xff] }
  0x8c   :  { %348 = vst [vmem:[#allocation2 + $0x698] sm:$0xff] %v347_v10  ;;  %v475_v10 = vld [vmem:[%s19145_s10 + $0x648] sm:$0xff] }
  0x8d   :  { %350 = vst [vmem:[#allocation2 + $0x2d0] sm:$0xff] %v349_v11  ;;  %v477_v11 = vld [vmem:[%s19145_s10 + $0x650] sm:$0xff] }
  0x8e   :  { %352 = vst [vmem:[#allocation2 + $0xf18] sm:$0xff] %v351_v12  ;;  %v479_v12 = vld [vmem:[%s19145_s10 + $0x658] sm:$0xff] }
  0x8f   :  { %354 = vst [vmem:[#allocation2 + $0xb90] sm:$0xff] %v353_v13  ;;  %v481_v13 = vld [vmem:[%s19145_s10 + $0x660] sm:$0xff] }
  0x90   :  { %356 = vst [vmem:[#allocation2 + $0x458] sm:$0xff] %v355_v14  ;;  %v483_v14 = vld [vmem:[%s19145_s10 + $0x668] sm:$0xff] }
  0x91   :  { %358 = vst [vmem:[#allocation2 + $0xf20] sm:$0xff] %v357_v15  ;;  %v485_v15 = vld [vmem:[%s19145_s10 + $0x670] sm:$0xff] }
  0x92   :  { %360 = vst [vmem:[#allocation2 + $0x8] sm:$0xff] %v359_v16  ;;  %v487_v16 = vld [vmem:[%s19145_s10 + $0x678] sm:$0xff] }
  0x93   :  { %362 = vst [vmem:[#allocation2 + $0xc40] sm:$0xff] %v361_v17  ;;  %v489_v17 = vld [vmem:[%s19145_s10 + $0x680] sm:$0xff] }
  0x94   :  { %364 = vst [vmem:[#allocation2 + $0xd48] sm:$0xff] %v363_v18  ;;  %v491_v18 = vld [vmem:[%s19145_s10 + $0x688] sm:$0xff] }
  0x95   :  { %366 = vst [vmem:[#allocation2 + $0x7b8] sm:$0xff] %v365_v19  ;;  %v493_v19 = vld [vmem:[%s19145_s10 + $0x690] sm:$0xff] }
  0x96   :  { %368 = vst [vmem:[#allocation2 + $0x6b0] sm:$0xff] %v367_v20  ;;  %v495_v20 = vld [vmem:[%s19145_s10 + $0x698] sm:$0xff] }
  0x97   :  { %370 = vst [vmem:[#allocation2 + $0x3d0] sm:$0xff] %v369_v21  ;;  %v497_v21 = vld [vmem:[%s19145_s10 + $0x6a0] sm:$0xff] }
  0x98   :  { %372 = vst [vmem:[#allocation2 + $0x228] sm:$0xff] %v371_v22  ;;  %v499_v22 = vld [vmem:[%s19145_s10 + $0x6a8] sm:$0xff] }
  0x99   :  { %374 = vst [vmem:[#allocation2 + $0xd00] sm:$0xff] %v373_v23  ;;  %v501_v23 = vld [vmem:[%s19145_s10 + $0x6b0] sm:$0xff] }
  0x9a   :  { %376 = vst [vmem:[#allocation2 + $0x498] sm:$0xff] %v375_v24  ;;  %v503_v24 = vld [vmem:[%s19145_s10 + $0x6b8] sm:$0xff] }
  0x9b   :  { %378 = vst [vmem:[#allocation2 + $0x688] sm:$0xff] %v377_v25  ;;  %v505_v25 = vld [vmem:[%s19145_s10 + $0x6c0] sm:$0xff] }
  0x9c   :  { %380 = vst [vmem:[#allocation2 + $0x5c0] sm:$0xff] %v379_v26  ;;  %v507_v26 = vld [vmem:[%s19145_s10 + $0x6c8] sm:$0xff] }
  0x9d   :  { %382 = vst [vmem:[#allocation2 + $0x858] sm:$0xff] %v381_v27  ;;  %v509_v27 = vld [vmem:[%s19145_s10 + $0x6d0] sm:$0xff] }
  0x9e   :  { %384 = vst [vmem:[#allocation2 + $0x478] sm:$0xff] %v383_v28  ;;  %v511_v28 = vld [vmem:[%s19145_s10 + $0x6d8] sm:$0xff] }
  0x9f   :  { %386 = vst [vmem:[#allocation2 + $0x6f8] sm:$0xff] %v385_v29  ;;  %v513_v29 = vld [vmem:[%s19145_s10 + $0x6e0] sm:$0xff] }
  0xa0   :  { %388 = vst [vmem:[#allocation2 + $0xc70] sm:$0xff] %v387_v30  ;;  %v515_v30 = vld [vmem:[%s19145_s10 + $0x6e8] sm:$0xff] }
  0xa1   :  { %390 = vst [vmem:[#allocation2 + $0x780] sm:$0xff] %v389_v31  ;;  %v517_v31 = vld [vmem:[%s19145_s10 + $0x6f0] sm:$0xff] }
  0xa2   :  { %392 = vst [vmem:[#allocation2 + $0x1f8] sm:$0xff] %v391_v32  ;;  %v519_v32 = vld [vmem:[%s19145_s10 + $0x6f8] sm:$0xff] }
  0xa3   :  { %394 = vst [vmem:[#allocation2 + $0xbc0] sm:$0xff] %v393_v33  ;;  %v521_v33 = vld [vmem:[%s19145_s10 + $0x700] sm:$0xff] }
  0xa4   :  { %396 = vst [vmem:[#allocation2 + $0x788] sm:$0xff] %v395_v34  ;;  %v523_v34 = vld [vmem:[%s19145_s10 + $0x708] sm:$0xff] }
  0xa5   :  { %398 = vst [vmem:[#allocation2 + $0x4b8] sm:$0xff] %v397_v35  ;;  %v525_v35 = vld [vmem:[%s19145_s10 + $0x710] sm:$0xff] }
  0xa6   :  { %400 = vst [vmem:[#allocation2 + $0x4c8] sm:$0xff] %v399_v36  ;;  %v527_v36 = vld [vmem:[%s19145_s10 + $0x718] sm:$0xff] }
  0xa7   :  { %402 = vst [vmem:[#allocation2 + $0x38] sm:$0xff] %v401_v37  ;;  %v529_v37 = vld [vmem:[%s19145_s10 + $0x720] sm:$0xff] }
  0xa8   :  { %404 = vst [vmem:[#allocation2 + $0x3b0] sm:$0xff] %v403_v38  ;;  %v531_v38 = vld [vmem:[%s19145_s10 + $0x728] sm:$0xff] }
  0xa9   :  { %406 = vst [vmem:[#allocation2 + $0x7c8] sm:$0xff] %v405_v39  ;;  %v533_v39 = vld [vmem:[%s19145_s10 + $0x730] sm:$0xff] }
  0xaa   :  { %408 = vst [vmem:[#allocation2 + $0xd90] sm:$0xff] %v407_v40  ;;  %v535_v40 = vld [vmem:[%s19145_s10 + $0x738] sm:$0xff] }
  0xab   :  { %410 = vst [vmem:[#allocation2 + $0xba8] sm:$0xff] %v409_v41  ;;  %v537_v41 = vld [vmem:[%s19145_s10 + $0x740] sm:$0xff] }
  0xac   :  { %412 = vst [vmem:[#allocation2 + $0x9c8] sm:$0xff] %v411_v42  ;;  %v539_v42 = vld [vmem:[%s19145_s10 + $0x748] sm:$0xff] }
  0xad   :  { %414 = vst [vmem:[#allocation2 + $0x2f0] sm:$0xff] %v413_v43  ;;  %v541_v43 = vld [vmem:[%s19145_s10 + $0x750] sm:$0xff] }
  0xae   :  { %416 = vst [vmem:[#allocation2 + $0x5d0] sm:$0xff] %v415_v44  ;;  %v543_v44 = vld [vmem:[%s19145_s10 + $0x758] sm:$0xff] }
  0xaf   :  { %418 = vst [vmem:[#allocation2 + $0xfe0] sm:$0xff] %v417_v45  ;;  %v545_v45 = vld [vmem:[%s19145_s10 + $0x760] sm:$0xff] }
  0xb0   :  { %420 = vst [vmem:[#allocation2 + $0xb98] sm:$0xff] %v419_v46  ;;  %v547_v46 = vld [vmem:[%s19145_s10 + $0x768] sm:$0xff] }
  0xb1   :  { %422 = vst [vmem:[#allocation2 + $0x840] sm:$0xff] %v421_v47  ;;  %v549_v47 = vld [vmem:[%s19145_s10 + $0x770] sm:$0xff] }
  0xb2   :  { %424 = vst [vmem:[#allocation2 + $0x768] sm:$0xff] %v423_v48  ;;  %v551_v48 = vld [vmem:[%s19145_s10 + $0x778] sm:$0xff] }
  0xb3   :  { %426 = vst [vmem:[#allocation2 + $0x568] sm:$0xff] %v425_v49  ;;  %v553_v49 = vld [vmem:[%s19145_s10 + $0x780] sm:$0xff] }
  0xb4   :  { %428 = vst [vmem:[#allocation2 + $0xb30] sm:$0xff] %v427_v50  ;;  %v555_v50 = vld [vmem:[%s19145_s10 + $0x788] sm:$0xff] }
  0xb5   :  { %430 = vst [vmem:[#allocation2 + $0x9f8] sm:$0xff] %v429_v51  ;;  %v557_v51 = vld [vmem:[%s19145_s10 + $0x790] sm:$0xff] }
  0xb6   :  { %432 = vst [vmem:[#allocation2 + $0x138] sm:$0xff] %v431_v52  ;;  %v559_v52 = vld [vmem:[%s19145_s10 + $0x798] sm:$0xff] }
  0xb7   :  { %434 = vst [vmem:[#allocation2 + $0xf00] sm:$0xff] %v433_v53  ;;  %v561_v53 = vld [vmem:[%s19145_s10 + $0x7a0] sm:$0xff] }
  0xb8   :  { %436 = vst [vmem:[#allocation2 + $0xd08] sm:$0xff] %v435_v54  ;;  %v563_v54 = vld [vmem:[%s19145_s10 + $0x7a8] sm:$0xff] }
  0xb9   :  { %438 = vst [vmem:[#allocation2 + $0xe00] sm:$0xff] %v437_v55  ;;  %v565_v55 = vld [vmem:[%s19145_s10 + $0x7b0] sm:$0xff] }
  0xba   :  { %440 = vst [vmem:[#allocation2 + $0xc28] sm:$0xff] %v439_v56  ;;  %v567_v56 = vld [vmem:[%s19145_s10 + $0x7b8] sm:$0xff] }
  0xbb   :  { %442 = vst [vmem:[#allocation2 + $0x6e0] sm:$0xff] %v441_v57  ;;  %v569_v57 = vld [vmem:[%s19145_s10 + $0x7c0] sm:$0xff] }
  0xbc   :  { %444 = vst [vmem:[#allocation2 + $0x970] sm:$0xff] %v443_v58  ;;  %v571_v58 = vld [vmem:[%s19145_s10 + $0x7c8] sm:$0xff] }
  0xbd   :  { %446 = vst [vmem:[#allocation2 + $0x628] sm:$0xff] %v445_v59  ;;  %v573_v59 = vld [vmem:[%s19145_s10 + $0x7d0] sm:$0xff] }
  0xbe   :  { %448 = vst [vmem:[#allocation2 + $0xb50] sm:$0xff] %v447_v60  ;;  %v575_v60 = vld [vmem:[%s19145_s10 + $0x7d8] sm:$0xff] }
  0xbf   :  { %450 = vst [vmem:[#allocation2 + $0x920] sm:$0xff] %v449_v61  ;;  %v577_v61 = vld [vmem:[%s19145_s10 + $0x7e0] sm:$0xff] }
  0xc0   :  { %452 = vst [vmem:[#allocation2 + $0xef8] sm:$0xff] %v451_v62  ;;  %v579_v62 = vld [vmem:[%s19145_s10 + $0x7e8] sm:$0xff] }
  0xc1   :  { %454 = vst [vmem:[#allocation2 + $0x370] sm:$0xff] %v453_v63  ;;  %v581_v63 = vld [vmem:[%s19145_s10 + $0x7f0] sm:$0xff] }
  0xc2   :  { %456 = vst [vmem:[#allocation2 + $0x2e8] sm:$0xff] %v455_v0  ;;  %v583_v0 = vld [vmem:[%s19145_s10 + $0x7f8] sm:$0xff] }
  0xc3   :  { %458 = vst [vmem:[#allocation2 + $0x398] sm:$0xff] %v457_v1  ;;  %v585_v1 = vld [vmem:[%s19145_s10 + $0x800] sm:$0xff] }
  0xc4   :  { %460 = vst [vmem:[#allocation2 + $0xe0] sm:$0xff] %v459_v2  ;;  %v587_v2 = vld [vmem:[%s19145_s10 + $0x808] sm:$0xff] }
  0xc5   :  { %462 = vst [vmem:[#allocation2 + $0x1e0] sm:$0xff] %v461_v3  ;;  %v589_v3 = vld [vmem:[%s19145_s10 + $0x810] sm:$0xff] }
  0xc6   :  { %464 = vst [vmem:[#allocation2 + $0xf90] sm:$0xff] %v463_v4  ;;  %v591_v4 = vld [vmem:[%s19145_s10 + $0x818] sm:$0xff] }
  0xc7   :  { %466 = vst [vmem:[#allocation2 + $0x270] sm:$0xff] %v465_v5  ;;  %v593_v5 = vld [vmem:[%s19145_s10 + $0x820] sm:$0xff] }
  0xc8   :  { %468 = vst [vmem:[#allocation2 + $0x8f8] sm:$0xff] %v467_v6  ;;  %v595_v6 = vld [vmem:[%s19145_s10 + $0x828] sm:$0xff] }
  0xc9   :  { %470 = vst [vmem:[#allocation2 + $0x598] sm:$0xff] %v469_v7  ;;  %v597_v7 = vld [vmem:[%s19145_s10 + $0x830] sm:$0xff] }
  0xca   :  { %472 = vst [vmem:[#allocation2 + $0x750] sm:$0xff] %v471_v8  ;;  %v599_v8 = vld [vmem:[%s19145_s10 + $0x838] sm:$0xff] }
  0xcb   :  { %474 = vst [vmem:[#allocation2 + $0xb08] sm:$0xff] %v473_v9  ;;  %v601_v9 = vld [vmem:[%s19145_s10 + $0x840] sm:$0xff] }
  0xcc   :  { %476 = vst [vmem:[#allocation2 + $0xde8] sm:$0xff] %v475_v10  ;;  %v603_v10 = vld [vmem:[%s19145_s10 + $0x848] sm:$0xff] }
  0xcd   :  { %478 = vst [vmem:[#allocation2 + $0x308] sm:$0xff] %v477_v11  ;;  %v605_v11 = vld [vmem:[%s19145_s10 + $0x850] sm:$0xff] }
  0xce   :  { %480 = vst [vmem:[#allocation2 + $0x9a8] sm:$0xff] %v479_v12  ;;  %v607_v12 = vld [vmem:[%s19145_s10 + $0x858] sm:$0xff] }
  0xcf   :  { %482 = vst [vmem:[#allocation2 + $0xe98] sm:$0xff] %v481_v13  ;;  %v609_v13 = vld [vmem:[%s19145_s10 + $0x860] sm:$0xff] }
  0xd0   :  { %484 = vst [vmem:[#allocation2 + $0x268] sm:$0xff] %v483_v14  ;;  %v611_v14 = vld [vmem:[%s19145_s10 + $0x868] sm:$0xff] }
  0xd1   :  { %486 = vst [vmem:[#allocation2 + $0x610] sm:$0xff] %v485_v15  ;;  %v613_v15 = vld [vmem:[%s19145_s10 + $0x870] sm:$0xff] }
  0xd2   :  { %488 = vst [vmem:[#allocation2 + $0x50] sm:$0xff] %v487_v16  ;;  %v615_v16 = vld [vmem:[%s19145_s10 + $0x878] sm:$0xff] }
  0xd3   :  { %490 = vst [vmem:[#allocation2 + $0x6d0] sm:$0xff] %v489_v17  ;;  %v617_v17 = vld [vmem:[%s19145_s10 + $0x880] sm:$0xff] }
  0xd4   :  { %492 = vst [vmem:[#allocation2 + $0xa60] sm:$0xff] %v491_v18  ;;  %v619_v18 = vld [vmem:[%s19145_s10 + $0x888] sm:$0xff] }
  0xd5   :  { %494 = vst [vmem:[#allocation2 + $0x470] sm:$0xff] %v493_v19  ;;  %v621_v19 = vld [vmem:[%s19145_s10 + $0x890] sm:$0xff] }
  0xd6   :  { %496 = vst [vmem:[#allocation2 + $0x928] sm:$0xff] %v495_v20  ;;  %v623_v20 = vld [vmem:[%s19145_s10 + $0x898] sm:$0xff] }
  0xd7   :  { %498 = vst [vmem:[#allocation2 + $0x8a0] sm:$0xff] %v497_v21  ;;  %v625_v21 = vld [vmem:[%s19145_s10 + $0x8a0] sm:$0xff] }
  0xd8   :  { %500 = vst [vmem:[#allocation2 + $0xe88] sm:$0xff] %v499_v22  ;;  %v627_v22 = vld [vmem:[%s19145_s10 + $0x8a8] sm:$0xff] }
  0xd9   :  { %502 = vst [vmem:[#allocation2 + $0xb68] sm:$0xff] %v501_v23  ;;  %v629_v23 = vld [vmem:[%s19145_s10 + $0x8b0] sm:$0xff] }
  0xda   :  { %504 = vst [vmem:[#allocation2 + $0x6a8] sm:$0xff] %v503_v24  ;;  %v631_v24 = vld [vmem:[%s19145_s10 + $0x8b8] sm:$0xff] }
  0xdb   :  { %506 = vst [vmem:[#allocation2 + $0xe50] sm:$0xff] %v505_v25  ;;  %v633_v25 = vld [vmem:[%s19145_s10 + $0x8c0] sm:$0xff] }
  0xdc   :  { %508 = vst [vmem:[#allocation2 + $0x7c0] sm:$0xff] %v507_v26  ;;  %v635_v26 = vld [vmem:[%s19145_s10 + $0x8c8] sm:$0xff] }
  0xdd   :  { %510 = vst [vmem:[#allocation2 + $0xe90] sm:$0xff] %v509_v27  ;;  %v637_v27 = vld [vmem:[%s19145_s10 + $0x8d0] sm:$0xff] }
  0xde   :  { %512 = vst [vmem:[#allocation2 + $0xc38] sm:$0xff] %v511_v28  ;;  %v639_v28 = vld [vmem:[%s19145_s10 + $0x8d8] sm:$0xff] }
  0xdf   :  { %514 = vst [vmem:[#allocation2 + $0xb8] sm:$0xff] %v513_v29  ;;  %v641_v29 = vld [vmem:[%s19145_s10 + $0x8e0] sm:$0xff] }
  0xe0   :  { %516 = vst [vmem:[#allocation2 + $0xc48] sm:$0xff] %v515_v30  ;;  %v643_v30 = vld [vmem:[%s19145_s10 + $0x8e8] sm:$0xff] }
  0xe1   :  { %518 = vst [vmem:[#allocation2 + $0xb20] sm:$0xff] %v517_v31  ;;  %v645_v31 = vld [vmem:[%s19145_s10 + $0x8f0] sm:$0xff] }
  0xe2   :  { %520 = vst [vmem:[#allocation2 + $0x30] sm:$0xff] %v519_v32  ;;  %v647_v32 = vld [vmem:[%s19145_s10 + $0x8f8] sm:$0xff] }
  0xe3   :  { %522 = vst [vmem:[#allocation2 + $0xc8] sm:$0xff] %v521_v33  ;;  %v649_v33 = vld [vmem:[%s19145_s10 + $0x900] sm:$0xff] }
  0xe4   :  { %524 = vst [vmem:[#allocation2 + $0x2b8] sm:$0xff] %v523_v34  ;;  %v651_v34 = vld [vmem:[%s19145_s10 + $0x908] sm:$0xff] }
  0xe5   :  { %526 = vst [vmem:[#allocation2 + $0x2a8] sm:$0xff] %v525_v35  ;;  %v653_v35 = vld [vmem:[%s19145_s10 + $0x910] sm:$0xff] }
  0xe6   :  { %528 = vst [vmem:[#allocation2 + $0xf78] sm:$0xff] %v527_v36  ;;  %v655_v36 = vld [vmem:[%s19145_s10 + $0x918] sm:$0xff] }
  0xe7   :  { %530 = vst [vmem:[#allocation2 + $0x210] sm:$0xff] %v529_v37  ;;  %v657_v37 = vld [vmem:[%s19145_s10 + $0x920] sm:$0xff] }
  0xe8   :  { %532 = vst [vmem:[#allocation2 + $0x998] sm:$0xff] %v531_v38  ;;  %v659_v38 = vld [vmem:[%s19145_s10 + $0x928] sm:$0xff] }
  0xe9   :  { %534 = vst [vmem:[#allocation2 + $0xc88] sm:$0xff] %v533_v39  ;;  %v661_v39 = vld [vmem:[%s19145_s10 + $0x930] sm:$0xff] }
  0xea   :  { %536 = vst [vmem:[#allocation2 + $0xab8] sm:$0xff] %v535_v40  ;;  %v663_v40 = vld [vmem:[%s19145_s10 + $0x938] sm:$0xff] }
  0xeb   :  { %538 = vst [vmem:[#allocation2 + $0x5a8] sm:$0xff] %v537_v41  ;;  %v665_v41 = vld [vmem:[%s19145_s10 + $0x940] sm:$0xff] }
  0xec   :  { %540 = vst [vmem:[#allocation2 + $0x668] sm:$0xff] %v539_v42  ;;  %v667_v42 = vld [vmem:[%s19145_s10 + $0x948] sm:$0xff] }
  0xed   :  { %542 = vst [vmem:[#allocation2 + $0xb18] sm:$0xff] %v541_v43  ;;  %v669_v43 = vld [vmem:[%s19145_s10 + $0x950] sm:$0xff] }
  0xee   :  { %544 = vst [vmem:[#allocation2 + $0x468] sm:$0xff] %v543_v44  ;;  %v671_v44 = vld [vmem:[%s19145_s10 + $0x958] sm:$0xff] }
  0xef   :  { %546 = vst [vmem:[#allocation2 + $0x578] sm:$0xff] %v545_v45  ;;  %v673_v45 = vld [vmem:[%s19145_s10 + $0x960] sm:$0xff] }
  0xf0   :  { %548 = vst [vmem:[#allocation2 + $0x600] sm:$0xff] %v547_v46  ;;  %v675_v46 = vld [vmem:[%s19145_s10 + $0x968] sm:$0xff] }
  0xf1   :  { %550 = vst [vmem:[#allocation2 + $0x570] sm:$0xff] %v549_v47  ;;  %v677_v47 = vld [vmem:[%s19145_s10 + $0x970] sm:$0xff] }
  0xf2   :  { %552 = vst [vmem:[#allocation2 + $0xb40] sm:$0xff] %v551_v48  ;;  %v679_v48 = vld [vmem:[%s19145_s10 + $0x978] sm:$0xff] }
  0xf3   :  { %554 = vst [vmem:[#allocation2 + $0x170] sm:$0xff] %v553_v49  ;;  %v681_v49 = vld [vmem:[%s19145_s10 + $0x980] sm:$0xff] }
  0xf4   :  { %556 = vst [vmem:[#allocation2 + $0x838] sm:$0xff] %v555_v50  ;;  %v683_v50 = vld [vmem:[%s19145_s10 + $0x988] sm:$0xff] }
  0xf5   :  { %558 = vst [vmem:[#allocation2 + $0xcb8] sm:$0xff] %v557_v51  ;;  %v685_v51 = vld [vmem:[%s19145_s10 + $0x990] sm:$0xff] }
  0xf6   :  { %560 = vst [vmem:[#allocation2 + $0xe28] sm:$0xff] %v559_v52  ;;  %v687_v52 = vld [vmem:[%s19145_s10 + $0x998] sm:$0xff] }
  0xf7   :  { %562 = vst [vmem:[#allocation2 + $0x500] sm:$0xff] %v561_v53  ;;  %v689_v53 = vld [vmem:[%s19145_s10 + $0x9a0] sm:$0xff] }
  0xf8   :  { %564 = vst [vmem:[#allocation2 + $0xe60] sm:$0xff] %v563_v54  ;;  %v691_v54 = vld [vmem:[%s19145_s10 + $0x9a8] sm:$0xff] }
  0xf9   :  { %566 = vst [vmem:[#allocation2 + $0x8c0] sm:$0xff] %v565_v55  ;;  %v693_v55 = vld [vmem:[%s19145_s10 + $0x9b0] sm:$0xff] }
  0xfa   :  { %568 = vst [vmem:[#allocation2 + $0xe08] sm:$0xff] %v567_v56  ;;  %v695_v56 = vld [vmem:[%s19145_s10 + $0x9b8] sm:$0xff] }
  0xfb   :  { %570 = vst [vmem:[#allocation2 + $0xb58] sm:$0xff] %v569_v57  ;;  %v697_v57 = vld [vmem:[%s19145_s10 + $0x9c0] sm:$0xff] }
  0xfc   :  { %572 = vst [vmem:[#allocation2 + $0x618] sm:$0xff] %v571_v58  ;;  %v699_v58 = vld [vmem:[%s19145_s10 + $0x9c8] sm:$0xff] }
  0xfd   :  { %574 = vst [vmem:[#allocation2 + $0x200] sm:$0xff] %v573_v59  ;;  %v701_v59 = vld [vmem:[%s19145_s10 + $0x9d0] sm:$0xff] }
  0xfe   :  { %576 = vst [vmem:[#allocation2 + $0x5b0] sm:$0xff] %v575_v60  ;;  %v703_v60 = vld [vmem:[%s19145_s10 + $0x9d8] sm:$0xff] }
  0xff   :  { %578 = vst [vmem:[#allocation2 + $0x140] sm:$0xff] %v577_v61  ;;  %v705_v61 = vld [vmem:[%s19145_s10 + $0x9e0] sm:$0xff] }
 0x100   :  { %580 = vst [vmem:[#allocation2 + $0xc0] sm:$0xff] %v579_v62  ;;  %v707_v62 = vld [vmem:[%s19145_s10 + $0x9e8] sm:$0xff] }
 0x101   :  { %582 = vst [vmem:[#allocation2 + $0xba0] sm:$0xff] %v581_v63  ;;  %v709_v63 = vld [vmem:[%s19145_s10 + $0x9f0] sm:$0xff] }
 0x102   :  { %584 = vst [vmem:[#allocation2 + $0xd0] sm:$0xff] %v583_v0  ;;  %v711_v0 = vld [vmem:[%s19145_s10 + $0x9f8] sm:$0xff] }
 0x103   :  { %586 = vst [vmem:[#allocation2 + $0xd70] sm:$0xff] %v585_v1  ;;  %v713_v1 = vld [vmem:[%s19145_s10 + $0xa00] sm:$0xff] }
 0x104   :  { %588 = vst [vmem:[#allocation2 + $0x448] sm:$0xff] %v587_v2  ;;  %v715_v2 = vld [vmem:[%s19145_s10 + $0xa08] sm:$0xff] }
 0x105   :  { %590 = vst [vmem:[#allocation2 + $0x5a0] sm:$0xff] %v589_v3  ;;  %v717_v3 = vld [vmem:[%s19145_s10 + $0xa10] sm:$0xff] }
 0x106   :  { %592 = vst [vmem:[#allocation2 + $0xc60] sm:$0xff] %v591_v4  ;;  %v719_v4 = vld [vmem:[%s19145_s10 + $0xa18] sm:$0xff] }
 0x107   :  { %594 = vst [vmem:[#allocation2 + $0x360] sm:$0xff] %v593_v5  ;;  %v721_v5 = vld [vmem:[%s19145_s10 + $0xa20] sm:$0xff] }
 0x108   :  { %596 = vst [vmem:[#allocation2 + $0xde0] sm:$0xff] %v595_v6  ;;  %v723_v6 = vld [vmem:[%s19145_s10 + $0xa28] sm:$0xff] }
 0x109   :  { %598 = vst [vmem:[#allocation2 + $0x118] sm:$0xff] %v597_v7  ;;  %v725_v7 = vld [vmem:[%s19145_s10 + $0xa30] sm:$0xff] }
 0x10a   :  { %600 = vst [vmem:[#allocation2 + $0x690] sm:$0xff] %v599_v8  ;;  %v727_v8 = vld [vmem:[%s19145_s10 + $0xa38] sm:$0xff] }
 0x10b   :  { %602 = vst [vmem:[#allocation2 + $0xb48] sm:$0xff] %v601_v9  ;;  %v729_v9 = vld [vmem:[%s19145_s10 + $0xa40] sm:$0xff] }
 0x10c   :  { %604 = vst [vmem:[#allocation2 + $0xeb0] sm:$0xff] %v603_v10  ;;  %v731_v10 = vld [vmem:[%s19145_s10 + $0xa48] sm:$0xff] }
 0x10d   :  { %606 = vst [vmem:[#allocation2 + $0x860] sm:$0xff] %v605_v11  ;;  %v733_v11 = vld [vmem:[%s19145_s10 + $0xa50] sm:$0xff] }
 0x10e   :  { %608 = vst [vmem:[#allocation2 + $0xcc8] sm:$0xff] %v607_v12  ;;  %v735_v12 = vld [vmem:[%s19145_s10 + $0xa58] sm:$0xff] }
 0x10f   :  { %610 = vst [vmem:[#allocation2 + $0xff8] sm:$0xff] %v609_v13  ;;  %v737_v13 = vld [vmem:[%s19145_s10 + $0xa60] sm:$0xff] }
 0x110   :  { %612 = vst [vmem:[#allocation2 + $0x758] sm:$0xff] %v611_v14  ;;  %v739_v14 = vld [vmem:[%s19145_s10 + $0xa68] sm:$0xff] }
 0x111   :  { %614 = vst [vmem:[#allocation2 + $0x590] sm:$0xff] %v613_v15  ;;  %v741_v15 = vld [vmem:[%s19145_s10 + $0xa70] sm:$0xff] }
 0x112   :  { %616 = vst [vmem:[#allocation2 + $0xb00] sm:$0xff] %v615_v16  ;;  %v743_v16 = vld [vmem:[%s19145_s10 + $0xa78] sm:$0xff] }
 0x113   :  { %618 = vst [vmem:[#allocation2 + $0x6c8] sm:$0xff] %v617_v17  ;;  %v745_v17 = vld [vmem:[%s19145_s10 + $0xa80] sm:$0xff] }
 0x114   :  { %620 = vst [vmem:[#allocation2 + $0xee8] sm:$0xff] %v619_v18  ;;  %v747_v18 = vld [vmem:[%s19145_s10 + $0xa88] sm:$0xff] }
 0x115   :  { %622 = vst [vmem:[#allocation2 + $0x848] sm:$0xff] %v621_v19  ;;  %v749_v19 = vld [vmem:[%s19145_s10 + $0xa90] sm:$0xff] }
 0x116   :  { %624 = vst [vmem:[#allocation2 + $0xe78] sm:$0xff] %v623_v20  ;;  %v751_v20 = vld [vmem:[%s19145_s10 + $0xa98] sm:$0xff] }
 0x117   :  { %626 = vst [vmem:[#allocation2 + $0x640] sm:$0xff] %v625_v21  ;;  %v753_v21 = vld [vmem:[%s19145_s10 + $0xaa0] sm:$0xff] }
 0x118   :  { %628 = vst [vmem:[#allocation2 + $0x258] sm:$0xff] %v627_v22  ;;  %v755_v22 = vld [vmem:[%s19145_s10 + $0xaa8] sm:$0xff] }
 0x119   :  { %630 = vst [vmem:[#allocation2 + $0x7f8] sm:$0xff] %v629_v23  ;;  %v757_v23 = vld [vmem:[%s19145_s10 + $0xab0] sm:$0xff] }
 0x11a   :  { %632 = vst [vmem:[#allocation2 + $0x278] sm:$0xff] %v631_v24  ;;  %v759_v24 = vld [vmem:[%s19145_s10 + $0xab8] sm:$0xff] }
 0x11b   :  { %634 = vst [vmem:[#allocation2 + $0x648] sm:$0xff] %v633_v25  ;;  %v761_v25 = vld [vmem:[%s19145_s10 + $0xac0] sm:$0xff] }
 0x11c   :  { %636 = vst [vmem:[#allocation2 + $0x120] sm:$0xff] %v635_v26  ;;  %v763_v26 = vld [vmem:[%s19145_s10 + $0xac8] sm:$0xff] }
 0x11d   :  { %638 = vst [vmem:[#allocation2 + $0x330] sm:$0xff] %v637_v27  ;;  %v765_v27 = vld [vmem:[%s19145_s10 + $0xad0] sm:$0xff] }
 0x11e   :  { %640 = vst [vmem:[#allocation2 + $0x718] sm:$0xff] %v639_v28  ;;  %v767_v28 = vld [vmem:[%s19145_s10 + $0xad8] sm:$0xff] }
 0x11f   :  { %642 = vst [vmem:[#allocation2 + $0x968] sm:$0xff] %v641_v29  ;;  %v769_v29 = vld [vmem:[%s19145_s10 + $0xae0] sm:$0xff] }
 0x120   :  { %644 = vst [vmem:[#allocation2 + $0x7f0] sm:$0xff] %v643_v30  ;;  %v771_v30 = vld [vmem:[%s19145_s10 + $0xae8] sm:$0xff] }
 0x121   :  { %646 = vst [vmem:[#allocation2 + $0x2f8] sm:$0xff] %v645_v31  ;;  %v773_v31 = vld [vmem:[%s19145_s10 + $0xaf0] sm:$0xff] }
 0x122   :  { %648 = vst [vmem:[#allocation2 + $0xc20] sm:$0xff] %v647_v32  ;;  %v775_v32 = vld [vmem:[%s19145_s10 + $0xaf8] sm:$0xff] }
 0x123   :  { %650 = vst [vmem:[#allocation2] sm:$0xff] %v649_v33  ;;  %v777_v33 = vld [vmem:[%s19145_s10 + $0xb00] sm:$0xff] }
 0x124   :  { %652 = vst [vmem:[#allocation2 + $0xe8] sm:$0xff] %v651_v34  ;;  %v779_v34 = vld [vmem:[%s19145_s10 + $0xb08] sm:$0xff] }
 0x125   :  { %654 = vst [vmem:[#allocation2 + $0xfd0] sm:$0xff] %v653_v35  ;;  %v781_v35 = vld [vmem:[%s19145_s10 + $0xb10] sm:$0xff] }
 0x126   :  { %656 = vst [vmem:[#allocation2 + $0x8a8] sm:$0xff] %v655_v36  ;;  %v783_v36 = vld [vmem:[%s19145_s10 + $0xb18] sm:$0xff] }
 0x127   :  { %658 = vst [vmem:[#allocation2 + $0xad8] sm:$0xff] %v657_v37  ;;  %v785_v37 = vld [vmem:[%s19145_s10 + $0xb20] sm:$0xff] }
 0x128   :  { %660 = vst [vmem:[#allocation2 + $0x878] sm:$0xff] %v659_v38  ;;  %v787_v38 = vld [vmem:[%s19145_s10 + $0xb28] sm:$0xff] }
 0x129   :  { %662 = vst [vmem:[#allocation2 + $0x80] sm:$0xff] %v661_v39  ;;  %v789_v39 = vld [vmem:[%s19145_s10 + $0xb30] sm:$0xff] }
 0x12a   :  { %664 = vst [vmem:[#allocation2 + $0xda8] sm:$0xff] %v663_v40  ;;  %v791_v40 = vld [vmem:[%s19145_s10 + $0xb38] sm:$0xff] }
 0x12b   :  { %666 = vst [vmem:[#allocation2 + $0x670] sm:$0xff] %v665_v41  ;;  %v793_v41 = vld [vmem:[%s19145_s10 + $0xb40] sm:$0xff] }
 0x12c   :  { %668 = vst [vmem:[#allocation2 + $0xda0] sm:$0xff] %v667_v42  ;;  %v795_v42 = vld [vmem:[%s19145_s10 + $0xb48] sm:$0xff] }
 0x12d   :  { %670 = vst [vmem:[#allocation2 + $0x530] sm:$0xff] %v669_v43  ;;  %v797_v43 = vld [vmem:[%s19145_s10 + $0xb50] sm:$0xff] }
 0x12e   :  { %672 = vst [vmem:[#allocation2 + $0x20] sm:$0xff] %v671_v44  ;;  %v799_v44 = vld [vmem:[%s19145_s10 + $0xb58] sm:$0xff] }
 0x12f   :  { %674 = vst [vmem:[#allocation2 + $0xf70] sm:$0xff] %v673_v45  ;;  %v801_v45 = vld [vmem:[%s19145_s10 + $0xb60] sm:$0xff] }
 0x130   :  { %676 = vst [vmem:[#allocation2 + $0xeb8] sm:$0xff] %v675_v46  ;;  %v803_v46 = vld [vmem:[%s19145_s10 + $0xb68] sm:$0xff] }
 0x131   :  { %678 = vst [vmem:[#allocation2 + $0x88] sm:$0xff] %v677_v47  ;;  %v805_v47 = vld [vmem:[%s19145_s10 + $0xb70] sm:$0xff] }
 0x132   :  { %680 = vst [vmem:[#allocation2 + $0x318] sm:$0xff] %v679_v48  ;;  %v807_v48 = vld [vmem:[%s19145_s10 + $0xb78] sm:$0xff] }
 0x133   :  { %682 = vst [vmem:[#allocation2 + $0x520] sm:$0xff] %v681_v49  ;;  %v809_v49 = vld [vmem:[%s19145_s10 + $0xb80] sm:$0xff] }
 0x134   :  { %684 = vst [vmem:[#allocation2 + $0x430] sm:$0xff] %v683_v50  ;;  %v811_v50 = vld [vmem:[%s19145_s10 + $0xb88] sm:$0xff] }
 0x135   :  { %686 = vst [vmem:[#allocation2 + $0x8b8] sm:$0xff] %v685_v51  ;;  %v813_v51 = vld [vmem:[%s19145_s10 + $0xb90] sm:$0xff] }
 0x136   :  { %688 = vst [vmem:[#allocation2 + $0x4b0] sm:$0xff] %v687_v52  ;;  %v815_v52 = vld [vmem:[%s19145_s10 + $0xb98] sm:$0xff] }
 0x137   :  { %690 = vst [vmem:[#allocation2 + $0xa38] sm:$0xff] %v689_v53  ;;  %v817_v53 = vld [vmem:[%s19145_s10 + $0xba0] sm:$0xff] }
 0x138   :  { %692 = vst [vmem:[#allocation2 + $0x588] sm:$0xff] %v691_v54  ;;  %v819_v54 = vld [vmem:[%s19145_s10 + $0xba8] sm:$0xff] }
 0x139   :  { %694 = vst [vmem:[#allocation2 + $0xd80] sm:$0xff] %v693_v55  ;;  %v821_v55 = vld [vmem:[%s19145_s10 + $0xbb0] sm:$0xff] }
 0x13a   :  { %696 = vst [vmem:[#allocation2 + $0xa0] sm:$0xff] %v695_v56  ;;  %v823_v56 = vld [vmem:[%s19145_s10 + $0xbb8] sm:$0xff] }
 0x13b   :  { %698 = vst [vmem:[#allocation2 + $0x550] sm:$0xff] %v697_v57  ;;  %v825_v57 = vld [vmem:[%s19145_s10 + $0xbc0] sm:$0xff] }
 0x13c   :  { %700 = vst [vmem:[#allocation2 + $0xf98] sm:$0xff] %v699_v58  ;;  %v827_v58 = vld [vmem:[%s19145_s10 + $0xbc8] sm:$0xff] }
 0x13d   :  { %702 = vst [vmem:[#allocation2 + $0x4f8] sm:$0xff] %v701_v59  ;;  %v829_v59 = vld [vmem:[%s19145_s10 + $0xbd0] sm:$0xff] }
 0x13e   :  { %704 = vst [vmem:[#allocation2 + $0xce0] sm:$0xff] %v703_v60  ;;  %v831_v60 = vld [vmem:[%s19145_s10 + $0xbd8] sm:$0xff] }
 0x13f   :  { %706 = vst [vmem:[#allocation2 + $0xfc8] sm:$0xff] %v705_v61  ;;  %v833_v61 = vld [vmem:[%s19145_s10 + $0xbe0] sm:$0xff] }
 0x140   :  { %708 = vst [vmem:[#allocation2 + $0xf48] sm:$0xff] %v707_v62  ;;  %v835_v62 = vld [vmem:[%s19145_s10 + $0xbe8] sm:$0xff] }
 0x141   :  { %710 = vst [vmem:[#allocation2 + $0x828] sm:$0xff] %v709_v63  ;;  %v837_v63 = vld [vmem:[%s19145_s10 + $0xbf0] sm:$0xff] }
 0x142   :  { %712 = vst [vmem:[#allocation2 + $0xe40] sm:$0xff] %v711_v0  ;;  %v839_v0 = vld [vmem:[%s19145_s10 + $0xbf8] sm:$0xff] }
 0x143   :  { %714 = vst [vmem:[#allocation2 + $0x978] sm:$0xff] %v713_v1  ;;  %v841_v1 = vld [vmem:[%s19145_s10 + $0xc00] sm:$0xff] }
 0x144   :  { %716 = vst [vmem:[#allocation2 + $0x3e0] sm:$0xff] %v715_v2  ;;  %v843_v2 = vld [vmem:[%s19145_s10 + $0xc08] sm:$0xff] }
 0x145   :  { %718 = vst [vmem:[#allocation2 + $0xf80] sm:$0xff] %v717_v3  ;;  %v845_v3 = vld [vmem:[%s19145_s10 + $0xc10] sm:$0xff] }
 0x146   :  { %720 = vst [vmem:[#allocation2 + $0xf50] sm:$0xff] %v719_v4  ;;  %v847_v4 = vld [vmem:[%s19145_s10 + $0xc18] sm:$0xff] }
 0x147   :  { %722 = vst [vmem:[#allocation2 + $0x1b0] sm:$0xff] %v721_v5  ;;  %v849_v5 = vld [vmem:[%s19145_s10 + $0xc20] sm:$0xff] }
 0x148   :  { %724 = vst [vmem:[#allocation2 + $0xdc0] sm:$0xff] %v723_v6  ;;  %v851_v6 = vld [vmem:[%s19145_s10 + $0xc28] sm:$0xff] }
 0x149   :  { %726 = vst [vmem:[#allocation2 + $0xfb0] sm:$0xff] %v725_v7  ;;  %v853_v7 = vld [vmem:[%s19145_s10 + $0xc30] sm:$0xff] }
 0x14a   :  { %728 = vst [vmem:[#allocation2 + $0xdb8] sm:$0xff] %v727_v8  ;;  %v855_v8 = vld [vmem:[%s19145_s10 + $0xc38] sm:$0xff] }
 0x14b   :  { %730 = vst [vmem:[#allocation2 + $0x350] sm:$0xff] %v729_v9  ;;  %v857_v9 = vld [vmem:[%s19145_s10 + $0xc40] sm:$0xff] }
 0x14c   :  { %732 = vst [vmem:[#allocation2 + $0x388] sm:$0xff] %v731_v10  ;;  %v859_v10 = vld [vmem:[%s19145_s10 + $0xc48] sm:$0xff] }
 0x14d   :  { %734 = vst [vmem:[#allocation2 + $0xa78] sm:$0xff] %v733_v11  ;;  %v861_v11 = vld [vmem:[%s19145_s10 + $0xc50] sm:$0xff] }
 0x14e   :  { %736 = vst [vmem:[#allocation2 + $0xcc0] sm:$0xff] %v735_v12  ;;  %v863_v12 = vld [vmem:[%s19145_s10 + $0xc58] sm:$0xff] }
 0x14f   :  { %738 = vst [vmem:[#allocation2 + $0xf40] sm:$0xff] %v737_v13  ;;  %v865_v13 = vld [vmem:[%s19145_s10 + $0xc60] sm:$0xff] }
 0x150   :  { %740 = vst [vmem:[#allocation2 + $0x908] sm:$0xff] %v739_v14  ;;  %v867_v14 = vld [vmem:[%s19145_s10 + $0xc68] sm:$0xff] }
 0x151   :  { %742 = vst [vmem:[#allocation2 + $0xc10] sm:$0xff] %v741_v15  ;;  %v869_v15 = vld [vmem:[%s19145_s10 + $0xc70] sm:$0xff] }
 0x152   :  { %744 = vst [vmem:[#allocation2 + $0x1a0] sm:$0xff] %v743_v16  ;;  %v871_v16 = vld [vmem:[%s19145_s10 + $0xc78] sm:$0xff] }
 0x153   :  { %746 = vst [vmem:[#allocation2 + $0x4d0] sm:$0xff] %v745_v17  ;;  %v873_v17 = vld [vmem:[%s19145_s10 + $0xc80] sm:$0xff] }
 0x154   :  { %748 = vst [vmem:[#allocation2 + $0xfa0] sm:$0xff] %v747_v18  ;;  %v875_v18 = vld [vmem:[%s19145_s10 + $0xc88] sm:$0xff] }
 0x155   :  { %750 = vst [vmem:[#allocation2 + $0xcb0] sm:$0xff] %v749_v19  ;;  %v877_v19 = vld [vmem:[%s19145_s10 + $0xc90] sm:$0xff] }
 0x156   :  { %752 = vst [vmem:[#allocation2 + $0x168] sm:$0xff] %v751_v20  ;;  %v879_v20 = vld [vmem:[%s19145_s10 + $0xc98] sm:$0xff] }
 0x157   :  { %754 = vst [vmem:[#allocation2 + $0xf28] sm:$0xff] %v753_v21  ;;  %v881_v21 = vld [vmem:[%s19145_s10 + $0xca0] sm:$0xff] }
 0x158   :  { %756 = vst [vmem:[#allocation2 + $0xf88] sm:$0xff] %v755_v22  ;;  %v883_v22 = vld [vmem:[%s19145_s10 + $0xca8] sm:$0xff] }
 0x159   :  { %758 = vst [vmem:[#allocation2 + $0xdc8] sm:$0xff] %v757_v23  ;;  %v885_v23 = vld [vmem:[%s19145_s10 + $0xcb0] sm:$0xff] }
 0x15a   :  { %760 = vst [vmem:[#allocation2 + $0x560] sm:$0xff] %v759_v24  ;;  %v887_v24 = vld [vmem:[%s19145_s10 + $0xcb8] sm:$0xff] }
 0x15b   :  { %762 = vst [vmem:[#allocation2 + $0x888] sm:$0xff] %v761_v25  ;;  %v889_v25 = vld [vmem:[%s19145_s10 + $0xcc0] sm:$0xff] }
 0x15c   :  { %764 = vst [vmem:[#allocation2 + $0x608] sm:$0xff] %v763_v26  ;;  %v891_v26 = vld [vmem:[%s19145_s10 + $0xcc8] sm:$0xff] }
 0x15d   :  { %766 = vst [vmem:[#allocation2 + $0x128] sm:$0xff] %v765_v27  ;;  %v893_v27 = vld [vmem:[%s19145_s10 + $0xcd0] sm:$0xff] }
 0x15e   :  { %768 = vst [vmem:[#allocation2 + $0x178] sm:$0xff] %v767_v28  ;;  %v895_v28 = vld [vmem:[%s19145_s10 + $0xcd8] sm:$0xff] }
 0x15f   :  { %770 = vst [vmem:[#allocation2 + $0xf8] sm:$0xff] %v769_v29  ;;  %v897_v29 = vld [vmem:[%s19145_s10 + $0xce0] sm:$0xff] }
 0x160   :  { %772 = vst [vmem:[#allocation2 + $0x8d0] sm:$0xff] %v771_v30  ;;  %v899_v30 = vld [vmem:[%s19145_s10 + $0xce8] sm:$0xff] }
 0x161   :  { %774 = vst [vmem:[#allocation2 + $0x130] sm:$0xff] %v773_v31  ;;  %v901_v31 = vld [vmem:[%s19145_s10 + $0xcf0] sm:$0xff] }
 0x162   :  { %776 = vst [vmem:[#allocation2 + $0xa8] sm:$0xff] %v775_v32  ;;  %v903_v32 = vld [vmem:[%s19145_s10 + $0xcf8] sm:$0xff] }
 0x163   :  { %778 = vst [vmem:[#allocation2 + $0x1d8] sm:$0xff] %v777_v33  ;;  %v905_v33 = vld [vmem:[%s19145_s10 + $0xd00] sm:$0xff] }
 0x164   :  { %780 = vst [vmem:[#allocation2 + $0xe58] sm:$0xff] %v779_v34  ;;  %v907_v34 = vld [vmem:[%s19145_s10 + $0xd08] sm:$0xff] }
 0x165   :  { %782 = vst [vmem:[#allocation2 + $0x638] sm:$0xff] %v781_v35  ;;  %v909_v35 = vld [vmem:[%s19145_s10 + $0xd10] sm:$0xff] }
 0x166   :  { %784 = vst [vmem:[#allocation2 + $0x870] sm:$0xff] %v783_v36  ;;  %v911_v36 = vld [vmem:[%s19145_s10 + $0xd18] sm:$0xff] }
 0x167   :  { %786 = vst [vmem:[#allocation2 + $0xa40] sm:$0xff] %v785_v37  ;;  %v913_v37 = vld [vmem:[%s19145_s10 + $0xd20] sm:$0xff] }
 0x168   :  { %788 = vst [vmem:[#allocation2 + $0x958] sm:$0xff] %v787_v38  ;;  %v915_v38 = vld [vmem:[%s19145_s10 + $0xd28] sm:$0xff] }
 0x169   :  { %790 = vst [vmem:[#allocation2 + $0xbe0] sm:$0xff] %v789_v39  ;;  %v917_v39 = vld [vmem:[%s19145_s10 + $0xd30] sm:$0xff] }
 0x16a   :  { %792 = vst [vmem:[#allocation2 + $0xad0] sm:$0xff] %v791_v40  ;;  %v919_v40 = vld [vmem:[%s19145_s10 + $0xd38] sm:$0xff] }
 0x16b   :  { %794 = vst [vmem:[#allocation2 + $0xa18] sm:$0xff] %v793_v41  ;;  %v921_v41 = vld [vmem:[%s19145_s10 + $0xd40] sm:$0xff] }
 0x16c   :  { %796 = vst [vmem:[#allocation2 + $0x300] sm:$0xff] %v795_v42  ;;  %v923_v42 = vld [vmem:[%s19145_s10 + $0xd48] sm:$0xff] }
 0x16d   :  { %798 = vst [vmem:[#allocation2 + $0xa10] sm:$0xff] %v797_v43  ;;  %v925_v43 = vld [vmem:[%s19145_s10 + $0xd50] sm:$0xff] }
 0x16e   :  { %800 = vst [vmem:[#allocation2 + $0xd28] sm:$0xff] %v799_v44  ;;  %v927_v44 = vld [vmem:[%s19145_s10 + $0xd58] sm:$0xff] }
 0x16f   :  { %802 = vst [vmem:[#allocation2 + $0x480] sm:$0xff] %v801_v45  ;;  %v929_v45 = vld [vmem:[%s19145_s10 + $0xd60] sm:$0xff] }
 0x170   :  { %804 = vst [vmem:[#allocation2 + $0x240] sm:$0xff] %v803_v46  ;;  %v931_v46 = vld [vmem:[%s19145_s10 + $0xd68] sm:$0xff] }
 0x171   :  { %806 = vst [vmem:[#allocation2 + $0xcf0] sm:$0xff] %v805_v47  ;;  %v933_v47 = vld [vmem:[%s19145_s10 + $0xd70] sm:$0xff] }
 0x172   :  { %808 = vst [vmem:[#allocation2 + $0x48] sm:$0xff] %v807_v48  ;;  %v935_v48 = vld [vmem:[%s19145_s10 + $0xd78] sm:$0xff] }
 0x173   :  { %810 = vst [vmem:[#allocation2 + $0x4e8] sm:$0xff] %v809_v49  ;;  %v937_v49 = vld [vmem:[%s19145_s10 + $0xd80] sm:$0xff] }
 0x174   :  { %812 = vst [vmem:[#allocation2 + $0x220] sm:$0xff] %v811_v50  ;;  %v939_v50 = vld [vmem:[%s19145_s10 + $0xd88] sm:$0xff] }
 0x175   :  { %814 = vst [vmem:[#allocation2 + $0x890] sm:$0xff] %v813_v51  ;;  %v941_v51 = vld [vmem:[%s19145_s10 + $0xd90] sm:$0xff] }
 0x176   :  { %816 = vst [vmem:[#allocation2 + $0x3b8] sm:$0xff] %v815_v52  ;;  %v943_v52 = vld [vmem:[%s19145_s10 + $0xd98] sm:$0xff] }
 0x177   :  { %818 = vst [vmem:[#allocation2 + $0x3e8] sm:$0xff] %v817_v53  ;;  %v945_v53 = vld [vmem:[%s19145_s10 + $0xda0] sm:$0xff] }
 0x178   :  { %820 = vst [vmem:[#allocation2 + $0xe10] sm:$0xff] %v819_v54  ;;  %v947_v54 = vld [vmem:[%s19145_s10 + $0xda8] sm:$0xff] }
 0x179   :  { %822 = vst [vmem:[#allocation2 + $0x248] sm:$0xff] %v821_v55  ;;  %v949_v55 = vld [vmem:[%s19145_s10 + $0xdb0] sm:$0xff] }
 0x17a   :  { %824 = vst [vmem:[#allocation2 + $0x3f0] sm:$0xff] %v823_v56  ;;  %v951_v56 = vld [vmem:[%s19145_s10 + $0xdb8] sm:$0xff] }
 0x17b   :  { %826 = vst [vmem:[#allocation2 + $0x3c8] sm:$0xff] %v825_v57  ;;  %v953_v57 = vld [vmem:[%s19145_s10 + $0xdc0] sm:$0xff] }
 0x17c   :  { %828 = vst [vmem:[#allocation2 + $0xc98] sm:$0xff] %v827_v58  ;;  %v955_v58 = vld [vmem:[%s19145_s10 + $0xdc8] sm:$0xff] }
 0x17d   :  { %830 = vst [vmem:[#allocation2 + $0x280] sm:$0xff] %v829_v59  ;;  %v957_v59 = vld [vmem:[%s19145_s10 + $0xdd0] sm:$0xff] }
 0x17e   :  { %832 = vst [vmem:[#allocation2 + $0xa08] sm:$0xff] %v831_v60  ;;  %v959_v60 = vld [vmem:[%s19145_s10 + $0xdd8] sm:$0xff] }
 0x17f   :  { %834 = vst [vmem:[#allocation2 + $0x540] sm:$0xff] %v833_v61  ;;  %v961_v61 = vld [vmem:[%s19145_s10 + $0xde0] sm:$0xff] }
 0x180   :  { %836 = vst [vmem:[#allocation2 + $0x378] sm:$0xff] %v835_v62  ;;  %v963_v62 = vld [vmem:[%s19145_s10 + $0xde8] sm:$0xff] }
 0x181   :  { %838 = vst [vmem:[#allocation2 + $0x7d8] sm:$0xff] %v837_v63  ;;  %v965_v63 = vld [vmem:[%s19145_s10 + $0xdf0] sm:$0xff] }
 0x182   :  { %840 = vst [vmem:[#allocation2 + $0x68] sm:$0xff] %v839_v0  ;;  %v967_v0 = vld [vmem:[%s19145_s10 + $0xdf8] sm:$0xff] }
 0x183   :  { %842 = vst [vmem:[#allocation2 + $0xd38] sm:$0xff] %v841_v1  ;;  %v969_v1 = vld [vmem:[%s19145_s10 + $0xe00] sm:$0xff] }
 0x184   :  { %844 = vst [vmem:[#allocation2 + $0x190] sm:$0xff] %v843_v2  ;;  %v971_v2 = vld [vmem:[%s19145_s10 + $0xe08] sm:$0xff] }
 0x185   :  { %846 = vst [vmem:[#allocation2 + $0x548] sm:$0xff] %v845_v3  ;;  %v973_v3 = vld [vmem:[%s19145_s10 + $0xe10] sm:$0xff] }
 0x186   :  { %848 = vst [vmem:[#allocation2 + $0x1e8] sm:$0xff] %v847_v4  ;;  %v975_v4 = vld [vmem:[%s19145_s10 + $0xe18] sm:$0xff] }
 0x187   :  { %850 = vst [vmem:[#allocation2 + $0xc08] sm:$0xff] %v849_v5  ;;  %v977_v5 = vld [vmem:[%s19145_s10 + $0xe20] sm:$0xff] }
 0x188   :  { %852 = vst [vmem:[#allocation2 + $0x2a0] sm:$0xff] %v851_v6  ;;  %v979_v6 = vld [vmem:[%s19145_s10 + $0xe28] sm:$0xff] }
 0x189   :  { %854 = vst [vmem:[#allocation2 + $0x408] sm:$0xff] %v853_v7  ;;  %v981_v7 = vld [vmem:[%s19145_s10 + $0xe30] sm:$0xff] }
 0x18a   :  { %856 = vst [vmem:[#allocation2 + $0x7e8] sm:$0xff] %v855_v8  ;;  %v983_v8 = vld [vmem:[%s19145_s10 + $0xe38] sm:$0xff] }
 0x18b   :  { %858 = vst [vmem:[#allocation2 + $0xc68] sm:$0xff] %v857_v9  ;;  %v985_v9 = vld [vmem:[%s19145_s10 + $0xe40] sm:$0xff] }
 0x18c   :  { %860 = vst [vmem:[#allocation2 + $0x658] sm:$0xff] %v859_v10  ;;  %v987_v10 = vld [vmem:[%s19145_s10 + $0xe48] sm:$0xff] }
 0x18d   :  { %862 = vst [vmem:[#allocation2 + $0xf60] sm:$0xff] %v861_v11  ;;  %v989_v11 = vld [vmem:[%s19145_s10 + $0xe50] sm:$0xff] }
 0x18e   :  { %864 = vst [vmem:[#allocation2 + $0xfc0] sm:$0xff] %v863_v12  ;;  %v991_v12 = vld [vmem:[%s19145_s10 + $0xe58] sm:$0xff] }
 0x18f   :  { %866 = vst [vmem:[#allocation2 + $0x5e8] sm:$0xff] %v865_v13  ;;  %v993_v13 = vld [vmem:[%s19145_s10 + $0xe60] sm:$0xff] }
 0x190   :  { %868 = vst [vmem:[#allocation2 + $0x440] sm:$0xff] %v867_v14  ;;  %v995_v14 = vld [vmem:[%s19145_s10 + $0xe68] sm:$0xff] }
 0x191   :  { %870 = vst [vmem:[#allocation2 + $0xff0] sm:$0xff] %v869_v15  ;;  %v997_v15 = vld [vmem:[%s19145_s10 + $0xe70] sm:$0xff] }
 0x192   :  { %872 = vst [vmem:[#allocation2 + $0x720] sm:$0xff] %v871_v16  ;;  %v999_v16 = vld [vmem:[%s19145_s10 + $0xe78] sm:$0xff] }
 0x193   :  { %874 = vst [vmem:[#allocation2 + $0x5d8] sm:$0xff] %v873_v17  ;;  %v1001_v17 = vld [vmem:[%s19145_s10 + $0xe80] sm:$0xff] }
 0x194   :  { %876 = vst [vmem:[#allocation2 + $0xb70] sm:$0xff] %v875_v18  ;;  %v1003_v18 = vld [vmem:[%s19145_s10 + $0xe88] sm:$0xff] }
 0x195   :  { %878 = vst [vmem:[#allocation2 + $0x2c8] sm:$0xff] %v877_v19  ;;  %v1005_v19 = vld [vmem:[%s19145_s10 + $0xe90] sm:$0xff] }
 0x196   :  { %880 = vst [vmem:[#allocation2 + $0x738] sm:$0xff] %v879_v20  ;;  %v1007_v20 = vld [vmem:[%s19145_s10 + $0xe98] sm:$0xff] }
 0x197   :  { %882 = vst [vmem:[#allocation2 + $0x808] sm:$0xff] %v881_v21  ;;  %v1009_v21 = vld [vmem:[%s19145_s10 + $0xea0] sm:$0xff] }
 0x198   :  { %884 = vst [vmem:[#allocation2 + $0x60] sm:$0xff] %v883_v22  ;;  %v1011_v22 = vld [vmem:[%s19145_s10 + $0xea8] sm:$0xff] }
 0x199   :  { %886 = vst [vmem:[#allocation2 + $0x6c0] sm:$0xff] %v885_v23  ;;  %v1013_v23 = vld [vmem:[%s19145_s10 + $0xeb0] sm:$0xff] }
 0x19a   :  { %888 = vst [vmem:[#allocation2 + $0xae8] sm:$0xff] %v887_v24  ;;  %v1015_v24 = vld [vmem:[%s19145_s10 + $0xeb8] sm:$0xff] }
 0x19b   :  { %890 = vst [vmem:[#allocation2 + $0xfb8] sm:$0xff] %v889_v25  ;;  %v1017_v25 = vld [vmem:[%s19145_s10 + $0xec0] sm:$0xff] }
 0x19c   :  { %892 = vst [vmem:[#allocation2 + $0xb0] sm:$0xff] %v891_v26  ;;  %v1019_v26 = vld [vmem:[%s19145_s10 + $0xec8] sm:$0xff] }
 0x19d   :  { %894 = vst [vmem:[#allocation2 + $0xdd8] sm:$0xff] %v893_v27  ;;  %v1021_v27 = vld [vmem:[%s19145_s10 + $0xed0] sm:$0xff] }
 0x19e   :  { %896 = vst [vmem:[#allocation2 + $0xa30] sm:$0xff] %v895_v28  ;;  %v1023_v28 = vld [vmem:[%s19145_s10 + $0xed8] sm:$0xff] }
 0x19f   :  { %898 = vst [vmem:[#allocation2 + $0x1d0] sm:$0xff] %v897_v29  ;;  %v1025_v29 = vld [vmem:[%s19145_s10 + $0xee0] sm:$0xff] }
 0x1a0   :  { %900 = vst [vmem:[#allocation2 + $0xdd0] sm:$0xff] %v899_v30  ;;  %v1027_v30 = vld [vmem:[%s19145_s10 + $0xee8] sm:$0xff] }
 0x1a1   :  { %902 = vst [vmem:[#allocation2 + $0x3a0] sm:$0xff] %v901_v31  ;;  %v1029_v31 = vld [vmem:[%s19145_s10 + $0xef0] sm:$0xff] }
 0x1a2   :  { %904 = vst [vmem:[#allocation2 + $0x9b8] sm:$0xff] %v903_v32  ;;  %v1031_v32 = vld [vmem:[%s19145_s10 + $0xef8] sm:$0xff] }
 0x1a3   :  { %906 = vst [vmem:[#allocation2 + $0x198] sm:$0xff] %v905_v33  ;;  %v1033_v33 = vld [vmem:[%s19145_s10 + $0xf00] sm:$0xff] }
 0x1a4   :  { %908 = vst [vmem:[#allocation2 + $0xcd0] sm:$0xff] %v907_v34  ;;  %v1035_v34 = vld [vmem:[%s19145_s10 + $0xf08] sm:$0xff] }
 0x1a5   :  { %910 = vst [vmem:[#allocation2 + $0x5f0] sm:$0xff] %v909_v35  ;;  %v1037_v35 = vld [vmem:[%s19145_s10 + $0xf10] sm:$0xff] }
 0x1a6   :  { %912 = vst [vmem:[#allocation2 + $0x7a0] sm:$0xff] %v911_v36  ;;  %v1039_v36 = vld [vmem:[%s19145_s10 + $0xf18] sm:$0xff] }
 0x1a7   :  { %914 = vst [vmem:[#allocation2 + $0x1f0] sm:$0xff] %v913_v37  ;;  %v1041_v37 = vld [vmem:[%s19145_s10 + $0xf20] sm:$0xff] }
 0x1a8   :  { %916 = vst [vmem:[#allocation2 + $0xd88] sm:$0xff] %v915_v38  ;;  %v1043_v38 = vld [vmem:[%s19145_s10 + $0xf28] sm:$0xff] }
 0x1a9   :  { %918 = vst [vmem:[#allocation2 + $0xef0] sm:$0xff] %v917_v39  ;;  %v1045_v39 = vld [vmem:[%s19145_s10 + $0xf30] sm:$0xff] }
 0x1aa   :  { %920 = vst [vmem:[#allocation2 + $0x148] sm:$0xff] %v919_v40  ;;  %v1047_v40 = vld [vmem:[%s19145_s10 + $0xf38] sm:$0xff] }
 0x1ab   :  { %922 = vst [vmem:[#allocation2 + $0x6b8] sm:$0xff] %v921_v41  ;;  %v1049_v41 = vld [vmem:[%s19145_s10 + $0xf40] sm:$0xff] }
 0x1ac   :  { %924 = vst [vmem:[#allocation2 + $0xf58] sm:$0xff] %v923_v42  ;;  %v1051_v42 = vld [vmem:[%s19145_s10 + $0xf48] sm:$0xff] }
 0x1ad   :  { %926 = vst [vmem:[#allocation2 + $0xa70] sm:$0xff] %v925_v43  ;;  %v1053_v43 = vld [vmem:[%s19145_s10 + $0xf50] sm:$0xff] }
 0x1ae   :  { %928 = vst [vmem:[#allocation2 + $0xe70] sm:$0xff] %v927_v44  ;;  %v1055_v44 = vld [vmem:[%s19145_s10 + $0xf58] sm:$0xff] }
 0x1af   :  { %930 = vst [vmem:[#allocation2 + $0x7d0] sm:$0xff] %v929_v45  ;;  %v1057_v45 = vld [vmem:[%s19145_s10 + $0xf60] sm:$0xff] }
 0x1b0   :  { %932 = vst [vmem:[#allocation2 + $0xe18] sm:$0xff] %v931_v46  ;;  %v1059_v46 = vld [vmem:[%s19145_s10 + $0xf68] sm:$0xff] }
 0x1b1   :  { %934 = vst [vmem:[#allocation2 + $0x518] sm:$0xff] %v933_v47  ;;  %v1061_v47 = vld [vmem:[%s19145_s10 + $0xf70] sm:$0xff] }
 0x1b2   :  { %936 = vst [vmem:[#allocation2 + $0x9f0] sm:$0xff] %v935_v48  ;;  %v1063_v48 = vld [vmem:[%s19145_s10 + $0xf78] sm:$0xff] }
 0x1b3   :  { %938 = vst [vmem:[#allocation2 + $0x6a0] sm:$0xff] %v937_v49  ;;  %v1065_v49 = vld [vmem:[%s19145_s10 + $0xf80] sm:$0xff] }
 0x1b4   :  { %940 = vst [vmem:[#allocation2 + $0xf0] sm:$0xff] %v939_v50  ;;  %v1067_v50 = vld [vmem:[%s19145_s10 + $0xf88] sm:$0xff] }
 0x1b5   :  { %942 = vst [vmem:[#allocation2 + $0x218] sm:$0xff] %v941_v51  ;;  %v1069_v51 = vld [vmem:[%s19145_s10 + $0xf90] sm:$0xff] }
 0x1b6   :  { %944 = vst [vmem:[#allocation2 + $0x58] sm:$0xff] %v943_v52  ;;  %v1071_v52 = vld [vmem:[%s19145_s10 + $0xf98] sm:$0xff] }
 0x1b7   :  { %946 = vst [vmem:[#allocation2 + $0x28] sm:$0xff] %v945_v53  ;;  %v1073_v53 = vld [vmem:[%s19145_s10 + $0xfa0] sm:$0xff] }
 0x1b8   :  { %948 = vst [vmem:[#allocation2 + $0xc18] sm:$0xff] %v947_v54  ;;  %v1075_v54 = vld [vmem:[%s19145_s10 + $0xfa8] sm:$0xff] }
 0x1b9   :  { %950 = vst [vmem:[#allocation2 + $0x290] sm:$0xff] %v949_v55  ;;  %v1077_v55 = vld [vmem:[%s19145_s10 + $0xfb0] sm:$0xff] }
 0x1ba   :  { %952 = vst [vmem:[#allocation2 + $0x4e0] sm:$0xff] %v951_v56  ;;  %v1079_v56 = vld [vmem:[%s19145_s10 + $0xfb8] sm:$0xff] }
 0x1bb   :  { %954 = vst [vmem:[#allocation2 + $0x10] sm:$0xff] %v953_v57  ;;  %v1081_v57 = vld [vmem:[%s19145_s10 + $0xfc0] sm:$0xff] }
 0x1bc   :  { %956 = vst [vmem:[#allocation2 + $0xa68] sm:$0xff] %v955_v58  ;;  %v1083_v58 = vld [vmem:[%s19145_s10 + $0xfc8] sm:$0xff] }
 0x1bd   :  { %958 = vst [vmem:[#allocation2 + $0xf30] sm:$0xff] %v957_v59  ;;  %v1085_v59 = vld [vmem:[%s19145_s10 + $0xfd0] sm:$0xff] }
 0x1be   :  { %960 = vst [vmem:[#allocation2 + $0x680] sm:$0xff] %v959_v60  ;;  %v1087_v60 = vld [vmem:[%s19145_s10 + $0xfd8] sm:$0xff] }
 0x1bf   :  { %962 = vst [vmem:[#allocation2 + $0x108] sm:$0xff] %v961_v61  ;;  %v1089_v61 = vld [vmem:[%s19145_s10 + $0xfe0] sm:$0xff] }
 0x1c0   :  { %964 = vst [vmem:[#allocation2 + $0x778] sm:$0xff] %v963_v62  ;;  %v1091_v62 = vld [vmem:[%s19145_s10 + $0xfe8] sm:$0xff] }
 0x1c1   :  { %966 = vst [vmem:[#allocation2 + $0x368] sm:$0xff] %v965_v63  ;;  %v1093_v63 = vld [vmem:[%s19145_s10 + $0xff0] sm:$0xff] }
 0x1c2   :  { %968 = vst [vmem:[#allocation2 + $0x110] sm:$0xff] %v967_v0  ;;  %v1095_v0 = vld [vmem:[%s19145_s10 + $0xff8] sm:$0xff] }
 0x1c3   :  { %970 = vst [vmem:[#allocation2 + $0xaa0] sm:$0xff] %v969_v1  ;;  %v14432_v1 = vld [vmem:[%s19462_s1 + $0x30] sm:$0xe] }
 0x1c4   :  { %972 = vst [vmem:[#allocation2 + $0xee0] sm:$0xff] %v971_v2  ;;  %v14437_v2 = vld [vmem:[%s19462_s1 + $0x20] sm:$0xe] }
 0x1c5   :  { %974 = vst [vmem:[#allocation2 + $0x260] sm:$0xff] %v973_v3  ;;  %v14440_v3 = vrot.slane %v14432_v1, 1 }
 0x1c6   :  { %976 = vst [vmem:[#allocation2 + $0x3a8] sm:$0xff] %v975_v4  ;;  %v14443_v4 = vrot.slane %v14437_v2, 1 }
 0x1c7   :  { %978 = vst [vmem:[#allocation2 + $0xf68] sm:$0xff] %v977_v5  ;;  %v14448_v5 = vld [vmem:[%s19462_s1] sm:$0xc0]  ;;  %1328 = vrot.lane.b32.xlu1 %v14440_v3, %s12780_s18 }
 0x1c8   :  { %980 = vst [vmem:[#allocation2 + $0x880] sm:$0xff] %v979_v6  ;;  %v14453_v6 = vld [vmem:[%s19462_s1 + $0x20] sm:$0x1]  ;;  %1324 = vrot.lane.b32.xlu0 %v14443_v4, %s12780_s18 }
 0x1c9   :  { %982 = vst [vmem:[#allocation2 + $0x4f0] sm:$0xff] %v981_v7  ;;  %v1358_v7 = vrot.slane %v14448_v5, 6 }
 0x1ca   :  { %984 = vst [vmem:[#allocation2 + $0x850] sm:$0xff] %v983_v8  ;;  %v1359_v8 = vrot.slane %v14453_v6, 6 }
 0x1cb   :  { %986 = vst [vmem:[#allocation2 + $0xd10] sm:$0xff] %v985_v9  ;;  %v14464_v9 = vld [vmem:[%s19462_s1 + $0x38] sm:$0xe] }
 0x1cc   :  { %988 = vst [vmem:[#allocation2 + $0xb38] sm:$0xff] %v987_v10  ;;  %v14469_v10 = vld [vmem:[%s19462_s1 + $0x28] sm:$0xe] }
 0x1cd   :  { %990 = vst [vmem:[#allocation2 + $0x8f0] sm:$0xff] %v989_v11  ;;  %v14474_v11 = vld [vmem:[%s19462_s1 + $0x8] sm:$0xc0] }
 0x1ce   :  { %992 = vst [vmem:[#allocation2 + $0x798] sm:$0xff] %v991_v12  ;;  %v14477_v12 = vsel %vm19177_vm0, %v1358_v7, %v1359_v8 }
 0x1cf   :  { %994 = vst [vmem:[#allocation2 + $0x238] sm:$0xff] %v993_v13  ;;  %v14482_v13 = vld [vmem:[%s19462_s1 + $0x28] sm:$0x1]  ;;  %1374 = vrot.lane.b32.xlu2 %v14477_v12, %s12781_s21 }
 0x1d0   :  { %996 = vst [vmem:[#allocation2 + $0xa00] sm:$0xff] %v995_v14  ;;  %v1319_v14 = vrot.slane %v14464_v9, 1 }
 0x1d1   :  { %998 = vst [vmem:[#allocation2 + $0xd18] sm:$0xff] %v997_v15  ;;  %v1317_v15 = vrot.slane %v14469_v10, 1 }
 0x1d2   :  { %1000 = vst [vmem:[#allocation2 + $0xd40] sm:$0xff] %v999_v16  ;;  %v1361_v16 = vrot.slane %v14474_v11, 6  ;;  %1330 = vrot.lane.b32.xlu1 %v1319_v14, %s12780_s18 }
 0x1d3   :  { %1002 = vst [vmem:[#allocation2 + $0xa80] sm:$0xff] %v1001_v17  ;;  %v1362_v17 = vrot.slane %v14482_v13, 6  ;;  %1326 = vrot.lane.b32.xlu0 %v1317_v15, %s12780_s18 }
 0x1d4   :  { %1004 = vst [vmem:[#allocation2 + $0x2b0] sm:$0xff] %v1003_v18  ;;  %v14493_v18 = vld [vmem:[%s19462_s1 + $0x18] sm:$0xc0] }
 0x1d5   :  { %1006 = vst [vmem:[#allocation2 + $0x740] sm:$0xff] %v1005_v19  ;;  %v14498_v19 = vld [vmem:[%s19462_s1 + $0x38] sm:$0x1] }
 0x1d6   :  { %1008 = vst [vmem:[#allocation2 + $0xaa8] sm:$0xff] %v1007_v20  ;;  %v14503_v20 = vld [vmem:[%s19462_s1 + $0x10] sm:$0xc0] }
 0x1d7   :  { %1010 = vst [vmem:[#allocation2 + $0xfa8] sm:$0xff] %v1009_v21  ;;  %v14508_v21 = vld [vmem:[%s19462_s1 + $0x30] sm:$0x1] }
 0x1d8   :  { %1012 = vst [vmem:[#allocation2 + $0xa98] sm:$0xff] %v1011_v22  ;;  %v1363_v22 = vsel %vm19177_vm0, %v1361_v16, %v1362_v17 }
 0x1d9   :  { %1014 = vst [vmem:[#allocation2 + $0xc78] sm:$0xff] %v1013_v23 }
 0x1da   :  { %1016 = vst [vmem:[#allocation2 + $0x2d8] sm:$0xff] %v1015_v24 }
 0x1db   :  { %1018 = vst [vmem:[#allocation2 + $0xc30] sm:$0xff] %v1017_v25 }
 0x1dc   :  { %1020 = vst [vmem:[#allocation2 + $0xf10] sm:$0xff] %v1019_v26 }
 0x1dd   :  { %1022 = vst [vmem:[#allocation2 + $0x460] sm:$0xff] %v1021_v27 }
 0x1de   :  { %1024 = vst [vmem:[#allocation2 + $0x898] sm:$0xff] %v1023_v28 }
 0x1df   :  { %1026 = vst [vmem:[#allocation2 + $0x538] sm:$0xff] %v1025_v29 }
 0x1e0   :  { %1028 = vst [vmem:[#allocation2 + $0x328] sm:$0xff] %v1027_v30 }
 0x1e1   :  { %1030 = vst [vmem:[#allocation2 + $0xa50] sm:$0xff] %v1029_v31 }
 0x1e2   :  { %1032 = vst [vmem:[#allocation2 + $0x7b0] sm:$0xff] %v1031_v32 }
 0x1e3   :  { %1034 = vst [vmem:[#allocation2 + $0xdf8] sm:$0xff] %v1033_v33 }
 0x1e4   :  { %1036 = vst [vmem:[#allocation2 + $0x9a0] sm:$0xff] %v1035_v34 }
 0x1e5   :  { %1038 = vst [vmem:[#allocation2 + $0xe38] sm:$0xff] %v1037_v35 }
 0x1e6   :  { %1040 = vst [vmem:[#allocation2 + $0x390] sm:$0xff] %v1039_v36 }
 0x1e7   :  { %1042 = vst [vmem:[#allocation2 + $0x7e0] sm:$0xff] %v1041_v37 }
 0x1e8   :  { %1044 = vst [vmem:[#allocation2 + $0x900] sm:$0xff] %v1043_v38 }
 0x1e9   :  { %1046 = vst [vmem:[#allocation2 + $0x4c0] sm:$0xff] %v1045_v39 }
 0x1ea   :  { %1048 = vst [vmem:[#allocation2 + $0x710] sm:$0xff] %v1047_v40 }
 0x1eb   :  { %1050 = vst [vmem:[#allocation2 + $0x508] sm:$0xff] %v1049_v41 }
 0x1ec   :  { %1052 = vst [vmem:[#allocation2 + $0x9e8] sm:$0xff] %v1051_v42 }
 0x1ed   :  { %1054 = vst [vmem:[#allocation2 + $0x938] sm:$0xff] %v1053_v43 }
 0x1ee   :  { %1056 = vst [vmem:[#allocation2 + $0x558] sm:$0xff] %v1055_v44 }
 0x1ef   :  { %1058 = vst [vmem:[#allocation2 + $0xac0] sm:$0xff] %v1057_v45 }
 0x1f0   :  { %1060 = vst [vmem:[#allocation2 + $0x930] sm:$0xff] %v1059_v46 }
 0x1f1   :  { %1062 = vst [vmem:[#allocation2 + $0x988] sm:$0xff] %v1061_v47 }
 0x1f2   :  { %1064 = vst [vmem:[#allocation2 + $0x348] sm:$0xff] %v1063_v48 }
 0x1f3   :  { %1066 = vst [vmem:[#allocation2 + $0xc90] sm:$0xff] %v1065_v49 }
 0x1f4   :  { %1068 = vst [vmem:[#allocation2 + $0xce8] sm:$0xff] %v1067_v50 }
 0x1f5   :  { %1070 = vst [vmem:[#allocation2 + $0xcf8] sm:$0xff] %v1069_v51 }
 0x1f6   :  { %1072 = vst [vmem:[#allocation2 + $0x1a8] sm:$0xff] %v1071_v52 }
 0x1f7   :  { %1074 = vst [vmem:[#allocation2 + $0x4a8] sm:$0xff] %v1073_v53 }
 0x1f8   :  { %1076 = vst [vmem:[#allocation2 + $0x40] sm:$0xff] %v1075_v54 }
 0x1f9   :  { %1078 = vst [vmem:[#allocation2 + $0x1c8] sm:$0xff] %v1077_v55 }
 0x1fa   :  { %1080 = vst [vmem:[#allocation2 + $0xfe8] sm:$0xff] %v1079_v56 }
 0x1fb   :  { %1082 = vst [vmem:[#allocation2 + $0xd98] sm:$0xff] %v1081_v57 }
 0x1fc   :  { %1084 = vst [vmem:[#allocation2 + $0x150] sm:$0xff] %v1083_v58 }
 0x1fd   :  { %1086 = vst [vmem:[#allocation2 + $0x400] sm:$0xff] %v1085_v59 }
 0x1fe   :  { %1088 = vst [vmem:[#allocation2 + $0x298] sm:$0xff] %v1087_v60 }
 0x1ff   :  { %1090 = vst [vmem:[#allocation2 + $0x730] sm:$0xff] %v1089_v61 }
 0x200   :  { %1092 = vst [vmem:[#allocation2 + $0x3c0] sm:$0xff] %v1091_v62 }
 0x201   :  { %1094 = vst [vmem:[#allocation2 + $0x2c0] sm:$0xff] %v1093_v63 }
 0x202   :  { %1096 = vst [vmem:[#allocation2 + $0x4a0] sm:$0xff] %v1095_v0 }
 0x203   :  { %1102 = vsyncadd [#allocation3], 65536  ;;  %v1367_v23 = vrot.slane %v14493_v18, 6  ;;  %v1368_v24 = vrot.slane %v14498_v19, 6  ;;  %v1364_v25 = vrot.slane %v14503_v20, 6  ;;  %v1365_v26 = vrot.slane %v14508_v21, 6  ;;  %1376 = vrot.lane.b32.xlu2 %v1363_v22, %s12781_s21 }
 0x204   :  { %v14525_v29 = vld [vmem:[%s19462_s1] sm:$0x38]  ;;  %s12782_s29 = smov 127   ;;  %v14533_v31 = vld [vmem:[%s19462_s1 + $0x18] sm:$0x38]  ;;  %s12783_s20 = smov 113   ;;  %v1103_v50 = vlaneseq }
 0x205   :  { %v1369_v27 = vsel %vm19177_vm0, %v1367_v23, %v1368_v24  ;;  %v1366_v28 = vsel %vm19177_vm0, %v1364_v25, %v1365_v26  ;;  %v1432_v30 = vrot.slane %v14525_v29, 3  ;;  %v1435_v32 = vrot.slane %v14533_v31, 3  ;;  %v14542_v33 = vld [vmem:[%s19462_s1 + $0x18] sm:$0x7]  ;;  %v14547_v34 = vld [vmem:[%s19462_s1] sm:$0x7] }
 0x206   :  { %1380 = vrot.lane.b32.xlu1 %v1369_v27, %s12781_s21  ;;  %1378 = vrot.lane.b32.xlu0 %v1366_v28, %s12781_s21  ;;  %19463 = vst [vmem:[#allocation7_spill] sm:$0xff] %v14547_v34  ;;  %s12784_s24 = smov 112   ;;  %v14559_v35 = vld [vmem:[%s19462_s1 + $0x10] sm:$0x38]  ;;  %s12785_s26 = smov 111   ;;  %v14646_v53 = vand.u32 127, %v1103_v50 }
 0x207   :  { %v1434_v36 = vrot.slane %v14559_v35, 3  ;;  %v14570_v37 = vld [vmem:[%s19462_s1 + $0x10] sm:$0x7]  ;;  %s12786_s0 = smov 1   ;;  %s12787_s30 = smov 15   ;;  %v1667_v8 = vrot.slane %v14493_v18, 3 }
 0x208   :  { %v14597_v38 = vld [vmem:[%s19462_s1 + $0x8] sm:$0x38]  ;;  %v14611_v42 = vld [vmem:[%s19462_s1 + $0x8] sm:$0x7]  ;;  %v1107_v54 = vadd.s32 384, %v14646_v53  ;;  %v1106_v60 = vadd.s32 256, %v14646_v53 }
 0x209   :  { %v1433_v39 = vrot.slane %v14597_v38, 3  ;;  %19465 = vst [vmem:[#allocation9_spill] sm:$0xff] %v14611_v42  ;;  %vm19181_vm9 = vcmp.lt.s32.totalorder %v14646_v53, 127  ;;  %vm19150_vm10 = vcmask 1044480   ;;  %vm19164_vm14 = vcmp.lt.s32.totalorder %v14646_v53, 113  ;;  %s19558_s3 = sld [smem:[#allocation129_spill]] }
 0x20a   :  { %v1115_v56 = vshra.s32 %v1107_v54, 4  ;;  %v1111_v62 = vand.u32 15, %v1107_v54  ;;  %v1114_v63 = vshra.s32 %v1106_v60, 4  ;;  %v1110_v23 = vand.u32 15, %v1106_v60  ;;  %s19561_s10 = sld [smem:[#allocation130_spill]] }
 0x20b   :  { %1494 = vrot.lane.b32.xlu2 %v14477_v12, %s12782_s29  ;;  %v19159_v24 = vmov 0.0  }
 0x20c   :  { %v14655_v59 = vand.u32 15, %v1115_v56  ;;  %vm14666_vm4 = vcmp.le.s32.totalorder %v1111_v62, 14  ;;  %v14680_v16 = vand.u32 15, %v1114_v63  ;;  %vm14698_vm13 = vcmp.ge.s32.totalorder %v1111_v62, 1 }
 0x20e   :  { %1510 = vrot.lane.b32.xlu1 %v1432_v30, %s12783_s20  ;;  %1500 = vrot.lane.b32.xlu0 %v1369_v27, %s12782_s29  ;;  %vm1207_vm1 = vcmp.ge.s32.totalorder %v14655_v59, 0  ;;  %vm1211_vm2 = vcmp.le.s32.totalorder %v14655_v59, 15  ;;  %vm1251_vm5 = vcmp.ge.s32.totalorder %v14655_v59, 4294967295  ;;  %vm1255_vm6 = vcmp.le.s32.totalorder %v14655_v59, 14 }
 0x20f   :  { %vm14662_vm3 = vmand %vm1207_vm1, %vm1211_vm2  ;;  %vm1206_vm11 = vcmp.ge.s32.totalorder %v14680_v16, 0  ;;  %vm1210_vm12 = vcmp.le.s32.totalorder %v14680_v16, 15  ;;  %vm1250_vm1 = vcmp.ge.s32.totalorder %v14680_v16, 4294967295  ;;  %vm1254_vm2 = vcmp.le.s32.totalorder %v14680_v16, 14 }
 0x210   :  { %vm1239_vm7 = vmand %vm14662_vm3, %vm14666_vm4 }
 0x211   :  { %vm14688_vm8 = vmand %vm1251_vm5, %vm1255_vm6  ;;  %v14704_v25 = vsel %vm1239_vm7, 1.0, %v19159_v24  ;;  %vm19171_vm6 = vcmp.lt.s32.totalorder %v14646_v53, 112  ;;  %vm14728_vm7 = vcmp.le.s32.totalorder %v1110_v23, 14 }
 0x212   :  { %19480 = vst [vmem:[#allocation16_spill] sm:$0xff] %v14704_v25  ;;  %vm1263_vm15 = vmand %vm14688_vm8, %vm14698_vm13  ;;  %v14753_v60 = vsel %vm14688_vm8, 1.0, %v19159_v24 }
 0x213   :  { %1516 = vrot.lane.b32.xlu2 %v1435_v32, %s12783_s20  ;;  %vm14721_vm5 = vmand %vm1206_vm11, %vm1210_vm12  ;;  %19488 = vst [vmem:[#allocation18_spill] sm:$0xff] %v14753_v60 }
 0x214   :  { %vm14742_vm11 = vmand %vm1250_vm1, %vm1254_vm2 }
 0x215   :  { %vm1238_vm12 = vmand %vm14721_vm5, %vm14728_vm7 }
 0x216   :  { %1533 = vrot.lane.b32.xlu1 %v14542_v33, %s12784_s24  ;;  %1527 = vrot.lane.b32.xlu0 %v14547_v34, %s12784_s24  ;;  %vm1299_vm1 = vmand %vm14688_vm8, %vm14666_vm4  ;;  %vm19175_vm8 = vcmask 1040384   ;;  %v14786_v18 = vsel %vm1238_vm12, 1.0, %v19159_v24  ;;  %vm19173_vm12 = vcmask 1043456  }
 0x217   :  { %19492 = vst [vmem:[#allocation20_spill] sm:$0xff] %v14786_v18 }
 0x21b   :  { %1544 = vrot.lane.b32.xlu2 %v1432_v30, %s12784_s24 }
 0x21e   :  { %1498 = vrot.lane.b32.xlu1 %v1366_v28, %s12782_s29  ;;  %1550 = vrot.lane.b32.xlu0 %v1435_v32, %s12784_s24 }
 0x223   :  { %1560 = vrot.lane.b32.xlu2 %v14547_v34, %s12785_s26 }
 0x226   :  { %1514 = vrot.lane.b32.xlu1 %v1434_v36, %s12783_s20  ;;  %1566 = vrot.lane.b32.xlu0 %v14542_v33, %s12785_s26 }
 0x229   :  { %v14601_v40 = vpop.permute.xlu2 %1374 }
 0x22a   :  { %19464 = vst [vmem:[#allocation8_spill] sm:$0xff] %v14601_v40 }
 0x22b   :  { %1531 = vrot.lane.b32.xlu2 %v14570_v37, %s12784_s24 }
 0x22e   :  { %1564 = vrot.lane.b32.xlu1 %v14570_v37, %s12785_s26  ;;  %1548 = vrot.lane.b32.xlu0 %v1434_v36, %s12784_s24 }
 0x233   :  { %1461 = vrot.lane.b32.xlu2 %v14547_v34, %s12782_s29 }
 0x236   :  { %1482 = vrot.lane.b32.xlu1 %v14440_v3, %s12786_s0  ;;  %1467 = vrot.lane.b32.xlu0 %v14542_v33, %s12782_s29 }
 0x239   :  { %v14623_v44 = vpop.permute.xlu1 %1328 }
 0x23a   :  { %v14625_v45 = vpop.permute.xlu0 %1324 }
 0x23b   :  { %1484 = vrot.lane.b32.xlu2 %v1319_v14, %s12786_s0  ;;  %19467 = vst [vmem:[#allocation11_spill] sm:$0xff] %v14625_v45  ;;  %v14783_v45 = vsel %vm1299_vm1, 1.0, %v19159_v24  ;;  %vm19172_vm1 = vcmask 1046528  }
 0x23c   :  { %19491 = vst [vmem:[#allocation19_spill] sm:$0xff] %v14783_v45 }
 0x23e   :  { %1397 = vrot.lane.b32.xlu1 %v1319_v14, %s12781_s21  ;;  %1395 = vrot.lane.b32.xlu0 %v14440_v3, %s12781_s21  ;;  %v1640_v14 = vrot.slane %v14533_v31, 1 }
 0x243   :  { %1411 = vrot.lane.b32.xlu2 %v1366_v28, %s12787_s30  ;;  %v19533_v28 = vrot.slane %v14611_v42, 1 }
 0x244   :  { %v14635_v47 = vpop.permute.xlu1 %1330 }
 0x245   :  { %v14637_v48 = vpop.permute.xlu0 %1326 }
 0x246   :  { %1465 = vrot.lane.b32.xlu1 %v14570_v37, %s12782_s29  ;;  %1413 = vrot.lane.b32.xlu0 %v1369_v27, %s12787_s30 }
 0x24b   :  { %1444 = vrot.lane.b32.xlu2 %v1434_v36, %s12786_s0  ;;  %v14735_v36 = vsel %vm1263_vm15, 1.0, %v19159_v24  ;;  %vm14765_vm15 = vcmp.ge.s32.totalorder %v1110_v23, 1 }
 0x24c   :  { %19485 = vst [vmem:[#allocation17_spill] sm:$0xff] %v14735_v36  ;;  %vm1262_vm2 = vmand %vm14742_vm11, %vm14765_vm15 }
 0x24e   :  { %1480 = vrot.lane.b32.xlu1 %v1317_v15, %s12786_s0  ;;  %1446 = vrot.lane.b32.xlu0 %v1435_v32, %s12786_s0 }
 0x253   :  { %1393 = vrot.lane.b32.xlu2 %v1317_v15, %s12781_s21  ;;  %v19149_v15 = vrot.slane %v14542_v33, 1 }
 0x255   :  { %v14719_v27 = vsel %vm19177_vm0, %v19149_v15, %v1640_v14 }
 0x256   :  { %1442 = vrot.lane.b32.xlu1 %v1433_v39, %s12786_s0  ;;  %1409 = vrot.lane.b32.xlu0 %v1363_v22, %s12787_s30 }
 0x25b   :  { %1496 = vrot.lane.b32.xlu2 %v1363_v22, %s12782_s29 }
 0x25d   :  { %v14606_v41 = vpop.permute.xlu2 %1376 }
 0x25e   :  { %1529 = vrot.lane.b32.xlu1 %v14611_v42, %s12784_s24  ;;  %1512 = vrot.lane.b32.xlu0 %v1433_v39, %s12783_s20 }
 0x263   :  { %1546 = vrot.lane.b32.xlu2 %v1433_v39, %s12784_s24 }
 0x265   :  { %v14617_v43 = vpop.permute.xlu2 %1494 }
 0x266   :  { %19466 = vst [vmem:[#allocation10_spill] sm:$0xff] %v14617_v43  ;;  %1463 = vrot.lane.b32.xlu1 %v14611_v42, %s12782_s29  ;;  %1562 = vrot.lane.b32.xlu0 %v14611_v42, %s12785_s26 }
 0x26b   :  { %1478 = vrot.lane.b32.xlu2 %v14443_v4, %s12786_s0 }
 0x26d   :  { %v14629_v46 = vpop.permute.xlu2 %1516 }
 0x26e   :  { %1407 = vrot.lane.b32.xlu1 %v14477_v12, %s12787_s30  ;;  %1391 = vrot.lane.b32.xlu0 %v14443_v4, %s12781_s21  ;;  %v1668_v12 = vrot.slane %v14498_v19, 3 }
 0x270   :  { %v14696_v19 = vsel %vm19150_vm10, %v1667_v8, %v1668_v12  ;;  %vm19170_vm10 = vcmp.lt.s32.totalorder %v14646_v53, 111 }
 0x273   :  { %1440 = vrot.lane.b32.xlu2 %v1432_v30, %s12786_s0 }
 0x275   :  { %v14640_v49 = vpop.permute.xlu2 %1544 }
 0x276   :  { %19468 = vst [vmem:[#allocation12_spill] sm:$0xff] %v14640_v49 }
 0x278   :  { %v14642_v51 = vpop.permute.xlu1 %1380  ;;  %v14644_v52 = vpop.permute.xlu0 %1378 }
 0x27d   :  { %v14649_v55 = vpop.permute.xlu2 %1560 }
 0x27e   :  { %19469 = vst [vmem:[#allocation13_spill] sm:$0xff] %v14649_v55 }
 0x280   :  { %v14651_v57 = vpop.permute.xlu1 %1510  ;;  %v14653_v58 = vpop.permute.xlu0 %1500 }
 0x281   :  { %19470 = vst [vmem:[#allocation14_spill] sm:$0xff] %v14651_v57  ;;  %v1505_v26 = vsel %vm19181_vm9, %v14653_v58, %v14617_v43  ;;  %v1522_v39 = vsel %vm19164_vm14, %v14629_v46, %v14651_v57 }
 0x282   :  { %v1509_v50 = vmul.f32 %v14704_v25, %v1505_v26  ;;  %v1526_v12 = vmul.f32 %v14735_v36, %v1522_v39 }
 0x284   :  { %v1689_v23 = vrot.slane %v1509_v50, 7  ;;  %v14795_v50 = vsel %vm1262_vm2, 1.0, %v19159_v24  ;;  %v1701_v26 = vrot.slane %v1526_v12, 4  ;;  %v1639_v12 = vrot.slane %v14559_v35, 1  ;;  %vm1298_vm2 = vmand %vm14742_vm11, %vm14728_vm7 }
 0x285   :  { %v14658_v61 = vpop.permute.xlu2 %1531  ;;  %19494 = vst [vmem:[#allocation22_spill] sm:$0xff] %v14795_v50 }
 0x288   :  { %v14670_v4 = vpop.permute.xlu1 %1533  ;;  %v14672_v7 = vpop.permute.xlu0 %1527 }
 0x289   :  { %19475 = vst [vmem:[#allocation15_spill] sm:$0xff] %v14672_v7  ;;  %v1539_v62 = vsel %vm19171_vm6, %v14670_v4, %v14672_v7  ;;  %v1536_v35 = vsel %vm19171_vm6, %v14658_v61, %v14670_v4  ;;  %v1658_v4 = vrot.slane %v14448_v5, 3 }
 0x28a   :  { %v1543_v15 = vmul.f32 %v14753_v60, %v1539_v62 }
 0x28c   :  { %v1713_v7 = vrot.slane %v1543_v15, 1 }
 0x28d   :  { %v14686_v17 = vpop.permute.xlu2 %1461 }
 0x290   :  { %v14726_v30 = vpop.permute.xlu1 %1498  ;;  %v14732_v32 = vpop.permute.xlu0 %1550 }
 0x291   :  { %v1555_v56 = vsel %vm19171_vm6, %v14732_v32, %v14640_v49  ;;  %v1502_v39 = vsel %vm19181_vm9, %v14726_v30, %v14653_v58  ;;  %v19495_v49 = vrot.slane %v14464_v9, 3 }
 0x292   :  { %v1559_v14 = vmul.f32 %v14753_v60, %v1555_v56  ;;  %v1508_v40 = vmul.f32 %v14786_v18, %v1502_v39 }
 0x293   :  { %v1786_v24 = vsel %vm19175_vm8, %v19495_v49, %v1689_v23  ;;  %v19180_v23 = vrot.slane %v14432_v1, 3 }
 0x294   :  { %v1725_v36 = vrot.slane %v1559_v14, 6  ;;  %v1790_v15 = vsel %vm19173_vm12, %v1786_v24, %v1701_v26  ;;  %v1688_v14 = vrot.slane %v1508_v40, 7  ;;  %v1659_v24 = vrot.slane %v14453_v6, 3 }
 0x295   :  { %v14763_v63 = vpop.permute.xlu2 %1484  ;;  %v1794_v39 = vsel %vm19172_vm1, %v1790_v15, %v1713_v7  ;;  %v1664_v40 = vrot.slane %v14503_v20, 3  ;;  %v1665_v15 = vrot.slane %v14508_v21, 3  ;;  %v1661_v6 = vrot.slane %v14474_v11, 3 }
 0x296   :  { %v1785_v21 = vsel %vm19175_vm8, %v19180_v23, %v1688_v14  ;;  %vm19194_vm8 = vcmp.lt.s32.totalorder %v14646_v53, 17 }
 0x298   :  { %v14792_v56 = vpop.permute.xlu1 %1514  ;;  %v1567_v62 = vpop.permute.xlu0 %1566 }
 0x299   :  { %19493 = vst [vmem:[#allocation21_spill] sm:$0xff] %v14792_v56  ;;  %v1519_v60 = vsel %vm19164_vm14, %v14792_v56, %v14629_v46  ;;  %v1572_v57 = vsel %vm19170_vm10, %v1567_v62, %v14649_v55  ;;  %vm19498_vm14 = vcmask 1044480  }
 0x29a   :  { %v1576_v58 = vmul.f32 %v14783_v45, %v1572_v57  ;;  %v1525_v46 = vmul.f32 %v14795_v50, %v1519_v60  ;;  %v19496_v57 = vmov 0.0   ;;  %v1798_v60 = vsel %vm19177_vm0, %v1713_v7, %v1725_v36 }
 0x29b   :  { %v14821_v49 = vsel %vm14742_vm11, 1.0, %v19496_v57  ;;  %v14833_v54 = vsel %vm1298_vm2, 1.0, %v19496_v57  ;;  %v19500_v50 = vrot.slane %v14570_v37, 1  ;;  %vm19501_vm11 = vcmask 1044480  }
 0x29c   :  { %v1737_v55 = vrot.slane %v1576_v58, 3  ;;  %19497 = vst [vmem:[#allocation23_spill] sm:$0xff] %v14821_v49  ;;  %v1542_v36 = vmul.f32 %v14821_v49, %v1536_v35  ;;  %v1700_v26 = vrot.slane %v1525_v46, 4  ;;  %vm19176_vm2 = vcmp.lt.s32.totalorder %v14646_v53, 1 }
 0x29d   :  { %v14811_v43 = vpop.permute.xlu2 %1411  ;;  %19499 = vst [vmem:[#allocation24_spill] sm:$0xff] %v14833_v54  ;;  %v14838_v56 = vsel %vm19177_vm0, %v19500_v50, %v1639_v12  ;;  %v1662_v12 = vrot.slane %v14482_v13, 3 }
 0x29e   :  { %v1802_v58 = vsel %vm19498_vm14, %v1798_v60, %v1737_v55  ;;  %vm1219_vm14 = vmand %vm14662_vm3, %vm14698_vm13  ;;  %v1789_v13 = vsel %vm19173_vm12, %v1785_v21, %v1700_v26  ;;  %v19506_v21 = vrot.slane %v14464_v9, 3  ;;  %v1112_v9 = vshra.s32 %v14646_v53, 4 }
 0x29f   :  { %v1814_v45 = vpack.c.bf16 %v1802_v58, %v1794_v39  ;;  %v14882_v0 = vsel %vm1219_vm14, 1.0, %v19496_v57 }
 0x2a0   :  { %v14843_v7 = vpop.permute.xlu1 %1564  ;;  %v14845_v55 = vpop.permute.xlu0 %1548  ;;  %19504 = vst [vmem:[#allocation25_spill] sm:$0xff] %v14882_v0 }
 0x2a1   :  { %v1569_v50 = vsel %vm19170_vm10, %v14843_v7, %v1567_v62  ;;  %v1552_v5 = vsel %vm19171_vm6, %v14845_v55, %v14732_v32  ;;  %1885 = vmatpush.bf16.msra.mxu3 %v1814_v45  ;;  %v1712_v45 = vrot.slane %v1542_v36, 1  ;;  %v14871_v62 = vsel %vm19501_vm11, %v1664_v40, %v1665_v15  ;;  %vm19502_vm10 = vmmov %vm19501_vm11 }
 0x2a2   :  { %v1575_v46 = vmul.f32 %v14833_v54, %v1569_v50  ;;  %v1558_v20 = vmul.f32 %v14821_v49, %v1552_v5  ;;  %v14876_v39 = vsel %vm19502_vm10, %v1658_v4, %v1659_v24  ;;  %vm19503_vm6 = vmmov %vm19502_vm10  ;;  %vm19174_vm10 = vcmask 1045504  }
 0x2a3   :  { %v14879_v14 = vsel %vm19503_vm6, %v1661_v6, %v1662_v12  ;;  %v1793_v58 = vsel %vm19172_vm1, %v1789_v13, %v1712_v45  ;;  %vm19505_vm3 = vmmov %vm19503_vm6  ;;  %vm19178_vm6 = vcmask 1042432   ;;  %v14900_v12 = vadd.s32 128, %v14646_v53 }
 0x2a4   :  { %v1736_v32 = vrot.slane %v1575_v46, 3  ;;  %v1724_v11 = vrot.slane %v1558_v20, 6  ;;  %vm19507_vm14 = vmmov %vm19505_vm3  ;;  %vm1123_vm11 = vcmp.ge.s32.totalorder %v14655_v59, 1  ;;  %vm19179_vm1 = vcmp.lt.s32.totalorder %v14646_v53, 16 }
 0x2a5   :  { %v14860_v35 = vpop.permute.xlu2 %1444  ;;  %v1113_v13 = vshra.s32 %v14900_v12, 4 }
 0x2a6   :  { %v1797_v60 = vsel %vm19177_vm0, %v1712_v45, %v1724_v11 }
 0x2a7   :  { %v1801_v36 = vsel %vm19505_vm3, %v1797_v60, %v1736_v32  ;;  %vm1127_vm3 = vcmp.le.s32.totalorder %v14655_v59, 16 }
 0x2a8   :  { %v14886_v26 = vpop.permute.xlu1 %1482  ;;  %v1468_v40 = vpop.permute.xlu0 %1467  ;;  %v1813_v15 = vpack.c.bf16 %v1801_v36, %v1793_v58  ;;  %vm14918_vm12 = vmand %vm1123_vm11, %vm1127_vm3  ;;  %vm1126_vm11 = vcmp.le.s32.totalorder %v14680_v16, 16 }
 0x2a9   :  { %v1486_v4 = vsel %vm19176_vm2, %v14886_v26, %v14763_v63  ;;  %v1473_v24 = vsel %vm19181_vm9, %v1468_v40, %v14686_v17  ;;  %v14925_v59 = vsel %vm14918_vm12, 1.0, %v19496_v57  ;;  %vm1195_vm3 = vmand %vm14918_vm12, %vm14666_vm4  ;;  %vm19516_vm4 = vcmp.lt.s32.totalorder %v14646_v53, 15 }
 0x2aa   :  { %v1493_v50 = vmul.f32 %v14882_v0, %v1486_v4  ;;  %v1477_v5 = vmul.f32 %v14704_v25, %v1473_v24  ;;  %1871 = vmatpush.bf16.msra.mxu2 %v1813_v15  ;;  %19511 = vst [vmem:[#allocation27_spill] sm:$0xff] %v14925_v59  ;;  %v14933_v15 = vand.u32 15, %v1113_v13  ;;  %v15070_v25 = vsel %vm19194_vm8, %v14637_v48, %v14623_v44 }
 0x2ac   :  { %v1652_v46 = vrot.slane %v1477_v5, 3  ;;  %v1778_v20 = vsel %vm19178_vm6, %v1493_v50, %v14696_v19  ;;  %v1637_v50 = vrot.slane %v14525_v29, 1  ;;  %v14944_v5 = vand.u32 15, %v1112_v9 }
 0x2ad   :  { %v14897_v6 = vpop.permute.xlu2 %1393  ;;  %v1782_v45 = vsel %vm19174_vm10, %v1778_v20, %v19506_v21  ;;  %vm1139_vm10 = vmand %vm14918_vm12, %vm14698_vm13  ;;  %v1638_v20 = vrot.slane %v14597_v38, 1  ;;  %vm1205_vm12 = vcmp.ge.s32.totalorder %v14933_v15, 0  ;;  %v19613_v21 = vrot.slane %v14437_v2, 3 }
 0x2ae   :  { %v1774_v32 = vsel %vm19507_vm14, %v14719_v27, %v1652_v46  ;;  %v1383_v27 = vsel %vm19179_vm1, %v14644_v52, %v14642_v51  ;;  %vm1122_vm14 = vcmp.ge.s32.totalorder %v14680_v16, 1  ;;  %vm1204_vm1 = vcmp.ge.s32.totalorder %v14944_v5, 0 }
 0x2af   :  { %v1810_v11 = vpack.c.bf16 %v1782_v45, %v1774_v32  ;;  %v1390_v46 = vmul.f32 %v14925_v59, %v1383_v27  ;;  %v1108_v45 = vand.u32 15, %v14646_v53  ;;  %vm14959_vm0 = vmand %vm1122_vm14, %vm1126_vm11  ;;  %vm1208_vm2 = vcmp.le.s32.totalorder %v14944_v5, 15 }
 0x2b0   :  { %v14912_v60 = vpop.permute.xlu1 %1397  ;;  %v14914_v58 = vpop.permute.xlu0 %1395  ;;  %v14977_v16 = vsel %vm1195_vm3, 1.0, %v19496_v57  ;;  %v14985_v9 = vsel %vm1139_vm10, 1.0, %v19496_v57  ;;  %vm1138_vm13 = vmand %vm14959_vm0, %vm14765_vm15  ;;  %vm1209_vm10 = vcmp.le.s32.totalorder %v14933_v15, 15  ;;  %vm19517_vm14 = vcmp.lt.s32.totalorder %v14646_v53, 16 }
 0x2b1   :  { %19508 = vst [vmem:[#allocation26_spill] sm:$0xff] %v14912_v60  ;;  %1886 = vmatpush.bf16.msra.mxu3 %v1810_v11  ;;  %v1109_v11 = vand.u32 15, %v14900_v12  ;;  %v1333_v12 = vsel %vm19194_vm8, %v14623_v44, %v14635_v47  ;;  %v1584_v22 = vrot.slane %v1390_v46, 5  ;;  %vm1218_vm11 = vmand %vm14721_vm5, %vm14765_vm15  ;;  %v15015_v19 = vsel %vm14959_vm0, 1.0, %v19496_v57 }
 0x2b2   :  { %19514 = vst [vmem:[#allocation28_spill] sm:$0xff] %v14977_v16  ;;  %vm19519_vm3 = vmmov %vm19517_vm14  ;;  %v15055_v29 = vsel %vm1138_vm13, 1.0, %v19496_v57  ;;  %vm19535_vm5 = vcmp.lt.s32.totalorder %v14646_v53, 16  ;;  %vm15102_vm15 = vcmp.le.s32.totalorder %v1108_v45, 14 }
 0x2b3   :  { %19515 = vst [vmem:[#allocation29_spill] sm:$0xff] %v14985_v9  ;;  %v1384_v46 = vsel %vm19519_vm3, %v14606_v41, %v14644_v52  ;;  %vm15035_vm6 = vmand %vm1204_vm1, %vm1208_vm2  ;;  %vm1124_vm3 = vcmp.le.s32.totalorder %v14944_v5, 16  ;;  %vm19530_vm2 = vcmask 1042432   ;;  %v19584_v52 = vld [vmem:[#allocation10_spill] sm:$0xff] }
 0x2b4   :  { %19518 = vst [vmem:[#allocation30_spill] sm:$0xff] %v15015_v19  ;;  %vm15062_vm1 = vmand %vm1205_vm12, %vm1209_vm10  ;;  %vm19532_vm12 = vcmask 1041408  }
 0x2b5   :  { %v14931_v36 = vpop.permute.xlu2 %1496  ;;  %19526 = vst [vmem:[#allocation31_spill] sm:$0xff] %v15055_v29  ;;  %vm19534_vm10 = vmmov %vm19532_vm12 }
 0x2b6   :  { %v15096_v8 = vsel %vm19534_vm10, %v19533_v28, %v1638_v20  ;;  %vm19540_vm10 = vcmp.lt.s32.totalorder %v14646_v53, 1 }
 0x2b8   :  { %v14967_v13 = vpop.permute.xlu1 %1465  ;;  %v14969_v38 = vpop.permute.xlu0 %1413 }
 0x2b9   :  { %v1470_v3 = vsel %vm19181_vm9, %v14967_v13, %v1468_v40  ;;  %v1416_v27 = vsel %vm19516_vm4, %v14811_v43, %v14969_v38  ;;  %v1399_v40 = vsel %vm19517_vm14, %v14914_v58, %v14912_v60  ;;  %vm15027_vm9 = vcmp.ge.s32.totalorder %v1108_v45, 1 }
 0x2ba   :  { %v1476_v24 = vmul.f32 %v14786_v18, %v1470_v3  ;;  %v1423_v4 = vmul.f32 %v14977_v16, %v1416_v27  ;;  %v1340_v3 = vmul.f32 %v14985_v9, %v1333_v12  ;;  %vm1216_vm14 = vmand %vm15035_vm6, %vm15027_vm9  ;;  %vm15045_vm4 = vcmp.ge.s32.totalorder %v1109_v11, 1 }
 0x2bb   :  { %v1406_v12 = vmul.f32 %v14925_v59, %v1399_v40  ;;  %v15073_v18 = vmul.f32 %v15015_v19, %v1384_v46  ;;  %v15081_v40 = vsel %vm1218_vm11, 1.0, %v19496_v57  ;;  %vm1217_vm13 = vmand %vm15062_vm1, %vm15045_vm4  ;;  %v19531_v46 = vrot.slane %v14547_v34, 1 }
 0x2bc   :  { %19529 = vst [vmem:[#allocation32_spill] sm:$0xff] %v15081_v40  ;;  %v1746_v49 = vsel %vm19530_vm2, %v1340_v3, %v1584_v22  ;;  %v1651_v44 = vrot.slane %v1476_v24, 3  ;;  %v1608_v59 = vrot.slane %v1423_v4, 7  ;;  %v1400_v22 = vsel %vm19535_vm5, %v14897_v6, %v14914_v58  ;;  %vm19541_vm5 = vmmov %vm19540_vm10  ;;  %v19624_v4 = vld [vmem:[#allocation13_spill] sm:$0xff] }
 0x2bd   :  { %v15023_v23 = vpop.permute.xlu2 %1546  ;;  %v15091_v16 = vsel %vm19532_vm12, %v19531_v46, %v1637_v50  ;;  %vm15106_vm11 = vcmp.le.s32.totalorder %v1109_v11, 14  ;;  %v1596_v20 = vrot.slane %v1406_v12, 2  ;;  %v15129_v12 = vsel %vm1216_vm14, 1.0, %v19496_v57 }
 0x2be   :  { %19542 = vst [vmem:[#allocation33_spill] sm:$0xff] %v15129_v12  ;;  %vm19548_vm12 = vcmask 1044480   ;;  %vm19549_vm2 = vcmask 1040384   ;;  %vm19552_vm14 = vcmask 1042432  }
 0x2bf   :  { %v1756_v9 = vsel %vm19549_vm2, %v1596_v20, %v1608_v59  ;;  %vm19553_vm2 = vcmp.ge.s32.totalorder %v14944_v5, 1 }
 0x2c0   :  { %v1481_v24 = vpop.permute.xlu1 %1480  ;;  %v15111_v50 = vpop.permute.xlu0 %1446 }
 0x2c1   :  { %v1487_v58 = vsel %vm19540_vm10, %v1481_v24, %v14886_v26  ;;  %v1449_v45 = vsel %vm19541_vm5, %v14860_v35, %v15111_v50  ;;  %v15137_v26 = vsel %vm1217_vm13, 1.0, %v19496_v57  ;;  %vm19544_vm10 = vcmp.le.s32.totalorder %v14933_v15, 16 }
 0x2c2   :  { %v1492_v11 = vmul.f32 %v15081_v40, %v1487_v58  ;;  %v1456_v46 = vmul.f32 %v14882_v0, %v1449_v45  ;;  %19543 = vst [vmem:[#allocation34_spill] sm:$0xff] %v15137_v26  ;;  %vm19545_vm5 = vcmp.ge.s32.totalorder %v14933_v15, 1  ;;  %v15148_v58 = vmul.f32 %v15015_v19, %v1400_v22 }
 0x2c3   :  { %vm15143_vm8 = vmand %vm19545_vm5, %vm19544_vm10  ;;  %v1773_v0 = vsel %vm19548_vm12, %v14838_v56, %v1651_v44  ;;  %vm19550_vm13 = vcmp.lt.s32.totalorder %v14646_v53, 1  ;;  %v19556_v44 = vrot.slane %v14432_v1, 3  ;;  %v1818_v1 = vld [vmem:[%s19561_s10 + $0x8] sm:$0xf] }
 0x2c4   :  { %v1620_v42 = vrot.slane %v1456_v46, 4  ;;  %vm19551_vm10 = vmmov %vm19550_vm13  ;;  %v1777_v22 = vsel %vm19552_vm14, %v1492_v11, %v14871_v62  ;;  %v10093_v62 = vld [vmem:[%s19558_s3] sm:$0xf]  ;;  %vm1253_vm14 = vcmp.le.s32.totalorder %v14933_v15, 14  ;;  %v1595_v54 = vrot.slane %v15148_v58, 2 }
 0x2c5   :  { %v1479_v45 = vpop.permute.xlu2 %1478  ;;  %vm1194_vm5 = vmand %vm14959_vm0, %vm14728_vm7  ;;  %vm19568_vm0 = vcmask 1045504  }
 0x2c6   :  { %v1488_v34 = vsel %vm19550_vm13, %v1479_v45, %v1481_v24  ;;  %v1489_v60 = vsel %vm19551_vm10, %v14763_v63, %v1479_v45  ;;  %vm15169_vm12 = vmand %vm19553_vm2, %vm1124_vm3  ;;  %vm19557_vm13 = vcmask 1045504   ;;  %vm19560_vm3 = vcmask 1043456  }
 0x2c7   :  { %v1490_v59 = vmul.f32 %v15129_v12, %v1489_v60  ;;  %v1491_v63 = vmul.f32 %v15137_v26, %v1488_v34  ;;  %v1781_v24 = vsel %vm19557_vm13, %v1777_v22, %v19556_v44  ;;  %vm19559_vm10 = vmmov %vm19557_vm13  ;;  %v1761_v45 = vsel %vm19560_vm3, %v1756_v9, %v1620_v42  ;;  %v12230_v60 = vld [vmem:[%s19558_s3] sm:$0x30] }
 0x2c8   :  { %v1809_v11 = vpack.c.bf16 %v1781_v24, %v1773_v0  ;;  %v1751_v46 = vsel %vm19559_vm10, %v1746_v49, %v1596_v20  ;;  %v12789_v34 = vmov 0   ;;  %v1817_v22 = vld [vmem:[%s19561_s10] sm:$0xff]  ;;  %v15203_v42 = vsel %vm1194_vm5, 1.0, %v19496_v57  ;;  %vm1237_vm2 = vmand %vm15062_vm1, %vm15106_vm11  ;;  %v15216_v31 = vpop.permute.xlu1 %1442  ;;  %v15218_v32 = vpop.permute.xlu0 %1409 }
 0x2c9   :  { %12768 = vset.pattern.permute.xlu1 %v12789_v34  ;;  %12767 = vset.pattern.permute.xlu0 %v12789_v34  ;;  %19562 = vst [vmem:[#allocation35_spill] sm:$0xff] %v15203_v42  ;;  %v19563_v49 = vrot.slane %v14542_v33, 1  ;;  %vm19564_vm13 = vcmask 1046528   ;;  %vm19565_vm10 = vcmask 1042432   ;;  %v19567_v44 = vrot.slane %v14437_v2, 3  ;;  %vm19570_vm7 = vmmov %vm19568_vm0 }
 0x2ca   :  { %v1775_v9 = vsel %vm19565_vm10, %v1490_v59, %v14876_v39  ;;  %vm19566_vm3 = vmmov %vm19565_vm10  ;;  %1826 = vperm.xlu1 %12768, %v1818_v1   ;;  %1821 = vperm.xlu0 %12767, %v1817_v22   ;;  %vm19571_vm5 = vcmp.le.s32.totalorder %v14944_v5, 14  ;;  %v15306_v58 = vsel %vm15169_vm12, 1.0, %v19496_v57 }
 0x2cb   :  { %v1766_v0 = vsel %vm19564_vm13, %v1761_v45, %v19563_v49  ;;  %v1776_v20 = vsel %vm19566_vm3, %v1491_v63, %v14879_v14  ;;  %1872 = vmatpush.bf16.msra.mxu2 %v1809_v11  ;;  %v15223_v39 = vsel %vm19568_vm0, %v1775_v9, %v19567_v44  ;;  %v19569_v14 = vrot.slane %v14469_v10, 3  ;;  %12769 = vset.pattern.permute.xlu2 %v12789_v34  ;;  %v1913_v44 = vld [vmem:[%s19131_s5 + $0x18] sm:$0xff] }
 0x2cc   :  { %v1806_v33 = vpack.c.bf16 %v1766_v0, %v1751_v46  ;;  %v1583_v63 = vrot.slane %v15073_v18, 5  ;;  %vm19572_vm13 = vcmp.ge.s32.totalorder %v14944_v5, 4294967295  ;;  %vm19575_vm3 = vcmp.lt.s32.totalorder %v14646_v53, 1 }
 0x2cd   :  { %v15228_v59 = vsel %vm19570_vm7, %v1776_v20, %v19569_v14  ;;  %vm15235_vm10 = vmand %vm19572_vm13, %vm19571_vm5  ;;  %v1450_v11 = vsel %vm19575_vm3, %v15216_v31, %v14860_v35  ;;  %vm19576_vm0 = vcmp.lt.s32.totalorder %v14646_v53, 15  ;;  %v15247_v45 = vor.u32 %v12230_v60, %v10093_v62 }
 0x2ce   :  { %v1417_v46 = vsel %vm19576_vm0, %v15218_v32, %v14811_v43  ;;  %v1339_v18 = vmul.f32 %v15055_v29, %v15070_v25  ;;  %vm19577_vm7 = vcmp.ge.s32.totalorder %v14933_v15, 4294967295  ;;  %v1455_v35 = vmul.f32 %v15081_v40, %v1450_v11  ;;  %1887 = vmatpush.bf16.msra.mxu3 %v1806_v33  ;;  %vm19580_vm3 = vmand %vm15035_vm6, %vm15102_vm15  ;;  %v1911_v33 = vld [vmem:[%s19131_s5 + $0x8] sm:$0xff] }
 0x2cf   :  { %vm15255_vm5 = vmand %vm19577_vm7, %vm1253_vm14  ;;  %v1422_v34 = vmul.f32 %v15203_v42, %v1417_v46  ;;  %vm1834_vm13 = vcmask 392192   ;;  %v15267_v43 = vsel %vm19580_vm3, 1.0, %v19496_v57  ;;  %v15275_v25 = vsel %vm1237_vm2, 1.0, %v19496_v57 }
 0x2d0   :  { %19581 = vst [vmem:[#allocation36_spill] sm:$0xff] %v15267_v43  ;;  %vm19583_vm14 = vcmp.lt.s32.totalorder %v14646_v53, 127  ;;  %vm1260_vm6 = vmand %vm15235_vm10, %vm15027_vm9  ;;  %v1619_v60 = vrot.slane %v1455_v35, 4  ;;  %vm19588_vm2 = vcmp.lt.s32.totalorder %v14646_v53, 16  ;;  %vm19590_vm7 = vcmask 1042432   ;;  %v19598_v35 = vld [vmem:[#allocation12_spill] sm:$0xff] }
 0x2d1   :  { %19582 = vst [vmem:[#allocation37_spill] sm:$0xff] %v15275_v25  ;;  %v1503_v15 = vsel %vm19583_vm14, %v14931_v36, %v14726_v30  ;;  %vm19585_vm0 = vmmov %vm19583_vm14  ;;  %v1607_v1 = vrot.slane %v1422_v34, 7  ;;  %v15297_v30 = vsel %vm15143_vm8, 1.0, %v19496_v57  ;;  %10098 = vmatmul.msk.bf16.vlgmr.msra.gmra.mxu3 %vm1834_vm13, %v15247_v45  ;;  %v1745_v49 = vsel %vm19590_vm7, %v1339_v18, %v1583_v63 }
 0x2d2   :  { %v1504_v62 = vsel %vm19585_vm0, %v19584_v52, %v14931_v36  ;;  %vm1261_vm1 = vmand %vm15255_vm5, %vm15045_vm4  ;;  %19586 = vst [vmem:[#allocation10_spill] sm:$0xff] %v15297_v30  ;;  %v19587_v36 = vld [vmem:[#allocation8_spill] sm:$0xff]  ;;  %v1507_v9 = vmul.f32 %v15275_v25, %v1503_v15  ;;  %v15316_v20 = vsel %vm15235_vm10, 1.0, %v19496_v57  ;;  %vm19592_vm3 = vcmask 1040384   ;;  %1921 = vperm.xlu1 %12768, %v1911_v33   ;;  %1931 = vperm.xlu0 %12767, %v1913_v44   ;;  %v1530_v15 = vpop.permute.xlu1 %1529  ;;  %v1513_v52 = vpop.permute.xlu0 %1512  ;;  %v19606_v33 = vld [vmem:[#allocation21_spill] sm:$0xff] }
 0x2d3   :  { %v1385_v22 = vsel %vm19588_vm2, %v19587_v36, %v14606_v41  ;;  %19589 = vst [vmem:[#allocation8_spill] sm:$0xff] %v15306_v58  ;;  %v1506_v0 = vmul.f32 %v15267_v43, %v1504_v62  ;;  %v1755_v41 = vsel %vm19592_vm3, %v1595_v54, %v1607_v1  ;;  %v15328_v14 = vsel %vm15255_vm5, 1.0, %v19496_v57  ;;  %vm1136_vm7 = vmand %vm15169_vm12, %vm15027_vm9 }
 0x2d4   :  { %19591 = vst [vmem:[#allocation38_spill] sm:$0xff] %v15316_v20  ;;  %v15336_v63 = vsel %vm1260_vm6, 1.0, %v19496_v57  ;;  %v15339_v11 = vsel %vm1261_vm1, 1.0, %v19496_v57  ;;  %vm19596_vm14 = vcmask 1043456   ;;  %vm19597_vm0 = vcmp.lt.s32.totalorder %v14646_v53, 112 }
 0x2d5   :  { %19593 = vst [vmem:[#allocation39_spill] sm:$0xff] %v15328_v14  ;;  %v1760_v46 = vsel %vm19596_vm14, %v1755_v41, %v1619_v60  ;;  %v1553_v18 = vsel %vm19597_vm0, %v15023_v23, %v14845_v55  ;;  %vm19599_vm2 = vmmov %vm19597_vm0  ;;  %vm19600_vm6 = vcmask 1045504   ;;  %v19601_v1 = vrot.slane %v14570_v37, 1  ;;  %v19604_v41 = vld [vmem:[#allocation15_spill] sm:$0xff]  ;;  %v19608_v37 = vld [vmem:[#allocation14_spill] sm:$0xff] }
 0x2d6   :  { %19594 = vst [vmem:[#allocation40_spill] sm:$0xff] %v15336_v63  ;;  %v1554_v34 = vsel %vm19599_vm2, %v19598_v35, %v15023_v23  ;;  %v1750_v62 = vsel %vm19600_vm6, %v1745_v49, %v1595_v54  ;;  %vm19602_vm1 = vcmask 1046528   ;;  %vm19603_vm3 = vmmov %vm19597_vm0  ;;  %v1686_v44 = vrot.slane %v1506_v0, 7 }
 0x2d7   :  { %19595 = vst [vmem:[#allocation41_spill] sm:$0xff] %v15339_v11  ;;  %v1765_v60 = vsel %vm19602_vm1, %v1760_v46, %v19601_v1  ;;  %v1537_v55 = vsel %vm19603_vm3, %v1530_v15, %v14658_v61  ;;  %vm19605_vm14 = vmmov %vm19597_vm0  ;;  %vm19607_vm0 = vcmp.lt.s32.totalorder %v14646_v53, 113  ;;  %v1687_v46 = vrot.slane %v1507_v9, 7 }
 0x2d8   :  { %v1538_v23 = vsel %vm19605_vm14, %v19604_v41, %v1530_v15  ;;  %v1520_v54 = vsel %vm19607_vm0, %v1513_v52, %v19606_v33  ;;  %vm19609_vm2 = vmmov %vm19607_vm0  ;;  %vm19610_vm1 = vcmp.lt.s32.totalorder %v14646_v53, 16  ;;  %v1556_v1 = vmul.f32 %v15316_v20, %v1554_v34 }
 0x2d9   :  { %v1521_v49 = vsel %vm19609_vm2, %v19608_v37, %v1513_v52  ;;  %vm1137_vm6 = vmand %vm15143_vm8, %vm15045_vm4  ;;  %v1524_v35 = vmul.f32 %v15339_v11, %v1520_v54  ;;  %v1386_v15 = vsel %vm19610_vm1, %v14642_v51, %v19587_v36  ;;  %v1557_v52 = vmul.f32 %v15328_v14, %v1553_v18 }
 0x2da   :  { %v1523_v61 = vmul.f32 %v15336_v63, %v1521_v49  ;;  %v1805_v41 = vpack.c.bf16 %v1765_v60, %v1750_v62  ;;  %vm1296_vm3 = vmand %vm15235_vm10, %vm15102_vm15  ;;  %v1540_v0 = vmul.f32 %v15316_v20, %v1538_v23  ;;  %v1541_v9 = vmul.f32 %v15328_v14, %v1537_v55  ;;  %v1441_v23 = vpop.permute.xlu2 %1440  ;;  %v1464_v49 = vpop.permute.xlu1 %1463 }
 0x2db   :  { %v1699_v54 = vrot.slane %v1524_v35, 4  ;;  %vm1297_vm14 = vmand %vm15255_vm5, %vm15106_vm11  ;;  %v15398_v51 = vsel %vm1136_vm7, 1.0, %v19496_v57  ;;  %v15406_v36 = vsel %vm1137_vm6, 1.0, %v19496_v57  ;;  %v15409_v5 = vmul.f32 %v15297_v30, %v1385_v22  ;;  %v1563_v24 = vpop.permute.xlu0 %1562 }
 0x2dc   :  { %v1698_v33 = vrot.slane %v1523_v61, 4  ;;  %19611 = vst [vmem:[#allocation12_spill] sm:$0xff] %v15398_v51  ;;  %1873 = vmatpush.bf16.msra.mxu2 %v1805_v41  ;;  %v15412_v18 = vmul.f32 %v15306_v58, %v1386_v15  ;;  %vm19614_vm9 = vcmask 1040384   ;;  %v19615_v62 = vrot.slane %v14469_v10, 3  ;;  %vm1192_vm4 = vmand %vm15169_vm12, %vm15102_vm15 }
 0x2dd   :  { %19612 = vst [vmem:[#allocation15_spill] sm:$0xff] %v15406_v36  ;;  %v1783_v34 = vsel %vm19614_vm9, %v19613_v21, %v1686_v44  ;;  %vm19616_vm5 = vmmov %vm19614_vm9  ;;  %v1722_v55 = vrot.slane %v1556_v1, 6  ;;  %v1723_v27 = vrot.slane %v1557_v52, 6  ;;  %v15426_v22 = vsel %vm1296_vm3, 1.0, %v19496_v57 }
 0x2de   :  { %v1784_v60 = vsel %vm19616_vm5, %v19615_v62, %v1687_v46  ;;  %19617 = vst [vmem:[#allocation21_spill] sm:$0xff] %v15426_v22  ;;  %v15429_v37 = vsel %vm1297_vm14, 1.0, %v19496_v57  ;;  %v1710_v2 = vrot.slane %v1540_v0, 1  ;;  %v1711_v10 = vrot.slane %v1541_v9, 1  ;;  %vm1193_vm10 = vmand %vm15143_vm8, %vm15106_vm11 }
 0x2df   :  { %19618 = vst [vmem:[#allocation14_spill] sm:$0xff] %v15429_v37  ;;  %10097 = vmatmul.msk.bf16.vlgmr.msra.gmra.mxu2 %vm1834_vm13, %v15247_v45  ;;  %vm19619_vm7 = vcmask 1043456   ;;  %vm19621_vm2 = vcmp.lt.s32.totalorder %v14646_v53, 127  ;;  %vm19623_vm1 = vcmp.lt.s32.totalorder %v14646_v53, 111  ;;  %vm19626_vm8 = vcmp.lt.s32.totalorder %v14646_v53, 1 }
 0x2e0   :  { %v1787_v44 = vsel %vm19619_vm7, %v1783_v34, %v1698_v33  ;;  %vm19620_vm0 = vmmov %vm19619_vm7  ;;  %v1471_v61 = vsel %vm19621_vm2, %v1464_v49, %v14967_v13  ;;  %v1570_v15 = vsel %vm19623_vm1, %v1563_v24, %v14843_v7  ;;  %v15471_v0 = vsel %vm1192_vm4, 1.0, %v19496_v57 }
 0x2e1   :  { %v1788_v46 = vsel %vm19620_vm0, %v1784_v60, %v1699_v54  ;;  %vm19622_vm6 = vmmov %vm19621_vm2  ;;  %v1475_v52 = vmul.f32 %v15275_v25, %v1471_v61  ;;  %v1574_v13 = vmul.f32 %v15429_v37, %v1570_v15  ;;  %19628 = vst [vmem:[#allocation13_spill] sm:$0xff] %v15471_v0  ;;  %v15474_v9 = vsel %vm1193_vm10, 1.0, %v19496_v57 }
 0x2e2   :  { %v1472_v35 = vsel %vm19622_vm6, %v14686_v17, %v1464_v49  ;;  %vm19625_vm3 = vmmov %vm19623_vm1  ;;  %v1451_v17 = vsel %vm19626_vm8, %v1441_v23, %v15216_v31  ;;  %19629 = vst [vmem:[#allocation42_spill] sm:$0xff] %v15474_v9  ;;  %vm19630_vm14 = vcmask 1046528   ;;  %vm19631_vm9 = vcmask 1041408  }
 0x2e3   :  { %v1571_v28 = vsel %vm19625_vm3, %v19624_v4, %v1563_v24  ;;  %v1474_v1 = vmul.f32 %v15267_v43, %v1472_v35  ;;  %vm19627_vm11 = vmmov %vm19626_vm8  ;;  %v1650_v54 = vrot.slane %v1475_v52, 3  ;;  %v1735_v34 = vrot.slane %v1574_v13, 3  ;;  %v1392_v61 = vpop.permute.xlu0 %1391  ;;  %v19644_v35 = vld [vmem:[#allocation26_spill] sm:$0xff] }
 0x2e4   :  { %v1573_v41 = vmul.f32 %v15426_v22, %v1571_v28  ;;  %v1452_v7 = vsel %vm19627_vm11, %v15111_v50, %v1441_v23  ;;  %v1791_v31 = vsel %vm19630_vm14, %v1787_v44, %v1710_v2  ;;  %v1795_v62 = vsel %vm19631_vm9, %v1710_v2, %v1722_v55  ;;  %vm19632_vm5 = vmmov %vm19630_vm14  ;;  %v19638_v2 = vld [vmem:[#allocation11_spill] sm:$0xff] }
 0x2e5   :  { %v1649_v33 = vrot.slane %v1474_v1, 3  ;;  %v1792_v50 = vsel %vm19632_vm5, %v1788_v46, %v1711_v10  ;;  %vm19633_vm7 = vmmov %vm19631_vm9  ;;  %vm19634_vm0 = vcmask 1044480   ;;  %vm19639_vm10 = vcmp.lt.s32.totalorder %v14646_v53, 17  ;;  %v1408_v46 = vpop.permute.xlu1 %1407 }
 0x2e6   :  { %v1734_v21 = vrot.slane %v1573_v41, 3  ;;  %v1796_v56 = vsel %vm19633_vm7, %v1711_v10, %v1723_v27  ;;  %vm19635_vm15 = vmmov %vm19634_vm0  ;;  %v1336_v27 = vsel %vm19639_vm10, %v14635_v47, %v19638_v2  ;;  %vm19641_vm6 = vcmp.lt.s32.totalorder %v14646_v53, 15 }
 0x2e7   :  { %v1800_v60 = vsel %vm19635_vm15, %v1796_v56, %v1735_v34  ;;  %vm19636_vm12 = vmmov %vm19634_vm0  ;;  %vm19643_vm3 = vcmp.lt.s32.totalorder %v14646_v53, 16  ;;  %v1581_v1 = vrot.slane %v15412_v18, 5  ;;  %vm19646_vm11 = vcmask 1040384   ;;  %v19653_v56 = vld [vmem:[#allocation7_spill] sm:$0xff] }
 0x2e8   :  { %v1799_v3 = vsel %vm19634_vm0, %v1795_v62, %v1734_v21  ;;  %v1771_v57 = vsel %vm19636_vm12, %v15091_v16, %v1649_v33  ;;  %vm19637_vm4 = vmmov %vm19634_vm0  ;;  %v1812_v24 = vpack.c.bf16 %v1800_v60, %v1792_v50  ;;  %v1453_v16 = vmul.f32 %v15129_v12, %v1452_v7 }
 0x2e9   :  { %v1772_v23 = vsel %vm19637_vm4, %v15096_v8, %v1650_v54  ;;  %v1811_v49 = vpack.c.bf16 %v1799_v3, %v1791_v31  ;;  %v1807_v44 = vpack.c.bf16 %v15223_v39, %v1771_v57  ;;  %vm19640_vm2 = vmmov %vm19639_vm10  ;;  %v1454_v8 = vmul.f32 %v15137_v26, %v1451_v17 }
 0x2ea   :  { %v1808_v55 = vpack.c.bf16 %v15228_v59, %v1772_v23  ;;  %v1335_v10 = vsel %vm19640_vm2, %v19638_v2, %v14637_v48  ;;  %v1418_v39 = vsel %vm19641_vm6, %v1408_v46, %v15218_v32  ;;  %vm19642_vm1 = vmmov %vm19641_vm6  ;;  %v1401_v47 = vsel %vm19643_vm3, %v1392_v61, %v14897_v6  ;;  %1857 = vmatpush.bf16.msra.mxu1 %v1812_v24  ;;  %v19657_v23 = vld [vmem:[#allocation9_spill] sm:$0xff] }
 0x2eb   :  { %v1419_v59 = vsel %vm19642_vm1, %v14969_v38, %v1408_v46  ;;  %vm19645_vm8 = vmmov %vm19643_vm3  ;;  %1843 = vmatpush.bf16.msra.mxu0 %v1811_v49  ;;  %v1421_v4 = vmul.f32 %v15474_v9, %v1418_v39  ;;  %v1404_v32 = vmul.f32 %v15297_v30, %v1401_v47  ;;  %v1338_v38 = vmul.f32 %v15406_v36, %v1335_v10 }
 0x2ec   :  { %v1402_v48 = vsel %vm19645_vm8, %v19644_v35, %v1392_v61  ;;  %v1420_v15 = vmul.f32 %v15471_v0, %v1419_v59  ;;  %v1582_v17 = vrot.slane %v15409_v5, 5  ;;  %v1337_v7 = vmul.f32 %v15398_v51, %v1336_v27  ;;  %vm19647_vm14 = vmmov %vm19646_vm11 }
 0x2ed   :  { %v1403_v28 = vmul.f32 %v15306_v58, %v1402_v48  ;;  %v1606_v6 = vrot.slane %v1421_v4, 7  ;;  %v1594_v13 = vrot.slane %v1404_v32, 2  ;;  %v1617_v33 = vrot.slane %v1453_v16, 4  ;;  %v12231_v48 = vld [vmem:[%s19130_s4] sm:$0xff] }
 0x2ee   :  { %v1605_v52 = vrot.slane %v1420_v15, 7  ;;  %v1618_v54 = vrot.slane %v1454_v8, 4  ;;  %1858 = vmatpush.bf16.msra.mxu1 %v1808_v55  ;;  %vm19648_vm9 = vcmask 1042432   ;;  %vm19649_vm5 = vcmask 1043456  }
 0x2ef   :  { %v1593_v41 = vrot.slane %v1403_v28, 2  ;;  %1844 = vmatpush.bf16.msra.mxu0 %v1807_v44  ;;  %v1754_v34 = vsel %vm19647_vm14, %v1594_v13, %v1606_v6  ;;  %v1743_v31 = vsel %vm19648_vm9, %v1337_v7, %v1581_v1  ;;  %vm19650_vm7 = vmmov %vm19648_vm9  ;;  %vm19652_vm15 = vcmask 1045504  }
 0x2f0   :  { %v1744_v62 = vsel %vm19650_vm7, %v1338_v38, %v1582_v17  ;;  %vm19651_vm0 = vmmov %vm19649_vm5  ;;  %v19654_v3 = vrot.slane %v19653_v56, 1  ;;  %vm19655_vm12 = vcmask 1046528   ;;  %v19658_v49 = vrot.slane %v19657_v23, 1 }
 0x2f1   :  { %v1753_v21 = vsel %vm19646_vm11, %v1593_v41, %v1605_v52  ;;  %v1759_v50 = vsel %vm19651_vm0, %v1754_v34, %v1618_v54  ;;  %v1748_v5 = vsel %vm19652_vm15, %v1743_v31, %v1593_v41  ;;  %vm19656_vm4 = vmmov %vm19652_vm15  ;;  %vm1944_vm6 = vcmask 97280   ;;  %v12232_v41 = vld [vmem:[%s19130_s4 + $0x8] sm:$0xff] }
 0x2f2   :  { %v1758_v18 = vsel %vm19649_vm5, %v1753_v21, %v1617_v33  ;;  %v1749_v57 = vsel %vm19656_vm4, %v1744_v62, %v1594_v13  ;;  %vm19659_vm10 = vmmov %vm19655_vm12  ;;  %v1910_v13 = vld [vmem:[%s19131_s5] sm:$0xff]  ;;  %vm19735_vm11 = vcmp.lt.s32.totalorder %v14646_v53, 17  ;;  %vm19737_vm9 = vcmp.lt.s32.totalorder %v14646_v53, 15 }
 0x2f3   :  { %v1763_v60 = vsel %vm19655_vm12, %v1758_v18, %v19654_v3  ;;  %v1764_v24 = vsel %vm19659_vm10, %v1759_v50, %v19658_v49  ;;  %vm19660_vm2 = vmmov %vm19656_vm4  ;;  %1916 = vperm.xlu2 %12769, %v1910_v13   ;;  %v1912_v18 = vld [vmem:[%s19131_s5 + $0x10] sm:$0xff]  ;;  %vm19746_vm5 = vcmp.lt.s32.totalorder %v14646_v53, 1  ;;  %vm19747_vm7 = vcmp.lt.s32.totalorder %v14646_v53, 127 }
 0x2f4   :  { %v1803_v44 = vpack.c.bf16 %v1763_v60, %v1748_v5  ;;  %v1804_v55 = vpack.c.bf16 %v1764_v24, %v1749_v57  ;;  %vm19662_vm1 = vmmov %vm19660_vm2  ;;  %vm19748_vm0 = vcmp.lt.s32.totalorder %v14646_v53, 112  ;;  %vm19750_vm12 = vcmp.lt.s32.totalorder %v14646_v53, 113 }
 0x2f5   :  { %vm19663_vm3 = vmmov %vm19662_vm1  ;;  %vm19751_vm4 = vcmp.lt.s32.totalorder %v14646_v53, 111 }
 0x2f6   :  { %1845 = vmatpush.bf16.msra.mxu0 %v1803_v44  ;;  %1859 = vmatpush.bf16.msra.mxu1 %v1804_v55  ;;  %vm19736_vm14 = vmmov %vm19645_vm8 }
 0x2f7   :  { %vm19749_vm15 = vmmov %vm19748_vm0 }
 0x2f8   :  { %vm19752_vm10 = vmmov %vm19735_vm11 }
 0x2f9   :  { %10095 = vmatmul.msk.bf16.vlgmr.msra.gmra.mxu0 %vm1834_vm13, %v15247_v45  ;;  %10096 = vmatmul.msk.bf16.vlgmr.msra.gmra.mxu1 %vm1834_vm13, %v15247_v45  ;;  %vm19661_vm13 = vmmov %vm19660_vm2 }
 0x2fb   :  { %1926 = vperm.xlu2 %12769, %v1912_v18  }
 0x33c   :  { %v1822_v27 = vpop.permute.xlu0 %1821  ;;  %v1827_v16 = vpop.permute.xlu1 %1826 }
 0x34d   :  { %v1917_v23 = vpop.permute.xlu2 %1916 }
 0x354   :  { %v1889_v2 = vpop.f32.mrf.mxu3 }
 0x355   :  { %v1890_v10 = vadd.f32 %v1889_v2, %v1822_v27  ;;  %v15604_v13 = vpop.permute.xlu2 %1926 }
 0x357   :  { %v1897_v61 = vmax.f32 %v1890_v10, 0.0 }
 0x35c   :  { %v1891_v8 = vpop.f32.mrf.mxu3 }
 0x35d   :  { %v1892_v46 = vadd.f32 %v1891_v8, %v1827_v16 }
 0x35f   :  { %v1901_v39 = vmax.f32 %v1892_v46, 0.0 }
 0x361   :  { %v1909_v47 = vpack.c.bf16 %v1901_v39, %v1897_v61 }
 0x362   :  { %v1875_v59 = vpop.f32.mrf.mxu2 }
 0x363   :  { %v1961_v35 = vsel %vm19660_vm2, %v1909_v47, 0  ;;  %v1876_v15 = vadd.f32 %v1875_v59, %v1822_v27  ;;  %vm19753_vm2 = vmmov %vm19645_vm8 }
 0x364   :  { %2027 = vmatpush.bf16.msrb.mxu3 %v1961_v35 }
 0x365   :  { %v1896_v4 = vmax.f32 %v1876_v15, 0.0 }
 0x367   :  { %10113 = vmatmul.msk.bf16.vlgmr.msrb.gmra.mxu3 %vm1944_vm6, %v12231_v48 }
 0x36a   :  { %v1877_v45 = vpop.f32.mrf.mxu2 }
 0x36b   :  { %v1878_v28 = vadd.f32 %v1877_v45, %v1827_v16 }
 0x36d   :  { %v1900_v32 = vmax.f32 %v1878_v28, 0.0 }
 0x36f   :  { %v1908_v38 = vpack.c.bf16 %v1900_v32, %v1896_v4 }
 0x371   :  { %v1958_v1 = vsel %vm19661_vm13, %v1908_v38, 0  ;;  %vm19755_vm13 = vmmov %vm19746_vm5 }
 0x372   :  { %2008 = vmatpush.bf16.msrb.mxu2 %v1958_v1 }
 0x375   :  { %10111 = vmatmul.msk.bf16.vlgmr.msrb.gmra.mxu2 %vm1944_vm6, %v12231_v48 }
 0x376   :  { %v1847_v52 = vpop.f32.mrf.mxu0  ;;  %v1861_v6 = vpop.f32.mrf.mxu1 }
 0x377   :  { %v1862_v17 = vadd.f32 %v1861_v6, %v1822_v27  ;;  %v1848_v7 = vadd.f32 %v1847_v52, %v1822_v27  ;;  %10114 = vmatmul.msk.bf16.gmra.mxu3 %vm1944_vm6, %v12232_v41 }
 0x379   :  { %v1895_v21 = vmax.f32 %v1862_v17, 0.0  ;;  %v1894_v62 = vmax.f32 %v1848_v7, 0.0 }
 0x37e   :  { %v1849_v33 = vpop.f32.mrf.mxu0  ;;  %v1863_v54 = vpop.f32.mrf.mxu1 }
 0x37f   :  { %v1850_v34 = vadd.f32 %v1849_v33, %v1827_v16  ;;  %v1864_v31 = vadd.f32 %v1863_v54, %v1827_v16  ;;  %v15563_v16 = vpop.permute.xlu1 %1921  ;;  %v15630_v54 = vpop.permute.xlu0 %1931 }
 0x381   :  { %v1898_v50 = vmax.f32 %v1850_v34, 0.0  ;;  %v1899_v5 = vmax.f32 %v1864_v31, 0.0 }
 0x383   :  { %v1906_v56 = vpack.c.bf16 %v1898_v50, %v1894_v62  ;;  %v1907_v3 = vpack.c.bf16 %v1899_v5, %v1895_v21 }
 0x385   :  { %v1952_v60 = vsel %vm19662_vm1, %v1906_v56, 0  ;;  %v1955_v57 = vsel %vm19663_vm3, %v1907_v3, 0  ;;  %10112 = vmatmul.msk.bf16.gmra.mxu2 %vm1944_vm6, %v12232_v41  ;;  %vm19756_vm1 = vmmov %vm19747_vm7 }
 0x386   :  { %1970 = vmatpush.bf16.msrb.mxu0 %v1952_v60  ;;  %1989 = vmatpush.bf16.msrb.mxu1 %v1955_v57  ;;  %vm19760_vm3 = vmmov %vm19752_vm10 }
 0x389   :  { %10107 = vmatmul.msk.bf16.vlgmr.msrb.gmra.mxu0 %vm1944_vm6, %v12231_v48  ;;  %10109 = vmatmul.msk.bf16.vlgmr.msrb.gmra.mxu1 %vm1944_vm6, %v12231_v48 }
 0x399   :  { %10108 = vmatmul.msk.bf16.gmra.mxu0 %vm1944_vm6, %v12232_v41  ;;  %10110 = vmatmul.msk.bf16.gmra.mxu1 %vm1944_vm6, %v12232_v41  ;;  %vm19754_vm6 = vmmov %vm19737_vm9 }
 0x3ea   :  { %v2029_v6 = vpop.f32.mrf.mxu3 }
 0x3eb   :  { %v2030_v41 = vadd.f32 %v2029_v6, %v1917_v23 }
 0x3ed   :  { %v15606_v17 = vmax.f32 %v2030_v41, 0.0 }
 0x3f8   :  { %v2010_v38 = vpop.f32.mrf.mxu2 }
 0x3f9   :  { %v2011_v1 = vadd.f32 %v2010_v38, %v1917_v23 }
 0x3fb   :  { %v15598_v52 = vmax.f32 %v2011_v1, 0.0 }
 0x406   :  { %v1972_v49 = vpop.f32.mrf.mxu0  ;;  %v1991_v44 = vpop.f32.mrf.mxu1 }
 0x407   :  { %v1973_v24 = vadd.f32 %v1972_v49, %v1917_v23  ;;  %v1992_v55 = vadd.f32 %v1991_v44, %v1917_v23 }
 0x409   :  { %v2039_v2 = vmax.f32 %v1973_v24, 0.0  ;;  %v2040_v27 = vmax.f32 %v1992_v55, 0.0 }
 0x40b   :  { %2055 = vrot.lane.b32.xlu1 %v2039_v2, %s12780_s18  ;;  %2135 = vrot.lane.b32.xlu0 %v2040_v27, %s12781_s21  ;;  %v2343_v10 = vpack.c.bf16 %v2040_v27, %v2039_v2 }
 0x40c   :  { %2063 = vrot.lane.b32.xlu2 %v2040_v27, %s12780_s18 }
 0x40d   :  { %v2807_v48 = vunpack.c.l.b16 %v2343_v10  ;;  %v2808_v45 = vunpack.c.h.b16 %v2343_v10 }
 0x40e   :  { %v1974_v8 = vpop.f32.mrf.mxu0  ;;  %v1993_v61 = vpop.f32.mrf.mxu1 }
 0x40f   :  { %v1975_v46 = vadd.f32 %v1974_v8, %v15563_v16  ;;  %v1994_v39 = vadd.f32 %v1993_v61, %v15563_v16  ;;  %v2031_v8 = vpop.f32.mrf.mxu3 }
 0x410   :  { %v2032_v61 = vadd.f32 %v2031_v8, %v15563_v16 }
 0x411   :  { %v2043_v59 = vmax.f32 %v1975_v46, 0.0  ;;  %v2044_v47 = vmax.f32 %v1994_v39, 0.0 }
 0x413   :  { %2207 = vrot.lane.b32.xlu1 %v2040_v27, %s12787_s30  ;;  %2199 = vrot.lane.b32.xlu0 %v2039_v2, %s12787_s30  ;;  %v2345_v35 = vpack.c.bf16 %v2044_v47, %v2043_v59 }
 0x414   :  { %2127 = vrot.lane.b32.xlu2 %v2039_v2, %s12781_s21 }
 0x415   :  { %v2811_v15 = vunpack.c.l.b16 %v2345_v35  ;;  %v2812_v4 = vunpack.c.h.b16 %v2345_v35  ;;  %v2012_v35 = vpop.f32.mrf.mxu2 }
 0x416   :  { %v1996_v34 = vpop.f32.mrf.mxu1  ;;  %v1977_v31 = vpop.f32.mrf.mxu0 }
 0x417   :  { %v15570_v28 = vpack.c.b16 %v2811_v15, %v2807_v48  ;;  %v15572_v32 = vpack.c.b16 %v2812_v4, %v2808_v45  ;;  %v1997_v18 = vadd.f32 %v1996_v34, %v15604_v13  ;;  %v1978_v50 = vadd.f32 %v1977_v31, %v15604_v13 }
 0x418   :  { %v2013_v15 = vadd.f32 %v2012_v35, %v15563_v16 }
 0x419   :  { %19664 = vst [vmem:[#allocation11_spill] sm:$0xff] %v15570_v28  ;;  %v15648_v3 = vmax.f32 %v1997_v18, 0.0  ;;  %v15650_v60 = vmax.f32 %v1978_v50, 0.0 }
 0x41a   :  { %19665 = vst [vmem:[#allocation26_spill] sm:$0xff] %v15572_v32  ;;  %v15716_v38 = vmax.f32 %v2013_v15, 0.0 }
 0x41b   :  { %2271 = vrot.lane.b32.xlu1 %v2039_v2, %s12786_s0  ;;  %2359 = vrot.lane.b32.xlu0 %v2040_v27, %s12782_s29 }
 0x41c   :  { %2279 = vrot.lane.b32.xlu2 %v2040_v27, %s12786_s0 }
 0x41e   :  { %v1998_v18 = vpop.f32.mrf.mxu1  ;;  %v1979_v32 = vpop.f32.mrf.mxu0 }
 0x41f   :  { %v1999_v8 = vadd.f32 %v1998_v18, %v15630_v54  ;;  %v1980_v18 = vadd.f32 %v1979_v32, %v15630_v54 }
 0x421   :  { %v15755_v15 = vmax.f32 %v1999_v8, 0.0  ;;  %v15770_v8 = vmax.f32 %v1980_v18, 0.0 }
 0x423   :  { %2495 = vrot.lane.b32.xlu1 %v2039_v2, %s12784_s24  ;;  %2503 = vrot.lane.b32.xlu0 %v2040_v27, %s12784_s24 }
 0x424   :  { %2351 = vrot.lane.b32.xlu2 %v2039_v2, %s12782_s29 }
 0x42b   :  { %2423 = vrot.lane.b32.xlu1 %v2039_v2, %s12783_s20  ;;  %2431 = vrot.lane.b32.xlu0 %v2040_v27, %s12783_s20 }
 0x42c   :  { %2567 = vrot.lane.b32.xlu2 %v2039_v2, %s12785_s26 }
 0x433   :  { %2575 = vrot.lane.b32.xlu1 %v2040_v27, %s12785_s26  ;;  %2065 = vrot.lane.b32.xlu0 %v2044_v47, %s12780_s18 }
 0x434   :  { %2057 = vrot.lane.b32.xlu2 %v2043_v59, %s12780_s18 }
 0x43b   :  { %2137 = vrot.lane.b32.xlu1 %v2044_v47, %s12781_s21  ;;  %2129 = vrot.lane.b32.xlu0 %v2043_v59, %s12781_s21 }
 0x43c   :  { %2209 = vrot.lane.b32.xlu2 %v2044_v47, %s12787_s30 }
 0x443   :  { %2201 = vrot.lane.b32.xlu1 %v2043_v59, %s12787_s30  ;;  %2281 = vrot.lane.b32.xlu0 %v2044_v47, %s12786_s0 }
 0x444   :  { %2273 = vrot.lane.b32.xlu2 %v2043_v59, %s12786_s0 }
 0x44b   :  { %2361 = vrot.lane.b32.xlu1 %v2044_v47, %s12782_s29  ;;  %2353 = vrot.lane.b32.xlu0 %v2043_v59, %s12782_s29 }
 0x44c   :  { %2497 = vrot.lane.b32.xlu2 %v2043_v59, %s12784_s24 }
 0x453   :  { %2505 = vrot.lane.b32.xlu1 %v2044_v47, %s12784_s24  ;;  %2569 = vrot.lane.b32.xlu0 %v2043_v59, %s12785_s26 }
 0x454   :  { %2425 = vrot.lane.b32.xlu2 %v2043_v59, %s12783_s20 }
 0x45b   :  { %2433 = vrot.lane.b32.xlu1 %v2044_v47, %s12783_s20  ;;  %2071 = vrot.lane.b32.xlu0 %v15598_v52, %s12780_s18 }
 0x45c   :  { %2577 = vrot.lane.b32.xlu2 %v2044_v47, %s12785_s26  ;;  %v15701_v47 = vmax.f32 %v2032_v61, 0.0 }
 0x463   :  { %2079 = vrot.lane.b32.xlu1 %v15606_v17, %s12780_s18  ;;  %2223 = vrot.lane.b32.xlu0 %v15606_v17, %s12787_s30 }
 0x464   :  { %2151 = vrot.lane.b32.xlu2 %v15606_v17, %s12781_s21 }
 0x466   :  { %v15614_v7 = vpop.permute.xlu2 %2063 }
 0x467   :  { %19666 = vst [vmem:[#allocation7_spill] sm:$0xff] %v15614_v7 }
 0x46b   :  { %2143 = vrot.lane.b32.xlu1 %v15598_v52, %s12781_s21  ;;  %2287 = vrot.lane.b32.xlu0 %v15598_v52, %s12786_s0 }
 0x46c   :  { %2215 = vrot.lane.b32.xlu2 %v15598_v52, %s12787_s30 }
 0x46e   :  { %v15622_v33 = vpop.permute.xlu2 %2127 }
 0x473   :  { %2295 = vrot.lane.b32.xlu1 %v15606_v17, %s12786_s0  ;;  %2367 = vrot.lane.b32.xlu0 %v15598_v52, %s12782_s29 }
 0x474   :  { %2511 = vrot.lane.b32.xlu2 %v15598_v52, %s12784_s24 }
 0x476   :  { %v15632_v21 = vpop.permute.xlu2 %2279 }
 0x47b   :  { %2519 = vrot.lane.b32.xlu1 %v15606_v17, %s12784_s24  ;;  %2583 = vrot.lane.b32.xlu0 %v15598_v52, %s12785_s26 }
 0x47c   :  { %2439 = vrot.lane.b32.xlu2 %v15598_v52, %s12783_s20 }
 0x47d   :  { %v15641_v62 = vpop.permute.xlu1 %2055  ;;  %v15644_v5 = vpop.permute.xlu0 %2135 }
 0x47e   :  { %19667 = vst [vmem:[#allocation9_spill] sm:$0xff] %v15644_v5  ;;  %v15646_v56 = vpop.permute.xlu2 %2351 }
 0x47f   :  { %19668 = vst [vmem:[#allocation43_spill] sm:$0xff] %v15646_v56 }
 0x483   :  { %2067 = vrot.lane.b32.xlu1 %v15648_v3, %s12780_s18  ;;  %2059 = vrot.lane.b32.xlu0 %v15650_v60, %s12780_s18 }
 0x484   :  { %2139 = vrot.lane.b32.xlu2 %v15648_v3, %s12781_s21 }
 0x485   :  { %v15658_v57 = vpop.permute.xlu1 %2207  ;;  %v15660_v23 = vpop.permute.xlu0 %2199 }
 0x486   :  { %v15662_v49 = vpop.permute.xlu2 %2567 }
 0x487   :  { %19669 = vst [vmem:[#allocation44_spill] sm:$0xff] %v15662_v49 }
 0x48b   :  { %2131 = vrot.lane.b32.xlu1 %v15650_v60, %s12781_s21  ;;  %2211 = vrot.lane.b32.xlu0 %v15648_v3, %s12787_s30 }
 0x48c   :  { %2203 = vrot.lane.b32.xlu2 %v15650_v60, %s12787_s30 }
 0x48d   :  { %v15670_v24 = vpop.permute.xlu1 %2271  ;;  %v15672_v44 = vpop.permute.xlu0 %2359 }
 0x48e   :  { %v15674_v55 = vpop.permute.xlu2 %2057 }
 0x493   :  { %2283 = vrot.lane.b32.xlu1 %v15648_v3, %s12786_s0  ;;  %2275 = vrot.lane.b32.xlu0 %v15650_v60, %s12786_s0 }
 0x494   :  { %2363 = vrot.lane.b32.xlu2 %v15648_v3, %s12782_s29 }
 0x495   :  { %v15682_v2 = vpop.permute.xlu1 %2495  ;;  %v15684_v27 = vpop.permute.xlu0 %2503 }
 0x496   :  { %v15686_v10 = vpop.permute.xlu2 %2209 }
 0x49b   :  { %2355 = vrot.lane.b32.xlu1 %v15650_v60, %s12782_s29  ;;  %2507 = vrot.lane.b32.xlu0 %v15648_v3, %s12784_s24 }
 0x49c   :  { %2571 = vrot.lane.b32.xlu2 %v15650_v60, %s12785_s26 }
 0x49d   :  { %v15694_v46 = vpop.permute.xlu1 %2423  ;;  %v15697_v39 = vpop.permute.xlu0 %2431 }
 0x49e   :  { %19670 = vst [vmem:[#allocation45_spill] sm:$0xff] %v15694_v46  ;;  %v15699_v59 = vpop.permute.xlu2 %2273 }
 0x4a3   :  { %2499 = vrot.lane.b32.xlu1 %v15650_v60, %s12784_s24  ;;  %2435 = vrot.lane.b32.xlu0 %v15648_v3, %s12783_s20 }
 0x4a4   :  { %2081 = vrot.lane.b32.xlu2 %v15701_v47, %s12780_s18 }
 0x4a5   :  { %v15709_v48 = vpop.permute.xlu1 %2575  ;;  %v15712_v45 = vpop.permute.xlu0 %2065 }
 0x4a6   :  { %v15714_v4 = vpop.permute.xlu2 %2497 }
 0x4ab   :  { %2427 = vrot.lane.b32.xlu1 %v15650_v60, %s12783_s20  ;;  %2153 = vrot.lane.b32.xlu0 %v15701_v47, %s12781_s21 }
 0x4ac   :  { %2145 = vrot.lane.b32.xlu2 %v15716_v38, %s12781_s21 }
 0x4ad   :  { %v15724_v1 = vpop.permute.xlu1 %2137  ;;  %v15726_v6 = vpop.permute.xlu0 %2129 }
 0x4ae   :  { %v15728_v16 = vpop.permute.xlu2 %2425 }
 0x4af   :  { %19671 = vst [vmem:[#allocation46_spill] sm:$0xff] %v15728_v16 }
 0x4b3   :  { %2579 = vrot.lane.b32.xlu1 %v15648_v3, %s12785_s26  ;;  %2217 = vrot.lane.b32.xlu0 %v15716_v38, %s12787_s30 }
 0x4b4   :  { %2297 = vrot.lane.b32.xlu2 %v15701_v47, %s12786_s0 }
 0x4b5   :  { %v15736_v41 = vpop.permute.xlu1 %2201  ;;  %v15738_v34 = vpop.permute.xlu0 %2281 }
 0x4b6   :  { %19672 = vst [vmem:[#allocation47_spill] sm:$0xff] %v15738_v34  ;;  %v15740_v31 = vpop.permute.xlu2 %2577 }
 0x4b7   :  { %19673 = vst [vmem:[#allocation48_spill] sm:$0xff] %v15740_v31 }
 0x4bb   :  { %2073 = vrot.lane.b32.xlu1 %v15716_v38, %s12780_s18  ;;  %2513 = vrot.lane.b32.xlu0 %v15716_v38, %s12784_s24 }
 0x4bc   :  { %2521 = vrot.lane.b32.xlu2 %v15701_v47, %s12784_s24 }
 0x4bd   :  { %v15748_v50 = vpop.permute.xlu1 %2361  ;;  %v15751_v61 = vpop.permute.xlu0 %2353 }
 0x4be   :  { %19674 = vst [vmem:[#allocation49_spill] sm:$0xff] %v15748_v50  ;;  %v15753_v35 = vpop.permute.xlu2 %2151 }
 0x4bf   :  { %19675 = vst [vmem:[#allocation50_spill] sm:$0xff] %v15751_v61 }
 0x4c0   :  { %19676 = vst [vmem:[#allocation51_spill] sm:$0xff] %v15753_v35 }
 0x4c3   :  { %2225 = vrot.lane.b32.xlu1 %v15701_v47, %s12787_s30  ;;  %2441 = vrot.lane.b32.xlu0 %v15716_v38, %s12783_s20 }
 0x4c4   :  { %2069 = vrot.lane.b32.xlu2 %v15755_v15, %s12780_s18 }
 0x4c5   :  { %v15763_v28 = vpop.permute.xlu1 %2505  ;;  %v15766_v37 = vpop.permute.xlu0 %2569 }
 0x4c6   :  { %19677 = vst [vmem:[#allocation52_spill] sm:$0xff] %v15766_v37  ;;  %v15768_v40 = vpop.permute.xlu2 %2215 }
 0x4c7   :  { %19678 = vst [vmem:[#allocation53_spill] sm:$0xff] %v15768_v40 }
 0x4cb   :  { %2289 = vrot.lane.b32.xlu1 %v15716_v38, %s12786_s0  ;;  %2141 = vrot.lane.b32.xlu0 %v15755_v15, %s12781_s21 }
 0x4cc   :  { %2133 = vrot.lane.b32.xlu2 %v15770_v8, %s12781_s21 }
 0x4cd   :  { %v15778_v25 = vpop.permute.xlu1 %2433  ;;  %v15780_v12 = vpop.permute.xlu0 %2071 }
 0x4ce   :  { %19679 = vst [vmem:[#allocation54_spill] sm:$0xff] %v15778_v25  ;;  %v15782_v32 = vpop.permute.xlu2 %2511 }
 0x4d3   :  { %2369 = vrot.lane.b32.xlu1 %v15716_v38, %s12782_s29  ;;  %2205 = vrot.lane.b32.xlu0 %v15770_v8, %s12787_s30 }
 0x4d4   :  { %2285 = vrot.lane.b32.xlu2 %v15755_v15, %s12786_s0 }
 0x4d5   :  { %v15790_v18 = vpop.permute.xlu1 %2079  ;;  %v15792_v19 = vpop.permute.xlu0 %2223 }
 0x4d6   :  { %19680 = vst [vmem:[#allocation55_spill] sm:$0xff] %v15792_v19  ;;  %v15794_v11 = vpop.permute.xlu2 %2439 }
 0x4d7   :  { %19681 = vst [vmem:[#allocation56_spill] sm:$0xff] %v15794_v11  ;;  %v2034_v11 = vpop.f32.mrf.mxu3 }
 0x4d8   :  { %v2035_v51 = vadd.f32 %v2034_v11, %v15604_v13 }
 0x4db   :  { %2585 = vrot.lane.b32.xlu1 %v15716_v38, %s12785_s26  ;;  %2365 = vrot.lane.b32.xlu0 %v15755_v15, %s12782_s29 }
 0x4dc   :  { %2357 = vrot.lane.b32.xlu2 %v15770_v8, %s12782_s29 }
 0x4dd   :  { %v15802_v0 = vpop.permute.xlu1 %2143  ;;  %v15804_v29 = vpop.permute.xlu0 %2287 }
 0x4de   :  { %19682 = vst [vmem:[#allocation57_spill] sm:$0xff] %v15802_v0  ;;  %v15806_v42 = vpop.permute.xlu2 %2139 }
 0x4df   :  { %19683 = vst [vmem:[#allocation58_spill] sm:$0xff] %v15804_v29  ;;  %v15821_v29 = vmax.f32 %v2035_v51, 0.0 }
 0x4e0   :  { %19684 = vst [vmem:[#allocation59_spill] sm:$0xff] %v15806_v42  ;;  %v2015_v42 = vpop.f32.mrf.mxu2 }
 0x4e1   :  { %v2016_v11 = vadd.f32 %v2015_v42, %v15604_v13 }
 0x4e3   :  { %2061 = vrot.lane.b32.xlu1 %v15770_v8, %s12780_s18  ;;  %2573 = vrot.lane.b32.xlu0 %v15770_v8, %s12785_s26  ;;  %v15836_v51 = vmax.f32 %v2016_v11, 0.0 }
 0x4e4   :  { %2501 = vrot.lane.b32.xlu2 %v15770_v8, %s12784_s24 }
 0x4e5   :  { %v15814_v19 = vpop.permute.xlu1 %2295  ;;  %v15817_v16 = vpop.permute.xlu0 %2367 }
 0x4e6   :  { %19685 = vst [vmem:[#allocation60_spill] sm:$0xff] %v15814_v19  ;;  %v15819_v0 = vpop.permute.xlu2 %2203 }
 0x4e7   :  { %19686 = vst [vmem:[#allocation61_spill] sm:$0xff] %v15817_v16 }
 0x4e8   :  { %19687 = vst [vmem:[#allocation62_spill] sm:$0xff] %v15819_v0 }
 0x4eb   :  { %2213 = vrot.lane.b32.xlu1 %v15755_v15, %s12787_s30  ;;  %2083 = vrot.lane.b32.xlu0 %v15821_v29, %s12780_s18 }
 0x4ec   :  { %2429 = vrot.lane.b32.xlu2 %v15770_v8, %s12783_s20 }
 0x4ed   :  { %v15829_v25 = vpop.permute.xlu1 %2519  ;;  %v15832_v19 = vpop.permute.xlu0 %2583 }
 0x4ee   :  { %19688 = vst [vmem:[#allocation63_spill] sm:$0xff] %v15829_v25  ;;  %v15834_v16 = vpop.permute.xlu2 %2363 }
 0x4ef   :  { %19689 = vst [vmem:[#allocation64_spill] sm:$0xff] %v15832_v19 }
 0x4f0   :  { %19690 = vst [vmem:[#allocation65_spill] sm:$0xff] %v15834_v16 }
 0x4f3   :  { %2277 = vrot.lane.b32.xlu1 %v15770_v8, %s12786_s0  ;;  %2147 = vrot.lane.b32.xlu0 %v15836_v51, %s12781_s21 }
 0x4f4   :  { %2581 = vrot.lane.b32.xlu2 %v15755_v15, %s12785_s26 }
 0x4f5   :  { %v15844_v0 = vpop.permute.xlu1 %2067  ;;  %v15846_v25 = vpop.permute.xlu0 %2059 }
 0x4f6   :  { %19691 = vst [vmem:[#allocation66_spill] sm:$0xff] %v15844_v0  ;;  %v15848_v42 = vpop.permute.xlu2 %2571  ;;  %v2017_v0 = vpop.f32.mrf.mxu2 }
 0x4f7   :  { %19692 = vst [vmem:[#allocation67_spill] sm:$0xff] %v15846_v25  ;;  %v2018_v25 = vadd.f32 %v2017_v0, %v15630_v54 }
 0x4f8   :  { %19693 = vst [vmem:[#allocation68_spill] sm:$0xff] %v15848_v42 }
 0x4fb   :  { %2509 = vrot.lane.b32.xlu1 %v15755_v15, %s12784_s24  ;;  %2299 = vrot.lane.b32.xlu0 %v15821_v29, %s12786_s0 }
 0x4fc   :  { %2075 = vrot.lane.b32.xlu2 %v15836_v51, %s12780_s18 }
 0x4fd   :  { %v15856_v13 = vpop.permute.xlu1 %2131  ;;  %v15858_v11 = vpop.permute.xlu0 %2211 }
 0x4fe   :  { %19694 = vst [vmem:[#allocation69_spill] sm:$0xff] %v15856_v13  ;;  %v15860_v16 = vpop.permute.xlu2 %2081 }
 0x4ff   :  { %19695 = vst [vmem:[#allocation70_spill] sm:$0xff] %v15858_v11  ;;  %v15875_v11 = vmax.f32 %v2018_v25, 0.0 }
 0x500   :  { %19696 = vst [vmem:[#allocation71_spill] sm:$0xff] %v15860_v16  ;;  %v2036_v16 = vpop.f32.mrf.mxu3 }
 0x501   :  { %v2037_v0 = vadd.f32 %v2036_v16, %v15630_v54 }
 0x503   :  { %2437 = vrot.lane.b32.xlu1 %v15755_v15, %s12783_s20  ;;  %2587 = vrot.lane.b32.xlu0 %v15836_v51, %s12785_s26  ;;  %v15890_v25 = vmax.f32 %v2037_v0, 0.0 }
 0x504   :  { %2227 = vrot.lane.b32.xlu2 %v15821_v29, %s12787_s30 }
 0x505   :  { %v15868_v42 = vpop.permute.xlu1 %2283  ;;  %v15871_v19 = vpop.permute.xlu0 %2275 }
 0x506   :  { %19697 = vst [vmem:[#allocation72_spill] sm:$0xff] %v15868_v42  ;;  %v15873_v13 = vpop.permute.xlu2 %2145 }
 0x507   :  { %19698 = vst [vmem:[#allocation73_spill] sm:$0xff] %v15871_v19 }
 0x508   :  { %19699 = vst [vmem:[#allocation74_spill] sm:$0xff] %v15873_v13 }
 0x50b   :  { %2155 = vrot.lane.b32.xlu1 %v15821_v29, %s12781_s21  ;;  %2077 = vrot.lane.b32.xlu0 %v15875_v11, %s12780_s18 }
 0x50c   :  { %2291 = vrot.lane.b32.xlu2 %v15836_v51, %s12786_s0 }
 0x50d   :  { %v15883_v40 = vpop.permute.xlu1 %2355  ;;  %v15886_v42 = vpop.permute.xlu0 %2507 }
 0x50e   :  { %19700 = vst [vmem:[#allocation75_spill] sm:$0xff] %v15883_v40  ;;  %v15888_v19 = vpop.permute.xlu2 %2297 }
 0x50f   :  { %19701 = vst [vmem:[#allocation76_spill] sm:$0xff] %v15886_v42 }
 0x510   :  { %19702 = vst [vmem:[#allocation77_spill] sm:$0xff] %v15888_v19  ;;  %v2167_v19 = vsel %vm19736_vm14, %v15622_v33, %v15644_v5  ;;  %v16061_v5 = vpack.c.bf16 %v15821_v29, %v15836_v51  ;;  %vm19764_vm14 = vmmov %vm19760_vm3 }
 0x512   :  { %19742 = vst [vmem:[#allocation114_spill] sm:$0xff] %v16061_v5 }
 0x513   :  { %2219 = vrot.lane.b32.xlu1 %v15836_v51, %s12787_s30  ;;  %2229 = vrot.lane.b32.xlu0 %v15890_v25, %s12787_s30 }
 0x514   :  { %2515 = vrot.lane.b32.xlu2 %v15836_v51, %s12784_s24 }
 0x515   :  { %v15898_v13 = vpop.permute.xlu1 %2499  ;;  %v15900_v40 = vpop.permute.xlu0 %2435 }
 0x516   :  { %19703 = vst [vmem:[#allocation78_spill] sm:$0xff] %v15898_v13  ;;  %v15902_v54 = vpop.permute.xlu2 %2521 }
 0x517   :  { %19704 = vst [vmem:[#allocation79_spill] sm:$0xff] %v15900_v40 }
 0x518   :  { %19705 = vst [vmem:[#allocation80_spill] sm:$0xff] %v15902_v54 }
 0x51b   :  { %2371 = vrot.lane.b32.xlu1 %v15836_v51, %s12782_s29  ;;  %2293 = vrot.lane.b32.xlu0 %v15875_v11, %s12786_s0 }
 0x51c   :  { %2443 = vrot.lane.b32.xlu2 %v15836_v51, %s12783_s20  ;;  %v2607_v51 = vsel %vm19751_vm4, %v15662_v49, %v15709_v48 }
 0x51d   :  { %v15910_v16 = vpop.permute.xlu1 %2427  ;;  %v15912_v0 = vpop.permute.xlu0 %2153 }
 0x51e   :  { %19706 = vst [vmem:[#allocation81_spill] sm:$0xff] %v15910_v16  ;;  %v15914_v42 = vpop.permute.xlu2 %2069 }
 0x51f   :  { %19707 = vst [vmem:[#allocation82_spill] sm:$0xff] %v15912_v0 }
 0x520   :  { %19708 = vst [vmem:[#allocation83_spill] sm:$0xff] %v15914_v42 }
 0x523   :  { %2085 = vrot.lane.b32.xlu1 %v15890_v25, %s12780_s18  ;;  %2517 = vrot.lane.b32.xlu0 %v15875_v11, %s12784_s24 }
 0x524   :  { %2523 = vrot.lane.b32.xlu2 %v15821_v29, %s12784_s24 }
 0x525   :  { %v15922_v40 = vpop.permute.xlu1 %2579  ;;  %v15924_v54 = vpop.permute.xlu0 %2217 }
 0x526   :  { %19709 = vst [vmem:[#allocation84_spill] sm:$0xff] %v15922_v40  ;;  %v15926_v13 = vpop.permute.xlu2 %2133 }
 0x527   :  { %19710 = vst [vmem:[#allocation85_spill] sm:$0xff] %v15924_v54 }
 0x528   :  { %19711 = vst [vmem:[#allocation86_spill] sm:$0xff] %v15926_v13 }
 0x52b   :  { %2149 = vrot.lane.b32.xlu1 %v15875_v11, %s12781_s21  ;;  %2445 = vrot.lane.b32.xlu0 %v15875_v11, %s12783_s20 }
 0x52c   :  { %2157 = vrot.lane.b32.xlu2 %v15890_v25, %s12781_s21 }
 0x52d   :  { %v15934_v42 = vpop.permute.xlu1 %2073  ;;  %v15936_v16 = vpop.permute.xlu0 %2513 }
 0x52e   :  { %19712 = vst [vmem:[#allocation87_spill] sm:$0xff] %v15934_v42  ;;  %v15938_v0 = vpop.permute.xlu2 %2285 }
 0x52f   :  { %19713 = vst [vmem:[#allocation88_spill] sm:$0xff] %v15936_v16 }
 0x530   :  { %19714 = vst [vmem:[#allocation89_spill] sm:$0xff] %v15938_v0 }
 0x533   :  { %2301 = vrot.lane.b32.xlu1 %v15890_v25, %s12786_s0  ;;  %2525 = vrot.lane.b32.xlu0 %v15890_v25, %s12784_s24 }
 0x534   :  { %2221 = vrot.lane.b32.xlu2 %v15875_v11, %s12787_s30 }
 0x535   :  { %v15946_v13 = vpop.permute.xlu1 %2225  ;;  %v15948_v40 = vpop.permute.xlu0 %2441 }
 0x536   :  { %19715 = vst [vmem:[#allocation90_spill] sm:$0xff] %v15946_v13  ;;  %v15950_v54 = vpop.permute.xlu2 %2357 }
 0x537   :  { %19716 = vst [vmem:[#allocation91_spill] sm:$0xff] %v15948_v40 }
 0x538   :  { %19717 = vst [vmem:[#allocation92_spill] sm:$0xff] %v15950_v54 }
 0x53b   :  { %2589 = vrot.lane.b32.xlu1 %v15875_v11, %s12785_s26  ;;  %2451 = vrot.lane.b32.xlu0 %v15821_v29, %s12783_s20 }
 0x53c   :  { %2373 = vrot.lane.b32.xlu2 %v15875_v11, %s12782_s29 }
 0x53d   :  { %v15958_v0 = vpop.permute.xlu1 %2289  ;;  %v15960_v42 = vpop.permute.xlu0 %2141 }
 0x53e   :  { %19718 = vst [vmem:[#allocation93_spill] sm:$0xff] %v15958_v0  ;;  %v15962_v16 = vpop.permute.xlu2 %2501 }
 0x53f   :  { %19719 = vst [vmem:[#allocation94_spill] sm:$0xff] %v15960_v42 }
 0x540   :  { %19720 = vst [vmem:[#allocation95_spill] sm:$0xff] %v15962_v16 }
 0x543   :  { %2453 = vrot.lane.b32.xlu1 %v15890_v25, %s12783_s20  ;;  %2449 = vrot.lane.b32.xlu0 %v15701_v47, %s12783_s20 }
 0x544   :  { %2447 = vrot.lane.b32.xlu2 %v15606_v17, %s12783_s20 }
 0x545   :  { %v15970_v54 = vpop.permute.xlu1 %2369  ;;  %v15972_v40 = vpop.permute.xlu0 %2205 }
 0x546   :  { %19721 = vst [vmem:[#allocation96_spill] sm:$0xff] %v15970_v54  ;;  %v15974_v13 = vpop.permute.xlu2 %2429 }
 0x547   :  { %19722 = vst [vmem:[#allocation97_spill] sm:$0xff] %v15972_v40 }
 0x548   :  { %19723 = vst [vmem:[#allocation98_spill] sm:$0xff] %v15974_v13 }
 0x54b   :  { %2379 = vrot.lane.b32.xlu1 %v15821_v29, %s12782_s29  ;;  %2375 = vrot.lane.b32.xlu0 %v15606_v17, %s12782_s29 }
 0x54c   :  { %2381 = vrot.lane.b32.xlu2 %v15890_v25, %s12782_s29 }
 0x54d   :  { %v15982_v42 = vpop.permute.xlu1 %2585  ;;  %v15984_v16 = vpop.permute.xlu0 %2365 }
 0x54e   :  { %19724 = vst [vmem:[#allocation99_spill] sm:$0xff] %v15982_v42  ;;  %v15986_v0 = vpop.permute.xlu2 %2581 }
 0x54f   :  { %19725 = vst [vmem:[#allocation100_spill] sm:$0xff] %v15984_v16  ;;  %v3007_v16 = vld [vmem:[%s19133_s7] sm:$0xff] }
 0x550   :  { %19726 = vst [vmem:[#allocation101_spill] sm:$0xff] %v15986_v0 }
 0x553   :  { %2377 = vrot.lane.b32.xlu1 %v15701_v47, %s12782_s29  ;;  %2597 = vrot.lane.b32.xlu0 %v15890_v25, %s12785_s26 }
 0x554   :  { %2595 = vrot.lane.b32.xlu2 %v15821_v29, %s12785_s26  ;;  %v2311_v29 = vsel %vm19746_vm5, %v15670_v24, %v15632_v21  ;;  %vm19771_vm5 = vmmov %vm19750_vm12 }
 0x555   :  { %v15994_v40 = vpop.permute.xlu1 %2061  ;;  %v15996_v13 = vpop.permute.xlu0 %2573 }
 0x556   :  { %19727 = vst [vmem:[#allocation102_spill] sm:$0xff] %v15994_v40  ;;  %v15998_v54 = vpop.permute.xlu2 %2075 }
 0x557   :  { %19728 = vst [vmem:[#allocation103_spill] sm:$0xff] %v15996_v13  ;;  %v3008_v13 = vld [vmem:[%s19133_s7 + $0x8] sm:$0xff] }
 0x558   :  { %19729 = vst [vmem:[#allocation104_spill] sm:$0xff] %v15998_v54  ;;  %v16015_v54 = vpack.c.bf16 %v15755_v15, %v15770_v8  ;;  %v2171_v15 = vsel %vm19645_vm8, %v15753_v35, %v15622_v33  ;;  %vm19762_vm8 = vmmov %vm19748_vm0 }
 0x559   :  { %v2175_v35 = vmul.f32 %v15306_v58, %v2171_v15 }
 0x55a   :  { %19733 = vst [vmem:[#allocation108_spill] sm:$0xff] %v16015_v54  ;;  %v2819_v8 = vunpack.c.l.b16 %v16015_v54  ;;  %v16052_v54 = vpack.c.bf16 %v15606_v17, %v15598_v52 }
 0x55b   :  { %2591 = vrot.lane.b32.xlu1 %v15606_v17, %s12785_s26  ;;  %3013 = vperm.xlu0 %12767, %v3007_v16   ;;  %v3010_v16 = vld [vmem:[%s19133_s7 + $0x18] sm:$0xff]  ;;  %v2176_v17 = vmul.f32 %v15297_v30, %v2167_v19  ;;  %v2535_v19 = vsel %vm19748_vm0, %v15682_v2, %v15684_v27  ;;  %vm19777_vm0 = vmmov %vm19754_vm6 }
 0x55c   :  { %2593 = vrot.lane.b32.xlu2 %v15701_v47, %s12785_s26  ;;  %19739 = vst [vmem:[#allocation111_spill] sm:$0xff] %v16052_v54 }
 0x55d   :  { %v16007_v0 = vpop.permute.xlu1 %2213  ;;  %v16009_v42 = vpop.permute.xlu0 %2083 }
 0x55e   :  { %19730 = vst [vmem:[#allocation105_spill] sm:$0xff] %v16007_v0  ;;  %v16011_v40 = vpop.permute.xlu2 %2227  ;;  %v3009_v0 = vld [vmem:[%s19133_s7 + $0x10] sm:$0xff] }
 0x55f   :  { %19731 = vst [vmem:[#allocation106_spill] sm:$0xff] %v16009_v42  ;;  %v16028_v42 = vpack.c.bf16 %v15648_v3, %v15650_v60  ;;  %v2239_v3 = vsel %vm19737_vm9, %v15660_v23, %v15658_v57  ;;  %vm19768_vm9 = vmmov %vm19754_vm6 }
 0x560   :  { %19732 = vst [vmem:[#allocation107_spill] sm:$0xff] %v16011_v40  ;;  %v2095_v40 = vsel %vm19735_vm11, %v15641_v62, %v15614_v7  ;;  %v16074_v15 = vmul.f32 %v15474_v9, %v2239_v3  ;;  %v2392_v3 = vsel %vm19756_vm1, %v15751_v61, %v15748_v50  ;;  %vm19763_vm11 = vmmov %vm19751_vm4  ;;  %v19769_v61 = vld [vmem:[#allocation54_spill] sm:$0xff] }
 0x561   :  { %19734 = vst [vmem:[#allocation109_spill] sm:$0xff] %v16028_v42  ;;  %v2104_v52 = vmul.f32 %v15406_v36, %v2095_v40  ;;  %v2531_v40 = vsel %vm19749_vm15, %v15684_v27, %v15782_v32  ;;  %v2168_v27 = vsel %vm19753_vm2, %v15726_v6, %v15724_v1  ;;  %vm19778_vm15 = vmmov %vm19777_vm0 }
 0x562   :  { %vm19788_vm4 = vmmov %vm19753_vm2 }
 0x563   :  { %3018 = vperm.xlu1 %12768, %v3008_v13   ;;  %3028 = vperm.xlu0 %12767, %v3010_v16   ;;  %v2815_v13 = vunpack.c.l.b16 %v16028_v42  ;;  %v16069_v16 = vpack.c.bf16 %v15701_v47, %v15716_v38  ;;  %v2391_v47 = vsel %vm19747_vm7, %v15646_v56, %v15672_v44  ;;  %v2463_v38 = vsel %vm19750_vm12, %v15694_v46, %v15697_v39  ;;  %vm19773_vm7 = vmmov %vm19760_vm3 }
 0x564   :  { %3023 = vperm.xlu2 %12769, %v3009_v0   ;;  %v16065_v0 = vpack.c.bf16 %v15890_v25, %v15875_v11  ;;  %v2096_v11 = vsel %vm19752_vm10, %v15674_v55, %v15712_v45  ;;  %v2240_v25 = vsel %vm19754_vm6, %v15736_v41, %v15686_v10  ;;  %v16128_v5 = vmul.f32 %v15267_v43, %v2391_v47  ;;  %vm19782_vm12 = vmmov %vm19771_vm5 }
 0x565   :  { %v16047_v60 = vpop.permute.xlu1 %2277  ;;  %v16055_v7 = vpop.permute.xlu0 %2147  ;;  %19744 = vst [vmem:[#allocation116_spill] sm:$0xff] %v16069_v16  ;;  %v16076_v54 = vpack.c.b16 %v2819_v8, %v2815_v13  ;;  %v2312_v8 = vsel %vm19755_vm13, %v15699_v59, %v15738_v34  ;;  %v16122_v13 = vpack.c.bf16 %v2176_v17, %v2175_v35  ;;  %v16125_v16 = vmul.f32 %v15137_v26, %v2311_v29  ;;  %vm19792_vm10 = vmmov %vm19753_vm2 }
 0x566   :  { %19738 = vst [vmem:[#allocation110_spill] sm:$0xff] %v16047_v60  ;;  %v16057_v33 = vpop.permute.xlu2 %2291  ;;  %v2543_v42 = vmul.f32 %v15316_v20, %v2535_v19  ;;  %v2471_v49 = vmul.f32 %v15336_v63, %v2463_v38  ;;  %v16134_v56 = vmul.f32 %v15426_v22, %v2607_v51  ;;  %v16137_v46 = vmul.f32 %v15406_v36, %v2096_v11  ;;  %v19775_v60 = vld [vmem:[#allocation12_spill] sm:$0xff]  ;;  %vm19795_vm2 = vmmov %vm19755_vm13 }
 0x567   :  { %19740 = vst [vmem:[#allocation112_spill] sm:$0xff] %v16055_v7  ;;  %v16140_v35 = vmul.f32 %v15297_v30, %v2168_v27  ;;  %v16143_v17 = vmul.f32 %v15474_v9, %v2240_v25  ;;  %v16146_v29 = vmul.f32 %v15137_v26, %v2312_v8  ;;  %v16149_v47 = vmul.f32 %v15267_v43, %v2392_v3  ;;  %v19767_v8 = vld [vmem:[#allocation53_spill] sm:$0xff]  ;;  %v19772_v7 = vld [vmem:[#allocation7_spill] sm:$0xff]  ;;  %vm19799_vm6 = vmmov %vm19795_vm2 }
 0x568   :  { %19741 = vst [vmem:[#allocation113_spill] sm:$0xff] %v16057_v33  ;;  %v2099_v19 = vsel %vm19760_vm3, %v15790_v18, %v15641_v62  ;;  %v2536_v38 = vsel %vm19762_vm8, %v15714_v4, %v15763_v28  ;;  %v2608_v51 = vsel %vm19763_vm11, %v15766_v37, %v15740_v31  ;;  %v2087_v11 = vsel %vm19764_vm14, %v15780_v12, %v15790_v18  ;;  %v19776_v25 = vld [vmem:[#allocation55_spill] sm:$0xff]  ;;  %vm19801_vm13 = vmmov %vm19756_vm1 }
 0x569   :  { %19743 = vst [vmem:[#allocation115_spill] sm:$0xff] %v16065_v0  ;;  %v2544_v0 = vmul.f32 %v15328_v14, %v2531_v40  ;;  %v2235_v3 = vsel %vm19768_vm9, %v15658_v57, %v19767_v8  ;;  %v2091_v18 = vsel %vm19773_vm7, %v19772_v7, %v15780_v12  ;;  %v2243_v57 = vsel %vm19778_vm15, %v19776_v25, %v15660_v23  ;;  %v19780_v7 = vld [vmem:[#allocation29_spill] sm:$0xff]  ;;  %v19785_v23 = vld [vmem:[#allocation31_spill] sm:$0xff]  ;;  %vm19805_vm1 = vmmov %vm19762_vm8 }
 0x56a   :  { %19745 = vst [vmem:[#allocation117_spill] sm:$0xff] %v16076_v54  ;;  %v19770_v54 = vld [vmem:[#allocation46_spill] sm:$0xff]  ;;  %v16202_v12 = vmul.f32 %v15426_v22, %v2608_v51  ;;  %vm19806_vm3 = vmmov %vm19805_vm1  ;;  %vm19817_vm14 = vcmp.lt.s32.totalorder %v14646_v53, 111 }
 0x56b   :  { %19757 = vst [vmem:[#allocation118_spill] sm:$0xff] %v16122_v13  ;;  %v2464_v37 = vsel %vm19771_vm5, %v19770_v54, %v19769_v61  ;;  %v16186_v33 = vpack.c.bf16 %v2544_v0, %v2543_v42  ;;  %v2106_v42 = vmul.f32 %v19780_v7, %v2087_v11  ;;  %v19781_v0 = vld [vmem:[#allocation56_spill] sm:$0xff]  ;;  %v19786_v54 = vld [vmem:[#allocation57_spill] sm:$0xff]  ;;  %vm19808_vm8 = vmmov %vm19773_vm7 }
 0x56c   :  { %19758 = vst [vmem:[#allocation119_spill] sm:$0xff] %v16143_v17  ;;  %v16211_v50 = vmul.f32 %v15336_v63, %v2464_v37  ;;  %v19790_v11 = vld [vmem:[#allocation28_spill] sm:$0xff]  ;;  %v19791_v17 = vld [vmem:[#allocation51_spill] sm:$0xff]  ;;  %vm19811_vm11 = vmmov %vm19795_vm2 }
 0x56d   :  { %19759 = vst [vmem:[#allocation120_spill] sm:$0xff] %v16149_v47  ;;  %v16155_v40 = vpop.permute.xlu1 %2509  ;;  %v16169_v27 = vpop.permute.xlu0 %2299  ;;  %v2231_v47 = vsel %vm19777_vm0, %v19767_v8, %v19776_v25  ;;  %v19783_v8 = vld [vmem:[#allocation35_spill] sm:$0xff]  ;;  %v2105_v25 = vmul.f32 %v19785_v23, %v2091_v18  ;;  %v19816_v13 = vld [vmem:[#allocation64_spill] sm:$0xff]  ;;  %vm19821_vm9 = vmmov %vm19795_vm2 }
 0x56e   :  { %19761 = vst [vmem:[#allocation121_spill] sm:$0xff] %v16155_v40  ;;  %v16171_v62 = vpop.permute.xlu2 %2515  ;;  %v16199_v40 = vmul.f32 %v15316_v20, %v2536_v38  ;;  %v2249_v31 = vmul.f32 %v19783_v8, %v2235_v3  ;;  %v19787_v38 = vld [vmem:[#allocation9_spill] sm:$0xff]  ;;  %v19804_v3 = vld [vmem:[#allocation63_spill] sm:$0xff]  ;;  %vm19830_vm5 = vmmov %vm19788_vm4 }
 0x56f   :  { %19765 = vst [vmem:[#allocation122_spill] sm:$0xff] %v16169_v27  ;;  %v2103_v27 = vmul.f32 %v19775_v60, %v2099_v19  ;;  %v2459_v19 = vsel %vm19782_vm12, %v15697_v39, %v19781_v0  ;;  %v2163_v51 = vsel %vm19788_vm4, %v19787_v38, %v19786_v54  ;;  %v2159_v39 = vsel %vm19792_vm10, %v19786_v54, %v19791_v17  ;;  %v19793_v0 = vld [vmem:[#allocation41_spill] sm:$0xff]  ;;  %vm19835_vm0 = vmmov %vm19788_vm4 }
 0x570   :  { %19766 = vst [vmem:[#allocation123_spill] sm:$0xff] %v16171_v62  ;;  %v2250_v62 = vmul.f32 %v19790_v11, %v2231_v47  ;;  %v2472_v18 = vmul.f32 %v19793_v0, %v2459_v19  ;;  %v16233_v8 = vpack.c.bf16 %v2106_v42, %v2105_v25  ;;  %v19797_v47 = vld [vmem:[#allocation30_spill] sm:$0xff]  ;;  %v19803_v19 = vld [vmem:[#allocation27_spill] sm:$0xff]  ;;  %v2527_v42 = vsel %vm19805_vm1, %v15782_v32, %v19804_v3  ;;  %v19815_v0 = vld [vmem:[#allocation37_spill] sm:$0xff] }
 0x571   :  { %19774 = vst [vmem:[#allocation53_spill] sm:$0xff] %v16186_v33  ;;  %v16225_v37 = vpack.c.bf16 %v2104_v52, %v2103_v27  ;;  %v2177_v34 = vmul.f32 %v19797_v47, %v2163_v51  ;;  %v19798_v11 = vld [vmem:[#allocation58_spill] sm:$0xff]  ;;  %v19800_v52 = vld [vmem:[#allocation61_spill] sm:$0xff]  ;;  %v2539_v25 = vsel %vm19806_vm3, %v19804_v3, %v15682_v2  ;;  %vm19839_vm12 = vmmov %vm19835_vm0  ;;  %vm19861_vm3 = vcmp.lt.s32.totalorder %v14646_v53, 113 }
 0x572   :  { %19779 = vst [vmem:[#allocation7_spill] sm:$0xff] %v16202_v12  ;;  %v19789_v12 = vld [vmem:[#allocation13_spill] sm:$0xff]  ;;  %v2387_v17 = vsel %vm19801_vm13, %v15672_v44, %v19800_v52  ;;  %v16266_v52 = vpack.c.bf16 %v2250_v62, %v2249_v31  ;;  %v2307_v32 = vsel %vm19811_vm11, %v15632_v21, %v19798_v11  ;;  %v19818_v31 = vld [vmem:[#allocation23_spill] sm:$0xff]  ;;  %v19819_v62 = vld [vmem:[#allocation18_spill] sm:$0xff] }
 0x573   :  { %19784 = vst [vmem:[#allocation55_spill] sm:$0xff] %v16211_v50  ;;  %v2247_v22 = vmul.f32 %v19789_v12, %v2243_v57  ;;  %v19794_v50 = vld [vmem:[#allocation60_spill] sm:$0xff]  ;;  %v19812_v2 = vld [vmem:[#allocation33_spill] sm:$0xff]  ;;  %vm19842_vm4 = vmmov %vm19795_vm2 }
 0x574   :  { %v2315_v38 = vsel %vm19795_vm2, %v19794_v50, %v15670_v24  ;;  %19796 = vst [vmem:[#allocation57_spill] sm:$0xff] %v16233_v8  ;;  %v2303_v54 = vsel %vm19799_vm6, %v19798_v11, %v19794_v50  ;;  %v2178_v24 = vmul.f32 %v19803_v19, %v2159_v39  ;;  %v19807_v50 = vld [vmem:[#allocation71_spill] sm:$0xff]  ;;  %v19814_v33 = vld [vmem:[#allocation25_spill] sm:$0xff]  ;;  %vm19843_vm10 = vmmov %vm19835_vm0 }
 0x575   :  { %v16244_v27 = vpop.permute.xlu1 %2437  ;;  %v2100_v51 = vsel %vm19808_vm8, %v19807_v50, %v15674_v55  ;;  %v16259_v44 = vpop.permute.xlu0 %2587  ;;  %v16264_v39 = vpack.c.bf16 %v16074_v15, %v2247_v22  ;;  %v2319_v3 = vmul.f32 %v19812_v2, %v2315_v38  ;;  %v2322_v55 = vmul.f32 %v19814_v33, %v2303_v54  ;;  %v19820_v21 = vld [vmem:[#allocation77_spill] sm:$0xff]  ;;  %v19833_v8 = vld [vmem:[#allocation59_spill] sm:$0xff]  ;;  %vm19846_vm2 = vmmov %vm19801_vm13 }
 0x576   :  { %19802 = vst [vmem:[#allocation9_spill] sm:$0xff] %v16244_v27  ;;  %v16261_v57 = vpop.permute.xlu2 %2443  ;;  %v16273_v27 = vpack.c.bf16 %v2472_v18, %v2471_v49  ;;  %v2603_v22 = vsel %vm19817_vm14, %v15709_v48, %v19816_v13  ;;  %v2545_v15 = vmul.f32 %v19818_v31, %v2527_v42  ;;  %v2107_v61 = vmul.f32 %v19775_v60, %v2100_v51  ;;  %v19822_v18 = vld [vmem:[#allocation32_spill] sm:$0xff]  ;;  %v19823_v42 = vld [vmem:[#allocation14_spill] sm:$0xff]  ;;  %vm19853_vm6 = vmmov %vm19805_vm1 }
 0x577   :  { %19809 = vst [vmem:[#allocation51_spill] sm:$0xff] %v16259_v44  ;;  %v2400_v44 = vmul.f32 %v19815_v0, %v2387_v17  ;;  %v2316_v49 = vsel %vm19821_vm9, %v19820_v21, %v15699_v59  ;;  %v16288_v11 = vpack.c.bf16 %v2178_v24, %v2177_v34  ;;  %v2321_v38 = vmul.f32 %v19822_v18, %v2307_v32  ;;  %v19837_v24 = vld [vmem:[#allocation62_spill] sm:$0xff]  ;;  %vm19857_vm13 = vmmov %vm19805_vm1 }
 0x578   :  { %19810 = vst [vmem:[#allocation60_spill] sm:$0xff] %v16261_v57  ;;  %v2546_v57 = vmul.f32 %v19819_v62, %v2539_v25  ;;  %v2647_v54 = vunpack.c.l.b16 %v16225_v37  ;;  %v2648_v17 = vunpack.c.h.b16 %v16225_v37  ;;  %v16294_v48 = vpack.c.bf16 %v16125_v16, %v2319_v3  ;;  %v19838_v34 = vld [vmem:[#allocation74_spill] sm:$0xff]  ;;  %vm19865_vm8 = vmmov %vm19773_vm7 }
 0x579   :  { %19813 = vst [vmem:[#allocation58_spill] sm:$0xff] %v16273_v27  ;;  %v2616_v25 = vmul.f32 %v19823_v42, %v2603_v22  ;;  %v16299_v60 = vpack.c.bf16 %v2322_v55, %v2321_v38  ;;  %v2323_v59 = vmul.f32 %v19812_v2, %v2316_v49  ;;  %v16305_v32 = vpack.c.bf16 %v2400_v44, %v16128_v5  ;;  %v19832_v38 = vld [vmem:[#allocation67_spill] sm:$0xff]  ;;  %v19841_v2 = vld [vmem:[#allocation73_spill] sm:$0xff]  ;;  %vm19866_vm11 = vmmov %vm19773_vm7 }
 0x57a   :  { %v16307_v37 = vpack.c.bf16 %v2546_v57, %v2545_v15  ;;  %v2121_v16 = vpack.c.bf16 %v16137_v46, %v2107_v61  ;;  %v19829_v46 = vld [vmem:[#allocation82_spill] sm:$0xff]  ;;  %v2767_v44 = vunpack.c.l.b16 %v16294_v48  ;;  %v2768_v22 = vunpack.c.h.b16 %v16294_v48  ;;  %vm19867_vm14 = vmmov %vm19805_vm1 }
 0x57b   :  { %19824 = vst [vmem:[#allocation63_spill] sm:$0xff] %v16305_v32  ;;  %v16322_v57 = vpack.c.bf16 %v2616_v25, %v16134_v56  ;;  %v2172_v61 = vsel %vm19830_vm5, %v19829_v46, %v15726_v6  ;;  %v2337_v49 = vpack.c.bf16 %v16146_v29, %v2323_v59  ;;  %v19831_v6 = vld [vmem:[#allocation66_spill] sm:$0xff]  ;;  %v19834_v29 = vld [vmem:[#allocation69_spill] sm:$0xff]  ;;  %v2160_v51 = vsel %vm19839_vm12, %v19838_v34, %v19829_v46  ;;  %vm19869_vm9 = vmmov %vm19778_vm15 }
 0x57c   :  { %19825 = vst [vmem:[#allocation71_spill] sm:$0xff] %v16307_v37  ;;  %v2651_v25 = vunpack.c.l.b16 %v2121_v16  ;;  %v2097_v15 = vsel %vm19773_vm7, %v19832_v38, %v19831_v6  ;;  %v2169_v48 = vsel %vm19835_vm0, %v19834_v29, %v19833_v8  ;;  %v19836_v59 = vld [vmem:[#allocation70_spill] sm:$0xff]  ;;  %v2179_v56 = vmul.f32 %v15306_v58, %v2172_v61  ;;  %v19840_v38 = vld [vmem:[#allocation72_spill] sm:$0xff]  ;;  %v19845_v58 = vld [vmem:[#allocation75_spill] sm:$0xff] }
 0x57d   :  { %v16310_v3 = vpop.permute.xlu1 %2155  ;;  %v16313_v13 = vpop.permute.xlu0 %2077  ;;  %v2241_v5 = vsel %vm19778_vm15, %v19837_v24, %v19836_v59  ;;  %v2313_v8 = vsel %vm19842_vm4, %v19841_v2, %v19840_v38  ;;  %v2164_v61 = vsel %vm19843_vm10, %v15724_v1, %v19838_v34  ;;  %v19844_v59 = vld [vmem:[#allocation65_spill] sm:$0xff]  ;;  %v2771_v29 = vunpack.c.l.b16 %v2337_v49  ;;  %v19852_v24 = vld [vmem:[#allocation88_spill] sm:$0xff]  ;;  %vm19872_vm5 = vmmov %vm19869_vm9 }
 0x57e   :  { %19826 = vst [vmem:[#allocation77_spill] sm:$0xff] %v16310_v3  ;;  %v16315_v55 = vpop.permute.xlu2 %2523  ;;  %v2652_v3 = vunpack.c.h.b16 %v2121_v16  ;;  %v2393_v46 = vsel %vm19846_vm2, %v19845_v58, %v19844_v59  ;;  %v16372_v16 = vmul.f32 %v15297_v30, %v2169_v48  ;;  %v16379_v6 = vpack.c.b16 %v2651_v25, %v2647_v54  ;;  %vm19873_vm7 = vmmov %vm19872_vm5 }
 0x57f   :  { %19827 = vst [vmem:[#allocation124_spill] sm:$0xff] %v16313_v13  ;;  %v16375_v13 = vmul.f32 %v15474_v9, %v2241_v5  ;;  %v2182_v1 = vmul.f32 %v19803_v19, %v2160_v51  ;;  %v2193_v34 = vpack.c.bf16 %v16140_v35, %v2179_v56  ;;  %v2772_v48 = vunpack.c.h.b16 %v2337_v49  ;;  %v19855_v51 = vld [vmem:[#allocation76_spill] sm:$0xff]  ;;  %v19856_v35 = vld [vmem:[#allocation78_spill] sm:$0xff]  ;;  %vm19876_vm0 = vmmov %vm19861_vm3 }
 0x580   :  { %19828 = vst [vmem:[#allocation125_spill] sm:$0xff] %v16315_v55  ;;  %v16369_v55 = vmul.f32 %v15406_v36, %v2097_v15  ;;  %v2532_v15 = vsel %vm19853_vm6, %v15763_v28, %v19852_v24  ;;  %v2181_v5 = vmul.f32 %v19797_v47, %v2164_v61  ;;  %v16394_v54 = vmul.f32 %v15267_v43, %v2393_v46  ;;  %v19858_v28 = vld [vmem:[#allocation80_spill] sm:$0xff]  ;;  %vm19887_vm12 = vmmov %vm19842_vm4 }
 0x581   :  { %19848 = vst [vmem:[#allocation74_spill] sm:$0xff] %v16372_v16  ;;  %v16390_v16 = vmul.f32 %v15137_v26, %v2313_v8  ;;  %v16396_v25 = vpack.c.b16 %v2652_v3, %v2648_v17  ;;  %v2537_v56 = vsel %vm19857_vm13, %v19856_v35, %v19855_v51  ;;  %v2540_v49 = vsel %vm19805_vm1, %v19858_v28, %v15714_v4  ;;  %v19860_v8 = vld [vmem:[#allocation81_spill] sm:$0xff]  ;;  %v19864_v17 = vld [vmem:[#allocation87_spill] sm:$0xff]  ;;  %vm19897_vm10 = vmmov %vm19805_vm1 }
 0x582   :  { %19847 = vst [vmem:[#allocation82_spill] sm:$0xff] %v16369_v55  ;;  %v16412_v46 = vpack.c.b16 %v2771_v29, %v2767_v44  ;;  %v2088_v3 = vsel %vm19865_vm8, %v19864_v17, %v19807_v50  ;;  %v2528_v4 = vsel %vm19867_vm14, %v19852_v24, %v19858_v28  ;;  %v2194_v35 = vpack.c.bf16 %v2182_v1, %v2181_v5  ;;  %v19868_v44 = vld [vmem:[#allocation90_spill] sm:$0xff]  ;;  %v19871_v5 = vld [vmem:[#allocation85_spill] sm:$0xff]  ;;  %vm19912_vm13 = vmmov %vm19805_vm1 }
 0x583   :  { %19849 = vst [vmem:[#allocation73_spill] sm:$0xff] %v16375_v13  ;;  %v2244_v29 = vsel %vm19869_vm9, %v19868_v44, %v15736_v41  ;;  %v2691_v50 = vunpack.c.l.b16 %v2193_v34  ;;  %v2692_v47 = vunpack.c.h.b16 %v2193_v34  ;;  %v2110_v1 = vmul.f32 %v19780_v7, %v2088_v3  ;;  %v19879_v3 = vld [vmem:[#allocation68_spill] sm:$0xff]  ;;  %vm19942_vm14 = vmmov %vm19846_vm2 }
 0x584   :  { %19851 = vst [vmem:[#allocation126_spill] sm:$0xff] %v16379_v6  ;;  %v19859_v6 = vld [vmem:[#allocation79_spill] sm:$0xff]  ;;  %v2232_v41 = vsel %vm19872_vm5, %v19871_v5, %v19868_v44  ;;  %v2251_v34 = vmul.f32 %v19789_v12, %v2244_v29  ;;  %vm19880_vm15 = vcmp.lt.s32.totalorder %v14646_v53, 111  ;;  %v19885_v29 = vld [vmem:[#allocation28_spill] sm:$0xff]  ;;  %vm19927_vm8 = vcmp.lt.s32.totalorder %v14646_v53, 16  ;;  %vm19948_vm5 = vmmov %vm19846_vm2 }
 0x585   :  { %v16377_v38 = vpop.permute.xlu1 %2219  ;;  %v16387_v58 = vpop.permute.xlu0 %2229  ;;  %19854 = vst [vmem:[#allocation88_spill] sm:$0xff] %v16396_v25  ;;  %v2465_v61 = vsel %vm19861_vm3, %v19860_v8, %v19859_v6  ;;  %v2092_v25 = vsel %vm19866_vm11, %v15712_v45, %v19864_v17  ;;  %v2548_v8 = vmul.f32 %v15328_v14, %v2532_v15  ;;  %v2550_v45 = vmul.f32 %v19819_v62, %v2540_v49  ;;  %v19882_v62 = vld [vmem:[#allocation118_spill] sm:$0xff]  ;;  %vm19902_vm6 = vmmov %vm19880_vm15 }
 0x586   :  { %19850 = vst [vmem:[#allocation65_spill] sm:$0xff] %v16377_v38  ;;  %v16410_v19 = vpop.permute.xlu2 %2157  ;;  %v16431_v38 = vpack.c.b16 %v2772_v48, %v2768_v22  ;;  %v16436_v17 = vmul.f32 %v15336_v63, %v2465_v61  ;;  %v2109_v24 = vmul.f32 %v19785_v23, %v2092_v25  ;;  %v2549_v15 = vmul.f32 %v19818_v31, %v2528_v4  ;;  %v19875_v25 = vld [vmem:[#allocation54_spill] sm:$0xff]  ;;  %v19878_v61 = vld [vmem:[#allocation84_spill] sm:$0xff]  ;;  %vm19922_vm3 = vmmov %vm19876_vm0 }
 0x587   :  { %19862 = vst [vmem:[#allocation76_spill] sm:$0xff] %v16410_v19  ;;  %v2236_v22 = vsel %vm19873_vm7, %v15686_v10, %v19871_v5  ;;  %v2561_v48 = vpack.c.bf16 %v2548_v8, %v16199_v40  ;;  %v2609_v4 = vsel %vm19880_vm15, %v19879_v3, %v19878_v61  ;;  %v19883_v10 = vunpack.c.l.b16 %v19882_v62  ;;  %v19895_v19 = vld [vmem:[#allocation119_spill] sm:$0xff]  ;;  %vm19939_vm11 = vmmov %vm19876_vm0 }
 0x588   :  { %19863 = vst [vmem:[#allocation80_spill] sm:$0xff] %v16412_v46  ;;  %v2551_v46 = vmul.f32 %v15316_v20, %v2537_v56  ;;  %v19874_v56 = vld [vmem:[#allocation91_spill] sm:$0xff]  ;;  %v2693_v40 = vunpack.c.l.b16 %v2194_v35  ;;  %v2694_v8 = vunpack.c.h.b16 %v2194_v35  ;;  %v2254_v31 = vmul.f32 %v19885_v29, %v2232_v41  ;;  %v19894_v41 = vld [vmem:[#allocation41_spill] sm:$0xff]  ;;  %vm19949_vm7 = vmmov %vm19876_vm0 }
 0x589   :  { %19870 = vst [vmem:[#allocation79_spill] sm:$0xff] %v16431_v38  ;;  %v2460_v28 = vsel %vm19876_vm0, %v19875_v25, %v19874_v56  ;;  %v16465_v5 = vpack.c.b16 %v2691_v50, %v19883_v10  ;;  %v19886_v38 = vld [vmem:[#allocation93_spill] sm:$0xff]  ;;  %v19888_v56 = vld [vmem:[#allocation47_spill] sm:$0xff]  ;;  %v19889_v55 = vunpack.c.h.b16 %v19882_v62  ;;  %v16483_v35 = vpack.c.bf16 %v2550_v45, %v2549_v15  ;;  %v19901_v15 = vld [vmem:[#allocation48_spill] sm:$0xff] }
 0x58a   :  { %v2304_v25 = vsel %vm19887_vm12, %v19886_v38, %v19820_v21  ;;  %v2308_v3 = vsel %vm19842_vm4, %v19888_v56, %v19886_v38  ;;  %v19891_v50 = vld [vmem:[#allocation35_spill] sm:$0xff]  ;;  %v2476_v29 = vmul.f32 %v19894_v41, %v2460_v28  ;;  %v2931_v38 = vunpack.c.l.b16 %v2561_v48  ;;  %vm19951_vm0 = vmmov %vm19842_vm4 }
 0x58b   :  { %19884 = vst [vmem:[#allocation85_spill] sm:$0xff] %v16465_v5  ;;  %v16478_v7 = vpack.c.b16 %v2692_v47, %v19889_v55  ;;  %v2253_v10 = vmul.f32 %v19891_v50, %v2236_v22  ;;  %v16481_v5 = vpack.c.bf16 %v2110_v1, %v2109_v24  ;;  %v19896_v21 = vld [vmem:[#allocation123_spill] sm:$0xff]  ;;  %v2932_v56 = vunpack.c.h.b16 %v2561_v48  ;;  %v19898_v55 = vld [vmem:[#allocation96_spill] sm:$0xff]  ;;  %v19899_v24 = vld [vmem:[#allocation49_spill] sm:$0xff] }
 0x58c   :  { %19893 = vst [vmem:[#allocation118_spill] sm:$0xff] %v16483_v35  ;;  %v2533_v13 = vsel %vm19897_vm10, %v19855_v51, %v19896_v21  ;;  %v2325_v47 = vmul.f32 %v19822_v18, %v2308_v3  ;;  %v2326_v62 = vmul.f32 %v19814_v33, %v2304_v25  ;;  %v2388_v45 = vsel %vm19846_vm2, %v19899_v24, %v19898_v55  ;;  %v19900_v1 = vld [vmem:[#allocation99_spill] sm:$0xff]  ;;  %vm19953_vm15 = vmmov %vm19846_vm2 }
 0x58d   :  { %v16455_v49 = vpop.permute.xlu1 %2371  ;;  %v16461_v44 = vpop.permute.xlu0 %2293  ;;  %19890 = vst [vmem:[#allocation54_spill] sm:$0xff] %v16478_v7  ;;  %v2266_v48 = vpack.c.bf16 %v2254_v31, %v2253_v10  ;;  %v19904_v28 = vunpack.c.l.b16 %v16288_v11  ;;  %v19906_v25 = vunpack.c.h.b16 %v16288_v11  ;;  %v19908_v24 = vld [vmem:[#allocation55_spill] sm:$0xff]  ;;  %v2552_v21 = vmul.f32 %v15328_v14, %v2533_v13  ;;  %v19910_v10 = vld [vmem:[#allocation121_spill] sm:$0xff]  ;;  %vm19958_vm12 = vmmov %vm19902_vm6 }
 0x58e   :  { %19877 = vst [vmem:[#allocation87_spill] sm:$0xff] %v16455_v49  ;;  %v16501_v22 = vpop.permute.xlu2 %2221  ;;  %v16515_v55 = vpack.c.bf16 %v2476_v29, %v19908_v24  ;;  %v2933_v29 = vunpack.c.l.b16 %v16483_v35  ;;  %vm19947_vm9 = vcmp.lt.s32.totalorder %v14646_v53, 17  ;;  %vm19961_vm4 = vcmp.lt.s32.totalorder %v14646_v53, 15  ;;  %vm19970_vm2 = vmmov %vm19951_vm0 }
 0x58f   :  { %19881 = vst [vmem:[#allocation90_spill] sm:$0xff] %v16461_v44  ;;  %v2265_v44 = vpack.c.bf16 %v19895_v19, %v2251_v34  ;;  %v2604_v19 = vsel %vm19902_vm6, %v19901_v15, %v19900_v1  ;;  %v19903_v34 = vld [vmem:[#allocation21_spill] sm:$0xff]  ;;  %v16508_v3 = vpack.c.b16 %v2693_v40, %v19904_v28  ;;  %v16512_v7 = vpack.c.b16 %v2694_v8, %v19906_v25  ;;  %v19911_v40 = vld [vmem:[#allocation95_spill] sm:$0xff]  ;;  %vm19965_vm10 = vmmov %vm19947_vm9 }
 0x590   :  { %19892 = vst [vmem:[#allocation84_spill] sm:$0xff] %v16481_v5  ;;  %v16504_v51 = vmul.f32 %v19903_v34, %v2609_v4  ;;  %v2404_v4 = vmul.f32 %v19815_v0, %v2388_v45  ;;  %v2620_v31 = vmul.f32 %v19823_v42, %v2604_v19  ;;  %v2538_v11 = vsel %vm19912_vm13, %v19911_v40, %v19910_v10  ;;  %v19913_v25 = vld [vmem:[#allocation53_spill] sm:$0xff]  ;;  %vm19973_vm6 = vmmov %vm19961_vm4 }
 0x591   :  { %19905 = vst [vmem:[#allocation93_spill] sm:$0xff] %v16508_v3  ;;  %v16529_v28 = vpack.c.bf16 %v2326_v62, %v2325_v47  ;;  %v19914_v24 = vunpack.c.l.b16 %v19913_v25  ;;  %v2731_v15 = vunpack.c.l.b16 %v2265_v44  ;;  %v19915_v45 = vunpack.c.h.b16 %v19913_v25  ;;  %vm19975_vm13 = vmmov %vm19958_vm12 }
 0x592   :  { %19907 = vst [vmem:[#allocation47_spill] sm:$0xff] %v16512_v7  ;;  %v2732_v5 = vunpack.c.h.b16 %v2265_v44  ;;  %v2733_v3 = vunpack.c.l.b16 %v2266_v48  ;;  %v2734_v35 = vunpack.c.h.b16 %v2266_v48  ;;  %v2555_v47 = vmul.f32 %v15316_v20, %v2538_v11 }
 0x593   :  { %19909 = vst [vmem:[#allocation119_spill] sm:$0xff] %v16515_v55  ;;  %v2943_v1 = vpack.c.b16 %v2931_v38, %v19914_v24  ;;  %v16537_v19 = vpack.c.b16 %v2932_v56, %v19915_v45  ;;  %v16544_v62 = vpack.c.bf16 %v2552_v21, %v2551_v46  ;;  %v2891_v38 = vunpack.c.l.b16 %v16515_v55  ;;  %v19918_v24 = vld [vmem:[#allocation120_spill] sm:$0xff]  ;;  %v19920_v56 = vld [vmem:[#allocation7_spill] sm:$0xff]  ;;  %v19925_v46 = vld [vmem:[#allocation94_spill] sm:$0xff] }
 0x594   :  { %v16549_v25 = vpack.c.bf16 %v2404_v4, %v19918_v24  ;;  %v2633_v45 = vpack.c.bf16 %v2620_v31, %v19920_v56  ;;  %v19923_v48 = vunpack.c.l.b16 %v16307_v37  ;;  %v19926_v21 = vld [vmem:[#allocation86_spill] sm:$0xff]  ;;  %v2773_v4 = vunpack.c.l.b16 %v16529_v28  ;;  %v19941_v55 = vld [vmem:[#allocation92_spill] sm:$0xff] }
 0x595   :  { %v16526_v8 = vpop.permute.xlu1 %2085  ;;  %v16531_v13 = vpop.permute.xlu0 %2517  ;;  %19916 = vst [vmem:[#allocation49_spill] sm:$0xff] %v16537_v19  ;;  %v19921_v19 = vld [vmem:[#allocation60_spill] sm:$0xff]  ;;  %v19929_v24 = vunpack.c.l.b16 %v16264_v39  ;;  %v19933_v20 = vunpack.c.h.b16 %v16266_v52 }
 0x596   :  { %v2534_v7 = vsel %vm19805_vm1, %v19910_v10, %v16531_v13  ;;  %19917 = vst [vmem:[#allocation48_spill] sm:$0xff] %v16544_v62  ;;  %v2461_v44 = vsel %vm19922_vm3, %v19859_v6, %v19921_v19  ;;  %v16558_v10 = vpack.c.b16 %v2933_v29, %v19923_v48  ;;  %v19930_v6 = vunpack.c.h.b16 %v16264_v39  ;;  %vm19976_vm1 = vmmov %vm19961_vm4 }
 0x597   :  { %v2556_v40 = vmul.f32 %v15328_v14, %v2534_v7  ;;  %19919 = vst [vmem:[#allocation55_spill] sm:$0xff] %v16549_v25  ;;  %v2170_v7 = vsel %vm19927_vm8, %v19926_v21, %v19925_v46  ;;  %v16570_v56 = vpack.c.b16 %v2731_v15, %v19929_v24  ;;  %v19931_v29 = vunpack.c.l.b16 %v16266_v52  ;;  %v16587_v15 = vpop.permute.xlu2 %2373  ;;  %vm19977_vm3 = vmmov %vm19951_vm0 }
 0x598   :  { %19924 = vst [vmem:[#allocation121_spill] sm:$0xff] %v16558_v10  ;;  %v16574_v14 = vpack.c.b16 %v2732_v5, %v19930_v6  ;;  %v2480_v31 = vmul.f32 %v19894_v41, %v2461_v44  ;;  %v19936_v39 = vunpack.c.l.b16 %v16273_v27  ;;  %v16594_v24 = vmul.f32 %v15297_v30, %v2170_v7  ;;  %v19938_v6 = vld [vmem:[#allocation98_spill] sm:$0xff]  ;;  %vm19980_vm8 = vmmov %vm19947_vm9 }
 0x599   :  { %v16564_v11 = vpack.c.bf16 %v2556_v40, %v2555_v47  ;;  %v16578_v48 = vpack.c.b16 %v2733_v3, %v19931_v29  ;;  %v16582_v40 = vpack.c.b16 %v2734_v35, %v19933_v20  ;;  %v2935_v47 = vunpack.c.l.b16 %v16544_v62  ;;  %19935 = vst [vmem:[#allocation94_spill] sm:$0xff] %v16587_v15  ;;  %v19937_v3 = vld [vmem:[#allocation9_spill] sm:$0xff]  ;;  %v19940_v29 = vld [vmem:[#allocation100_spill] sm:$0xff] }
 0x59a   :  { %v16591_v5 = vpack.c.b16 %v2891_v38, %v19936_v39  ;;  %v2466_v20 = vsel %vm19939_vm11, %v19938_v6, %v19937_v3  ;;  %v2851_v35 = vunpack.c.l.b16 %v16549_v25  ;;  %v2971_v44 = vunpack.c.l.b16 %v2633_v45  ;;  %v19968_v6 = vld [vmem:[#allocation89_spill] sm:$0xff]  ;;  %vm19983_vm11 = vmmov %vm19951_vm0 }
 0x59b   :  { %19928 = vst [vmem:[#allocation53_spill] sm:$0xff] %v16564_v11  ;;  %v2939_v37 = vunpack.c.l.b16 %v16564_v11  ;;  %v2394_v27 = vsel %vm19942_vm14, %v19941_v55, %v19940_v29  ;;  %v19944_v7 = vunpack.c.l.b16 %v16299_v60  ;;  %v2390_v19 = vsel %vm19948_vm5, %v19940_v29, %v16587_v15  ;;  %vm19984_vm14 = vmmov %vm19951_vm0 }
 0x59c   :  { %19932 = vst [vmem:[#allocation120_spill] sm:$0xff] %v16578_v48  ;;  %v19946_v48 = vld [vmem:[#allocation102_spill] sm:$0xff]  ;;  %v2483_v10 = vmul.f32 %v15336_v63, %v2466_v20  ;;  %v16632_v55 = vpack.c.bf16 %v2480_v31, %v16436_v17  ;;  %v2411_v29 = vmul.f32 %v15267_v43, %v2394_v27  ;;  %v19956_v17 = vld [vmem:[#allocation101_spill] sm:$0xff]  ;;  %v19957_v31 = vld [vmem:[#allocation103_spill] sm:$0xff] }
 0x59d   :  { %19934 = vst [vmem:[#allocation7_spill] sm:$0xff] %v16582_v40  ;;  %v16600_v52 = vpop.permute.xlu1 %2149  ;;  %v16607_v38 = vpop.permute.xlu0 %2445  ;;  %v2947_v39 = vpack.c.b16 %v2939_v37, %v2935_v47  ;;  %v16611_v30 = vpack.c.b16 %v2773_v4, %v19944_v7  ;;  %v19945_v40 = vld [vmem:[#allocation83_spill] sm:$0xff]  ;;  %v2972_v47 = vunpack.c.h.b16 %v2633_v45  ;;  %v19950_v4 = vld [vmem:[#allocation122_spill] sm:$0xff]  ;;  %v2389_v45 = vsel %vm19953_vm15, %v19844_v59, %v16455_v49  ;;  %v19966_v63 = vld [vmem:[#allocation33_spill] sm:$0xff] }
 0x59e   :  { %19943 = vst [vmem:[#allocation86_spill] sm:$0xff] %v16607_v38  ;;  %v2098_v25 = vsel %vm19947_vm9, %v19946_v48, %v19945_v40  ;;  %v2462_v37 = vsel %vm19949_vm7, %v19937_v3, %v16607_v38  ;;  %v2317_v7 = vsel %vm19951_vm0, %v19950_v4, %v19841_v2  ;;  %v19954_v3 = vunpack.c.l.b16 %v16305_v32  ;;  %v19960_v27 = vld [vmem:[#allocation107_spill] sm:$0xff]  ;;  %vm19985_vm9 = vmmov %vm19980_vm8 }
 0x59f   :  { %19952 = vst [vmem:[#allocation9_spill] sm:$0xff] %v16632_v55  ;;  %v2484_v11 = vmul.f32 %v19894_v41, %v2462_v37  ;;  %3087 = vmatpush.bf16.msra.mxu1 %v2947_v39  ;;  %v19955_v2 = vunpack.c.l.b16 %v16322_v57  ;;  %v2610_v39 = vsel %vm19958_vm12, %v19957_v31, %v19956_v17  ;;  %v19959_v37 = vld [vmem:[#allocation62_spill] sm:$0xff]  ;;  %v2412_v59 = vmul.f32 %v19815_v0, %v2390_v19  ;;  %vm19989_vm5 = vmmov %vm19951_vm0 }
 0x5a0   :  { %v16642_v15 = vpack.c.b16 %v2851_v35, %v19954_v3  ;;  %v2245_v41 = vsel %vm19961_vm4, %v19960_v27, %v19959_v37  ;;  %v16660_v35 = vmul.f32 %v15406_v36, %v2098_v25  ;;  %v19963_v3 = vld [vmem:[#allocation104_spill] sm:$0xff]  ;;  %v2327_v32 = vmul.f32 %v19966_v63, %v2317_v7  ;;  %v19969_v37 = vld [vmem:[#allocation110_spill] sm:$0xff]  ;;  %v19971_v36 = vld [vmem:[#allocation105_spill] sm:$0xff] }
 0x5a1   :  { %v16646_v20 = vpack.c.b16 %v2971_v44, %v19955_v2  ;;  %v16657_v43 = vpack.c.bf16 %v2484_v11, %v2483_v10  ;;  %v19964_v44 = vld [vmem:[#allocation66_spill] sm:$0xff]  ;;  %v19967_v31 = vunpack.c.h.b16 %v16322_v57  ;;  %v2314_v19 = vsel %vm19970_vm2, %v19969_v37, %v19968_v6  ;;  %v19972_v7 = vld [vmem:[#allocation97_spill] sm:$0xff]  ;;  %vm19996_vm15 = vmmov %vm19958_vm12 }
 0x5a2   :  { %v2093_v2 = vsel %vm19965_vm10, %v19964_v44, %v19963_v3  ;;  %v2408_v10 = vmul.f32 %v19815_v0, %v2389_v45  ;;  %v2895_v25 = vunpack.c.l.b16 %v16632_v55  ;;  %v2627_v44 = vmul.f32 %v19903_v34, %v2610_v39  ;;  %v19978_v55 = vld [vmem:[#allocation67_spill] sm:$0xff]  ;;  %vm20001_vm4 = vmmov %vm19970_vm2 }
 0x5a3   :  { %19962 = vst [vmem:[#allocation100_spill] sm:$0xff] %v16657_v43  ;;  %v16669_v49 = vpack.c.b16 %v2972_v47, %v19967_v31  ;;  %3088 = vmatpush.bf16.msra.mxu1 %v2943_v1  ;;  %v2899_v11 = vunpack.c.l.b16 %v16657_v43  ;;  %v2242_v57 = vsel %vm19973_vm6, %v19972_v7, %v19971_v36  ;;  %v2255_v47 = vmul.f32 %v19789_v12, %v2245_v41  ;;  %v19974_v31 = vld [vmem:[#allocation51_spill] sm:$0xff]  ;;  %v19979_v41 = vld [vmem:[#allocation106_spill] sm:$0xff]  ;;  %vm20005_vm10 = vmmov %vm19976_vm1 }
 0x5a4   :  { %v2605_v38 = vsel %vm19975_vm13, %v19878_v61, %v19974_v31  ;;  %v2246_v1 = vsel %vm19976_vm1, %v16387_v58, %v19972_v7  ;;  %v16692_v0 = vpack.c.bf16 %v2412_v59, %v2411_v29  ;;  %v2101_v43 = vsel %vm19980_vm8, %v19979_v41, %v19978_v55  ;;  %vm20006_vm2 = vmmov %vm19976_vm1 }
 0x5a5   :  { %v2302_v45 = vpop.permute.xlu1 %2301  ;;  %v2907_v34 = vpack.c.b16 %v2899_v11, %v2895_v25  ;;  %v2332_v61 = vmul.f32 %v15137_v26, %v2314_v19  ;;  %v2339_v31 = vpack.c.bf16 %v16390_v16, %v2327_v32  ;;  %v16705_v7 = vmul.f32 %v19785_v23, %v2093_v2  ;;  %v19981_v25 = vld [vmem:[#allocation113_spill] sm:$0xff]  ;;  %v19982_v11 = vld [vmem:[#allocation72_spill] sm:$0xff]  ;;  %vm20012_vm13 = vmmov %vm19976_vm1 }
 0x5a6   :  { %v2318_v39 = vsel %vm19977_vm3, %v2302_v45, %v19969_v37  ;;  %v2260_v29 = vmul.f32 %v15474_v9, %v2242_v57  ;;  %v2624_v59 = vmul.f32 %v19823_v42, %v2605_v38  ;;  %v16710_v37 = vpack.c.bf16 %v2408_v10, %v16394_v54  ;;  %v19986_v38 = vld [vmem:[#allocation12_spill] sm:$0xff]  ;;  %v19987_v19 = vld [vmem:[#allocation73_spill] sm:$0xff]  ;;  %vm20017_vm3 = vmmov %vm19980_vm8 }
 0x5a7   :  { %v2331_v62 = vmul.f32 %v19966_v63, %v2318_v39  ;;  %3089 = vmatpush.bf16.msra.mxu1 %v2907_v34  ;;  %v2309_v55 = vsel %vm19983_vm11, %v19982_v11, %v19981_v25  ;;  %v2305_v32 = vsel %vm19984_vm14, %v19981_v25, %v19950_v4  ;;  %v2259_v16 = vmul.f32 %v19789_v12, %v2246_v1  ;;  %vm20018_vm8 = vmmov %vm20017_vm3 }
 0x5a8   :  { %v2089_v54 = vsel %vm19985_vm9, %v19963_v3, %v19979_v41  ;;  %v2111_v34 = vmul.f32 %v19986_v38, %v2101_v43  ;;  %v16727_v10 = vpack.c.bf16 %v19987_v19, %v2255_v47  ;;  %v2859_v57 = vunpack.c.l.b16 %v16692_v0  ;;  %v19988_v47 = vld [vmem:[#allocation90_spill] sm:$0xff] }
 0x5a9   :  { %v2341_v2 = vpack.c.bf16 %v2332_v61, %v2331_v62  ;;  %v2775_v39 = vunpack.c.l.b16 %v2339_v31  ;;  %v2776_v11 = vunpack.c.h.b16 %v2339_v31  ;;  %v2329_v4 = vmul.f32 %v19822_v18, %v2309_v55  ;;  %v19992_v55 = vld [vmem:[#allocation77_spill] sm:$0xff] }
 0x5aa   :  { %v2330_v62 = vmul.f32 %v19814_v33, %v2305_v32  ;;  %v16733_v1 = vpack.c.bf16 %v2624_v59, %v16504_v51  ;;  %v2855_v43 = vunpack.c.l.b16 %v16710_v37  ;;  %v2269_v3 = vpack.c.bf16 %v2260_v29, %v2259_v16  ;;  %v19994_v51 = vld [vmem:[#allocation76_spill] sm:$0xff]  ;;  %v19997_v59 = vld [vmem:[#allocation29_spill] sm:$0xff] }
 0x5ab   :  { %v2779_v63 = vunpack.c.l.b16 %v2341_v2  ;;  %v2780_v26 = vunpack.c.h.b16 %v2341_v2  ;;  %3090 = vmatpush.bf16.msra.mxu1 %v16591_v5  ;;  %v2306_v41 = vsel %vm19989_vm5, %v19988_v47, %v2302_v45  ;;  %v19991_v2 = vld [vmem:[#allocation69_spill] sm:$0xff]  ;;  %vm19993_vm7 = vcmp.lt.s32.totalorder %v14646_v53, 16 }
 0x5ac   :  { %v2173_v32 = vsel %vm19993_vm7, %v19992_v55, %v19991_v2  ;;  %vm19995_vm0 = vmmov %vm19993_vm7  ;;  %v2867_v45 = vpack.c.b16 %v2859_v57, %v2855_v43  ;;  %v16755_v16 = vmul.f32 %v19997_v59, %v2089_v54  ;;  %v16771_v54 = vpack.c.bf16 %v2330_v62, %v2329_v4 }
 0x5ad   :  { %v16740_v61 = vpop.permute.xlu1 %2589  ;;  %v2787_v31 = vpack.c.b16 %v2779_v63, %v2775_v39  ;;  %v2788_v25 = vpack.c.b16 %v2780_v26, %v2776_v11  ;;  %v2174_v5 = vsel %vm19995_vm0, %v19994_v51, %v19926_v21  ;;  %v19998_v26 = vld [vmem:[#allocation112_spill] sm:$0xff]  ;;  %v19999_v63 = vld [vmem:[#allocation59_spill] sm:$0xff]  ;;  %vm20000_vm12 = vmmov %vm19995_vm0  ;;  %v2310_v39 = vsel %vm20001_vm4, %v19968_v6, %v19988_v47  ;;  %v16765_v21 = vpop.permute.xlu0 %2525 }
 0x5ae   :  { %19990 = vst [vmem:[#allocation83_spill] sm:$0xff] %v16740_v61  ;;  %v2606_v29 = vsel %vm19996_vm15, %v19956_v17, %v16740_v61  ;;  %v2165_v19 = vsel %vm20000_vm12, %v19999_v63, %v19998_v26  ;;  %v20002_v17 = vld [vmem:[#allocation82_spill] sm:$0xff]  ;;  %v2334_v43 = vmul.f32 %v19814_v33, %v2306_v41  ;;  %v2735_v2 = vunpack.c.l.b16 %v16727_v10  ;;  %v20003_v63 = vld [vmem:[#allocation8_spill] sm:$0xff]  ;;  %vm20008_vm6 = vmmov %vm19995_vm0 }
 0x5af   :  { %v2628_v11 = vmul.f32 %v19823_v42, %v2606_v29  ;;  %3068 = vmatpush.bf16.msra.mxu0 %v2787_v31  ;;  %v16769_v57 = vpack.c.bf16 %v20002_v17, %v2111_v34  ;;  %3091 = vmatpush.bf16.msra.mxu1 %v2867_v45  ;;  %v2183_v12 = vmul.f32 %v20003_v63, %v2173_v32  ;;  %v2739_v47 = vunpack.c.l.b16 %v2269_v3  ;;  %v20004_v61 = vld [vmem:[#allocation30_spill] sm:$0xff]  ;;  %v20011_v17 = vld [vmem:[#allocation65_spill] sm:$0xff]  ;;  %vm20025_vm9 = vmmov %vm19995_vm0 }
 0x5b0   :  { %v2187_v9 = vmul.f32 %v20003_v63, %v2174_v5  ;;  %3125 = vmatpush.bf16.msra.mxu3 %v2788_v25  ;;  %v16778_v29 = vmul.f32 %v20004_v61, %v2165_v19  ;;  %v2975_v34 = vunpack.c.l.b16 %v16733_v1  ;;  %v2333_v4 = vmul.f32 %v19822_v18, %v2310_v39  ;;  %v20007_v25 = vld [vmem:[#allocation80_spill] sm:$0xff]  ;;  %vm20026_vm5 = vmmov %vm19995_vm0 }
 0x5b1   :  { %v2637_v6 = vpack.c.bf16 %v2628_v11, %v2627_v44  ;;  %v2736_v62 = vunpack.c.h.b16 %v16727_v10  ;;  %v2234_v41 = vsel %vm20005_vm10, %v16501_v22, %v16387_v58  ;;  %v2238_v44 = vsel %vm20006_vm2, %v19971_v36, %v16501_v22  ;;  %v20009_v58 = vld [vmem:[#allocation74_spill] sm:$0xff]  ;;  %v20010_v22 = vld [vmem:[#allocation79_spill] sm:$0xff]  ;;  %vm20031_vm12 = vmmov %vm20017_vm3 }
 0x5b2   :  { %v2740_v32 = vunpack.c.h.b16 %v2269_v3  ;;  %v2777_v5 = vunpack.c.l.b16 %v16771_v54  ;;  %v2976_v45 = vunpack.c.h.b16 %v16733_v1  ;;  %v2161_v10 = vsel %vm20008_vm6, %v19998_v26, %v19992_v55  ;;  %v20014_v26 = vld [vmem:[#allocation28_spill] sm:$0xff] }
 0x5b3   :  { %v2979_v31 = vunpack.c.l.b16 %v2637_v6  ;;  %3069 = vmatpush.bf16.msra.mxu0 %v20007_v25  ;;  %v16798_v19 = vpack.c.bf16 %v2334_v43, %v2333_v4  ;;  %3092 = vmatpush.bf16.msra.mxu1 %v16642_v15  ;;  %v2195_v39 = vpack.c.bf16 %v20009_v58, %v2183_v12  ;;  %v2197_v36 = vpack.c.bf16 %v16594_v24, %v2187_v9  ;;  %v20013_v25 = vld [vmem:[#allocation70_spill] sm:$0xff]  ;;  %v20015_v43 = vld [vmem:[#allocation27_spill] sm:$0xff]  ;;  %v20016_v24 = vld [vmem:[#allocation124_spill] sm:$0xff] }
 0x5b4   :  { %3126 = vmatpush.bf16.msra.mxu3 %v20010_v22  ;;  %v2747_v3 = vpack.c.b16 %v2739_v47, %v2735_v2  ;;  %v2233_v1 = vsel %vm20012_vm13, %v20011_v17, %v19960_v27  ;;  %v2237_v55 = vsel %vm19976_vm1, %v20013_v25, %v20011_v17  ;;  %v2261_v15 = vmul.f32 %v19891_v50, %v2238_v44  ;;  %v20019_v4 = vld [vmem:[#allocation125_spill] sm:$0xff] }
 0x5b5   :  { %v2987_v11 = vpack.c.b16 %v2979_v31, %v2975_v34  ;;  %v2262_v12 = vmul.f32 %v20014_v26, %v2234_v41  ;;  %v2186_v9 = vmul.f32 %v20015_v43, %v2161_v10  ;;  %v16819_v2 = vsel %vm20017_vm3, %v19945_v40, %v20016_v24  ;;  %v12233_v34 = vld [vmem:[%s19132_s6 + $0x4] sm:$0xf]  ;;  %v20022_v31 = vld [vmem:[#allocation78_spill] sm:$0xff]  ;;  %v12235_v22 = vld [vmem:[%s19132_s6 + $0x10] sm:$0xf0]  ;;  %v16849_v25 = vpop.permute.xlu0 %2451 }
 0x5b6   :  { %v2102_v27 = vsel %vm20018_vm8, %v16526_v8, %v19946_v48  ;;  %v2748_v47 = vpack.c.b16 %v2740_v32, %v2736_v62  ;;  %v20020_v41 = vld [vmem:[#allocation123_spill] sm:$0xff]  ;;  %vm20021_vm11 = vcmp.lt.s32.totalorder %v14646_v53, 112  ;;  %v2781_v10 = vunpack.c.l.b16 %v16798_v19  ;;  %v20024_v48 = vld [vmem:[#allocation117_spill] sm:$0xff] }
 0x5b7   :  { %3070 = vmatpush.bf16.msra.mxu0 %v2747_v3  ;;  %v2529_v44 = vsel %vm20021_vm11, %v20020_v41, %v20019_v4  ;;  %vm20023_vm14 = vmmov %vm20021_vm11  ;;  %v2980_v58 = vunpack.c.h.b16 %v2637_v6  ;;  %3093 = vmatpush.bf16.msra.mxu1 %v20024_v48  ;;  %v10119_v62 = vld [vmem:[%s19132_s6 + $0xc] sm:$0xf0]  ;;  %v10125_v32 = vld [vmem:[%s19132_s6 + $0x8] sm:$0xf]  ;;  %v2257_v3 = vmul.f32 %v19891_v50, %v2237_v55  ;;  %v2258_v17 = vmul.f32 %v20014_v26, %v2233_v1  ;;  %v16854_v48 = vpop.permute.xlu1 %2453 }
 0x5b8   :  { %v2541_v40 = vsel %vm20023_vm14, %v20019_v4, %v20022_v31  ;;  %3112 = vmatpush.bf16.msra.mxu2 %v2987_v11  ;;  %3127 = vmatpush.bf16.msra.mxu3 %v2748_v47  ;;  %v2695_v6 = vunpack.c.l.b16 %v2195_v39  ;;  %v2699_v4 = vunpack.c.l.b16 %v2197_v36  ;;  %v16851_v41 = vpack.c.bf16 %v2262_v12, %v2261_v15  ;;  %vm20027_vm7 = vmmov %vm20021_vm11  ;;  %v20030_v12 = vld [vmem:[#allocation11_spill] sm:$0xff] }
 0x5b9   :  { %v2115_v31 = vmul.f32 %v19986_v38, %v2102_v27  ;;  %v2696_v33 = vunpack.c.h.b16 %v2195_v39  ;;  %v2700_v18 = vunpack.c.h.b16 %v2197_v36  ;;  %v2162_v55 = vsel %vm20025_vm9, %v16600_v52, %v19994_v51  ;;  %v20028_v36 = vld [vmem:[#allocation95_spill] sm:$0xff]  ;;  %vm20029_vm0 = vmmov %vm20027_vm7 }
 0x5ba   :  { %v2166_v11 = vsel %vm20026_vm5, %v19925_v46, %v16600_v52  ;;  %v16865_v1 = vor.u32 %v12233_v34, %v10119_v62  ;;  %v16867_v15 = vor.u32 %v12235_v22, %v10125_v32  ;;  %v2530_v39 = vsel %vm20027_vm7, %v16531_v13, %v16765_v21  ;;  %v20032_v34 = vld [vmem:[#allocation23_spill] sm:$0xff] }
 0x5bb   :  { %3071 = vmatpush.bf16.msra.mxu0 %v16570_v56  ;;  %v2542_v51 = vsel %vm20029_vm0, %v16765_v21, %v20028_v36  ;;  %3094 = vmatpush.bf16.msra.mxu1 %v20030_v12  ;;  %v2988_v27 = vpack.c.b16 %v2980_v58, %v2976_v45  ;;  %v2789_v46 = vpack.c.b16 %v2781_v10, %v2777_v5  ;;  %v2782_v56 = vunpack.c.h.b16 %v16798_v19  ;;  %v16889_v5 = vpop.permute.xlu2 %2447  ;;  %v20033_v58 = vld [vmem:[#allocation18_spill] sm:$0xff] }
 0x5bc   :  { %v16878_v52 = vpack.c.bf16 %v2258_v17, %v2257_v3  ;;  %3113 = vmatpush.bf16.msra.mxu2 %v16646_v20  ;;  %3128 = vmatpush.bf16.msra.mxu3 %v16574_v14  ;;  %vm3061_vm15 = vcmask 261120   ;;  %v2707_v47 = vpack.c.b16 %v2699_v4, %v2695_v6  ;;  %v2778_v13 = vunpack.c.h.b16 %v16771_v54  ;;  %v20040_v12 = vld [vmem:[#allocation98_spill] sm:$0xff] }
 0x5bd   :  { %v2090_v21 = vsel %vm20031_vm12, %v20016_v24, %v16526_v8  ;;  %v2125_v45 = vpack.c.bf16 %v16660_v35, %v2115_v31  ;;  %v2708_v19 = vpack.c.b16 %v2700_v18, %v2696_v33  ;;  %v2189_v20 = vmul.f32 %v20004_v61, %v2166_v11 }
 0x5be   :  { %v2190_v14 = vmul.f32 %v20015_v43, %v2162_v55  ;;  %v2557_v10 = vmul.f32 %v20032_v34, %v2530_v39  ;;  %v2558_v54 = vmul.f32 %v20033_v58, %v2542_v51  ;;  %3095 = vmatmul.bf16.vlgmr.msra.gmra.mxu1 %v16865_v1  ;;  %v16897_v62 = vpack.c.bf16 %v2186_v9, %v16778_v29  ;;  %v20037_v55 = vld [vmem:[#allocation85_spill] sm:$0xff] }
 0x5bf   :  { %3169 = vmatpush.bf16.msrb.mxu1 %v2988_v27  ;;  %v2553_v8 = vmul.f32 %v20032_v34, %v2529_v44  ;;  %v2554_v35 = vmul.f32 %v20033_v58, %v2541_v40  ;;  %10139 = vmatmul.msk.bf16.vlgmr.msra.gmra.mxu2 %vm3061_vm15, %v16867_v15  ;;  %v2741_v33 = vunpack.c.l.b16 %v16851_v41  ;;  %v16906_v18 = vpack.c.bf16 %v16755_v16, %v16705_v7  ;;  %v2380_v31 = vpop.permute.xlu1 %2379  ;;  %v20042_v27 = vld [vmem:[#allocation54_spill] sm:$0xff] }
 0x5c0   :  { %3182 = vmatpush.bf16.msrb.mxu2 %v2789_v46  ;;  %3072 = vmatpush.bf16.msra.mxu0 %v2707_v47  ;;  %v2118_v24 = vmul.f32 %v19997_v59, %v2090_v21  ;;  %v2790_v32 = vpack.c.b16 %v2782_v56, %v2778_v13  ;;  %v20034_v29 = vunpack.c.h.b16 %v16299_v60  ;;  %v20035_v9 = vunpack.c.h.b16 %v16529_v28  ;;  %v2450_v60 = vpop.permute.xlu0 %2449  ;;  %v20043_v56 = vld [vmem:[#allocation53_spill] sm:$0xff] }
 0x5c1   :  { %3129 = vmatpush.bf16.msra.mxu3 %v2708_v19  ;;  %v2737_v40 = vunpack.c.l.b16 %v16878_v52  ;;  %v2655_v22 = vunpack.c.l.b16 %v16769_v57  ;;  %v2659_v3 = vunpack.c.l.b16 %v2125_v45  ;;  %v2660_v7 = vunpack.c.h.b16 %v2125_v45 }
 0x5c2   :  { %v2786_v44 = vpack.c.b16 %v20035_v9, %v20034_v29  ;;  %v2117_v16 = vmul.f32 %v19785_v23, %v16819_v2  ;;  %v16919_v17 = vpack.c.bf16 %v2190_v14, %v2189_v20  ;;  %v16921_v6 = vpack.c.bf16 %v2558_v54, %v2557_v10  ;;  %v20038_v2 = vld [vmem:[#allocation86_spill] sm:$0xff]  ;;  %v20044_v20 = vld [vmem:[#allocation60_spill] sm:$0xff]  ;;  %v20046_v10 = vld [vmem:[#allocation81_spill] sm:$0xff] }
 0x5c3   :  { %3170 = vmatpush.bf16.msrb.mxu1 %v16669_v49  ;;  %v2656_v28 = vunpack.c.h.b16 %v16769_v57  ;;  %v20036_v49 = vld [vmem:[#allocation48_spill] sm:$0xff]  ;;  %v2749_v11 = vpack.c.b16 %v2741_v33, %v2737_v40  ;;  %v2697_v39 = vunpack.c.l.b16 %v16897_v62  ;;  %vm20039_vm4 = vcmp.lt.s32.totalorder %v14646_v53, 113  ;;  %v2382_v54 = vpop.permute.xlu2 %2381  ;;  %v20049_v33 = vld [vmem:[#allocation17_spill] sm:$0xff]  ;;  %v20052_v29 = vld [vmem:[#allocation46_spill] sm:$0xff] }
 0x5c4   :  { %3183 = vmatpush.bf16.msrb.mxu2 %v16611_v30  ;;  %v2936_v4 = vunpack.c.h.b16 %v20036_v49  ;;  %v16925_v30 = vpack.c.bf16 %v2554_v35, %v2553_v8  ;;  %3073 = vmatpush.bf16.msra.mxu0 %v20037_v55  ;;  %v16929_v36 = vpack.c.bf16 %v2118_v24, %v2117_v16  ;;  %v2458_v51 = vsel %vm20039_vm4, %v20038_v2, %v16854_v48  ;;  %vm20041_vm10 = vmmov %vm20039_vm4  ;;  %v20048_v8 = vld [vmem:[#allocation22_spill] sm:$0xff]  ;;  %v20050_v24 = vld [vmem:[#allocation91_spill] sm:$0xff] }
 0x5c5   :  { %v2470_v57 = vsel %vm20041_vm10, %v16854_v48, %v20040_v12  ;;  %3130 = vmatpush.bf16.msra.mxu3 %v20042_v27  ;;  %v2742_v46 = vunpack.c.h.b16 %v16851_v41  ;;  %v2940_v47 = vunpack.c.h.b16 %v20043_v56  ;;  %v2667_v13 = vpack.c.b16 %v2659_v3, %v2655_v22  ;;  %vm20045_vm2 = vmmov %vm20039_vm4  ;;  %v12236_v40 = vld [vmem:[%s19132_s6 + $0x1c] sm:$0xf]  ;;  %v20054_v3 = vld [vmem:[#allocation56_spill] sm:$0xff] }
 0x5c6   :  { %v2668_v21 = vpack.c.b16 %v2660_v7, %v2656_v28  ;;  %v2738_v45 = vunpack.c.h.b16 %v16878_v52  ;;  %v2941_v19 = vunpack.c.l.b16 %v16921_v6  ;;  %v2457_v14 = vsel %vm20045_vm2, %v20044_v20, %v16849_v25  ;;  %vm20047_vm6 = vmmov %vm20045_vm2  ;;  %v10137_v28 = vld [vmem:[%s19132_s6 + $0x20] sm:$0xf]  ;;  %v12238_v49 = vld [vmem:[%s19132_s6 + $0x28] sm:$0xf0] }
 0x5c7   :  { %3239 = vmatpush.bf16.msra.mxu1 %v2790_v32  ;;  %v2469_v48 = vsel %vm20047_vm6, %v16849_v25, %v20046_v10  ;;  %v2701_v41 = vunpack.c.l.b16 %v16919_v17  ;;  %v2485_v35 = vmul.f32 %v20048_v8, %v2458_v51  ;;  %v2486_v52 = vmul.f32 %v20049_v33, %v2470_v57  ;;  %vm20051_vm13 = vmmov %vm20045_vm2  ;;  %v10117_v25 = vld [vmem:[%s19132_s6] sm:$0xf]  ;;  %v20058_v57 = vld [vmem:[#allocation120_spill] sm:$0xff] }
 0x5c8   :  { %3184 = vmatpush.bf16.msrb.mxu2 %v2749_v11  ;;  %v2456_v32 = vsel %vm20051_vm13, %v20050_v24, %v2450_v60  ;;  %vm20053_vm1 = vmmov %vm20045_vm2  ;;  %3074 = vmatpush.bf16.msra.mxu0 %v2667_v13  ;;  %v2937_v22 = vunpack.c.l.b16 %v16925_v30  ;;  %v2750_v16 = vpack.c.b16 %v2742_v46, %v2738_v45  ;;  %v2661_v55 = vunpack.c.l.b16 %v16929_v36  ;;  %v20056_v11 = vld [vmem:[#allocation45_spill] sm:$0xff]  ;;  %v20059_v20 = vld [vmem:[#allocation126_spill] sm:$0xff] }
 0x5c9   :  { %v2468_v9 = vsel %vm20053_vm1, %v2450_v60, %v20052_v29  ;;  %vm20055_vm3 = vmmov %vm20053_vm1  ;;  %3131 = vmatpush.bf16.msra.mxu3 %v2668_v21  ;;  %v10131_v60 = vld [vmem:[%s19132_s6 + $0x24] sm:$0xf0]  ;;  %v2481_v51 = vmul.f32 %v20048_v8, %v2457_v14  ;;  %v2482_v12 = vmul.f32 %v20049_v33, %v2469_v48  ;;  %v2948_v27 = vpack.c.b16 %v2940_v47, %v2936_v4 }
 0x5ca   :  { %v2455_v7 = vsel %vm20055_vm3, %v20054_v3, %v16889_v5  ;;  %vm20057_vm8 = vmmov %vm20053_vm1  ;;  %v2477_v46 = vmul.f32 %v20048_v8, %v2456_v32  ;;  %v2478_v56 = vmul.f32 %v20049_v33, %v2468_v9  ;;  %v2709_v13 = vpack.c.b16 %v2701_v41, %v2697_v39  ;;  %v20060_v48 = vld [vmem:[#allocation87_spill] sm:$0xff]  ;;  %v2376_v39 = vpop.permute.xlu0 %2375  ;;  %v20064_v41 = vld [vmem:[#allocation88_spill] sm:$0xff]  ;;  %v2378_v9 = vpop.permute.xlu1 %2377 }
 0x5cb   :  { %3240 = vmatpush.bf16.msra.mxu1 %v2786_v44  ;;  %v12234_v44 = vld [vmem:[%s19132_s6 + $0x8] sm:$0xf0]  ;;  %v2467_v2 = vsel %vm20057_vm8, %v16889_v5, %v20056_v11  ;;  %v16996_v45 = vpack.c.bf16 %v2486_v52, %v2485_v35  ;;  %v2949_v5 = vpack.c.b16 %v2941_v19, %v2937_v22  ;;  %v16999_v10 = vor.u32 %v12236_v40, %v10131_v60  ;;  %v20062_v47 = vld [vmem:[#allocation75_spill] sm:$0xff] }
 0x5cc   :  { %3185 = vmatpush.bf16.msrb.mxu2 %v20058_v57  ;;  %v16994_v21 = vor.u32 %v12234_v44, %v10117_v25  ;;  %3075 = vmatpush.bf16.msra.mxu0 %v20059_v20  ;;  %v17001_v14 = vor.u32 %v12238_v49, %v10137_v28  ;;  %vm20061_vm11 = vcmp.lt.s32.totalorder %v14646_v53, 127  ;;  %v2702_v35 = vunpack.c.h.b16 %v16919_v17  ;;  %v20067_v40 = vld [vmem:[#allocation92_spill] sm:$0xff]  ;;  %v20069_v3 = vld [vmem:[#allocation7_spill] sm:$0xff] }
 0x5cd   :  { %v2385_v4 = vsel %vm20061_vm11, %v20060_v48, %v2380_v31  ;;  %vm20063_vm14 = vmmov %vm20061_vm11  ;;  %3132 = vmatpush.bf16.msra.mxu3 %v20064_v41  ;;  %v2657_v19 = vunpack.c.l.b16 %v16906_v18  ;;  %v2473_v52 = vmul.f32 %v20048_v8, %v2455_v7  ;;  %v2474_v32 = vmul.f32 %v20049_v33, %v2467_v2  ;;  %v20070_v7 = vld [vmem:[#allocation100_spill] sm:$0xff]  ;;  %v2596_v48 = vpop.permute.xlu2 %2595  ;;  %v20081_v41 = vld [vmem:[#allocation61_spill] sm:$0xff] }
 0x5ce   :  { %v2397_v24 = vsel %vm20063_vm14, %v2380_v31, %v20062_v47  ;;  %v17014_v29 = vpack.c.bf16 %v2482_v12, %v2481_v51  ;;  %v2698_v25 = vunpack.c.h.b16 %v16897_v62  ;;  %v20065_v31 = vld [vmem:[#allocation94_spill] sm:$0xff]  ;;  %vm20066_vm9 = vmmov %vm20061_vm11  ;;  %v17023_v22 = vpack.c.bf16 %v2478_v56, %v2477_v46  ;;  %v20071_v60 = vld [vmem:[#allocation20_spill] sm:$0xff]  ;;  %3100 = vmatmul.bf16.gmra.mxu1 %v16999_v10 }
 0x5cf   :  { %3241 = vmatpush.bf16.msra.mxu1 %v2750_v16  ;;  %v2386_v44 = vsel %vm20066_vm9, %v20065_v31, %v2382_v54  ;;  %vm20068_vm5 = vmmov %vm20066_vm9  ;;  %3076 = vmatmul.bf16.vlgmr.msra.gmra.mxu0 %v16994_v21  ;;  %v2900_v16 = vunpack.c.h.b16 %v20070_v7  ;;  %v2409_v28 = vmul.f32 %v20071_v60, %v2385_v4  ;;  %v20072_v49 = vld [vmem:[#allocation16_spill] sm:$0xff]  ;;  %v2669_v11 = vpack.c.b16 %v2661_v55, %v2657_v19  ;;  %v20075_v12 = vld [vmem:[#allocation50_spill] sm:$0xff] }
 0x5d0   :  { %3144 = vmatpush.bf16.msrb.mxu0 %v2948_v27  ;;  %3186 = vmatpush.bf16.msrb.mxu2 %v2709_v13  ;;  %v2398_v17 = vsel %vm20068_vm5, %v2382_v54, %v20067_v40  ;;  %v2410_v62 = vmul.f32 %v20072_v49, %v2397_v24  ;;  %v2901_v54 = vunpack.c.l.b16 %v16996_v45  ;;  %v20073_v2 = vld [vmem:[#allocation96_spill] sm:$0xff]  ;;  %vm20074_vm7 = vmmov %vm20068_vm5  ;;  %v20077_v27 = vld [vmem:[#allocation49_spill] sm:$0xff]  ;;  %v2710_v46 = vpack.c.b16 %v2702_v35, %v2698_v25 }
 0x5d1   :  { %3201 = vmatpush.bf16.msrb.mxu3 %v2949_v5  ;;  %10140 = vmatmul.msk.bf16.gmra.mxu2 %vm3061_vm15, %v17001_v14  ;;  %v2384_v51 = vsel %vm20074_vm7, %v20073_v2, %v2378_v9  ;;  %vm20076_vm0 = vmmov %vm20068_vm5  ;;  %v20078_v56 = vld [vmem:[#allocation9_spill] sm:$0xff]  ;;  %v17043_v20 = vpack.c.bf16 %v2474_v32, %v2473_v52  ;;  %v2413_v55 = vmul.f32 %v20071_v60, %v2386_v44  ;;  %v2897_v24 = vunpack.c.l.b16 %v17014_v29  ;;  %v20083_v35 = vld [vmem:[#allocation43_spill] sm:$0xff] }
 0x5d2   :  { %v2396_v57 = vsel %vm20076_vm0, %v2378_v9, %v20075_v12  ;;  %3133 = vmatmul.bf16.vlgmr.msra.gmra.mxu3 %v16994_v21  ;;  %v2896_v13 = vunpack.c.h.b16 %v20078_v56  ;;  %v2414_v5 = vmul.f32 %v20072_v49, %v2398_v17  ;;  %v20079_v4 = vld [vmem:[#allocation93_spill] sm:$0xff]  ;;  %vm20082_vm12 = vmmov %vm20076_vm0  ;;  %v2893_v9 = vunpack.c.l.b16 %v17023_v22  ;;  %v20087_v2 = vld [vmem:[#allocation84_spill] sm:$0xff] }
 0x5d3   :  { %3242 = vmatpush.bf16.msra.mxu1 %v20069_v3  ;;  %v20080_v47 = vld [vmem:[#allocation121_spill] sm:$0xff]  ;;  %v2383_v19 = vsel %vm20082_vm12, %v20081_v41, %v2376_v39  ;;  %vm20084_vm4 = vmmov %vm20076_vm0  ;;  %v17057_v25 = vpack.c.bf16 %v2410_v62, %v2409_v28  ;;  %v2405_v31 = vmul.f32 %v20071_v60, %v2384_v51  ;;  %v2406_v44 = vmul.f32 %v20072_v49, %v2396_v57  ;;  %v2598_v51 = vpop.permute.xlu0 %2597  ;;  %v20090_v57 = vld [vmem:[#allocation47_spill] sm:$0xff] }
 0x5d4   :  { %3145 = vmatpush.bf16.msrb.mxu0 %v20077_v27  ;;  %3187 = vmatpush.bf16.msrb.mxu2 %v20079_v4  ;;  %v2395_v52 = vsel %vm20084_vm4, %v2376_v39, %v20083_v35  ;;  %v2908_v32 = vpack.c.b16 %v2900_v16, %v2896_v13  ;;  %v2909_v40 = vpack.c.b16 %v2901_v54, %v2897_v24  ;;  %v2942_v17 = vunpack.c.h.b16 %v16921_v6  ;;  %v20085_v3 = vld [vmem:[#allocation57_spill] sm:$0xff]  ;;  %v20089_v16 = vld [vmem:[#allocation118_spill] sm:$0xff] }
 0x5d5   :  { %3202 = vmatpush.bf16.msrb.mxu3 %v20080_v47  ;;  %v20086_v7 = vunpack.c.l.b16 %v20085_v3  ;;  %v20088_v12 = vunpack.c.l.b16 %v20087_v2  ;;  %v2662_v39 = vunpack.c.h.b16 %v16929_v36  ;;  %v17068_v56 = vpack.c.bf16 %v2414_v5, %v2413_v55  ;;  %v20091_v13 = vld [vmem:[#allocation58_spill] sm:$0xff]  ;;  %v20093_v36 = vld [vmem:[#allocation119_spill] sm:$0xff] }
 0x5d6   :  { %v2401_v28 = vmul.f32 %v20071_v60, %v2383_v19  ;;  %v2402_v62 = vmul.f32 %v20072_v49, %v2395_v52  ;;  %v2889_v6 = vunpack.c.l.b16 %v17043_v20  ;;  %v2938_v54 = vunpack.c.h.b16 %v16925_v30 }
 0x5d7   :  { %3243 = vmatpush.bf16.msra.mxu1 %v2710_v46  ;;  %v2665_v27 = vpack.c.b16 %v20088_v12, %v20086_v7  ;;  %v2934_v46 = vunpack.c.h.b16 %v20089_v16  ;;  %v20092_v4 = vunpack.c.h.b16 %v20091_v13  ;;  %v20094_v47 = vunpack.c.h.b16 %v20093_v36  ;;  %v20100_v12 = vld [vmem:[#allocation103_spill] sm:$0xff] }
 0x5d8   :  { %3146 = vmatpush.bf16.msrb.mxu0 %v2908_v32  ;;  %3188 = vmatpush.bf16.msrb.mxu2 %v2669_v11  ;;  %v2658_v55 = vunpack.c.h.b16 %v16906_v18  ;;  %v2860_v5 = vunpack.c.h.b16 %v16692_v0  ;;  %v17081_v41 = vpack.c.bf16 %v2406_v44, %v2405_v31  ;;  %v2905_v11 = vpack.c.b16 %v2893_v9, %v2889_v6  ;;  %v10129_v18 = vld [vmem:[%s19132_s6 + $0x18] sm:$0xf]  ;;  %v12237_v0 = vld [vmem:[%s19132_s6 + $0x20] sm:$0xf0]  ;;  %v20104_v6 = vld [vmem:[#allocation68_spill] sm:$0xff] }
 0x5d9   :  { %3203 = vmatpush.bf16.msrb.mxu3 %v2909_v40  ;;  %v2904_v24 = vpack.c.b16 %v20094_v47, %v20092_v4  ;;  %v2857_v19 = vunpack.c.l.b16 %v17057_v25  ;;  %v20095_v35 = vunpack.c.h.b16 %v20085_v3  ;;  %v20096_v30 = vunpack.c.h.b16 %v20087_v2  ;;  %v20097_v9 = vld [vmem:[#allocation55_spill] sm:$0xff]  ;;  %v2594_v4 = vpop.permute.xlu2 %2593 }
 0x5da   :  { %v2670_v32 = vpack.c.b16 %v2662_v39, %v2658_v55  ;;  %v2950_v40 = vpack.c.b16 %v2942_v17, %v2938_v54  ;;  %v2856_v7 = vunpack.c.h.b16 %v16710_v37  ;;  %v2852_v31 = vunpack.c.h.b16 %v20097_v9  ;;  %v20098_v3 = vld [vmem:[#allocation83_spill] sm:$0xff] }
 0x5db   :  { %3244 = vmatpush.bf16.msra.mxu1 %v20090_v57  ;;  %v2666_v52 = vpack.c.b16 %v20096_v30, %v20095_v35  ;;  %v17096_v44 = vpack.c.bf16 %v2402_v62, %v2401_v28  ;;  %vm20099_vm10 = vcmp.lt.s32.totalorder %v14646_v53, 111  ;;  %v2861_v17 = vunpack.c.l.b16 %v17068_v56  ;;  %v20102_v39 = vld [vmem:[#allocation51_spill] sm:$0xff]  ;;  %v2592_v62 = vpop.permute.xlu1 %2591 }
 0x5dc   :  { %3147 = vmatpush.bf16.msrb.mxu0 %v2904_v24  ;;  %v2602_v2 = vsel %vm20099_vm10, %v20098_v3, %v2598_v51  ;;  %vm20101_vm2 = vmmov %vm20099_vm10  ;;  %3189 = vmatpush.bf16.msrb.mxu2 %v2665_v27  ;;  %v2868_v54 = vpack.c.b16 %v2860_v5, %v2856_v7  ;;  %v20106_v57 = vld [vmem:[#allocation71_spill] sm:$0xff]  ;;  %v17112_v27 = vor.u32 %v12237_v0, %v10129_v18  ;;  %v2853_v36 = vunpack.c.l.b16 %v17081_v41  ;;  %v20107_v24 = vld [vmem:[#allocation24_spill] sm:$0xff] }
 0x5dd   :  { %v2614_v37 = vsel %vm20101_vm2, %v2598_v51, %v20100_v12  ;;  %3204 = vmatpush.bf16.msrb.mxu3 %v2905_v11  ;;  %vm20103_vm6 = vmmov %vm20101_vm2  ;;  %v2930_v13 = vunpack.c.h.b16 %v20106_v57  ;;  %v2869_v51 = vpack.c.b16 %v2861_v17, %v2857_v19  ;;  %v2902_v47 = vunpack.c.h.b16 %v16996_v45  ;;  %v20108_v11 = vld [vmem:[#allocation19_spill] sm:$0xff]  ;;  %v20111_v5 = vld [vmem:[#allocation64_spill] sm:$0xff] }
 0x5de   :  { %v2601_v16 = vsel %vm20103_vm6, %v20102_v39, %v2596_v48  ;;  %vm20105_vm13 = vmmov %vm20101_vm2  ;;  %v2629_v55 = vmul.f32 %v20107_v24, %v2602_v2  ;;  %v2630_v35 = vmul.f32 %v20108_v11, %v2614_v37  ;;  %v20109_v30 = vld [vmem:[#allocation63_spill] sm:$0xff]  ;;  %v20113_v19 = vld [vmem:[#allocation44_spill] sm:$0xff]  ;;  %v2849_v45 = vunpack.c.l.b16 %v17096_v44  ;;  %10141 = vmatmul.msk.bf16.vlgmr.msrb.gmra.mxu1 %vm3061_vm15, %v16867_v15 }
 0x5df   :  { %v2613_v28 = vsel %vm20105_vm13, %v2596_v48, %v20104_v6  ;;  %3245 = vmatpush.bf16.msra.mxu1 %v2670_v32  ;;  %v2946_v48 = vpack.c.b16 %v2934_v46, %v2930_v13  ;;  %v20110_v32 = vunpack.c.h.b16 %v20109_v30  ;;  %vm20112_vm1 = vmmov %vm20101_vm2  ;;  %v2898_v0 = vunpack.c.h.b16 %v17014_v29  ;;  %v20115_v3 = vld [vmem:[#allocation99_spill] sm:$0xff]  ;;  %v20118_v37 = vld [vmem:[#allocation52_spill] sm:$0xff]  ;;  %3081 = vmatmul.bf16.gmra.mxu0 %v17112_v27 }
 0x5e0   :  { %3258 = vmatpush.bf16.msra.mxu2 %v2950_v40  ;;  %3148 = vmatpush.bf16.msrb.mxu0 %v2868_v54  ;;  %v2599_v7 = vsel %vm20112_vm1, %v20111_v5, %v2592_v62  ;;  %vm20114_vm3 = vmmov %vm20112_vm1  ;;  %v2625_v9 = vmul.f32 %v20107_v24, %v2601_v16  ;;  %v2626_v46 = vmul.f32 %v20108_v11, %v2613_v28  ;;  %v20117_v2 = vld [vmem:[#allocation115_spill] sm:$0xff]  ;;  %v20120_v16 = vld [vmem:[#allocation108_spill] sm:$0xff]  ;;  %v2894_v54 = vunpack.c.h.b16 %v17023_v22 }
 0x5e1   :  { %v2864_v40 = vpack.c.b16 %v2852_v31, %v20110_v32  ;;  %v2611_v18 = vsel %vm20114_vm3, %v2592_v62, %v20113_v19  ;;  %3205 = vmatpush.bf16.msrb.mxu3 %v2869_v51  ;;  %vm20116_vm8 = vmmov %vm20112_vm1  ;;  %v2821_v12 = vunpack.c.l.b16 %v20117_v2  ;;  %v2865_v29 = vpack.c.b16 %v2853_v36, %v2849_v45  ;;  %3190 = vmatmul.bf16.vlgmr.msrb.gmra.mxu2 %v16994_v21  ;;  %v20121_v57 = vld [vmem:[#allocation109_spill] sm:$0xff]  ;;  %v20123_v32 = vld [vmem:[#allocation111_spill] sm:$0xff] }
 0x5e2   :  { %v2600_v31 = vsel %vm20116_vm8, %v20115_v3, %v2594_v4  ;;  %vm20119_vm11 = vmmov %vm20112_vm1  ;;  %v2910_v39 = vpack.c.b16 %v2902_v47, %v2898_v0  ;;  %v2820_v6 = vunpack.c.h.b16 %v20120_v16  ;;  %v2638_v28 = vpack.c.bf16 %v2630_v35, %v2629_v55  ;;  %3138 = vmatmul.bf16.gmra.mxu3 %v17112_v27 }
 0x5e3   :  { %3246 = vmatpush.bf16.msra.mxu1 %v2666_v52  ;;  %v2612_v17 = vsel %vm20119_vm11, %v2594_v4, %v20118_v37  ;;  %v2617_v62 = vmul.f32 %v20107_v24, %v2599_v7  ;;  %v2618_v52 = vmul.f32 %v20108_v11, %v2611_v18  ;;  %v2816_v13 = vunpack.c.h.b16 %v20121_v57  ;;  %v20122_v4 = vld [vmem:[#allocation114_spill] sm:$0xff]  ;;  %v20124_v7 = vld [vmem:[#allocation116_spill] sm:$0xff] }
 0x5e4   :  { %3259 = vmatpush.bf16.msra.mxu2 %v2946_v48  ;;  %3149 = vmatpush.bf16.msrb.mxu0 %v2864_v40  ;;  %v2817_v51 = vunpack.c.l.b16 %v20122_v4  ;;  %v2636_v36 = vpack.c.bf16 %v2626_v46, %v2625_v9  ;;  %v2621_v47 = vmul.f32 %v20107_v24, %v2600_v31  ;;  %v2622_v55 = vmul.f32 %v20108_v11, %v2612_v17 }
 0x5e5   :  { %3206 = vmatpush.bf16.msrb.mxu3 %v2865_v29  ;;  %v2890_v35 = vunpack.c.h.b16 %v17043_v20  ;;  %v2828_v48 = vpack.c.b16 %v2820_v6, %v2816_v13  ;;  %v2809_v5 = vunpack.c.l.b16 %v20123_v32  ;;  %v2813_v22 = vunpack.c.l.b16 %v20124_v7 }
 0x5e6   :  { %v2829_v30 = vpack.c.b16 %v2821_v12, %v2817_v51  ;;  %v2981_v40 = vunpack.c.l.b16 %v2638_v28  ;;  %v2632_v19 = vpack.c.bf16 %v2618_v52, %v2617_v62  ;;  %v2858_v45 = vunpack.c.h.b16 %v17057_v25 }
 0x5e7   :  { %v2906_v18 = vpack.c.b16 %v2894_v54, %v2890_v35  ;;  %v2982_v0 = vunpack.c.h.b16 %v2638_v28  ;;  %v2977_v9 = vunpack.c.l.b16 %v2636_v36  ;;  %v2634_v46 = vpack.c.bf16 %v2622_v55, %v2621_v47 }
 0x5e8   :  { %3260 = vmatpush.bf16.msra.mxu2 %v2910_v39  ;;  %3150 = vmatpush.bf16.msrb.mxu0 %v2828_v48  ;;  %v2862_v3 = vunpack.c.h.b16 %v17068_v56  ;;  %v2978_v20 = vunpack.c.h.b16 %v2636_v36  ;;  %v2825_v31 = vpack.c.b16 %v2813_v22, %v2809_v5  ;;  %v2969_v17 = vunpack.c.l.b16 %v2632_v19  ;;  %v20125_v39 = vld [vmem:[#allocation26_spill] sm:$0xff]  ;;  %v17181_v36 = vpop.permute.xlu0 %3013  ;;  %v17184_v48 = vpop.permute.xlu1 %3018 }
 0x5e9   :  { %3207 = vmatpush.bf16.msrb.mxu3 %v2829_v30  ;;  %v2989_v12 = vpack.c.b16 %v2981_v40, %v2977_v9  ;;  %v2854_v29 = vunpack.c.h.b16 %v17081_v41  ;;  %v2970_v25 = vunpack.c.h.b16 %v2632_v19  ;;  %v2973_v6 = vunpack.c.l.b16 %v2634_v46 }
 0x5ea   :  { %v2870_v37 = vpack.c.b16 %v2862_v3, %v2858_v45  ;;  %v2990_v16 = vpack.c.b16 %v2982_v0, %v2978_v20  ;;  %v2850_v28 = vunpack.c.h.b16 %v17096_v44  ;;  %v2974_v62 = vunpack.c.h.b16 %v2634_v46  ;;  %v17199_v20 = vpop.permute.xlu2 %3023 }
 0x5eb   :  { %v2985_v56 = vpack.c.b16 %v2973_v6, %v2969_v17  ;;  %v2822_v54 = vunpack.c.h.b16 %v20117_v2  ;;  %v2818_v41 = vunpack.c.h.b16 %v20122_v4  ;;  %v2810_v13 = vunpack.c.h.b16 %v20123_v32 }
 0x5ec   :  { %3261 = vmatpush.bf16.msra.mxu2 %v2906_v18  ;;  %3151 = vmatpush.bf16.msrb.mxu0 %v20125_v39  ;;  %v2866_v52 = vpack.c.b16 %v2854_v29, %v2850_v28  ;;  %v2986_v57 = vpack.c.b16 %v2974_v62, %v2970_v25  ;;  %v2814_v51 = vunpack.c.h.b16 %v20124_v7  ;;  %vm20180_vm14 = vcmp.lt.s32.totalorder %v14646_v53, 16 }
 0x5ed   :  { %3208 = vmatpush.bf16.msrb.mxu3 %v2825_v31  ;;  %v2830_v44 = vpack.c.b16 %v2822_v54, %v2818_v41  ;;  %vm20184_vm9 = vmmov %vm20180_vm14  ;;  %vm20195_vm12 = vcmp.lt.s32.totalorder %v14646_v53, 17 }
 0x5ee   :  { %10142 = vmatmul.msk.bf16.gmra.mxu1 %vm3061_vm15, %v17001_v14  ;;  %v2826_v2 = vpack.c.b16 %v2814_v51, %v2810_v13  ;;  %vm20185_vm5 = vmmov %vm20184_vm9 }
 0x5ef   :  { %3152 = vmatmul.bf16.vlgmr.msrb.gmra.mxu0 %v16865_v1  ;;  %vm20193_vm7 = vmmov %vm20185_vm5 }
 0x5f0   :  { %3226 = vmatpush.bf16.msra.mxu0 %v2989_v12  ;;  %3262 = vmatpush.bf16.msra.mxu2 %v2870_v37  ;;  %v17224_v13 = vpop.permute.xlu0 %3028  ;;  %vm20194_vm0 = vmmov %vm20185_vm5 }
 0x5f1   :  { %3283 = vmatpush.bf16.msra.mxu3 %v2990_v16  ;;  %3195 = vmatmul.bf16.gmra.mxu2 %v17112_v27  ;;  %vm20196_vm4 = vmmov %vm20195_vm12 }
 0x5f2   :  { %3209 = vmatmul.bf16.vlgmr.msrb.gmra.mxu3 %v16865_v1  ;;  %vm20197_vm10 = vmmov %vm20194_vm0 }
 0x5f3   :  { %vm20199_vm2 = vmmov %vm20196_vm4 }
 0x5f4   :  { %3227 = vmatpush.bf16.msra.mxu0 %v2985_v56  ;;  %3263 = vmatpush.bf16.msra.mxu2 %v2866_v52  ;;  %vm20201_vm6 = vmmov %vm20199_vm2 }
 0x5f5   :  { %3284 = vmatpush.bf16.msra.mxu3 %v2986_v57  ;;  %vm20203_vm13 = vmmov %vm20194_vm0 }
 0x5f6   :  { %vm20204_vm1 = vmmov %vm20194_vm0 }
 0x5f7   :  { %vm20205_vm3 = vmmov %vm20199_vm2 }
 0x5f8   :  { %3264 = vmatpush.bf16.msra.mxu2 %v2830_v44  ;;  %vm20206_vm8 = vmmov %vm20199_vm2 }
 0x5f9   :  { %vm20213_vm11 = vmmov %vm20199_vm2 }
 0x5fc   :  { %3265 = vmatpush.bf16.msra.mxu2 %v2826_v2 }
 0x5fe   :  { %3247 = vmatmul.bf16.vlgmr.msra.gmra.mxu1 %v16994_v21 }
 0x5ff   :  { %3157 = vmatmul.bf16.gmra.mxu0 %v16999_v10 }
 0x601   :  { %3266 = vmatmul.bf16.vlgmr.msra.gmra.mxu2 %v16865_v1 }
 0x602   :  { %3214 = vmatmul.bf16.gmra.mxu3 %v16999_v10 }
 0x60e   :  { %3252 = vmatmul.bf16.gmra.mxu1 %v17112_v27 }
 0x60f   :  { %10143 = vmatmul.msk.bf16.vlgmr.msra.gmra.mxu0 %vm3061_vm15, %v16867_v15 }
 0x611   :  { %3271 = vmatmul.bf16.gmra.mxu2 %v16999_v10 }
 0x612   :  { %10145 = vmatmul.msk.bf16.vlgmr.msra.gmra.mxu3 %vm3061_vm15, %v16867_v15 }
 0x61f   :  { %10144 = vmatmul.msk.bf16.gmra.mxu0 %vm3061_vm15, %v17001_v14 }
 0x622   :  { %10146 = vmatmul.msk.bf16.gmra.mxu3 %vm3061_vm15, %v17001_v14 }
 0x63b   :  { %v3096_v21 = vpop.f32.mrf.mxu1 }
 0x642   :  { %v3115_v1 = vpop.f32.mrf.mxu2 }
 0x643   :  { %v3098_v4 = vpop.f32.mrf.mxu1 }
 0x64a   :  { %v3117_v47 = vpop.f32.mrf.mxu2 }
 0x64b   :  { %v3101_v30 = vpop.f32.mrf.mxu1 }
 0x64c   :  { %v3077_v55 = vpop.f32.mrf.mxu0 }
 0x64d   :  { %v3078_v27 = vadd.f32 %v3077_v55, %v17181_v36 }
 0x64f   :  { %v3097_v35 = vadd.f32 %v3096_v21, %v3078_v27 }
 0x651   :  { %v3116_v10 = vadd.f32 %v3115_v1, %v3097_v35 }
 0x653   :  { %v3296_v15 = vmax.f32 %v3116_v10, 0.0  ;;  %v3103_v0 = vpop.f32.mrf.mxu1 }
 0x654   :  { %v3079_v5 = vpop.f32.mrf.mxu0  ;;  %v3120_v14 = vpop.f32.mrf.mxu2 }
 0x655   :  { %v3134_v32 = vpop.f32.mrf.mxu3  ;;  %v3080_v7 = vadd.f32 %v3079_v5, %v17184_v48  ;;  %3456 = vrot.lane.b32.xlu0 %v3296_v15, %s12787_s30  ;;  %3384 = vrot.lane.b32.xlu2 %v3296_v15, %s12781_s21 }
 0x656   :  { %3312 = vrot.lane.b32.xlu1 %v3296_v15, %s12780_s18  ;;  %v3135_v29 = vadd.f32 %v3134_v32, %v17181_v36 }
 0x657   :  { %v3099_v22 = vadd.f32 %v3098_v4, %v3080_v7 }
 0x659   :  { %v3118_v40 = vadd.f32 %v3117_v47, %v3099_v22 }
 0x65b   :  { %v17190_v19 = vmax.f32 %v3118_v40, 0.0  ;;  %v3172_v12 = vpop.f32.mrf.mxu1 }
 0x65c   :  { %v3082_v45 = vpop.f32.mrf.mxu0  ;;  %v3122_v9 = vpop.f32.mrf.mxu2 }
 0x65d   :  { %v3136_v18 = vpop.f32.mrf.mxu3  ;;  %3680 = vrot.lane.b32.xlu0 %v3296_v15, %s12783_s20  ;;  %3314 = vrot.lane.b32.xlu2 %v17190_v19, %s12780_s18  ;;  %v3083_v31 = vadd.f32 %v3082_v45, %v17199_v20 }
 0x65e   :  { %3528 = vrot.lane.b32.xlu1 %v3296_v15, %s12786_s0  ;;  %v3137_v52 = vadd.f32 %v3136_v18, %v17184_v48 }
 0x65f   :  { %v3102_v17 = vadd.f32 %v3101_v30, %v3083_v31 }
 0x661   :  { %v3121_v6 = vadd.f32 %v3120_v14, %v3102_v17 }
 0x663   :  { %v3174_v62 = vpop.f32.mrf.mxu1  ;;  %v17211_v56 = vmax.f32 %v3121_v6, 0.0 }
 0x664   :  { %v3084_v3 = vpop.f32.mrf.mxu0  ;;  %v17203_v37 = vpop.f32.mrf.mxu2 }
 0x665   :  { %v3139_v46 = vpop.f32.mrf.mxu3  ;;  %3608 = vrot.lane.b32.xlu0 %v3296_v15, %s12782_s29  ;;  %3530 = vrot.lane.b32.xlu2 %v17190_v19, %s12786_s0  ;;  %v3085_v2 = vadd.f32 %v3084_v3, %v17224_v13 }
 0x666   :  { %3752 = vrot.lane.b32.xlu1 %v3296_v15, %s12784_s24  ;;  %v3140_v55 = vadd.f32 %v3139_v46, %v17199_v20 }
 0x667   :  { %v3104_v47 = vadd.f32 %v3103_v0, %v3085_v2 }
 0x669   :  { %v3123_v22 = vadd.f32 %v3122_v9, %v3104_v47 }
 0x66b   :  { %v3177_v27 = vpop.f32.mrf.mxu1  ;;  %v3308_v46 = vmax.f32 %v3123_v22, 0.0 }
 0x66c   :  { %v3153_v16 = vpop.f32.mrf.mxu0  ;;  %v17214_v54 = vpop.f32.mrf.mxu2 }
 0x66d   :  { %v3141_v39 = vpop.f32.mrf.mxu3  ;;  %3824 = vrot.lane.b32.xlu0 %v3296_v15, %s12785_s26  ;;  %3754 = vrot.lane.b32.xlu2 %v17190_v19, %s12784_s24  ;;  %v3154_v25 = vadd.f32 %v3153_v16, %v3135_v29 }
 0x66e   :  { %3458 = vrot.lane.b32.xlu1 %v17190_v19, %s12787_s30  ;;  %v3142_v3 = vadd.f32 %v3141_v39, %v17224_v13 }
 0x66f   :  { %v3173_v28 = vadd.f32 %v3172_v12, %v3154_v25 }
 0x671   :  { %v17216_v57 = vmax.f32 %v3173_v28, 0.0 }
 0x673   :  { %v3600_v1 = vpack.c.bf16 %v17216_v57, %v3296_v15  ;;  %v3179_v29 = vpop.f32.mrf.mxu1 }
 0x674   :  { %v3155_v44 = vpop.f32.mrf.mxu0  ;;  %v17243_v40 = vpop.f32.mrf.mxu2 }
 0x675   :  { %v17218_v41 = vpop.f32.mrf.mxu3  ;;  %3386 = vrot.lane.b32.xlu0 %v17190_v19, %s12781_s21  ;;  %3460 = vrot.lane.b32.xlu2 %v17211_v56, %s12787_s30  ;;  %v3156_v51 = vadd.f32 %v3155_v44, %v3137_v52  ;;  %v4064_v32 = vunpack.c.l.b16 %v3600_v1  ;;  %v4065_v7 = vunpack.c.h.b16 %v3600_v1 }
 0x676   :  { %3682 = vrot.lane.b32.xlu1 %v17190_v19, %s12783_s20 }
 0x677   :  { %v3175_v21 = vadd.f32 %v3174_v62, %v3156_v51 }
 0x679   :  { %v17230_v4 = vmax.f32 %v3175_v21, 0.0 }
 0x67b   :  { %v3602_v35 = vpack.c.bf16 %v17230_v4, %v17190_v19 }
 0x67c   :  { %v3158_v30 = vpop.f32.mrf.mxu0  ;;  %v3198_v25 = vpop.f32.mrf.mxu2 }
 0x67d   :  { %v17235_v10 = vpop.f32.mrf.mxu3  ;;  %3316 = vrot.lane.b32.xlu0 %v17211_v56, %s12780_s18  ;;  %3684 = vrot.lane.b32.xlu2 %v17211_v56, %s12783_s20  ;;  %v3159_v15 = vadd.f32 %v3158_v30, %v3140_v55  ;;  %v4068_v5 = vunpack.c.l.b16 %v3602_v35  ;;  %v4069_v14 = vunpack.c.h.b16 %v3602_v35  ;;  %v3199_v28 = vadd.f32 %v3198_v25, %v17224_v13 }
 0x67e   :  { %3610 = vrot.lane.b32.xlu1 %v17190_v19, %s12782_s29 }
 0x67f   :  { %v17245_v18 = vpack.c.b16 %v4068_v5, %v4064_v32  ;;  %v17247_v45 = vpack.c.b16 %v4069_v14, %v4065_v7  ;;  %v3178_v0 = vadd.f32 %v3177_v27, %v3159_v15 }
 0x681   :  { %20126 = vst [vmem:[#allocation102_spill] sm:$0xff] %v17245_v18  ;;  %v17250_v31 = vmax.f32 %v3178_v0, 0.0 }
 0x682   :  { %20127 = vst [vmem:[#allocation122_spill] sm:$0xff] %v17247_v45 }
 0x683   :  { %v3604_v39 = vpack.c.bf16 %v17250_v31, %v17211_v56 }
 0x684   :  { %v3160_v17 = vpop.f32.mrf.mxu0 }
 0x685   :  { %v17252_v12 = vpop.f32.mrf.mxu3  ;;  %3612 = vrot.lane.b32.xlu0 %v17211_v56, %s12782_s29  ;;  %3390 = vrot.lane.b32.xlu2 %v3308_v46, %s12781_s21  ;;  %v3161_v9 = vadd.f32 %v3160_v17, %v3142_v3  ;;  %v4072_v44 = vunpack.c.l.b16 %v3604_v39  ;;  %v4073_v2 = vunpack.c.h.b16 %v3604_v39 }
 0x686   :  { %3826 = vrot.lane.b32.xlu1 %v17190_v19, %s12785_s26 }
 0x687   :  { %v3180_v16 = vadd.f32 %v3179_v29, %v3161_v9  ;;  %v3192_v29 = vadd.f32 %v17203_v37, %v17181_v36  ;;  %v3267_v37 = vpop.f32.mrf.mxu2 }
 0x689   :  { %v17261_v6 = vmax.f32 %v3180_v16, 0.0  ;;  %v3211_v25 = vadd.f32 %v17218_v41, %v3192_v29 }
 0x68b   :  { %v3606_v62 = vpack.c.bf16 %v17261_v6, %v3308_v46 }
 0x68c   :  { %v3229_v16 = vpop.f32.mrf.mxu0 }
 0x68d   :  { %v3217_v52 = vpop.f32.mrf.mxu3  ;;  %3828 = vrot.lane.b32.xlu0 %v17211_v56, %s12785_s26  ;;  %3534 = vrot.lane.b32.xlu2 %v3308_v46, %s12786_s0  ;;  %v4076_v51 = vunpack.c.l.b16 %v3606_v62  ;;  %v4077_v21 = vunpack.c.h.b16 %v3606_v62  ;;  %v3230_v39 = vadd.f32 %v3229_v16, %v3211_v25 }
 0x68e   :  { %v17268_v19 = vadd.f32 %v3217_v52, %v3199_v28  ;;  %3388 = vrot.lane.b32.xlu1 %v17211_v56, %s12781_s21  ;;  %v3248_v52 = vpop.f32.mrf.mxu1 }
 0x68f   :  { %v17272_v1 = vpack.c.b16 %v4076_v51, %v4072_v44  ;;  %v17274_v47 = vpack.c.b16 %v4077_v21, %v4073_v2  ;;  %v3249_v41 = vadd.f32 %v3248_v52, %v17181_v36  ;;  %v17388_v51 = vmax.f32 %v3230_v39, 0.0 }
 0x691   :  { %20128 = vst [vmem:[#allocation101_spill] sm:$0xff] %v17272_v1  ;;  %v3268_v2 = vadd.f32 %v3267_v37, %v3249_v41  ;;  %v3194_v41 = vadd.f32 %v17214_v54, %v17184_v48 }
 0x692   :  { %20129 = vst [vmem:[#allocation62_spill] sm:$0xff] %v17274_v47 }
 0x693   :  { %20144 = vst [vmem:[#allocation77_spill] sm:$0xff] %v17388_v51 }
 0x695   :  { %3462 = vrot.lane.b32.xlu0 %v3308_v46, %s12787_s30  ;;  %3758 = vrot.lane.b32.xlu2 %v3308_v46, %s12784_s24 }
 0x696   :  { %3532 = vrot.lane.b32.xlu1 %v17211_v56, %s12786_s0 }
 0x69d   :  { %3686 = vrot.lane.b32.xlu0 %v3308_v46, %s12783_s20  ;;  %3320 = vrot.lane.b32.xlu2 %v17216_v57, %s12780_s18 }
 0x69e   :  { %3756 = vrot.lane.b32.xlu1 %v17211_v56, %s12784_s24 }
 0x6a5   :  { %3392 = vrot.lane.b32.xlu0 %v17216_v57, %s12781_s21  ;;  %3464 = vrot.lane.b32.xlu2 %v17216_v57, %s12787_s30 }
 0x6a6   :  { %3318 = vrot.lane.b32.xlu1 %v3308_v46, %s12780_s18 }
 0x6ad   :  { %3536 = vrot.lane.b32.xlu0 %v17216_v57, %s12786_s0  ;;  %3688 = vrot.lane.b32.xlu2 %v17216_v57, %s12783_s20 }
 0x6ae   :  { %3614 = vrot.lane.b32.xlu1 %v3308_v46, %s12782_s29 }
 0x6af   :  { %v17295_v55 = vpop.permute.xlu2 %3384 }
 0x6b5   :  { %3760 = vrot.lane.b32.xlu0 %v17216_v57, %s12784_s24  ;;  %3616 = vrot.lane.b32.xlu2 %v17216_v57, %s12782_s29 }
 0x6b6   :  { %3830 = vrot.lane.b32.xlu1 %v3308_v46, %s12785_s26 }
 0x6b7   :  { %v17302_v56 = vpop.permute.xlu2 %3314 }
 0x6bd   :  { %3322 = vrot.lane.b32.xlu0 %v17230_v4, %s12780_s18  ;;  %3832 = vrot.lane.b32.xlu2 %v17216_v57, %s12785_s26 }
 0x6be   :  { %3394 = vrot.lane.b32.xlu1 %v17230_v4, %s12781_s21 }
 0x6bf   :  { %v17310_v27 = vpop.permute.xlu2 %3530 }
 0x6c5   :  { %3466 = vrot.lane.b32.xlu0 %v17230_v4, %s12787_s30  ;;  %3396 = vrot.lane.b32.xlu2 %v17250_v31, %s12781_s21 }
 0x6c6   :  { %3538 = vrot.lane.b32.xlu1 %v17230_v4, %s12786_s0 }
 0x6c7   :  { %v17318_v35 = vpop.permute.xlu0 %3456  ;;  %v17320_v30 = vpop.permute.xlu2 %3754 }
 0x6c8   :  { %20130 = vst [vmem:[#allocation107_spill] sm:$0xff] %v17320_v30  ;;  %v17322_v32 = vpop.permute.xlu1 %3312 }
 0x6cd   :  { %3690 = vrot.lane.b32.xlu0 %v17230_v4, %s12783_s20  ;;  %3620 = vrot.lane.b32.xlu2 %v17250_v31, %s12782_s29 }
 0x6ce   :  { %3762 = vrot.lane.b32.xlu1 %v17230_v4, %s12784_s24 }
 0x6cf   :  { %v17330_v57 = vpop.permute.xlu0 %3680  ;;  %v17332_v15 = vpop.permute.xlu2 %3460 }
 0x6d0   :  { %20131 = vst [vmem:[#allocation104_spill] sm:$0xff] %v17330_v57  ;;  %v17334_v5 = vpop.permute.xlu1 %3528 }
 0x6d1   :  { %20132 = vst [vmem:[#allocation66_spill] sm:$0xff] %v17332_v15 }
 0x6d5   :  { %3618 = vrot.lane.b32.xlu0 %v17230_v4, %s12782_s29  ;;  %3836 = vrot.lane.b32.xlu2 %v17250_v31, %s12785_s26 }
 0x6d6   :  { %3324 = vrot.lane.b32.xlu1 %v17250_v31, %s12780_s18 }
 0x6d7   :  { %v17342_v7 = vpop.permute.xlu0 %3608  ;;  %v17344_v14 = vpop.permute.xlu2 %3684 }
 0x6d8   :  { %20133 = vst [vmem:[#allocation89_spill] sm:$0xff] %v17342_v7  ;;  %v17346_v22 = vpop.permute.xlu1 %3752 }
 0x6d9   :  { %20134 = vst [vmem:[#allocation110_spill] sm:$0xff] %v17344_v14 }
 0x6da   :  { %20135 = vst [vmem:[#allocation105_spill] sm:$0xff] %v17346_v22 }
 0x6dd   :  { %3834 = vrot.lane.b32.xlu0 %v17230_v4, %s12785_s26  ;;  %3326 = vrot.lane.b32.xlu2 %v17261_v6, %s12780_s18 }
 0x6de   :  { %3468 = vrot.lane.b32.xlu1 %v17250_v31, %s12787_s30 }
 0x6df   :  { %v17354_v0 = vpop.permute.xlu0 %3824  ;;  %v17356_v46 = vpop.permute.xlu2 %3390 }
 0x6e0   :  { %20136 = vst [vmem:[#allocation97_spill] sm:$0xff] %v17354_v0  ;;  %v17358_v3 = vpop.permute.xlu1 %3458 }
 0x6e1   :  { %20137 = vst [vmem:[#allocation67_spill] sm:$0xff] %v17356_v46 }
 0x6e2   :  { %20138 = vst [vmem:[#allocation106_spill] sm:$0xff] %v17358_v3 }
 0x6e5   :  { %3540 = vrot.lane.b32.xlu0 %v17250_v31, %s12786_s0  ;;  %3470 = vrot.lane.b32.xlu2 %v17261_v6, %s12787_s30 }
 0x6e6   :  { %3692 = vrot.lane.b32.xlu1 %v17250_v31, %s12783_s20 }
 0x6e7   :  { %v17366_v4 = vpop.permute.xlu0 %3386  ;;  %v17368_v17 = vpop.permute.xlu2 %3534 }
 0x6e8   :  { %20139 = vst [vmem:[#allocation113_spill] sm:$0xff] %v17368_v17  ;;  %v17370_v9 = vpop.permute.xlu1 %3682 }
 0x6e9   :  { %20140 = vst [vmem:[#allocation72_spill] sm:$0xff] %v17370_v9 }
 0x6ed   :  { %3764 = vrot.lane.b32.xlu0 %v17250_v31, %s12784_s24  ;;  %3694 = vrot.lane.b32.xlu2 %v17261_v6, %s12783_s20  ;;  %v3286_v31 = vpop.f32.mrf.mxu3 }
 0x6ee   :  { %3542 = vrot.lane.b32.xlu1 %v17261_v6, %s12786_s0  ;;  %v3287_v21 = vadd.f32 %v3286_v31, %v3268_v2  ;;  %v3231_v31 = vpop.f32.mrf.mxu0  ;;  %v3213_v2 = vadd.f32 %v17235_v10, %v3194_v41  ;;  %v3250_v41 = vpop.f32.mrf.mxu1 }
 0x6ef   :  { %v17381_v28 = vpop.permute.xlu0 %3316  ;;  %v17383_v62 = vpop.permute.xlu2 %3758 }
 0x6f0   :  { %20141 = vst [vmem:[#allocation73_spill] sm:$0xff] %v17381_v28  ;;  %v17385_v44 = vpop.permute.xlu1 %3610  ;;  %v17402_v36 = vmax.f32 %v3287_v21, 0.0  ;;  %v3232_v21 = vadd.f32 %v3231_v31, %v3213_v2  ;;  %v3269_v2 = vpop.f32.mrf.mxu2 }
 0x6f1   :  { %20142 = vst [vmem:[#allocation90_spill] sm:$0xff] %v17383_v62 }
 0x6f2   :  { %20143 = vst [vmem:[#allocation69_spill] sm:$0xff] %v17385_v44  ;;  %v17431_v54 = vmax.f32 %v3232_v21, 0.0  ;;  %v3251_v21 = vadd.f32 %v3250_v41, %v17184_v48  ;;  %v3197_v41 = vadd.f32 %v17243_v40, %v17199_v20 }
 0x6f3   :  { %20147 = vst [vmem:[#allocation59_spill] sm:$0xff] %v17402_v36 }
 0x6f4   :  { %20153 = vst [vmem:[#allocation65_spill] sm:$0xff] %v17431_v54  ;;  %v3270_v49 = vadd.f32 %v3269_v2, %v3251_v21  ;;  %v3216_v2 = vadd.f32 %v17252_v12, %v3197_v41 }
 0x6f5   :  { %3398 = vrot.lane.b32.xlu0 %v17261_v6, %s12781_s21  ;;  %3768 = vrot.lane.b32.xlu2 %v17388_v51, %s12784_s24  ;;  %v3288_v24 = vpop.f32.mrf.mxu3 }
 0x6f6   :  { %3766 = vrot.lane.b32.xlu1 %v17261_v6, %s12784_s24  ;;  %v3289_v60 = vadd.f32 %v3288_v24, %v3270_v49 }
 0x6f7   :  { %v17396_v29 = vpop.permute.xlu0 %3612  ;;  %v17398_v16 = vpop.permute.xlu2 %3320 }
 0x6f8   :  { %20145 = vst [vmem:[#allocation76_spill] sm:$0xff] %v17396_v29  ;;  %v17400_v25 = vpop.permute.xlu1 %3826  ;;  %v17458_v34 = vmax.f32 %v3289_v60, 0.0  ;;  %v3234_v60 = vpop.f32.mrf.mxu0 }
 0x6f9   :  { %20146 = vst [vmem:[#allocation112_spill] sm:$0xff] %v17400_v25  ;;  %v3235_v21 = vadd.f32 %v3234_v60, %v3216_v2  ;;  %v3253_v60 = vpop.f32.mrf.mxu1  ;;  %v3272_v50 = vpop.f32.mrf.mxu2 }
 0x6fa   :  { %20157 = vst [vmem:[#allocation125_spill] sm:$0xff] %v17458_v34 }
 0x6fb   :  { %v17487_v40 = vmax.f32 %v3235_v21, 0.0  ;;  %v3254_v21 = vadd.f32 %v3253_v60, %v17199_v20 }
 0x6fd   :  { %3622 = vrot.lane.b32.xlu0 %v17261_v6, %s12782_s29  ;;  %3408 = vrot.lane.b32.xlu2 %v17402_v36, %s12781_s21  ;;  %20161 = vst [vmem:[#allocation95_spill] sm:$0xff] %v17487_v40  ;;  %v3273_v46 = vadd.f32 %v3272_v50, %v3254_v21 }
 0x6fe   :  { %3400 = vrot.lane.b32.xlu1 %v17388_v51, %s12781_s21 }
 0x6ff   :  { %v17410_v39 = vpop.permute.xlu0 %3828  ;;  %v17412_v52 = vpop.permute.xlu2 %3464 }
 0x700   :  { %20148 = vst [vmem:[#allocation82_spill] sm:$0xff] %v17410_v39  ;;  %v17414_v37 = vpop.permute.xlu1 %3388 }
 0x701   :  { %20149 = vst [vmem:[#allocation30_spill] sm:$0xff] %v17412_v52 }
 0x702   :  { %20150 = vst [vmem:[#allocation80_spill] sm:$0xff] %v17414_v37 }
 0x705   :  { %3838 = vrot.lane.b32.xlu0 %v17261_v6, %s12785_s26  ;;  %3552 = vrot.lane.b32.xlu2 %v17402_v36, %s12786_s0 }
 0x706   :  { %3696 = vrot.lane.b32.xlu1 %v17388_v51, %s12783_s20 }
 0x707   :  { %v17425_v45 = vpop.permute.xlu0 %3462  ;;  %v17427_v47 = vpop.permute.xlu2 %3688 }
 0x708   :  { %20151 = vst [vmem:[#allocation74_spill] sm:$0xff] %v17425_v45  ;;  %v17429_v11 = vpop.permute.xlu1 %3532 }
 0x709   :  { %20152 = vst [vmem:[#allocation79_spill] sm:$0xff] %v17429_v11 }
 0x70d   :  { %3328 = vrot.lane.b32.xlu0 %v17388_v51, %s12780_s18  ;;  %3402 = vrot.lane.b32.xlu2 %v17431_v54, %s12781_s21 }
 0x70e   :  { %3624 = vrot.lane.b32.xlu1 %v17388_v51, %s12782_s29 }
 0x70f   :  { %v17439_v10 = vpop.permute.xlu0 %3686  ;;  %v17441_v6 = vpop.permute.xlu2 %3616 }
 0x710   :  { %20154 = vst [vmem:[#allocation70_spill] sm:$0xff] %v17439_v10  ;;  %v17443_v31 = vpop.permute.xlu1 %3756 }
 0x711   :  { %20155 = vst [vmem:[#allocation27_spill] sm:$0xff] %v17443_v31 }
 0x715   :  { %3770 = vrot.lane.b32.xlu0 %v17431_v54, %s12784_s24  ;;  %3698 = vrot.lane.b32.xlu2 %v17431_v54, %s12783_s20 }
 0x716   :  { %3840 = vrot.lane.b32.xlu1 %v17388_v51, %s12785_s26 }
 0x717   :  { %v17452_v33 = vpop.permute.xlu0 %3392  ;;  %v17454_v8 = vpop.permute.xlu2 %3832 }
 0x718   :  { %v17456_v58 = vpop.permute.xlu1 %3318 }
 0x719   :  { %20156 = vst [vmem:[#allocation124_spill] sm:$0xff] %v17456_v58 }
 0x71d   :  { %3410 = vrot.lane.b32.xlu0 %v17458_v34, %s12781_s21  ;;  %3626 = vrot.lane.b32.xlu2 %v17431_v54, %s12782_s29 }
 0x71e   :  { %3336 = vrot.lane.b32.xlu1 %v17402_v36, %s12780_s18 }
 0x71f   :  { %v17466_v48 = vpop.permute.xlu0 %3536  ;;  %v17468_v49 = vpop.permute.xlu2 %3396 }
 0x720   :  { %20158 = vst [vmem:[#allocation123_spill] sm:$0xff] %v17466_v48  ;;  %v17470_v24 = vpop.permute.xlu1 %3614 }
 0x721   :  { %20159 = vst [vmem:[#allocation78_spill] sm:$0xff] %v17470_v24  ;;  %v3291_v24 = vpop.f32.mrf.mxu3 }
 0x722   :  { %v3292_v62 = vadd.f32 %v3291_v24, %v3273_v46  ;;  %v3236_v24 = vpop.f32.mrf.mxu0 }
 0x724   :  { %v17514_v11 = vmax.f32 %v3292_v62, 0.0  ;;  %v3237_v62 = vadd.f32 %v3236_v24, %v17268_v19  ;;  %v3255_v24 = vpop.f32.mrf.mxu1 }
 0x725   :  { %3554 = vrot.lane.b32.xlu0 %v17458_v34, %s12786_s0  ;;  %3842 = vrot.lane.b32.xlu2 %v17431_v54, %s12785_s26 }
 0x726   :  { %3480 = vrot.lane.b32.xlu1 %v17402_v36, %s12787_s30  ;;  %20164 = vst [vmem:[#allocation85_spill] sm:$0xff] %v17514_v11  ;;  %v17541_v28 = vmax.f32 %v3237_v62, 0.0  ;;  %v3256_v62 = vadd.f32 %v3255_v24, %v17224_v13 }
 0x727   :  { %v17481_v18 = vpop.permute.xlu0 %3760  ;;  %v17483_v1 = vpop.permute.xlu2 %3620 }
 0x728   :  { %v17485_v26 = vpop.permute.xlu1 %3830  ;;  %20169 = vst [vmem:[#allocation60_spill] sm:$0xff] %v17541_v28 }
 0x729   :  { %20160 = vst [vmem:[#allocation117_spill] sm:$0xff] %v17485_v26  ;;  %v3274_v26 = vpop.f32.mrf.mxu2  ;;  %v3293_v10 = vpop.f32.mrf.mxu3 }
 0x72d   :  { %3404 = vrot.lane.b32.xlu0 %v17487_v40, %s12781_s21  ;;  %3338 = vrot.lane.b32.xlu2 %v17458_v34, %s12780_s18 }
 0x72e   :  { %3330 = vrot.lane.b32.xlu1 %v17431_v54, %s12780_s18 }
 0x72f   :  { %v17495_v12 = vpop.permute.xlu0 %3322  ;;  %v17497_v41 = vpop.permute.xlu2 %3836 }
 0x730   :  { %v17499_v2 = vpop.permute.xlu1 %3394 }
 0x735   :  { %3700 = vrot.lane.b32.xlu0 %v17487_v40, %s12783_s20  ;;  %3482 = vrot.lane.b32.xlu2 %v17458_v34, %s12787_s30 }
 0x736   :  { %3628 = vrot.lane.b32.xlu1 %v17487_v40, %s12782_s29 }
 0x737   :  { %v17508_v17 = vpop.permute.xlu0 %3466  ;;  %v17510_v31 = vpop.permute.xlu2 %3326 }
 0x738   :  { %20162 = vst [vmem:[#allocation11_spill] sm:$0xff] %v17508_v17  ;;  %v17512_v14 = vpop.permute.xlu1 %3538 }
 0x739   :  { %20163 = vst [vmem:[#allocation48_spill] sm:$0xff] %v17512_v14 }
 0x73d   :  { %3340 = vrot.lane.b32.xlu0 %v17514_v11, %s12780_s18  ;;  %3332 = vrot.lane.b32.xlu2 %v17487_v40, %s12780_s18 }
 0x73e   :  { %3844 = vrot.lane.b32.xlu1 %v17487_v40, %s12785_s26 }
 0x73f   :  { %v17522_v50 = vpop.permute.xlu0 %3690  ;;  %v17524_v20 = vpop.permute.xlu2 %3470 }
 0x740   :  { %20165 = vst [vmem:[#allocation86_spill] sm:$0xff] %v17524_v20  ;;  %v17526_v46 = vpop.permute.xlu1 %3762 }
 0x741   :  { %20166 = vst [vmem:[#allocation98_spill] sm:$0xff] %v17526_v46 }
 0x745   :  { %3484 = vrot.lane.b32.xlu0 %v17514_v11, %s12787_s30  ;;  %3772 = vrot.lane.b32.xlu2 %v17487_v40, %s12784_s24 }
 0x746   :  { %3412 = vrot.lane.b32.xlu1 %v17514_v11, %s12781_s21 }
 0x747   :  { %v17535_v60 = vpop.permute.xlu0 %3618  ;;  %v17537_v21 = vpop.permute.xlu2 %3694 }
 0x748   :  { %20167 = vst [vmem:[#allocation54_spill] sm:$0xff] %v17535_v60  ;;  %v17539_v15 = vpop.permute.xlu1 %3324 }
 0x749   :  { %20168 = vst [vmem:[#allocation53_spill] sm:$0xff] %v17537_v21  ;;  %v3275_v21 = vadd.f32 %v3274_v26, %v3256_v62 }
 0x74d   :  { %3334 = vrot.lane.b32.xlu0 %v17541_v28, %s12780_s18  ;;  %3556 = vrot.lane.b32.xlu2 %v17514_v11, %s12786_s0 }
 0x74e   :  { %3406 = vrot.lane.b32.xlu1 %v17541_v28, %s12781_s21 }
 0x74f   :  { %v17549_v25 = vpop.permute.xlu0 %3834  ;;  %v17551_v19 = vpop.permute.xlu2 %3768 }
 0x750   :  { %20170 = vst [vmem:[#allocation81_spill] sm:$0xff] %v17549_v25  ;;  %v17553_v42 = vpop.permute.xlu1 %3468  ;;  %v3294_v25 = vadd.f32 %v3293_v10, %v3275_v21 }
 0x751   :  { %20171 = vst [vmem:[#allocation91_spill] sm:$0xff] %v17551_v19 }
 0x752   :  { %20172 = vst [vmem:[#allocation46_spill] sm:$0xff] %v17553_v42  ;;  %v17566_v42 = vmax.f32 %v3294_v25, 0.0 }
 0x754   :  { %20175 = vst [vmem:[#allocation120_spill] sm:$0xff] %v17566_v42 }
 0x755   :  { %3774 = vrot.lane.b32.xlu0 %v17541_v28, %s12784_s24  ;;  %3630 = vrot.lane.b32.xlu2 %v17541_v28, %s12782_s29 }
 0x756   :  { %3702 = vrot.lane.b32.xlu1 %v17541_v28, %s12783_s20 }
 0x757   :  { %v17562_v44 = vpop.permute.xlu0 %3540  ;;  %v3409_v19 = vpop.permute.xlu2 %3408 }
 0x758   :  { %20173 = vst [vmem:[#allocation56_spill] sm:$0xff] %v17562_v44  ;;  %v17564_v60 = vpop.permute.xlu1 %3692 }
 0x759   :  { %20174 = vst [vmem:[#allocation45_spill] sm:$0xff] %v17564_v60 }
 0x75d   :  { %3558 = vrot.lane.b32.xlu0 %v17566_v42, %s12786_s0  ;;  %3846 = vrot.lane.b32.xlu2 %v17541_v28, %s12785_s26 }
 0x75e   :  { %3342 = vrot.lane.b32.xlu1 %v17566_v42, %s12780_s18 }
 0x75f   :  { %v17574_v26 = vpop.permute.xlu0 %3764  ;;  %v17576_v13 = vpop.permute.xlu2 %3552 }
 0x760   :  { %20176 = vst [vmem:[#allocation126_spill] sm:$0xff] %v17574_v26  ;;  %v17578_v10 = vpop.permute.xlu1 %3542 }
 0x761   :  { %20177 = vst [vmem:[#allocation87_spill] sm:$0xff] %v17576_v13 }
 0x762   :  { %20178 = vst [vmem:[#allocation75_spill] sm:$0xff] %v17578_v10 }
 0x765   :  { %3548 = vrot.lane.b32.xlu0 %v17487_v40, %s12786_s0  ;;  %3414 = vrot.lane.b32.xlu2 %v17566_v42, %s12781_s21 }
 0x766   :  { %3550 = vrot.lane.b32.xlu1 %v17541_v28, %s12786_s0 }
 0x767   :  { %v17586_v25 = vpop.permute.xlu0 %3398  ;;  %v3403_v21 = vpop.permute.xlu2 %3402 }
 0x768   :  { %20179 = vst [vmem:[#allocation88_spill] sm:$0xff] %v17586_v25  ;;  %v3421_v24 = vsel %vm20180_vm14, %v17499_v2, %v3403_v21  ;;  %v17591_v62 = vpop.permute.xlu1 %3766  ;;  %vm20214_vm14 = vmmov %vm20199_vm2 }
 0x769   :  { %20181 = vst [vmem:[#allocation94_spill] sm:$0xff] %v17591_v62  ;;  %v3438_v9 = vmul.f32 %v20004_v61, %v3421_v24 }
 0x76d   :  { %3776 = vrot.lane.b32.xlu0 %v17402_v36, %s12784_s24  ;;  %3780 = vrot.lane.b32.xlu2 %v17514_v11, %s12784_s24 }
 0x76e   :  { %3486 = vrot.lane.b32.xlu1 %v17566_v42, %s12787_s30 }
 0x76f   :  { %v17599_v10 = vpop.permute.xlu0 %3622  ;;  %v17601_v26 = vpop.permute.xlu2 %3698 }
 0x770   :  { %20182 = vst [vmem:[#allocation92_spill] sm:$0xff] %v17599_v10  ;;  %v3401_v25 = vpop.permute.xlu1 %3400 }
 0x771   :  { %20183 = vst [vmem:[#allocation7_spill] sm:$0xff] %v17601_v26  ;;  %v3416_v13 = vsel %vm20184_vm9, %v3401_v25, %v3409_v19  ;;  %v3420_v62 = vsel %vm20185_vm5, %v17452_v33, %v3401_v25  ;;  %vm20217_vm9 = vcmp.lt.s32.totalorder %v14646_v53, 15  ;;  %vm20218_vm5 = vcmp.lt.s32.totalorder %v14646_v53, 113 }
 0x772   :  { %v3434_v60 = vmul.f32 %v20004_v61, %v3420_v62  ;;  %v3435_v44 = vmul.f32 %v20015_v43, %v3416_v13 }
 0x774   :  { %v17610_v30 = vpack.c.bf16 %v3435_v44, %v3434_v60 }
 0x775   :  { %3478 = vrot.lane.b32.xlu0 %v17541_v28, %s12787_s30  ;;  %3546 = vrot.lane.b32.xlu2 %v17431_v54, %s12786_s0 }
 0x776   :  { %3544 = vrot.lane.b32.xlu1 %v17388_v51, %s12786_s0 }
 0x777   :  { %v17618_v10 = vpop.permute.xlu0 %3838  ;;  %v17620_v26 = vpop.permute.xlu2 %3626 }
 0x778   :  { %20186 = vst [vmem:[#allocation100_spill] sm:$0xff] %v17618_v10  ;;  %v17622_v25 = vpop.permute.xlu1 %3696 }
 0x779   :  { %20187 = vst [vmem:[#allocation96_spill] sm:$0xff] %v17620_v26  ;;  %v3428_v26 = vsel %vm20193_vm7, %v3409_v19, %v17295_v55  ;;  %v3425_v19 = vsel %vm20197_vm10, %v17366_v4, %v17499_v2  ;;  %vm20219_vm7 = vcmp.lt.s32.totalorder %v14646_v53, 127  ;;  %vm20223_vm10 = vcmp.lt.s32.totalorder %v14646_v53, 112 }
 0x77a   :  { %20188 = vst [vmem:[#allocation50_spill] sm:$0xff] %v17622_v25 }
 0x77d   :  { %3782 = vrot.lane.b32.xlu0 %v17566_v42, %s12784_s24  ;;  %3476 = vrot.lane.b32.xlu2 %v17487_v40, %s12787_s30 }
 0x77e   :  { %3778 = vrot.lane.b32.xlu1 %v17458_v34, %s12784_s24 }
 0x77f   :  { %v3329_v44 = vpop.permute.xlu0 %3328  ;;  %v17630_v60 = vpop.permute.xlu2 %3842 }
 0x780   :  { %20189 = vst [vmem:[#allocation49_spill] sm:$0xff] %v17630_v60  ;;  %v17632_v13 = vpop.permute.xlu1 %3624  ;;  %v3348_v2 = vsel %vm20201_vm6, %v17398_v16, %v3329_v44 }
 0x781   :  { %20190 = vst [vmem:[#allocation9_spill] sm:$0xff] %v17632_v13  ;;  %v3353_v13 = vsel %vm20195_vm12, %v17302_v56, %v17495_v12  ;;  %vm20221_vm12 = vcmp.lt.s32.totalorder %v14646_v53, 1 }
 0x785   :  { %3472 = vrot.lane.b32.xlu0 %v17388_v51, %s12787_s30  ;;  %3704 = vrot.lane.b32.xlu2 %v17402_v36, %s12783_s20  ;;  %v3424_v51 = vsel %vm20194_vm0, %v17295_v55, %v17452_v33  ;;  %v20198_v33 = vld [vmem:[#allocation10_spill] sm:$0xff]  ;;  %vm20220_vm0 = vcmp.lt.s32.totalorder %v14646_v53, 111 }
 0x786   :  { %3708 = vrot.lane.b32.xlu1 %v17514_v11, %s12783_s20  ;;  %v3433_v55 = vmul.f32 %v20198_v33, %v3424_v51  ;;  %v3437_v51 = vmul.f32 %v20198_v33, %v3425_v19  ;;  %vm20225_vm6 = vmmov %vm20220_vm0 }
 0x787   :  { %v17640_v62 = vpop.permute.xlu0 %3770  ;;  %v17642_v40 = vpop.permute.xlu2 %3338 }
 0x788   :  { %20191 = vst [vmem:[#allocation93_spill] sm:$0xff] %v17640_v62  ;;  %v17644_v28 = vpop.permute.xlu1 %3840  ;;  %v3432_v62 = vmul.f32 %v20003_v63, %v3428_v26  ;;  %v3357_v25 = vsel %vm20196_vm4, %v17642_v40, %v17302_v56  ;;  %v3352_v56 = vsel %vm20199_vm2, %v17322_v32, %v17398_v16  ;;  %v20200_v26 = vld [vmem:[#allocation15_spill] sm:$0xff]  ;;  %vm20222_vm4 = vmmov %vm20204_vm1 }
 0x789   :  { %20192 = vst [vmem:[#allocation121_spill] sm:$0xff] %v17644_v28  ;;  %v3365_v60 = vmul.f32 %v20200_v26, %v3353_v13  ;;  %v3364_v10 = vmul.f32 %v19986_v38, %v3357_v25  ;;  %v3361_v19 = vmul.f32 %v20200_v26, %v3352_v56  ;;  %vm20224_vm2 = vmmov %vm20219_vm7 }
 0x78a   :  { %v3448_v45 = vpack.c.bf16 %v3433_v55, %v3432_v62  ;;  %v3362_v62 = vmul.f32 %v19785_v23, %v3348_v2 }
 0x78c   :  { %v3945_v2 = vunpack.c.h.b16 %v3448_v45 }
 0x78d   :  { %3706 = vrot.lane.b32.xlu0 %v17458_v34, %s12783_s20  ;;  %3710 = vrot.lane.b32.xlu2 %v17566_v42, %s12783_s20 }
 0x78e   :  { %3474 = vrot.lane.b32.xlu1 %v17431_v54, %s12787_s30 }
 0x78f   :  { %v3411_v28 = vpop.permute.xlu0 %3410  ;;  %v17682_v46 = vpop.permute.xlu2 %3482 }
 0x790   :  { %20202 = vst [vmem:[#allocation61_spill] sm:$0xff] %v17682_v46  ;;  %v3417_v54 = vsel %vm20203_vm13, %v3403_v21, %v3411_v28  ;;  %v3429_v20 = vsel %vm20204_vm1, %v3411_v28, %v17366_v4  ;;  %v3337_v13 = vpop.permute.xlu1 %3336  ;;  %v3378_v28 = vpack.c.bf16 %v3365_v60, %v3364_v10  ;;  %vm20230_vm13 = vmmov %vm20205_vm3 }
 0x791   :  { %v3436_v16 = vmul.f32 %v20003_v63, %v3429_v20  ;;  %v3439_v25 = vmul.f32 %v20015_v43, %v3417_v54  ;;  %v3344_v46 = vsel %vm20205_vm3, %v3329_v44, %v3337_v13  ;;  %v3356_v21 = vsel %vm20206_vm8, %v3337_v13, %v17322_v32  ;;  %vm20234_vm1 = vmmov %vm20217_vm9 }
 0x792   :  { %v3363_v4 = vmul.f32 %v19997_v59, %v3344_v46  ;;  %v3360_v20 = vmul.f32 %v19986_v38, %v3356_v21  ;;  %v3944_v44 = vunpack.c.l.b16 %v3448_v45  ;;  %v3946_v46 = vunpack.c.l.b16 %v17610_v30  ;;  %vm20239_vm8 = vmmov %vm20205_vm3 }
 0x793   :  { %v3450_v55 = vpack.c.bf16 %v3437_v51, %v3436_v16  ;;  %v3451_v24 = vpack.c.bf16 %v3439_v25, %v3438_v9  ;;  %v3908_v25 = vunpack.c.l.b16 %v3378_v28  ;;  %v3909_v21 = vunpack.c.h.b16 %v3378_v28 }
 0x794   :  { %v3377_v63 = vpack.c.bf16 %v3363_v4, %v3362_v62  ;;  %v3376_v54 = vpack.c.bf16 %v3361_v19, %v3360_v20 }
 0x795   :  { %3632 = vrot.lane.b32.xlu0 %v17402_v36, %s12782_s29  ;;  %3638 = vrot.lane.b32.xlu2 %v17566_v42, %s12782_s29  ;;  %v3948_v56 = vunpack.c.l.b16 %v3450_v55  ;;  %v3949_v32 = vunpack.c.h.b16 %v3450_v55  ;;  %v3950_v9 = vunpack.c.l.b16 %v3451_v24  ;;  %v3951_v10 = vunpack.c.h.b16 %v3451_v24 }
 0x796   :  { %3636 = vrot.lane.b32.xlu1 %v17514_v11, %s12782_s29  ;;  %v3904_v16 = vunpack.c.l.b16 %v3376_v54  ;;  %v3905_v19 = vunpack.c.h.b16 %v3376_v54  ;;  %v3947_v55 = vunpack.c.h.b16 %v17610_v30 }
 0x797   :  { %v17709_v60 = vpop.permute.xlu0 %3554  ;;  %v17711_v51 = vpop.permute.xlu2 %3332  ;;  %v17713_v13 = vpack.c.b16 %v3948_v56, %v3944_v44  ;;  %v17717_v45 = vpack.c.b16 %v3949_v32, %v3945_v2  ;;  %v17719_v4 = vpack.c.b16 %v3950_v9, %v3946_v46  ;;  %v4264_v46 = vld [vmem:[%s19135_s9] sm:$0xff] }
 0x798   :  { %v17715_v62 = vpop.permute.xlu1 %3480  ;;  %v17722_v20 = vpack.c.b16 %v3908_v25, %v3904_v16  ;;  %v17724_v24 = vpack.c.b16 %v3909_v21, %v3905_v19  ;;  %v17726_v38 = vpack.c.b16 %v3951_v10, %v3947_v55  ;;  %v3907_v16 = vunpack.c.h.b16 %v3377_v63 }
 0x799   :  { %20207 = vst [vmem:[#allocation43_spill] sm:$0xff] %v17713_v13 }
 0x79a   :  { %20208 = vst [vmem:[#allocation57_spill] sm:$0xff] %v17717_v45  ;;  %v20245_v45 = vld [vmem:[#allocation74_spill] sm:$0xff] }
 0x79b   :  { %20209 = vst [vmem:[#allocation84_spill] sm:$0xff] %v17719_v4  ;;  %v20231_v4 = vld [vmem:[#allocation21_spill] sm:$0xff] }
 0x79c   :  { %20210 = vst [vmem:[#allocation118_spill] sm:$0xff] %v17722_v20 }
 0x79d   :  { %20211 = vst [vmem:[#allocation47_spill] sm:$0xff] %v17724_v24  ;;  %3854 = vrot.lane.b32.xlu0 %v17566_v42, %s12785_s26  ;;  %3852 = vrot.lane.b32.xlu2 %v17514_v11, %s12785_s26  ;;  %v20229_v11 = vld [vmem:[#allocation36_spill] sm:$0xff] }
 0x79e   :  { %20212 = vst [vmem:[#allocation58_spill] sm:$0xff] %v17726_v38  ;;  %3634 = vrot.lane.b32.xlu1 %v17458_v34, %s12782_s29  ;;  %v3350_v38 = vsel %vm20230_vm13, %v17539_v15, %v17711_v51 }
 0x79f   :  { %v17734_v28 = vpop.permute.xlu0 %3404  ;;  %v17736_v54 = vpop.permute.xlu2 %3772 }
 0x7a0   :  { %v3331_v30 = vpop.permute.xlu1 %3330 }
 0x7a1   :  { %v3345_v44 = vsel %vm20213_vm11, %v3331_v30, %v17642_v40  ;;  %v3349_v56 = vsel %vm20214_vm14, %v17495_v12, %v3331_v30  ;;  %v3906_v40 = vunpack.c.l.b16 %v3377_v63  ;;  %v3496_v63 = vsel %vm20217_vm9, %v17318_v35, %v17412_v52  ;;  %vm20240_vm11 = vmmov %vm20221_vm12 }
 0x7a2   :  { %v3366_v2 = vmul.f32 %v19785_v23, %v3349_v56  ;;  %v3367_v32 = vmul.f32 %v19997_v59, %v3345_v44  ;;  %v4267_v44 = vld [vmem:[%s19135_s9 + $0x18] sm:$0xff]  ;;  %v4266_v56 = vld [vmem:[%s19135_s9 + $0x10] sm:$0xff]  ;;  %vm20243_vm14 = vmmov %vm20218_vm5 }
 0x7a3   :  { %vm20246_vm9 = vmmov %vm20234_vm1 }
 0x7a4   :  { %v3379_v9 = vpack.c.bf16 %v3367_v32, %v3366_v2  ;;  %v3720_v2 = vsel %vm20218_vm5, %v17330_v57, %v17427_v47  ;;  %v3648_v32 = vsel %vm20219_vm7, %v17342_v7, %v17441_v6  ;;  %v20244_v57 = vld [vmem:[#allocation86_spill] sm:$0xff]  ;;  %vm20247_vm5 = vmmov %vm20220_vm0 }
 0x7a5   :  { %4270 = vperm.xlu0 %12767, %v4264_v46   ;;  %3850 = vrot.lane.b32.xlu2 %v17458_v34, %s12785_s26  ;;  %v4265_v46 = vld [vmem:[%s19135_s9 + $0x8] sm:$0xff]  ;;  %v17815_v42 = vmul.f32 %v20229_v11, %v3648_v32  ;;  %v3499_v13 = vsel %vm20246_vm9, %v20245_v45, %v20244_v57  ;;  %vm20250_vm7 = vmmov %vm20223_vm10 }
 0x7a6   :  { %3848 = vrot.lane.b32.xlu1 %v17402_v36, %s12785_s26  ;;  %v3910_v10 = vunpack.c.l.b16 %v3379_v9  ;;  %v3911_v12 = vunpack.c.h.b16 %v3379_v9  ;;  %v3864_v9 = vsel %vm20220_vm0, %v17354_v0, %v17454_v8  ;;  %v20228_v0 = vld [vmem:[#allocation40_spill] sm:$0xff]  ;;  %vm20253_vm0 = vmmov %vm20224_vm2 }
 0x7a7   :  { %v17753_v25 = vpop.permute.xlu0 %3700  ;;  %v17755_v19 = vpop.permute.xlu2 %3556  ;;  %v17812_v34 = vmul.f32 %v20228_v0, %v3720_v2  ;;  %v3872_v7 = vmul.f32 %v20231_v4, %v3864_v9 }
 0x7a8   :  { %v17757_v21 = vpop.permute.xlu1 %3628  ;;  %v17759_v55 = vpack.c.b16 %v3910_v10, %v3906_v40  ;;  %v17761_v30 = vpack.c.b16 %v3911_v12, %v3907_v16  ;;  %v3568_v40 = vsel %vm20221_vm12, %v17334_v5, %v17466_v48  ;;  %v3426_v10 = vsel %vm20222_vm4, %v17414_v37, %v17468_v49  ;;  %v20251_v48 = vld [vmem:[#allocation54_spill] sm:$0xff]  ;;  %vm20255_vm12 = vmmov %vm20250_vm7 }
 0x7a9   :  { %v3792_v16 = vsel %vm20223_vm10, %v17346_v22, %v17481_v18  ;;  %v3650_v12 = vsel %vm20224_vm2, %v17396_v29, %v17483_v1  ;;  %v20236_v29 = vld [vmem:[#allocation38_spill] sm:$0xff]  ;;  %vm20260_vm4 = vmmov %vm20243_vm14 }
 0x7aa   :  { %20215 = vst [vmem:[#allocation119_spill] sm:$0xff] %v17759_v55  ;;  %v20226_v55 = vld [vmem:[#allocation42_spill] sm:$0xff]  ;;  %v3800_v24 = vmul.f32 %v20236_v29, %v3792_v16  ;;  %v3569_v16 = vsel %vm20240_vm11, %v17310_v27, %v17512_v14  ;;  %vm20262_vm10 = vmmov %vm20247_vm5 }
 0x7ab   :  { %20216 = vst [vmem:[#allocation55_spill] sm:$0xff] %v17761_v30  ;;  %v3866_v30 = vsel %vm20225_vm6, %v17410_v39, %v17497_v41  ;;  %v17809_v36 = vmul.f32 %v20226_v55, %v3496_v63  ;;  %v20232_v39 = vld [vmem:[#allocation34_spill] sm:$0xff]  ;;  %v3497_v63 = vsel %vm20234_vm1, %v17358_v3, %v17508_v17  ;;  %v3355_v17 = vsel %vm20239_vm8, %v17456_v58, %v17510_v31  ;;  %v20254_v58 = vld [vmem:[#allocation91_spill] sm:$0xff]  ;;  %vm20266_vm2 = vmmov %vm20247_vm5 }
 0x7ac   :  { %v3880_v9 = vmul.f32 %v20231_v4, %v3866_v30  ;;  %v17858_v20 = vmul.f32 %v20226_v55, %v3497_v63  ;;  %v20248_v22 = vld [vmem:[#allocation98_spill] sm:$0xff]  ;;  %v3788_v57 = vsel %vm20255_vm12, %v17481_v18, %v20254_v58  ;;  %v17887_v45 = vmul.f32 %v20200_v26, %v3355_v17  ;;  %v20264_v17 = vld [vmem:[#allocation100_spill] sm:$0xff]  ;;  %vm20271_vm6 = vmmov %vm20266_vm2 }
 0x7ad   :  { %4285 = vperm.xlu0 %12767, %v4267_v44   ;;  %4280 = vperm.xlu2 %12769, %v4266_v56   ;;  %20227 = vst [vmem:[#allocation83_spill] sm:$0xff] %v17809_v36  ;;  %v17823_v44 = vmul.f32 %v20232_v39, %v3568_v40  ;;  %v17826_v56 = vmul.f32 %v20198_v33, %v3426_v10  ;;  %v20267_v58 = vld [vmem:[#allocation14_spill] sm:$0xff]  ;;  %vm20273_vm13 = vmmov %vm20266_vm2  ;;  %vm20274_vm1 = vcmp.lt.s32.totalorder %v14646_v53, 16 }
 0x7ae   :  { %4275 = vperm.xlu1 %12768, %v4265_v46   ;;  %v17838_v46 = vmul.f32 %v20229_v11, %v3650_v12  ;;  %v3370_v12 = vmul.f32 %v19785_v23, %v3350_v38  ;;  %20241 = vst [vmem:[#allocation63_spill] sm:$0xff] %v17858_v20  ;;  %v20278_v36 = vld [vmem:[#allocation46_spill] sm:$0xff]  ;;  %vm20280_vm8 = vmmov %vm20246_vm9  ;;  %v20287_v23 = vld [vmem:[#allocation79_spill] sm:$0xff]  ;;  %vm20288_vm9 = vcmp.lt.s32.totalorder %v14646_v53, 1 }
 0x7af   :  { %20233 = vst [vmem:[#allocation103_spill] sm:$0xff] %v17826_v56  ;;  %v17832_v2 = vpop.permute.xlu0 %3340  ;;  %v17834_v32 = vpop.permute.xlu2 %3630  ;;  %v20252_v56 = vld [vmem:[#allocation69_spill] sm:$0xff]  ;;  %v20279_v3 = vld [vmem:[#allocation66_spill] sm:$0xff]  ;;  %vm20281_vm11 = vmmov %vm20266_vm2 }
 0x7b0   :  { %20235 = vst [vmem:[#allocation51_spill] sm:$0xff] %v17832_v2  ;;  %v3346_v40 = vsel %vm20205_vm3, %v17711_v51, %v17832_v2  ;;  %v17845_v10 = vpop.permute.xlu1 %3844  ;;  %v20242_v51 = vld [vmem:[#allocation72_spill] sm:$0xff]  ;;  %v20261_v2 = vld [vmem:[#allocation121_spill] sm:$0xff]  ;;  %vm20302_vm12 = vmmov %vm20260_vm4 }
 0x7b1   :  { %20237 = vst [vmem:[#allocation68_spill] sm:$0xff] %v17838_v46  ;;  %v3371_v30 = vmul.f32 %v19997_v59, %v3346_v40  ;;  %v3721_v52 = vsel %vm20243_vm14, %v20242_v51, %v17522_v50  ;;  %v3862_v38 = vsel %vm20247_vm5, %v17497_v41, %v17845_v10  ;;  %v20249_v40 = vld [vmem:[#allocation107_spill] sm:$0xff]  ;;  %v3649_v51 = vsel %vm20253_vm0, %v20252_v56, %v20251_v48  ;;  %vm20284_vm14 = vmmov %vm20274_vm1 }
 0x7b2   :  { %20238 = vst [vmem:[#allocation71_spill] sm:$0xff] %v17845_v10  ;;  %v3793_v63 = vsel %vm20250_vm7, %v20249_v40, %v20248_v22  ;;  %v17890_v41 = vmul.f32 %v20232_v39, %v3569_v16  ;;  %v20258_v10 = vld [vmem:[#allocation53_spill] sm:$0xff]  ;;  %v20259_v40 = vld [vmem:[#allocation70_spill] sm:$0xff]  ;;  %v3860_v56 = vsel %vm20262_vm10, %v17454_v8, %v20261_v2  ;;  %v17901_v18 = vmul.f32 %v20228_v0, %v3721_v52  ;;  %v20268_v8 = vld [vmem:[#allocation39_spill] sm:$0xff] }
 0x7b3   :  { %v17884_v14 = vpack.c.bf16 %v3371_v30, %v3370_v12  ;;  %20257 = vst [vmem:[#allocation44_spill] sm:$0xff] %v17887_v45  ;;  %v3723_v37 = vsel %vm20260_vm4, %v20259_v40, %v20258_v10  ;;  %v17904_v12 = vmul.f32 %v20226_v55, %v3499_v13  ;;  %v20265_v30 = vld [vmem:[#allocation117_spill] sm:$0xff]  ;;  %v3881_v45 = vmul.f32 %v20267_v58, %v3862_v38  ;;  %vm20291_vm5 = vmmov %vm20260_vm4 }
 0x7b4   :  { %v3867_v16 = vsel %vm20266_vm2, %v20265_v30, %v20264_v17  ;;  %v17912_v40 = vmul.f32 %v20236_v29, %v3793_v63  ;;  %v17915_v20 = vmul.f32 %v20229_v11, %v3649_v51  ;;  %v3801_v2 = vmul.f32 %v20268_v8, %v3788_v57  ;;  %v20269_v52 = vld [vmem:[#allocation49_spill] sm:$0xff]  ;;  %v20272_v30 = vld [vmem:[#allocation112_spill] sm:$0xff]  ;;  %vm20297_vm7 = vmmov %vm20260_vm4 }
 0x7b5   :  { %20256 = vst [vmem:[#allocation64_spill] sm:$0xff] %v17884_v14  ;;  %v20270_v14 = vld [vmem:[#allocation81_spill] sm:$0xff]  ;;  %v3873_v63 = vmul.f32 %v20267_v58, %v3860_v56  ;;  %v3422_v57 = vsel %vm20274_vm1, %v17468_v49, %v17734_v28  ;;  %v3884_v56 = vmul.f32 %v20231_v4, %v3867_v16  ;;  %v17954_v59 = vpack.c.bf16 %v3881_v45, %v3880_v9  ;;  %vm20299_vm0 = vmmov %vm20288_vm9 }
 0x7b6   :  { %20263 = vst [vmem:[#allocation99_spill] sm:$0xff] %v17904_v12  ;;  %v3861_v13 = vsel %vm20271_vm6, %v20270_v14, %v20269_v52  ;;  %v17923_v12 = vmul.f32 %v20228_v0, %v3723_v37  ;;  %v3865_v38 = vsel %vm20273_vm13, %v20272_v30, %v20270_v14  ;;  %v20277_v52 = vld [vmem:[#allocation73_spill] sm:$0xff]  ;;  %v3498_v14 = vsel %vm20280_vm8, %v20279_v3, %v20278_v36  ;;  %vm20311_vm10 = vmmov %vm20299_vm0 }
 0x7b7   :  { %v17934_v51 = vpop.permute.xlu0 %3484  ;;  %v17936_v46 = vpop.permute.xlu2 %3846  ;;  %v3354_v37 = vsel %vm20205_vm3, %v20277_v52, %v17539_v15  ;;  %20283 = vst [vmem:[#allocation109_spill] sm:$0xff] %v17954_v59  ;;  %v3876_v16 = vmul.f32 %v20231_v4, %v3865_v38  ;;  %v17962_v52 = vpack.c.bf16 %v3801_v2, %v3800_v24  ;;  %v3442_v3 = vmul.f32 %v20004_v61, %v3422_v57  ;;  %v20289_v9 = vld [vmem:[#allocation45_spill] sm:$0xff]  ;;  %v20298_v57 = vld [vmem:[#allocation87_spill] sm:$0xff]  ;;  %vm20317_vm13 = vmmov %vm20274_vm1 }
 0x7b8   :  { %20275 = vst [vmem:[#allocation115_spill] sm:$0xff] %v17934_v51  ;;  %v3863_v49 = vsel %vm20281_vm11, %v20264_v17, %v17936_v46  ;;  %v17951_v30 = vpop.permute.xlu1 %3412  ;;  %v3877_v51 = vmul.f32 %v20267_v58, %v3861_v13  ;;  %v17979_v4 = vmul.f32 %v20200_v26, %v3354_v37  ;;  %v17982_v24 = vmul.f32 %v20226_v55, %v3498_v14  ;;  %vm20324_vm11 = vmmov %vm20274_vm1 }
 0x7b9   :  { %20276 = vst [vmem:[#allocation52_spill] sm:$0xff] %v17936_v46  ;;  %v3885_v15 = vmul.f32 %v20267_v58, %v3863_v49  ;;  %v3418_v36 = vsel %vm20284_vm14, %v17734_v28, %v17951_v30  ;;  %v20286_v46 = vld [vmem:[#allocation56_spill] sm:$0xff]  ;;  %v20290_v58 = vld [vmem:[#allocation110_spill] sm:$0xff]  ;;  %v17974_v49 = vpack.c.bf16 %v3873_v63, %v3872_v7  ;;  %v3572_v7 = vsel %vm20299_vm0, %v20298_v57, %v17334_v5  ;;  %v20309_v57 = vld [vmem:[#allocation75_spill] sm:$0xff] }
 0x7ba   :  { %20282 = vst [vmem:[#allocation108_spill] sm:$0xff] %v17951_v30  ;;  %v3443_v17 = vmul.f32 %v20015_v43, %v3418_v36  ;;  %v3570_v45 = vsel %vm20288_vm9, %v20287_v23, %v20286_v46  ;;  %v3722_v13 = vsel %vm20291_vm5, %v20290_v58, %v20289_v9  ;;  %v20296_v36 = vld [vmem:[#allocation50_spill] sm:$0xff]  ;;  %v17994_v63 = vpack.c.bf16 %v3877_v51, %v3876_v16  ;;  %v20303_v51 = vld [vmem:[#allocation41_spill] sm:$0xff]  ;;  %vm20330_vm5 = vmmov %vm20299_vm0 }
 0x7bb   :  { %20285 = vst [vmem:[#allocation114_spill] sm:$0xff] %v17962_v52  ;;  %v17976_v28 = vpack.c.bf16 %v3885_v15, %v3884_v56  ;;  %v3716_v2 = vsel %vm20297_vm7, %v17427_v47, %v20296_v36  ;;  %v4232_v26 = vunpack.c.l.b16 %v17954_v59  ;;  %v17999_v55 = vmul.f32 %v20232_v39, %v3570_v45  ;;  %v20301_v56 = vld [vmem:[#allocation7_spill] sm:$0xff]  ;;  %v20315_v59 = vld [vmem:[#allocation90_spill] sm:$0xff] }
 0x7bc   :  { %20292 = vst [vmem:[#allocation111_spill] sm:$0xff] %v17974_v49  ;;  %v17988_v38 = vpack.c.bf16 %v3443_v17, %v3442_v3  ;;  %v18002_v14 = vmul.f32 %v20228_v0, %v3722_v13  ;;  %v3717_v5 = vsel %vm20302_vm12, %v17522_v50, %v20301_v56  ;;  %v3729_v15 = vmul.f32 %v20303_v51, %v3716_v2  ;;  %v20305_v0 = vld [vmem:[#allocation126_spill] sm:$0xff]  ;;  %v20306_v13 = vld [vmem:[#allocation27_spill] sm:$0xff]  ;;  %v20308_v3 = vld [vmem:[#allocation33_spill] sm:$0xff] }
 0x7bd   :  { %20293 = vst [vmem:[#allocation116_spill] sm:$0xff] %v17976_v28  ;;  %v4236_v37 = vunpack.c.l.b16 %v17976_v28  ;;  %v4224_v58 = vunpack.c.l.b16 %v17974_v49  ;;  %vm20307_vm4 = vcmp.lt.s32.totalorder %v14646_v53, 112  ;;  %v3576_v36 = vmul.f32 %v20308_v3, %v3572_v7  ;;  %v20312_v2 = vld [vmem:[#allocation96_spill] sm:$0xff] }
 0x7be   :  { %20294 = vst [vmem:[#allocation26_spill] sm:$0xff] %v17979_v4  ;;  %v3794_v47 = vsel %vm20307_vm4, %v20306_v13, %v20305_v0  ;;  %v20310_v4 = vld [vmem:[#allocation113_spill] sm:$0xff]  ;;  %vm20313_vm2 = vcmp.lt.s32.totalorder %v14646_v53, 127  ;;  %vm20316_vm6 = vmmov %vm20307_vm4  ;;  %v20318_v13 = vld [vmem:[#allocation88_spill] sm:$0xff]  ;;  %v4228_v49 = vunpack.c.l.b16 %v17994_v63  ;;  %v3733_v30 = vmul.f32 %v20303_v51, %v3717_v5 }
 0x7bf   :  { %20295 = vst [vmem:[#allocation10_spill] sm:$0xff] %v17982_v24  ;;  %v18011_v16 = vpop.permute.xlu0 %3334  ;;  %v18013_v17 = vpop.permute.xlu2 %3414  ;;  %v4244_v45 = vpack.c.b16 %v4236_v37, %v4232_v26  ;;  %v3571_v50 = vsel %vm20311_vm10, %v20310_v4, %v20309_v57  ;;  %v3645_v56 = vsel %vm20313_vm2, %v20251_v48, %v20312_v2  ;;  %v20314_v37 = vld [vmem:[#allocation94_spill] sm:$0xff]  ;;  %vm20319_vm3 = vmmov %vm20307_vm4  ;;  %v20320_v57 = vld [vmem:[#allocation37_spill] sm:$0xff]  ;;  %v18049_v46 = vpack.c.bf16 %v3729_v15, %v17812_v34 }
 0x7c0   :  { %20300 = vst [vmem:[#allocation15_spill] sm:$0xff] %v17994_v63  ;;  %v3407_v26 = vpop.permute.xlu1 %3406  ;;  %v3795_v28 = vsel %vm20316_vm6, %v20315_v59, %v20314_v37  ;;  %v3790_v48 = vsel %vm20319_vm3, %v20305_v0, %v17736_v54  ;;  %vm20322_vm8 = vmmov %vm20319_vm3  ;;  %v4240_v5 = vpack.c.b16 %v4228_v49, %v4224_v58  ;;  %v3808_v63 = vmul.f32 %v20236_v29, %v3794_v47  ;;  %v20325_v15 = vld [vmem:[#allocation92_spill] sm:$0xff]  ;;  %v20326_v0 = vld [vmem:[#allocation78_spill] sm:$0xff] }
 0x7c1   :  { %20304 = vst [vmem:[#allocation42_spill] sm:$0xff] %v18013_v17  ;;  %v3419_v7 = vsel %vm20317_vm13, %v3407_v26, %v18013_v17  ;;  %v3423_v24 = vsel %vm20274_vm1, %v20318_v13, %v3407_v26  ;;  %4368 = vmatpush.bf16.msrb.mxu2 %v4244_v45  ;;  %v3661_v17 = vmul.f32 %v20320_v57, %v3645_v56  ;;  %v20321_v26 = vld [vmem:[#allocation93_spill] sm:$0xff]  ;;  %vm20327_vm14 = vmmov %vm20313_vm2  ;;  %vm20336_vm10 = vcmp.lt.s32.totalorder %v14646_v53, 15 }
 0x7c2   :  { %v3446_v2 = vmul.f32 %v20004_v61, %v3423_v24  ;;  %v3447_v59 = vmul.f32 %v20015_v43, %v3419_v7  ;;  %v3789_v45 = vsel %vm20322_vm8, %v20248_v22, %v20321_v26  ;;  %v18057_v52 = vpack.c.bf16 %v17823_v44, %v3576_v36  ;;  %v20323_v24 = vld [vmem:[#allocation67_spill] sm:$0xff]  ;;  %vm20329_vm9 = vmmov %vm20313_vm2 }
 0x7c3   :  { %v18060_v61 = vmul.f32 %v20232_v39, %v3571_v50  ;;  %v3427_v34 = vsel %vm20324_vm11, %v20323_v24, %v20318_v13  ;;  %v3812_v56 = vmul.f32 %v20236_v29, %v3795_v28  ;;  %v3651_v22 = vsel %vm20327_vm14, %v20326_v0, %v20325_v15  ;;  %v20328_v29 = vld [vmem:[#allocation9_spill] sm:$0xff]  ;;  %vm20331_vm7 = vmmov %vm20319_vm3 }
 0x7c4   :  { %v3455_v43 = vpack.c.bf16 %v3447_v59, %v3446_v2  ;;  %v3809_v58 = vmul.f32 %v20268_v8, %v3790_v48  ;;  %v3805_v44 = vmul.f32 %v20268_v8, %v3789_v45  ;;  %v3954_v39 = vunpack.c.l.b16 %v17988_v38  ;;  %vm20333_vm4 = vmmov %vm20302_vm12 }
 0x7c5   :  { %4369 = vmatpush.bf16.msrb.mxu2 %v4240_v5  ;;  %v18075_v36 = vpack.c.bf16 %v3733_v30, %v17901_v18  ;;  %v18078_v47 = vpack.c.bf16 %v3661_v17, %v17915_v20  ;;  %v3644_v28 = vsel %vm20329_vm9, %v17441_v6, %v20328_v29  ;;  %v4144_v50 = vunpack.c.l.b16 %v18049_v46  ;;  %vm20338_vm6 = vmmov %vm20329_vm9  ;;  %v20385_v29 = vld [vmem:[#allocation116_spill] sm:$0xff] }
 0x7c6   :  { %v3958_v59 = vunpack.c.l.b16 %v3455_v43  ;;  %v3959_v49 = vunpack.c.h.b16 %v3455_v43  ;;  %v3573_v2 = vsel %vm20330_vm5, %v17709_v60, %v17310_v27  ;;  %v3955_v6 = vunpack.c.h.b16 %v17988_v38  ;;  %vm20339_vm13 = vmmov %vm20299_vm0 }
 0x7c7   :  { %v18084_v13 = vpop.permute.xlu0 %3774  ;;  %v18100_v17 = vpack.c.bf16 %v3809_v58, %v3808_v63  ;;  %v3574_v7 = vsel %vm20299_vm0, %v17755_v19, %v20287_v23  ;;  %v3657_v48 = vmul.f32 %v20320_v57, %v3644_v28  ;;  %v18113_v45 = vpack.c.bf16 %v3805_v44, %v17912_v40  ;;  %v18119_v63 = vpop.permute.xlu2 %3780  ;;  %vm20340_vm1 = vmmov %vm20338_vm6 }
 0x7c8   :  { %v3791_v20 = vsel %vm20331_vm7, %v20314_v37, %v18084_v13  ;;  %v18095_v18 = vpop.permute.xlu1 %3702  ;;  %v18097_v30 = vpack.c.b16 %v3958_v59, %v3954_v39  ;;  %v3718_v38 = vsel %vm20333_vm4, %v20289_v9, %v17753_v25  ;;  %v18121_v23 = vpack.c.b16 %v3959_v49, %v3955_v6  ;;  %vm20349_vm8 = vmmov %vm20336_vm10 }
 0x7c9   :  { %v3813_v27 = vmul.f32 %v20268_v8, %v3791_v20  ;;  %v3719_v37 = vsel %vm20302_vm12, %v20258_v10, %v18095_v18  ;;  %v18129_v40 = vmul.f32 %v20198_v33, %v3427_v34  ;;  %v3580_v58 = vmul.f32 %v20308_v3, %v3573_v2  ;;  %vm20352_vm11 = vmmov %vm20299_vm0  ;;  %v20358_v10 = vld [vmem:[#allocation25_spill] sm:$0xff] }
 0x7ca   :  { %20332 = vst [vmem:[#allocation40_spill] sm:$0xff] %v18097_v30  ;;  %v3741_v5 = vmul.f32 %v20303_v51, %v3719_v37  ;;  %v3584_v44 = vmul.f32 %v20308_v3, %v3574_v7  ;;  %v4148_v9 = vunpack.c.l.b16 %v18075_v36  ;;  %v3668_v39 = vmul.f32 %v20229_v11, %v3651_v22  ;;  %v20343_v37 = vld [vmem:[#allocation31_spill] sm:$0xff]  ;;  %vm20354_vm14 = vmmov %vm20299_vm0 }
 0x7cb   :  { %20334 = vst [vmem:[#allocation36_spill] sm:$0xff] %v18121_v23  ;;  %v18123_v8 = vpack.c.bf16 %v3813_v27, %v3812_v56  ;;  %v4192_v56 = vunpack.c.l.b16 %v18100_v17  ;;  %v3737_v59 = vmul.f32 %v20303_v51, %v3718_v38  ;;  %v18139_v28 = vpack.c.bf16 %v3657_v48, %v17815_v42  ;;  %v20344_v38 = vld [vmem:[#allocation29_spill] sm:$0xff]  ;;  %vm20360_vm9 = vmmov %vm20299_vm0  ;;  %v20375_v23 = vld [vmem:[#allocation108_spill] sm:$0xff] }
 0x7cc   :  { %v4188_v33 = vunpack.c.l.b16 %v18113_v45  ;;  %v18142_v34 = vpack.c.b16 %v4148_v9, %v4144_v50  ;;  %v3500_v11 = vsel %vm20336_vm10, %v17715_v62, %v17318_v35  ;;  %vm20337_vm2 = vcmp.lt.s32.totalorder %v14646_v53, 17  ;;  %v20347_v9 = vld [vmem:[#allocation106_spill] sm:$0xff]  ;;  %vm20362_vm5 = vmmov %vm20299_vm0 }
 0x7cd   :  { %v4196_v49 = vunpack.c.l.b16 %v18123_v8  ;;  %20335 = vst [vmem:[#allocation21_spill] sm:$0xff] %v18139_v28  ;;  %v3351_v51 = vsel %vm20337_vm2, %v17510_v31, %v18011_v16  ;;  %v18154_v22 = vpack.c.bf16 %v3741_v5, %v17923_v12  ;;  %v3594_v50 = vpack.c.bf16 %v17890_v41, %v3580_v58  ;;  %vm20341_vm3 = vmmov %vm20337_vm2  ;;  %v20345_v5 = vld [vmem:[#allocation114_spill] sm:$0xff] }
 0x7ce   :  { %v3596_v6 = vpack.c.bf16 %v17999_v55, %v3584_v44  ;;  %v3647_v7 = vsel %vm20338_vm6, %v20325_v15, %v17834_v32  ;;  %v18168_v31 = vpack.c.bf16 %v3737_v59, %v18002_v14  ;;  %v3646_v41 = vsel %vm20340_vm1, %v17483_v1, %v17757_v21  ;;  %v20342_v15 = vld [vmem:[#allocation13_spill] sm:$0xff]  ;;  %vm20366_vm7 = vmmov %vm20349_vm8 }
 0x7cf   :  { %v3559_v42 = vpop.permute.xlu0 %3558  ;;  %v4204_v20 = vpack.c.b16 %v4196_v49, %v4192_v56  ;;  %v3374_v48 = vmul.f32 %v20343_v37, %v3351_v51  ;;  %v20346_v58 = vunpack.c.l.b16 %v20345_v5  ;;  %v20348_v56 = vld [vmem:[#allocation61_spill] sm:$0xff]  ;;  %v18192_v51 = vpop.permute.xlu2 %3546  ;;  %vm20373_vm0 = vmmov %vm20337_vm2  ;;  %vm20376_vm12 = vcmp.lt.s32.totalorder %v14646_v53, 16 }
 0x7d0   :  { %v3575_v35 = vsel %vm20339_vm13, %v3559_v42, %v20310_v4  ;;  %v18165_v27 = vpop.permute.xlu1 %3342  ;;  %v3504_v4 = vmul.f32 %v20342_v15, %v3500_v11  ;;  %v3501_v1 = vsel %vm20349_vm8, %v20348_v56, %v20347_v9  ;;  %v4032_v49 = vunpack.c.l.b16 %v3596_v6  ;;  %vm20380_vm4 = vmmov %vm20376_vm12 }
 0x7d1   :  { %v3588_v12 = vmul.f32 %v20308_v3, %v3575_v35  ;;  %v3347_v55 = vsel %vm20341_vm3, %v18011_v16, %v18165_v27  ;;  %4343 = vmatpush.bf16.msrb.mxu1 %v4204_v20  ;;  %v4200_v44 = vpack.c.b16 %v4188_v33, %v20346_v58  ;;  %v3669_v3 = vmul.f32 %v20320_v57, %v3647_v7  ;;  %v20350_v7 = vld [vmem:[#allocation83_spill] sm:$0xff]  ;;  %vm20387_vm10 = vmmov %vm20366_vm7 }
 0x7d2   :  { %v3375_v14 = vmul.f32 %v20344_v38, %v3347_v55  ;;  %v4156_v16 = vunpack.c.l.b16 %v18154_v22  ;;  %v3665_v11 = vmul.f32 %v20320_v57, %v3646_v41  ;;  %v4028_v35 = vunpack.c.l.b16 %v3594_v50  ;;  %vm20390_vm2 = vmmov %vm20362_vm5 }
 0x7d3   :  { %v3598_v59 = vpack.c.bf16 %v18060_v61, %v3588_v12  ;;  %v4033_v55 = vunpack.c.h.b16 %v3596_v6  ;;  %v4152_v38 = vunpack.c.l.b16 %v18168_v31  ;;  %v3508_v58 = vmul.f32 %v20342_v15, %v3501_v1  ;;  %vm20392_vm6 = vmmov %vm20390_vm2 }
 0x7d4   :  { %v3383_v20 = vpack.c.bf16 %v3375_v14, %v3374_v48  ;;  %v18197_v9 = vpack.c.bf16 %v20350_v7, %v3504_v4  ;;  %v4029_v61 = vunpack.c.h.b16 %v3594_v50  ;;  %v4104_v12 = vunpack.c.l.b16 %v18139_v28  ;;  %v20355_v50 = vld [vmem:[#allocation68_spill] sm:$0xff]  ;;  %vm20394_vm13 = vmmov %vm20373_vm0 }
 0x7d5   :  { %v4036_v33 = vunpack.c.l.b16 %v3598_v59  ;;  %v4037_v37 = vunpack.c.h.b16 %v3598_v59  ;;  %4344 = vmatpush.bf16.msrb.mxu1 %v4200_v44  ;;  %v18200_v2 = vpack.c.bf16 %v3669_v3, %v3668_v39  ;;  %v4164_v48 = vpack.c.b16 %v4156_v16, %v4152_v38  ;;  %v20353_v44 = vld [vmem:[#allocation56_spill] sm:$0xff]  ;;  %vm20397_vm1 = vmmov %vm20366_vm7 }
 0x7d6   :  { %v3918_v4 = vunpack.c.l.b16 %v3383_v20  ;;  %v3919_v7 = vunpack.c.h.b16 %v3383_v20  ;;  %v18209_v43 = vpack.c.bf16 %v3665_v11, %v20355_v50  ;;  %v20357_v39 = vld [vmem:[#allocation32_spill] sm:$0xff]  ;;  %v20359_v16 = vunpack.c.l.b16 %v18057_v52  ;;  %v12241_v50 = vld [vmem:[%s19134_s8 + $0x10] sm:$0xf0]  ;;  %vm20399_vm3 = vmmov %vm20397_vm1 }
 0x7d7   :  { %20351 = vst [vmem:[#allocation34_spill] sm:$0xff] %v18200_v2  ;;  %v3549_v57 = vpop.permute.xlu0 %3548  ;;  %v4044_v41 = vpack.c.b16 %v4036_v33, %v4032_v49  ;;  %v4045_v14 = vpack.c.b16 %v4037_v37, %v4033_v55  ;;  %v20361_v33 = vld [vmem:[#allocation75_spill] sm:$0xff]  ;;  %v20363_v20 = vld [vmem:[#allocation64_spill] sm:$0xff]  ;;  %vm20400_vm8 = vmmov %vm20397_vm1 }
 0x7d8   :  { %v3562_v6 = vsel %vm20352_vm11, %v3549_v57, %v17755_v19  ;;  %v3566_v1 = vsel %vm20354_vm14, %v20353_v44, %v3549_v57  ;;  %v3551_v59 = vpop.permute.xlu1 %3550  ;;  %20356 = vst [vmem:[#allocation38_spill] sm:$0xff] %v18209_v43  ;;  %v4040_v55 = vpack.c.b16 %v4028_v35, %v20359_v16  ;;  %v3914_v11 = vunpack.c.l.b16 %v20363_v20  ;;  %v20364_v57 = vld [vmem:[#allocation66_spill] sm:$0xff]  ;;  %v20365_v44 = vld [vmem:[#allocation115_spill] sm:$0xff]  ;;  %vm20402_vm11 = vmmov %vm20397_vm1 }
 0x7d9   :  { %v3586_v3 = vmul.f32 %v20357_v39, %v3566_v1  ;;  %v3587_v49 = vmul.f32 %v20358_v10, %v3562_v6  ;;  %4324 = vmatpush.bf16.msrb.mxu0 %v4044_v41  ;;  %v3563_v19 = vsel %vm20360_vm9, %v3551_v59, %v3559_v42  ;;  %v3567_v37 = vsel %vm20362_vm5, %v20361_v33, %v3551_v59  ;;  %vm20406_vm14 = vmmov %vm20390_vm2 }
 0x7da   :  { %4345 = vmatpush.bf16.msrb.mxu1 %v4164_v48  ;;  %4381 = vmatpush.bf16.msrb.mxu3 %v4045_v14  ;;  %v3915_v38 = vunpack.c.h.b16 %v20363_v20  ;;  %v3502_v41 = vsel %vm20366_vm7, %v20365_v44, %v20364_v57  ;;  %v3590_v35 = vmul.f32 %v20357_v39, %v3567_v37  ;;  %v3591_v42 = vmul.f32 %v20358_v10, %v3563_v19  ;;  %v10157_v14 = vld [vmem:[%s19134_s8 + $0x8] sm:$0xf]  ;;  %v20371_v19 = vld [vmem:[#allocation73_spill] sm:$0xff]  ;;  %vm20408_vm9 = vmmov %vm20390_vm2 }
 0x7db   :  { %v18226_v6 = vpack.c.bf16 %v3587_v49, %v3586_v3  ;;  %v20367_v1 = vunpack.c.h.b16 %v18057_v52  ;;  %v4116_v48 = vunpack.c.l.b16 %v18200_v2  ;;  %v18239_v16 = vpack.c.b16 %v3918_v4, %v3914_v11  ;;  %v20370_v49 = vld [vmem:[#allocation63_spill] sm:$0xff] }
 0x7dc   :  { %v18241_v3 = vpack.c.b16 %v3919_v7, %v3915_v38  ;;  %v3522_v33 = vpack.c.bf16 %v20370_v49, %v3508_v58  ;;  %v20372_v37 = vld [vmem:[#allocation51_spill] sm:$0xff]  ;;  %v4112_v20 = vunpack.c.l.b16 %v18209_v43  ;;  %v3512_v57 = vmul.f32 %v20342_v15, %v3502_v41  ;;  %v3477_v58 = vpop.permute.xlu2 %3476  ;;  %v20384_v43 = vld [vmem:[#allocation10_spill] sm:$0xff] }
 0x7dd   :  { %v4041_v59 = vpack.c.b16 %v4029_v61, %v20367_v1  ;;  %20368 = vst [vmem:[#allocation98_spill] sm:$0xff] %v18239_v16  ;;  %v3358_v52 = vsel %vm20373_vm0, %v20372_v37, %v20371_v19  ;;  %v18248_v61 = vpack.c.bf16 %v3591_v42, %v3590_v35  ;;  %4325 = vmatpush.bf16.msrb.mxu0 %v4040_v55  ;;  %v20374_v1 = vld [vmem:[#allocation80_spill] sm:$0xff]  ;;  %v4034_v7 = vunpack.c.l.b16 %v18226_v6  ;;  %v20377_v41 = vld [vmem:[#allocation111_spill] sm:$0xff] }
 0x7de   :  { %20369 = vst [vmem:[#allocation54_spill] sm:$0xff] %v18241_v3  ;;  %v3430_v4 = vsel %vm20376_vm12, %v20375_v23, %v20374_v1  ;;  %4346 = vmatpush.bf16.msrb.mxu1 %v18142_v34  ;;  %v18258_v11 = vor.u32 %v12241_v50, %v10157_v14  ;;  %v3984_v35 = vunpack.c.l.b16 %v18197_v9  ;;  %v4225_v42 = vunpack.c.h.b16 %v20377_v41  ;;  %v20378_v49 = vld [vmem:[#allocation15_spill] sm:$0xff]  ;;  %v20379_v23 = vld [vmem:[#allocation42_spill] sm:$0xff]  ;;  %v20382_v3 = vld [vmem:[#allocation12_spill] sm:$0xff] }
 0x7df   :  { %4382 = vmatpush.bf16.msrb.mxu3 %v4041_v59  ;;  %v4038_v38 = vunpack.c.l.b16 %v18248_v61  ;;  %v18261_v55 = vpop.permute.xlu0 %3776  ;;  %v4229_v19 = vunpack.c.h.b16 %v20378_v49  ;;  %v3431_v37 = vsel %vm20380_vm4, %v20379_v23, %v20323_v24  ;;  %v4124_v34 = vpack.c.b16 %v4116_v48, %v4112_v20  ;;  %v20383_v41 = vld [vmem:[#allocation8_spill] sm:$0xff]  ;;  %v20386_v23 = vld [vmem:[#allocation74_spill] sm:$0xff] }
 0x7e0   :  { %v3487_v1 = vpop.permute.xlu1 %3486  ;;  %v20381_v59 = vunpack.c.l.b16 %v18078_v47  ;;  %v3985_v50 = vunpack.c.h.b16 %v18197_v9  ;;  %10171 = vmatmul.msk.bf16.vlgmr.msrb.gmra.mxu2 %vm3061_vm15, %v18258_v11  ;;  %v3368_v16 = vmul.f32 %v20382_v3, %v3358_v52  ;;  %v3440_v30 = vmul.f32 %v20383_v41, %v3430_v4  ;;  %v20388_v4 = vld [vmem:[#allocation109_spill] sm:$0xff] }
 0x7e1   :  { %v3988_v49 = vunpack.c.l.b16 %v3522_v33  ;;  %v3989_v28 = vunpack.c.h.b16 %v3522_v33  ;;  %v3524_v2 = vpack.c.bf16 %v20384_v43, %v3512_v57  ;;  %v4237_v24 = vunpack.c.h.b16 %v20385_v29  ;;  %v20389_v29 = vld [vmem:[#allocation48_spill] sm:$0xff] }
 0x7e2   :  { %v4120_v14 = vpack.c.b16 %v20381_v59, %v4104_v12  ;;  %v3503_v48 = vsel %vm20387_vm10, %v3487_v1, %v20386_v23  ;;  %4347 = vmatpush.bf16.msrb.mxu1 %v4124_v34  ;;  %v4046_v12 = vpack.c.b16 %v4038_v38, %v4034_v7  ;;  %v3444_v9 = vmul.f32 %v20383_v41, %v3431_v37  ;;  %v20391_v7 = vld [vmem:[#allocation26_spill] sm:$0xff]  ;;  %v20396_v41 = vld [vmem:[#allocation103_spill] sm:$0xff] }
 0x7e3   :  { %v3516_v20 = vmul.f32 %v20342_v15, %v3503_v48  ;;  %v18284_v59 = vpack.c.b16 %v3988_v49, %v3984_v35  ;;  %v18286_v52 = vpack.c.b16 %v4229_v19, %v4225_v42  ;;  %v4193_v33 = vunpack.c.h.b16 %v18100_v17  ;;  %v20393_v35 = vld [vmem:[#allocation124_spill] sm:$0xff]  ;;  %v20395_v19 = vld [vmem:[#allocation99_spill] sm:$0xff] }
 0x7e4   :  { %v4233_v43 = vunpack.c.h.b16 %v20388_v4  ;;  %v3565_v57 = vsel %vm20390_vm2, %v20389_v29, %v18192_v51  ;;  %4438 = vmatpush.bf16.msra.mxu2 %v4046_v12  ;;  %v4001_v34 = vpack.c.b16 %v3989_v28, %v3985_v50  ;;  %v18295_v38 = vpack.c.bf16 %v20391_v7, %v3368_v16  ;;  %v18313_v29 = vpop.permute.xlu2 %3704 }
 0x7e5   :  { %v3561_v15 = vsel %vm20392_vm6, %v18192_v51, %v17709_v60  ;;  %v3359_v42 = vsel %vm20394_vm13, %v18165_v27, %v20393_v35  ;;  %v3526_v37 = vpack.c.bf16 %v20395_v19, %v3516_v20  ;;  %v18307_v49 = vpack.c.bf16 %v20396_v41, %v3440_v30  ;;  %v20405_v35 = vld [vmem:[#allocation87_spill] sm:$0xff] }
 0x7e6   :  { %4348 = vmatpush.bf16.msrb.mxu1 %v4120_v14  ;;  %v3992_v28 = vunpack.c.l.b16 %v3524_v2  ;;  %v3993_v50 = vunpack.c.h.b16 %v3524_v2  ;;  %v4245_v16 = vpack.c.b16 %v4237_v24, %v4233_v43  ;;  %v3454_v23 = vpack.c.bf16 %v18129_v40, %v3444_v9  ;;  %v20398_v14 = vld [vmem:[#allocation86_spill] sm:$0xff]  ;;  %v20403_v43 = vld [vmem:[#allocation35_spill] sm:$0xff] }
 0x7e7   :  { %v3582_v48 = vmul.f32 %v20357_v39, %v3565_v57  ;;  %v3479_v12 = vpop.permute.xlu0 %3478  ;;  %v3996_v60 = vunpack.c.l.b16 %v3526_v37  ;;  %v3997_v51 = vunpack.c.h.b16 %v3526_v37  ;;  %v3583_v4 = vmul.f32 %v20358_v10, %v3561_v15  ;;  %v20401_v9 = vld [vmem:[#allocation46_spill] sm:$0xff]  ;;  %v20404_v57 = vld [vmem:[#allocation28_spill] sm:$0xff]  ;;  %v20409_v37 = vld [vmem:[#allocation101_spill] sm:$0xff] }
 0x7e8   :  { %v3372_v27 = vmul.f32 %v20382_v3, %v3359_v42  ;;  %v3491_v30 = vsel %vm20397_vm1, %v3479_v12, %v3487_v1  ;;  %v3495_v2 = vsel %vm20399_vm3, %v20398_v14, %v3479_v12  ;;  %v3545_v24 = vpop.permute.xlu1 %3544  ;;  %v3490_v40 = vsel %vm20400_vm8, %v3477_v58, %v20365_v44  ;;  %v12239_v1 = vld [vmem:[%s19134_s8 + $0x4] sm:$0xf]  ;;  %v10151_v15 = vld [vmem:[%s19134_s8 + $0xc] sm:$0xf0] }
 0x7e9   :  { %v3494_v20 = vsel %vm20402_vm11, %v20401_v9, %v3477_v58  ;;  %v3518_v3 = vmul.f32 %v20403_v43, %v3495_v2  ;;  %v3519_v7 = vmul.f32 %v20404_v57, %v3491_v30  ;;  %v3560_v44 = vsel %vm20406_vm14, %v3545_v24, %v20405_v35  ;;  %v20407_v42 = vld [vmem:[#allocation123_spill] sm:$0xff] }
 0x7ea   :  { %v3564_v58 = vsel %vm20408_vm9, %v20407_v42, %v3545_v24  ;;  %v4004_v19 = vpack.c.b16 %v3996_v60, %v3992_v28  ;;  %4349 = vmatpush.bf16.msrb.mxu1 %v20409_v37  ;;  %v4005_v41 = vpack.c.b16 %v3997_v51, %v3993_v50  ;;  %vm20410_vm5 = vcmp.lt.s32.totalorder %v14646_v53, 112  ;;  %v20411_v9 = vld [vmem:[#allocation27_spill] sm:$0xff]  ;;  %v20416_v37 = vld [vmem:[#allocation18_spill] sm:$0xff] }
 0x7eb   :  { %v3786_v12 = vsel %vm20410_vm5, %v17736_v54, %v18119_v63  ;;  %v3578_v30 = vmul.f32 %v20357_v39, %v3564_v58  ;;  %v3579_v14 = vmul.f32 %v20358_v10, %v3560_v44  ;;  %v3956_v2 = vunpack.c.l.b16 %v3454_v23  ;;  %vm20412_vm7 = vmmov %vm20410_vm5  ;;  %v10169_v54 = vld [vmem:[%s19134_s8 + $0x20] sm:$0xf]  ;;  %v12244_v10 = vld [vmem:[%s19134_s8 + $0x28] sm:$0xf0] }
 0x7ec   :  { %v3798_v35 = vsel %vm20412_vm7, %v18119_v63, %v20411_v9  ;;  %v18351_v24 = vpack.c.bf16 %v3583_v4, %v3582_v48  ;;  %4326 = vmatpush.bf16.msrb.mxu0 %v4004_v19  ;;  %4383 = vmatpush.bf16.msrb.mxu3 %v4005_v41  ;;  %v18353_v28 = vor.u32 %v12239_v1, %v10151_v15  ;;  %v3957_v50 = vunpack.c.h.b16 %v3454_v23  ;;  %v20413_v39 = vld [vmem:[#allocation44_spill] sm:$0xff]  ;;  %v20414_v15 = vld [vmem:[#allocation102_spill] sm:$0xff]  ;;  %v20415_v42 = vld [vmem:[#allocation23_spill] sm:$0xff] }
 0x7ed   :  { %v18362_v60 = vpack.c.bf16 %v20413_v39, %v3372_v27  ;;  %v3514_v63 = vmul.f32 %v20403_v43, %v3494_v20  ;;  %v3515_v48 = vmul.f32 %v20404_v57, %v3490_v40  ;;  %v3593_v51 = vpack.c.bf16 %v3579_v14, %v3578_v30  ;;  %vm20417_vm0 = vmmov %vm20410_vm5 }
 0x7ee   :  { %v4035_v4 = vunpack.c.h.b16 %v18226_v6  ;;  %v4039_v23 = vunpack.c.h.b16 %v18248_v61  ;;  %v18368_v1 = vpack.c.bf16 %v3519_v7, %v3518_v3  ;;  %4350 = vmatpush.bf16.msrb.mxu1 %v20414_v15  ;;  %v18371_v44 = vor.u32 %v12244_v10, %v10169_v54  ;;  %v20418_v61 = vld [vmem:[#allocation90_spill] sm:$0xff]  ;;  %vm20419_vm12 = vmmov %vm20417_vm0 }
 0x7ef   :  { %v3810_v58 = vmul.f32 %v20415_v42, %v3786_v12  ;;  %v3783_v27 = vpop.permute.xlu0 %3782  ;;  %v3952_v19 = vunpack.c.l.b16 %v18307_v49  ;;  %v3953_v20 = vunpack.c.h.b16 %v18307_v49  ;;  %v4026_v40 = vunpack.c.l.b16 %v3593_v51  ;;  %vm20420_vm4 = vmmov %vm20417_vm0 }
 0x7f0   :  { %v3811_v41 = vmul.f32 %v20416_v37, %v3798_v35  ;;  %4327 = vmatpush.bf16.msrb.mxu0 %v18284_v59  ;;  %4384 = vmatpush.bf16.msrb.mxu3 %v4001_v34  ;;  %v3787_v6 = vsel %vm20417_vm0, %v18084_v13, %v3783_v27  ;;  %v3799_v3 = vsel %vm20419_vm12, %v3783_v27, %v20418_v61  ;;  %v4030_v7 = vunpack.c.l.b16 %v18351_v24  ;;  %v3711_v34 = vpop.permute.xlu2 %3710  ;;  %vm20422_vm10 = vmmov %vm20417_vm0  ;;  %v20425_v27 = vld [vmem:[#allocation105_spill] sm:$0xff] }
 0x7f1   :  { %v18385_v12 = vpack.c.bf16 %v3515_v48, %v3514_v63  ;;  %4351 = vmatmul.bf16.vlgmr.msrb.gmra.mxu1 %v18353_v28  ;;  %v3964_v49 = vpack.c.b16 %v3956_v2, %v3952_v19  ;;  %v3965_v30 = vpack.c.b16 %v3957_v50, %v3953_v20  ;;  %v3912_v59 = vunpack.c.l.b16 %v18295_v38  ;;  %10172 = vmatmul.msk.bf16.gmra.mxu2 %vm3061_vm15, %v18371_v44  ;;  %v20421_v50 = vld [vmem:[#allocation107_spill] sm:$0xff]  ;;  %vm20424_vm2 = vmmov %vm20417_vm0 }
 0x7f2   :  { %4425 = vmatpush.bf16.msra.mxu1 %v4245_v16  ;;  %v3779_v16 = vpop.permute.xlu1 %3778  ;;  %v4042_v14 = vpack.c.b16 %v4030_v7, %v4026_v40  ;;  %v4047_v9 = vpack.c.b16 %v4039_v23, %v4035_v4  ;;  %v3998_v13 = vunpack.c.l.b16 %v18368_v1  ;;  %v3916_v35 = vunpack.c.l.b16 %v18362_v60  ;;  %v20423_v48 = vld [vmem:[#allocation91_spill] sm:$0xff]  ;;  %vm20426_vm6 = vmmov %vm20417_vm0 }
 0x7f3   :  { %v3814_v54 = vmul.f32 %v20415_v42, %v3787_v6  ;;  %v3815_v10 = vmul.f32 %v20416_v37, %v3799_v3  ;;  %v3785_v2 = vsel %vm20420_vm4, %v20321_v26, %v3779_v16  ;;  %v3797_v39 = vsel %vm20422_vm10, %v3779_v16, %v20421_v50  ;;  %v20430_v7 = vld [vmem:[#allocation43_spill] sm:$0xff]  ;;  %v20440_v50 = vld [vmem:[#allocation17_spill] sm:$0xff] }
 0x7f4   :  { %v18402_v63 = vpack.c.bf16 %v3811_v41, %v3810_v58  ;;  %v3784_v4 = vsel %vm20424_vm2, %v20423_v48, %v18261_v55  ;;  %4328 = vmatpush.bf16.msrb.mxu0 %v3964_v49  ;;  %4385 = vmatpush.bf16.msrb.mxu3 %v3965_v30  ;;  %v4027_v23 = vunpack.c.h.b16 %v3593_v51  ;;  %v3913_v15 = vunpack.c.h.b16 %v18295_v38 }
 0x7f5   :  { %v4197_v26 = vunpack.c.h.b16 %v18123_v8  ;;  %v3796_v19 = vsel %vm20426_vm6, %v18261_v55, %v20425_v27  ;;  %4439 = vmatpush.bf16.msra.mxu2 %v4042_v14  ;;  %v3917_v58 = vunpack.c.h.b16 %v18362_v60  ;;  %v3806_v20 = vmul.f32 %v20415_v42, %v3785_v2  ;;  %v20428_v60 = vld [vmem:[#allocation70_spill] sm:$0xff]  ;;  %v20434_v14 = vld [vmem:[#allocation104_spill] sm:$0xff] }
 0x7f6   :  { %4426 = vmatpush.bf16.msra.mxu1 %v18286_v52  ;;  %v3994_v52 = vunpack.c.l.b16 %v18385_v12  ;;  %v3807_v40 = vmul.f32 %v20416_v37, %v3797_v39  ;;  %v4031_v51 = vunpack.c.h.b16 %v18351_v24  ;;  %v3924_v38 = vpack.c.b16 %v3916_v35, %v3912_v59  ;;  %v20431_v24 = vld [vmem:[#allocation57_spill] sm:$0xff] }
 0x7f7   :  { %v3802_v8 = vmul.f32 %v20415_v42, %v3784_v4  ;;  %vm20427_vm13 = vcmp.lt.s32.totalorder %v14646_v53, 113  ;;  %v18423_v55 = vpack.c.bf16 %v3815_v10, %v3814_v54  ;;  %v3473_v61 = vpop.permute.xlu0 %3472  ;;  %v3803_v3 = vmul.f32 %v20416_v37, %v3796_v19  ;;  %v20438_v10 = vld [vmem:[#allocation110_spill] sm:$0xff] }
 0x7f8   :  { %v3715_v41 = vsel %vm20427_vm13, %v18095_v18, %v3711_v34  ;;  %v4006_v6 = vpack.c.b16 %v3998_v13, %v3994_v52  ;;  %vm20429_vm1 = vmmov %vm20427_vm13  ;;  %4329 = vmatpush.bf16.msrb.mxu0 %v20430_v7  ;;  %4386 = vmatpush.bf16.msrb.mxu3 %v20431_v24  ;;  %v4043_v42 = vpack.c.b16 %v4031_v51, %v4027_v23  ;;  %v3999_v30 = vunpack.c.h.b16 %v18368_v1  ;;  %v20432_v18 = vld [vmem:[#allocation50_spill] sm:$0xff]  ;;  %v3639_v19 = vpop.permute.xlu2 %3638 }
 0x7f9   :  { %v3727_v16 = vsel %vm20429_vm1, %v3711_v34, %v20428_v60  ;;  %vm20433_vm3 = vmmov %vm20429_vm1  ;;  %v3925_v34 = vpack.c.b16 %v3917_v58, %v3913_v15  ;;  %v20436_v13 = vld [vmem:[#allocation22_spill] sm:$0xff]  ;;  %v18442_v54 = vpack.c.bf16 %v3807_v40, %v3806_v20  ;;  %v10163_v15 = vld [vmem:[%s19134_s8 + $0x24] sm:$0xf0]  ;;  %v18466_v27 = vpack.c.bf16 %v3803_v3, %v3802_v8 }
 0x7fa   :  { %4495 = vmatpush.bf16.msrb.mxu1 %v4047_v9  ;;  %v3709_v49 = vpop.permute.xlu1 %3708  ;;  %v3712_v59 = vsel %vm20433_vm3, %v20432_v18, %v18313_v29  ;;  %vm20435_vm8 = vmmov %vm20429_vm1  ;;  %4440 = vmatpush.bf16.msra.mxu2 %v4006_v6  ;;  %v3995_v9 = vunpack.c.h.b16 %v18385_v12  ;;  %v3742_v35 = vmul.f32 %v20436_v13, %v3715_v41  ;;  %v3743_v39 = vmul.f32 %v20440_v50, %v3727_v16  ;;  %v12242_v23 = vld [vmem:[%s19134_s8 + $0x1c] sm:$0xf] }
 0x7fb   :  { %v3724_v37 = vsel %vm20435_vm8, %v18313_v29, %v20434_v14  ;;  %vm20437_vm11 = vmmov %vm20429_vm1  ;;  %v10149_v29 = vld [vmem:[%s19134_s8] sm:$0xf]  ;;  %v4198_v12 = vunpack.c.l.b16 %v18423_v55  ;;  %vm20442_vm9 = vcmp.lt.s32.totalorder %v14646_v53, 15  ;;  %v4189_v40 = vunpack.c.h.b16 %v18113_v45 }
 0x7fc   :  { %v3714_v1 = vsel %vm20437_vm11, %v17753_v25, %v3709_v49  ;;  %vm20439_vm14 = vmmov %vm20429_vm1  ;;  %v12240_v25 = vld [vmem:[%s19134_s8 + $0x8] sm:$0xf0]  ;;  %v20441_v52 = vld [vmem:[#allocation30_spill] sm:$0xff]  ;;  %4330 = vmatpush.bf16.msrb.mxu0 %v3924_v38  ;;  %4387 = vmatpush.bf16.msrb.mxu3 %v3925_v34  ;;  %v4007_v20 = vpack.c.b16 %v3999_v30, %v3995_v9  ;;  %v4194_v51 = vunpack.c.l.b16 %v18402_v63  ;;  %v3730_v41 = vmul.f32 %v20436_v13, %v3712_v59 }
 0x7fd   :  { %v3726_v2 = vsel %vm20439_vm14, %v3709_v49, %v20438_v10  ;;  %v3738_v48 = vmul.f32 %v20436_v13, %v3714_v1  ;;  %v3492_v58 = vsel %vm20442_vm9, %v20441_v52, %v3473_v61  ;;  %vm20443_vm5 = vmmov %vm20442_vm9  ;;  %v4205_v8 = vpack.c.b16 %v4197_v26, %v4193_v33  ;;  %v20444_v33 = vld [vmem:[#allocation118_spill] sm:$0xff]  ;;  %v20445_v26 = vld [vmem:[#allocation47_spill] sm:$0xff] }
 0x7fe   :  { %4496 = vmatpush.bf16.msrb.mxu1 %v4043_v42  ;;  %v3739_v4 = vmul.f32 %v20440_v50, %v3726_v2  ;;  %v3488_v6 = vsel %vm20443_vm5, %v3473_v61, %v17715_v62  ;;  %v3731_v3 = vmul.f32 %v20440_v50, %v3724_v37  ;;  %v18480_v60 = vor.u32 %v12240_v25, %v10149_v29  ;;  %v20446_v61 = vld [vmem:[#allocation7_spill] sm:$0xff]  ;;  %vm20447_vm7 = vmmov %vm20429_vm1  ;;  %v20448_v30 = vld [vmem:[#allocation72_spill] sm:$0xff] }
 0x7ff   :  { %v18482_v38 = vor.u32 %v12242_v23, %v10163_v15  ;;  %v4190_v45 = vunpack.c.l.b16 %v18442_v54  ;;  %v18485_v16 = vpack.c.bf16 %v3743_v39, %v3742_v35  ;;  %v3506_v7 = vmul.f32 %v20403_v43, %v3492_v58  ;;  %v3707_v62 = vpop.permute.xlu0 %3706  ;;  %vm20449_vm0 = vmmov %vm20429_vm1  ;;  %v20452_v29 = vld [vmem:[#allocation11_spill] sm:$0xff] }
 0x800   :  { %v18488_v24 = vpack.c.bf16 %v3739_v4, %v3738_v48  ;;  %v4206_v49 = vpack.c.b16 %v4198_v12, %v4194_v51  ;;  %v3507_v17 = vmul.f32 %v20404_v57, %v3488_v6  ;;  %4331 = vmatpush.bf16.msrb.mxu0 %v20444_v33  ;;  %4388 = vmatpush.bf16.msrb.mxu3 %v20445_v26  ;;  %v4186_v14 = vunpack.c.l.b16 %v18466_v27  ;;  %vm20451_vm12 = vmmov %vm20443_vm5  ;;  %v3853_v52 = vpop.permute.xlu2 %3852 }
 0x801   :  { %v3713_v42 = vsel %vm20447_vm7, %v20446_v61, %v3707_v62  ;;  %v3725_v18 = vsel %vm20449_vm0, %v3707_v62, %v20448_v30  ;;  %v20450_v9 = vunpack.c.h.b16 %v20345_v5  ;;  %v4157_v1 = vunpack.c.h.b16 %v18154_v22  ;;  %vm20453_vm4 = vmmov %vm20443_vm5  ;;  %4356 = vmatmul.bf16.gmra.mxu1 %v18482_v38  ;;  %v20459_v62 = vld [vmem:[#allocation76_spill] sm:$0xff] }
 0x802   :  { %4497 = vmatpush.bf16.msrb.mxu1 %v4007_v20  ;;  %v3475_v59 = vpop.permute.xlu1 %3474  ;;  %v3734_v37 = vmul.f32 %v20436_v13, %v3713_v42  ;;  %v3735_v34 = vmul.f32 %v20440_v50, %v3725_v18  ;;  %v18505_v10 = vpack.c.bf16 %v3731_v3, %v3730_v41  ;;  %v4202_v13 = vpack.c.b16 %v4190_v45, %v4186_v14  ;;  %v20461_v42 = vld [vmem:[#allocation9_spill] sm:$0xff]  ;;  %v20465_v14 = vld [vmem:[#allocation34_spill] sm:$0xff] }
 0x803   :  { %v4201_v35 = vpack.c.b16 %v4189_v40, %v20450_v9  ;;  %v3489_v2 = vsel %vm20451_vm12, %v3475_v59, %v20348_v56  ;;  %v3493_v39 = vsel %vm20453_vm4, %v20452_v29, %v3475_v59  ;;  %4332 = vmatmul.bf16.vlgmr.msrb.gmra.mxu0 %v18480_v60  ;;  %4389 = vmatmul.bf16.vlgmr.msrb.gmra.mxu3 %v18480_v60  ;;  %v4154_v22 = vunpack.c.l.b16 %v18488_v24  ;;  %v20463_v18 = vld [vmem:[#allocation89_spill] sm:$0xff]  ;;  %v20466_v9 = vld [vmem:[#allocation71_spill] sm:$0xff]  ;;  %v20468_v29 = vld [vmem:[#allocation82_spill] sm:$0xff] }
 0x804   :  { %4400 = vmatpush.bf16.msra.mxu0 %v4205_v8  ;;  %4457 = vmatpush.bf16.msra.mxu3 %v4206_v49  ;;  %v18514_v12 = vpack.c.bf16 %v3735_v34, %v3734_v37  ;;  %v3510_v5 = vmul.f32 %v20403_v43, %v3493_v39  ;;  %v3511_v50 = vmul.f32 %v20404_v57, %v3489_v2  ;;  %v4153_v48 = vunpack.c.h.b16 %v18168_v31  ;;  %v20457_v8 = vld [vmem:[#allocation16_spill] sm:$0xff]  ;;  %v12243_v2 = vld [vmem:[%s19134_s8 + $0x20] sm:$0xf0] }
 0x805   :  { %v3521_v56 = vpack.c.bf16 %v3507_v17, %v3506_v7  ;;  %v4158_v4 = vunpack.c.l.b16 %v18485_v16  ;;  %v4145_v25 = vunpack.c.h.b16 %v18049_v46  ;;  %vm20454_vm10 = vcmp.lt.s32.totalorder %v14646_v53, 127 }
 0x806   :  { %v3643_v23 = vsel %vm20454_vm10, %v17834_v32, %v3639_v19  ;;  %vm20455_vm2 = vmmov %vm20454_vm10  ;;  %v3523_v57 = vpack.c.bf16 %v3511_v50, %v3510_v5  ;;  %v4150_v15 = vunpack.c.l.b16 %v18514_v12  ;;  %v4165_v58 = vpack.c.b16 %v4157_v1, %v4153_v48  ;;  %v20456_v32 = vld [vmem:[#allocation20_spill] sm:$0xff]  ;;  %v10161_v1 = vld [vmem:[%s19134_s8 + $0x18] sm:$0xf] }
 0x807   :  { %v3655_v43 = vsel %vm20455_vm2, %v3639_v19, %v20326_v0  ;;  %v4149_v31 = vunpack.c.h.b16 %v18075_v36  ;;  %v4166_v20 = vpack.c.b16 %v4158_v4, %v4154_v22  ;;  %v3633_v40 = vpop.permute.xlu0 %3632  ;;  %v4146_v41 = vunpack.c.l.b16 %v18505_v10  ;;  %vm20458_vm6 = vmmov %vm20455_vm2  ;;  %v20470_v5 = vld [vmem:[#allocation38_spill] sm:$0xff]  ;;  %v20471_v48 = vld [vmem:[#allocation21_spill] sm:$0xff] }
 0x808   :  { %4401 = vmatpush.bf16.msra.mxu0 %v4201_v35  ;;  %4458 = vmatpush.bf16.msra.mxu3 %v4202_v13  ;;  %v3990_v46 = vunpack.c.l.b16 %v3523_v57  ;;  %v3991_v51 = vunpack.c.h.b16 %v3523_v57  ;;  %v3670_v6 = vmul.f32 %v20456_v32, %v3643_v23  ;;  %v3671_v3 = vmul.f32 %v20457_v8, %v3655_v43  ;;  %vm20460_vm13 = vmmov %vm20455_vm2  ;;  %v20472_v23 = vld [vmem:[#allocation24_spill] sm:$0xff] }
 0x809   :  { %v3986_v19 = vunpack.c.l.b16 %v3521_v56  ;;  %v3987_v45 = vunpack.c.h.b16 %v3521_v56  ;;  %v4161_v36 = vpack.c.b16 %v4149_v31, %v4145_v25  ;;  %v4162_v49 = vpack.c.b16 %v4150_v15, %v4146_v41  ;;  %vm20462_vm1 = vmmov %vm20455_vm2  ;;  %v20473_v31 = vld [vmem:[#allocation19_spill] sm:$0xff]  ;;  %v20476_v41 = vld [vmem:[#allocation52_spill] sm:$0xff] }
 0x80a   :  { %v3637_v0 = vpop.permute.xlu1 %3636  ;;  %v3640_v30 = vsel %vm20462_vm1, %v20461_v42, %v3633_v40  ;;  %vm20464_vm3 = vmmov %vm20462_vm1  ;;  %v4117_v37 = vunpack.c.h.b16 %v20465_v14  ;;  %v18550_v34 = vpack.c.bf16 %v3671_v3, %v3670_v6  ;;  %vm20467_vm8 = vcmp.lt.s32.totalorder %v14646_v53, 111 }
 0x80b   :  { %v3642_v7 = vsel %vm20458_vm6, %v17757_v21, %v3637_v0  ;;  %v3654_v17 = vsel %vm20460_vm13, %v3637_v0, %v20459_v62  ;;  %v4002_v26 = vpack.c.b16 %v3990_v46, %v3986_v19  ;;  %v4003_v61 = vpack.c.b16 %v3991_v51, %v3987_v45  ;;  %vm20469_vm11 = vmmov %vm20467_vm8  ;;  %v20474_v46 = vld [vmem:[#allocation40_spill] sm:$0xff]  ;;  %v20482_v62 = vld [vmem:[#allocation69_spill] sm:$0xff] }
 0x80c   :  { %4402 = vmatpush.bf16.msra.mxu0 %v4165_v58  ;;  %4459 = vmatpush.bf16.msra.mxu3 %v4166_v20  ;;  %v3666_v33 = vmul.f32 %v20456_v32, %v3642_v7  ;;  %v3652_v59 = vsel %vm20464_vm3, %v3633_v40, %v20463_v18  ;;  %v3667_v21 = vmul.f32 %v20457_v8, %v3654_v17  ;;  %v4113_v50 = vunpack.c.h.b16 %v20470_v5  ;;  %v3851_v40 = vpop.permute.xlu2 %3850  ;;  %v20475_v51 = vld [vmem:[#allocation36_spill] sm:$0xff]  ;;  %vm20477_vm14 = vmmov %vm20467_vm8 }
 0x80d   :  { %v3858_v35 = vsel %vm20467_vm8, %v20466_v9, %v3853_v52  ;;  %4441 = vmatpush.bf16.msra.mxu2 %v4002_v26  ;;  %4498 = vmatpush.bf16.msrb.mxu1 %v4003_v61  ;;  %v3870_v39 = vsel %vm20469_vm11, %v3853_v52, %v20468_v29  ;;  %v3658_v22 = vmul.f32 %v20456_v32, %v3640_v30  ;;  %v4105_v4 = vunpack.c.h.b16 %v20471_v48  ;;  %vm20479_vm9 = vmmov %vm20467_vm8  ;;  %v20484_v30 = vld [vmem:[#allocation49_spill] sm:$0xff] }
 0x80e   :  { %v18564_v13 = vpack.c.bf16 %v3667_v21, %v3666_v33  ;;  %v3659_v56 = vmul.f32 %v20457_v8, %v3652_v59  ;;  %v4109_v25 = vunpack.c.h.b16 %v18078_v47  ;;  %v3882_v43 = vmul.f32 %v20472_v23, %v3858_v35  ;;  %v20478_v47 = vld [vmem:[#allocation117_spill] sm:$0xff]  ;;  %vm20481_vm5 = vmmov %vm20462_vm1  ;;  %v20486_v59 = vld [vmem:[#allocation112_spill] sm:$0xff] }
 0x80f   :  { %v4125_v57 = vpack.c.b16 %v4117_v37, %v4113_v50  ;;  %v3855_v15 = vpop.permute.xlu0 %3854  ;;  %v18572_v58 = vor.u32 %v12243_v2, %v10161_v1  ;;  %v3883_v20 = vmul.f32 %v20473_v31, %v3870_v39  ;;  %v4118_v19 = vunpack.c.l.b16 %v18550_v34  ;;  %vm20483_vm7 = vmmov %vm20462_vm1  ;;  %v20489_v35 = vld [vmem:[#allocation58_spill] sm:$0xff]  ;;  %v20490_v1 = vld [vmem:[#allocation60_spill] sm:$0xff] }
 0x810   :  { %4403 = vmatpush.bf16.msra.mxu0 %v4161_v36  ;;  %4460 = vmatpush.bf16.msra.mxu3 %v4162_v49  ;;  %v4114_v52 = vunpack.c.l.b16 %v18564_v13  ;;  %v3859_v6 = vsel %vm20477_vm14, %v20476_v41, %v3855_v15  ;;  %v3871_v3 = vsel %vm20479_vm9, %v3855_v15, %v20478_v47  ;;  %v20480_v36 = vld [vmem:[#allocation96_spill] sm:$0xff]  ;;  %v18593_v33 = vpack.c.bf16 %v3659_v56, %v3658_v22  ;;  %vm20485_vm0 = vmmov %vm20467_vm8  ;;  %v20492_v56 = vld [vmem:[#allocation95_spill] sm:$0xff] }
 0x811   :  { %4442 = vmatpush.bf16.msra.mxu2 %v20474_v46  ;;  %4499 = vmatpush.bf16.msrb.mxu1 %v20475_v51  ;;  %v3886_v45 = vmul.f32 %v20472_v23, %v3859_v6  ;;  %v3887_v7 = vmul.f32 %v20473_v31, %v3871_v3  ;;  %v3857_v18 = vsel %vm20485_vm0, %v20484_v30, %v3851_v40  ;;  %vm20487_vm12 = vmmov %vm20485_vm0  ;;  %v20491_v2 = vld [vmem:[#allocation120_spill] sm:$0xff]  ;;  %v20493_v48 = vld [vmem:[#allocation85_spill] sm:$0xff]  ;;  %v4195_v51 = vunpack.c.h.b16 %v18402_v63 }
 0x812   :  { %v3635_v0 = vpop.permute.xlu1 %3634  ;;  %10173 = vmatmul.msk.bf16.vlgmr.msra.gmra.mxu1 %vm3061_vm15, %v18258_v11  ;;  %v4126_v42 = vpack.c.b16 %v4118_v19, %v4114_v52  ;;  %v3869_v21 = vsel %vm20487_vm12, %v3851_v40, %v20486_v59  ;;  %v4121_v14 = vpack.c.b16 %v4109_v25, %v4105_v4  ;;  %v3893_v9 = vpack.c.bf16 %v3883_v20, %v3882_v43  ;;  %v20495_v20 = vld [vmem:[#allocation65_spill] sm:$0xff]  ;;  %v20497_v41 = vld [vmem:[#allocation54_spill] sm:$0xff]  ;;  %vm20500_vm4 = vmmov %vm20485_vm0 }
 0x813   :  { %v3641_v49 = vsel %vm20481_vm5, %v20480_v36, %v3635_v0  ;;  %v3653_v17 = vsel %vm20483_vm7, %v3635_v0, %v20482_v62  ;;  %4337 = vmatmul.bf16.gmra.mxu0 %v18572_v58  ;;  %4394 = vmatmul.bf16.gmra.mxu3 %v18572_v58  ;;  %v18613_v29 = vpack.c.bf16 %v20491_v2, %v20490_v1  ;;  %v4106_v50 = vunpack.c.l.b16 %v18593_v33  ;;  %v20496_v40 = vld [vmem:[#allocation125_spill] sm:$0xff]  ;;  %v20498_v6 = vld [vmem:[#allocation62_spill] sm:$0xff]  ;;  %vm20502_vm10 = vmmov %vm20485_vm0 }
 0x814   :  { %4404 = vmatpush.bf16.msra.mxu0 %v4125_v57  ;;  %v3662_v26 = vmul.f32 %v20456_v32, %v3641_v49  ;;  %v3663_v61 = vmul.f32 %v20457_v8, %v3653_v17  ;;  %v3895_v32 = vpack.c.bf16 %v3887_v7, %v3886_v45  ;;  %v20488_v8 = vld [vmem:[#allocation84_spill] sm:$0xff]  ;;  %4461 = vmatpush.bf16.msra.mxu3 %v4126_v42  ;;  %v4199_v25 = vunpack.c.h.b16 %v18423_v55  ;;  %v20494_v57 = vld [vmem:[#allocation98_spill] sm:$0xff]  ;;  %v20499_v47 = vld [vmem:[#allocation121_spill] sm:$0xff] }
 0x815   :  { %4443 = vmatpush.bf16.msra.mxu2 %v20488_v8  ;;  %4500 = vmatpush.bf16.msrb.mxu1 %v20489_v35  ;;  %v3878_v39 = vmul.f32 %v20472_v23, %v3857_v18  ;;  %v3879_v5 = vmul.f32 %v20473_v31, %v3869_v21  ;;  %v18621_v4 = vpack.c.bf16 %v20493_v48, %v20492_v56  ;;  %v20501_v55 = vld [vmem:[#allocation97_spill] sm:$0xff]  ;;  %v4078_v19 = vunpack.c.l.b16 %v18613_v29  ;;  %v20504_v17 = vld [vmem:[#allocation59_spill] sm:$0xff]  ;;  %v20507_v21 = vld [vmem:[#allocation122_spill] sm:$0xff] }
 0x816   :  { %v18607_v37 = vpack.c.bf16 %v3663_v61, %v3662_v26  ;;  %v4238_v43 = vunpack.c.l.b16 %v3895_v32  ;;  %v18627_v46 = vpack.c.bf16 %v20496_v40, %v20495_v20  ;;  %v4234_v45 = vunpack.c.l.b16 %v3893_v9  ;;  %v20503_v62 = vld [vmem:[#allocation77_spill] sm:$0xff]  ;;  %v20505_v42 = vld [vmem:[#allocation119_spill] sm:$0xff] }
 0x817   :  { %v3891_v7 = vpack.c.bf16 %v3879_v5, %v3878_v39  ;;  %v4074_v49 = vunpack.c.l.b16 %v18621_v4  ;;  %v3601_v26 = vpack.c.bf16 %v20504_v17, %v20503_v62  ;;  %v4207_v30 = vpack.c.b16 %v4199_v25, %v4195_v51  ;;  %v20506_v59 = vld [vmem:[#allocation55_spill] sm:$0xff] }
 0x818   :  { %4405 = vmatpush.bf16.msra.mxu0 %v4121_v14  ;;  %v4110_v22 = vunpack.c.l.b16 %v18607_v37  ;;  %v4246_v53 = vpack.c.b16 %v4238_v43, %v4234_v45  ;;  %v4191_v18 = vunpack.c.h.b16 %v18442_v54  ;;  %v4239_v14 = vunpack.c.h.b16 %v3895_v32 }
 0x819   :  { %4444 = vmatpush.bf16.msra.mxu2 %v20494_v57  ;;  %4501 = vmatpush.bf16.msrb.mxu1 %v20497_v41  ;;  %v4187_v8 = vunpack.c.h.b16 %v18466_v27  ;;  %v4230_v1 = vunpack.c.l.b16 %v3891_v7  ;;  %v4066_v2 = vunpack.c.l.b16 %v3601_v26  ;;  %v4235_v39 = vunpack.c.h.b16 %v3893_v9 }
 0x81a   :  { %v3849_v15 = vpop.permute.xlu1 %3848  ;;  %v4122_v52 = vpack.c.b16 %v4110_v22, %v4106_v50  ;;  %v4155_v50 = vunpack.c.h.b16 %v18488_v24  ;;  %v4159_v32 = vunpack.c.h.b16 %v18485_v16  ;;  %v4151_v9 = vunpack.c.h.b16 %v18514_v12 }
 0x81b   :  { %v3856_v3 = vsel %vm20500_vm4, %v20499_v47, %v3849_v15  ;;  %v3868_v0 = vsel %vm20502_vm10, %v3849_v15, %v20501_v55  ;;  %v4203_v54 = vpack.c.b16 %v4191_v18, %v4187_v8  ;;  %v4247_v56 = vpack.c.b16 %v4239_v14, %v4235_v39 }
 0x81c   :  { %4406 = vmatpush.bf16.msra.mxu0 %v20498_v6  ;;  %v3874_v36 = vmul.f32 %v20472_v23, %v3856_v3  ;;  %v3875_v63 = vmul.f32 %v20473_v31, %v3868_v0  ;;  %4462 = vmatpush.bf16.msra.mxu3 %v4122_v52  ;;  %v4086_v23 = vpack.c.b16 %v4078_v19, %v4074_v49  ;;  %v4070_v31 = vunpack.c.l.b16 %v18627_v46 }
 0x81d   :  { %4445 = vmatpush.bf16.msra.mxu2 %v20505_v42  ;;  %4502 = vmatpush.bf16.msrb.mxu1 %v20506_v59  ;;  %v4167_v48 = vpack.c.b16 %v4159_v32, %v4155_v50  ;;  %v4231_v25 = vunpack.c.h.b16 %v3891_v7  ;;  %v4147_v24 = vunpack.c.h.b16 %v18505_v10  ;;  %v4115_v16 = vunpack.c.h.b16 %v18564_v13 }
 0x81e   :  { %v3889_v61 = vpack.c.bf16 %v3875_v63, %v3874_v36  ;;  %v4082_v22 = vpack.c.b16 %v4070_v31, %v4066_v2  ;;  %v4119_v15 = vunpack.c.h.b16 %v18550_v34  ;;  %v4111_v20 = vunpack.c.h.b16 %v18607_v37  ;;  %v18689_v63 = vpop.permute.xlu2 %4280 }
 0x81f   :  { %v4163_v57 = vpack.c.b16 %v4151_v9, %v4147_v24  ;;  %v4107_v12 = vunpack.c.h.b16 %v18593_v33  ;;  %v4079_v51 = vunpack.c.h.b16 %v18613_v29  ;;  %v4075_v10 = vunpack.c.h.b16 %v18621_v4 }
 0x820   :  { %4407 = vmatpush.bf16.msra.mxu0 %v20507_v21  ;;  %v4226_v35 = vunpack.c.l.b16 %v3889_v61  ;;  %4446 = vmatmul.bf16.vlgmr.msra.gmra.mxu2 %v18480_v60  ;;  %v4227_v27 = vunpack.c.h.b16 %v3889_v61  ;;  %v4127_v52 = vpack.c.b16 %v4119_v15, %v4115_v16  ;;  %v4071_v34 = vunpack.c.h.b16 %v18627_v46 }
 0x821   :  { %4514 = vmatpush.bf16.msrb.mxu2 %v4207_v30  ;;  %4463 = vmatpush.bf16.msra.mxu3 %v4086_v23  ;;  %v4123_v40 = vpack.c.b16 %v4111_v20, %v4107_v12  ;;  %v4087_v13 = vpack.c.b16 %v4079_v51, %v4075_v10  ;;  %v4067_v37 = vunpack.c.h.b16 %v3601_v26 }
 0x822   :  { %v4242_v5 = vpack.c.b16 %v4230_v1, %v4226_v35  ;;  %10174 = vmatmul.msk.bf16.gmra.mxu1 %vm3061_vm15, %v18371_v44  ;;  %v4243_v43 = vpack.c.b16 %v4231_v25, %v4227_v27  ;;  %v18686_v55 = vpop.permute.xlu1 %4275 }
 0x823   :  { %4408 = vmatmul.bf16.vlgmr.msra.gmra.mxu0 %v18353_v28  ;;  %v4083_v33 = vpack.c.b16 %v4071_v34, %v4067_v37 }
 0x824   :  { %4482 = vmatpush.bf16.msrb.mxu0 %v4246_v53 }
 0x825   :  { %4515 = vmatpush.bf16.msrb.mxu2 %v4203_v54  ;;  %4464 = vmatpush.bf16.msra.mxu3 %v4082_v22 }
 0x828   :  { %4483 = vmatpush.bf16.msrb.mxu0 %v4242_v5  ;;  %4465 = vmatmul.bf16.vlgmr.msra.gmra.mxu3 %v18353_v28 }
 0x829   :  { %4539 = vmatpush.bf16.msrb.mxu3 %v4247_v56  ;;  %4516 = vmatpush.bf16.msrb.mxu2 %v4167_v48 }
 0x82d   :  { %4540 = vmatpush.bf16.msrb.mxu3 %v4243_v43  ;;  %4517 = vmatpush.bf16.msrb.mxu2 %v4163_v57 }
 0x830   :  { %4451 = vmatmul.bf16.gmra.mxu2 %v18572_v58 }
 0x831   :  { %4518 = vmatpush.bf16.msrb.mxu2 %v4127_v52 }
 0x832   :  { %4503 = vmatmul.bf16.vlgmr.msrb.gmra.mxu1 %v18480_v60 }
 0x833   :  { %4413 = vmatmul.bf16.gmra.mxu0 %v18482_v38 }
 0x835   :  { %4519 = vmatpush.bf16.msrb.mxu2 %v4123_v40 }
 0x838   :  { %4470 = vmatmul.bf16.gmra.mxu3 %v18482_v38 }
 0x839   :  { %4520 = vmatpush.bf16.msrb.mxu2 %v4087_v13 }
 0x83d   :  { %4521 = vmatpush.bf16.msrb.mxu2 %v4083_v33 }
 0x840   :  { %4522 = vmatmul.bf16.vlgmr.msrb.gmra.mxu2 %v18353_v28  ;;  %v18681_v28 = vpop.permute.xlu0 %4270 }
 0x842   :  { %4508 = vmatmul.bf16.gmra.mxu1 %v18572_v58 }
 0x843   :  { %10175 = vmatmul.msk.bf16.vlgmr.msrb.gmra.mxu0 %vm3061_vm15, %v18258_v11 }
 0x848   :  { %10177 = vmatmul.msk.bf16.vlgmr.msrb.gmra.mxu3 %vm3061_vm15, %v18258_v11  ;;  %v18696_v59 = vpop.permute.xlu0 %4285 }
 0x850   :  { %4527 = vmatmul.bf16.gmra.mxu2 %v18482_v38 }
 0x853   :  { %10176 = vmatmul.msk.bf16.gmra.mxu0 %vm3061_vm15, %v18371_v44 }
 0x858   :  { %10178 = vmatmul.msk.bf16.gmra.mxu3 %vm3061_vm15, %v18371_v44 }
 0x863   :  { %v4371_v4 = vpop.f32.mrf.mxu2 }
 0x86b   :  { %v4373_v3 = vpop.f32.mrf.mxu2 }
 0x86e   :  { %v4352_v60 = vpop.f32.mrf.mxu1 }
 0x874   :  { %v4376_v17 = vpop.f32.mrf.mxu2 }
 0x876   :  { %v4354_v29 = vpop.f32.mrf.mxu1 }
 0x87c   :  { %v4378_v31 = vpop.f32.mrf.mxu2 }
 0x87e   :  { %v4357_v41 = vpop.f32.mrf.mxu1 }
 0x880   :  { %v4333_v58 = vpop.f32.mrf.mxu0 }
 0x881   :  { %v4334_v46 = vadd.f32 %v4333_v58, %v18681_v28 }
 0x883   :  { %v4353_v6 = vadd.f32 %v4352_v60, %v4334_v46 }
 0x885   :  { %v4372_v47 = vadd.f32 %v4371_v4, %v4353_v6 }
 0x886   :  { %v4390_v11 = vpop.f32.mrf.mxu3  ;;  %v4359_v19 = vpop.f32.mrf.mxu1 }
 0x887   :  { %v18684_v38 = vmax.f32 %v4372_v47, 0.0  ;;  %v4391_v35 = vadd.f32 %v4390_v11, %v18681_v28 }
 0x888   :  { %v4335_v0 = vpop.f32.mrf.mxu0 }
 0x889   :  { %v4336_v44 = vadd.f32 %v4335_v0, %v18686_v55 }
 0x88b   :  { %v4355_v45 = vadd.f32 %v4354_v29, %v4336_v44 }
 0x88d   :  { %v4374_v7 = vadd.f32 %v4373_v3, %v4355_v45 }
 0x88e   :  { %v4392_v36 = vpop.f32.mrf.mxu3 }
 0x88f   :  { %v18691_v49 = vmax.f32 %v4374_v7, 0.0  ;;  %v4428_v42 = vpop.f32.mrf.mxu1  ;;  %v4393_v56 = vadd.f32 %v4392_v36, %v18686_v55 }
 0x890   :  { %v4338_v62 = vpop.f32.mrf.mxu0 }
 0x891   :  { %v4339_v26 = vadd.f32 %v4338_v62, %v18689_v63 }
 0x893   :  { %v4358_v61 = vadd.f32 %v4357_v41, %v4339_v26 }
 0x895   :  { %v4377_v30 = vadd.f32 %v4376_v17, %v4358_v61 }
 0x896   :  { %v4395_v18 = vpop.f32.mrf.mxu3 }
 0x897   :  { %v18694_v53 = vmax.f32 %v4377_v30, 0.0  ;;  %v4430_v1 = vpop.f32.mrf.mxu1  ;;  %v4396_v16 = vadd.f32 %v4395_v18, %v18689_v63 }
 0x898   :  { %v4340_v21 = vpop.f32.mrf.mxu0 }
 0x899   :  { %v4341_v23 = vadd.f32 %v4340_v21, %v18696_v59 }
 0x89b   :  { %v4360_v14 = vadd.f32 %v4359_v19, %v4341_v23 }
 0x89d   :  { %v4379_v8 = vadd.f32 %v4378_v31, %v4360_v14 }
 0x89e   :  { %v4397_v54 = vpop.f32.mrf.mxu3 }
 0x89f   :  { %v18700_v2 = vmax.f32 %v4379_v8, 0.0  ;;  %v4433_v48 = vpop.f32.mrf.mxu1  ;;  %v4398_v13 = vadd.f32 %v4397_v54, %v18696_v59 }
 0x8a0   :  { %v4409_v39 = vpop.f32.mrf.mxu0 }
 0x8a1   :  { %v4410_v5 = vadd.f32 %v4409_v39, %v4391_v35 }
 0x8a3   :  { %v4447_v50 = vpop.f32.mrf.mxu2  ;;  %v4429_v22 = vadd.f32 %v4428_v42, %v4410_v5 }
 0x8a4   :  { %v4448_v4 = vadd.f32 %v4447_v50, %v18681_v28 }
 0x8a5   :  { %v18702_v32 = vmax.f32 %v4429_v22, 0.0 }
 0x8a7   :  { %v4435_v40 = vpop.f32.mrf.mxu1 }
 0x8a8   :  { %v4411_v27 = vpop.f32.mrf.mxu0 }
 0x8a9   :  { %v4412_v9 = vadd.f32 %v4411_v27, %v4393_v56 }
 0x8ab   :  { %v4466_v25 = vpop.f32.mrf.mxu3  ;;  %v4449_v24 = vpop.f32.mrf.mxu2  ;;  %v4431_v43 = vadd.f32 %v4430_v1, %v4412_v9 }
 0x8ac   :  { %v4467_v41 = vadd.f32 %v4466_v25, %v4448_v4  ;;  %v4450_v44 = vadd.f32 %v4449_v24, %v18686_v55 }
 0x8ad   :  { %v18705_v57 = vmax.f32 %v4431_v43, 0.0 }
 0x8af   :  { %v4504_v58 = vpop.f32.mrf.mxu1 }
 0x8b0   :  { %v4414_v15 = vpop.f32.mrf.mxu0  ;;  %v4505_v19 = vadd.f32 %v4504_v58, %v18681_v28 }
 0x8b1   :  { %v4415_v52 = vadd.f32 %v4414_v15, %v4396_v16 }
 0x8b3   :  { %v4468_v20 = vpop.f32.mrf.mxu3  ;;  %v4452_v12 = vpop.f32.mrf.mxu2  ;;  %v4434_v51 = vadd.f32 %v4433_v48, %v4415_v52 }
 0x8b4   :  { %v4469_v45 = vadd.f32 %v4468_v20, %v4450_v44  ;;  %v4453_v21 = vadd.f32 %v4452_v12, %v18689_v63 }
 0x8b5   :  { %v18708_v10 = vmax.f32 %v4434_v51, 0.0 }
 0x8b7   :  { %v4506_v7 = vpop.f32.mrf.mxu1 }
 0x8b8   :  { %v4416_v34 = vpop.f32.mrf.mxu0  ;;  %v4507_v23 = vadd.f32 %v4506_v7, %v18686_v55 }
 0x8b9   :  { %v4417_v37 = vadd.f32 %v4416_v34, %v4398_v13 }
 0x8bb   :  { %v4471_v33 = vpop.f32.mrf.mxu3  ;;  %v4454_v60 = vpop.f32.mrf.mxu2  ;;  %v4436_v29 = vadd.f32 %v4435_v40, %v4417_v37 }
 0x8bc   :  { %v4472_v31 = vadd.f32 %v4471_v33, %v4453_v21  ;;  %v4455_v22 = vadd.f32 %v4454_v60, %v18696_v59 }
 0x8bd   :  { %v18712_v46 = vmax.f32 %v4436_v29, 0.0 }
 0x8bf   :  { %v4509_v28 = vpop.f32.mrf.mxu1 }
 0x8c0   :  { %v4485_v6 = vpop.f32.mrf.mxu0  ;;  %v4510_v56 = vadd.f32 %v4509_v28, %v18689_v63 }
 0x8c1   :  { %v4486_v47 = vadd.f32 %v4485_v6, %v4467_v41 }
 0x8c3   :  { %v4473_v11 = vpop.f32.mrf.mxu3  ;;  %v4523_v3 = vpop.f32.mrf.mxu2  ;;  %v18714_v0 = vmax.f32 %v4486_v47, 0.0 }
 0x8c4   :  { %v4524_v36 = vadd.f32 %v4523_v3, %v4505_v19  ;;  %v4474_v27 = vadd.f32 %v4473_v11, %v4455_v22 }
 0x8c7   :  { %v4511_v43 = vpop.f32.mrf.mxu1 }
 0x8c8   :  { %v4487_v62 = vpop.f32.mrf.mxu0  ;;  %v4512_v20 = vadd.f32 %v4511_v43, %v18696_v59 }
 0x8c9   :  { %v4488_v17 = vadd.f32 %v4487_v62, %v4469_v45 }
 0x8cb   :  { %v4542_v26 = vpop.f32.mrf.mxu3  ;;  %v4525_v61 = vpop.f32.mrf.mxu2  ;;  %v18718_v30 = vmax.f32 %v4488_v17, 0.0 }
 0x8cc   :  { %v4543_v42 = vadd.f32 %v4542_v26, %v4524_v36  ;;  %v4526_v14 = vadd.f32 %v4525_v61, %v4507_v23 }
 0x8ce   :  { %v18720_v18 = vmax.f32 %v4543_v42, 0.0 }
 0x8d0   :  { %v4490_v8 = vpop.f32.mrf.mxu0 }
 0x8d1   :  { %v4491_v35 = vadd.f32 %v4490_v8, %v4472_v31 }
 0x8d3   :  { %v4544_v1 = vpop.f32.mrf.mxu3  ;;  %v18724_v54 = vmax.f32 %v4491_v35, 0.0  ;;  %v4528_v5 = vpop.f32.mrf.mxu2 }
 0x8d4   :  { %v4545_v39 = vadd.f32 %v4544_v1, %v4526_v14  ;;  %v4529_v48 = vadd.f32 %v4528_v5, %v4510_v56 }
 0x8d6   :  { %v18726_v50 = vmax.f32 %v4545_v39, 0.0 }
 0x8d8   :  { %v4492_v9 = vpop.f32.mrf.mxu0 }
 0x8d9   :  { %v4493_v55 = vadd.f32 %v4492_v9, %v4474_v27 }
 0x8db   :  { %v4547_v25 = vpop.f32.mrf.mxu3  ;;  %v18730_v16 = vmax.f32 %v4493_v55, 0.0  ;;  %v4530_v52 = vpop.f32.mrf.mxu2 }
 0x8dc   :  { %v4548_v24 = vadd.f32 %v4547_v25, %v4529_v48  ;;  %v4531_v12 = vadd.f32 %v4530_v52, %v4512_v20 }
 0x8de   :  { %v18732_v15 = vmax.f32 %v4548_v24, 0.0 }
 0x8e3   :  { %v4549_v40 = vpop.f32.mrf.mxu3 }
 0x8e4   :  { %v4550_v51 = vadd.f32 %v4549_v40, %v4531_v12 }
 0x8e6   :  { %v18735_v13 = vmax.f32 %v4550_v51, 0.0 }
 0x8e7   :  { %12778 = dma.done.wait [#allocation3], 65536 }
 0x8e8   :  { %12779 = vsyncadd [#allocation3], 4294901760  ;;  %v12252_v63 = vld [vmem:[#allocation2 + $0x338] sm:$0xff]  ;;  %v12260_v34 = vld [vmem:[#allocation2 + $0x510] sm:$0xff]  ;;  %v4582_v8 = vrot.slane %v18684_v38, 1  ;;  %v4574_v28 = vrot.slane %v18714_v0, 7 }
 0x8e9   :  { %v12268_v37 = vld [vmem:[#allocation2 + $0x5b8] sm:$0xff]  ;;  %9040 = vmatpush.bf16.msra.mxu0 %v12252_v63  ;;  %9053 = vmatpush.bf16.msra.mxu1 %v12260_v34  ;;  %v12251_v60 = vld [vmem:[#allocation2 + $0x770] sm:$0xff]  ;;  %v12275_v58 = vld [vmem:[#allocation2 + $0x948] sm:$0xff]  ;;  %v4583_v35 = vrot.slane %v18702_v32, 1  ;;  %v4575_v1 = vrot.slane %v18720_v18, 7  ;;  %vm20508_vm15 = vcmask 1040384  }
 0x8ea   :  { %v12276_v33 = vld [vmem:[#allocation2 + $0xbf8] sm:$0xff]  ;;  %9066 = vmatpush.bf16.msra.mxu2 %v12268_v37  ;;  %v12267_v4 = vld [vmem:[#allocation2 + $0xaf0] sm:$0xff]  ;;  %v12258_v41 = vld [vmem:[#allocation2 + $0xb28] sm:$0xff]  ;;  %v4586_v27 = vsel %vm20508_vm15, %v4582_v8, %v18714_v0  ;;  %v4599_v8 = vrot.slane %v18702_v32, 3  ;;  %s20569_s0 = sld [smem:[#allocation128_spill]] }
 0x8eb   :  { %v12259_v29 = vld [vmem:[#allocation2 + $0xd58] sm:$0xff]  ;;  %9079 = vmatpush.bf16.msra.mxu3 %v12276_v33  ;;  %v12250_v59 = vld [vmem:[#allocation2 + $0x810] sm:$0xff]  ;;  %v12257_v3 = vld [vmem:[#allocation2 + $0xca0] sm:$0xff]  ;;  %v4878_v20 = vpack.c.bf16 %v4586_v27, %v4586_v27 }
 0x8ec   :  { %v12266_v6 = vld [vmem:[#allocation2 + $0x830] sm:$0xff]  ;;  %v12274_v47 = vld [vmem:[#allocation2 + $0xb78] sm:$0xff]  ;;  %v12265_v44 = vld [vmem:[#allocation2 + $0x748] sm:$0xff] }
 0x8ed   :  { %9041 = vmatpush.bf16.msra.mxu0 %v12251_v60  ;;  %9054 = vmatpush.bf16.msra.mxu1 %v12259_v29  ;;  %v12249_v11 = vld [vmem:[#allocation2 + $0xc50] sm:$0xff]  ;;  %v12273_v19 = vld [vmem:[#allocation2 + $0xea0] sm:$0xff]  ;;  %v12248_v45 = vld [vmem:[#allocation2 + $0x818] sm:$0xff] }
 0x8ee   :  { %9067 = vmatpush.bf16.msra.mxu2 %v12267_v4  ;;  %v12256_v7 = vld [vmem:[#allocation2 + $0xd20] sm:$0xff]  ;;  %v12272_v62 = vld [vmem:[#allocation2 + $0xf08] sm:$0xff]  ;;  %v12247_v17 = vld [vmem:[#allocation2 + $0x4d8] sm:$0xff] }
 0x8ef   :  { %9080 = vmatpush.bf16.msra.mxu3 %v12275_v58  ;;  %v12264_v36 = vld [vmem:[#allocation2 + $0x340] sm:$0xff]  ;;  %v12255_v26 = vld [vmem:[#allocation2 + $0x918] sm:$0xff]  ;;  %v12263_v61 = vld [vmem:[#allocation2 + $0x790] sm:$0xff] }
 0x8f0   :  { %v12271_v42 = vld [vmem:[#allocation2 + $0x3f8] sm:$0xff]  ;;  %v12246_v21 = vld [vmem:[#allocation2 + $0xbb0] sm:$0xff]  ;;  %v12254_v23 = vld [vmem:[#allocation2 + $0xb88] sm:$0xff] }
 0x8f1   :  { %9042 = vmatpush.bf16.msra.mxu0 %v12250_v59  ;;  %9055 = vmatpush.bf16.msra.mxu1 %v12258_v41  ;;  %v12262_v31 = vld [vmem:[#allocation2 + $0x6e8] sm:$0xff]  ;;  %v12270_v14 = vld [vmem:[#allocation2 + $0xd78] sm:$0xff]  ;;  %v12245_v39 = vld [vmem:[#allocation2 + $0xab0] sm:$0xff] }
 0x8f2   :  { %9068 = vmatpush.bf16.msra.mxu2 %v12266_v6  ;;  %v12253_v5 = vld [vmem:[#allocation2 + $0x450] sm:$0xff]  ;;  %v12261_v22 = vld [vmem:[#allocation2 + $0x728] sm:$0xff]  ;;  %vm20509_vm2 = vmmov %vm20508_vm15 }
 0x8f3   :  { %9081 = vmatpush.bf16.msra.mxu3 %v12274_v47  ;;  %v12269_v56 = vld [vmem:[#allocation2 + $0x5c8] sm:$0xff]  ;;  %v4578_v48 = vsel %vm20509_vm2, %v18684_v38, %v4574_v28  ;;  %v12284_v9 = vld [vmem:[#allocation2 + $0xe30] sm:$0xff]  ;;  %v12292_v55 = vld [vmem:[#allocation2 + $0x160] sm:$0xff]  ;;  %v4603_v28 = vrot.slane %v18720_v18, 2 }
 0x8f4   :  { %vm20510_vm6 = vmmov %vm20509_vm2  ;;  %v12300_v43 = vld [vmem:[#allocation2 + $0x7a8] sm:$0xff]  ;;  %v12308_v52 = vld [vmem:[#allocation2 + $0x800] sm:$0xff]  ;;  %v4876_v12 = vpack.c.bf16 %v4578_v48, %v4578_v48 }
 0x8f5   :  { %9043 = vmatpush.bf16.msra.mxu0 %v12249_v11  ;;  %9056 = vmatpush.bf16.msra.mxu1 %v12257_v3  ;;  %v4587_v25 = vsel %vm20510_vm6, %v4583_v35, %v18720_v18  ;;  %vm20511_vm13 = vmmov %vm20509_vm2  ;;  %v12283_v63 = vld [vmem:[#allocation2 + $0x868] sm:$0xff]  ;;  %v12291_v34 = vld [vmem:[#allocation2 + $0xed0] sm:$0xff]  ;;  %v4589_v35 = vrot.slane %v18702_v32, 2 }
 0x8f6   :  { %9069 = vmatpush.bf16.msra.mxu2 %v12265_v44  ;;  %v4579_v24 = vsel %vm20511_vm13, %v18702_v32, %v4575_v1  ;;  %v4879_v40 = vpack.c.bf16 %v4587_v25, %v4587_v25  ;;  %v12299_v37 = vld [vmem:[#allocation2 + $0x630] sm:$0xff]  ;;  %v12307_v33 = vld [vmem:[#allocation2 + $0x9d8] sm:$0xff]  ;;  %v12290_v29 = vld [vmem:[#allocation2 + $0x940] sm:$0xff]  ;;  %v4593_v1 = vrot.slane %v18720_v18, 1 }
 0x8f7   :  { %9082 = vmatpush.bf16.msra.mxu3 %v12273_v19  ;;  %v4877_v51 = vpack.c.bf16 %v4579_v24, %v4579_v24  ;;  %v12282_v60 = vld [vmem:[#allocation2 + $0xbf0] sm:$0xff]  ;;  %v12298_v4 = vld [vmem:[#allocation2 + $0x620] sm:$0xff]  ;;  %v12306_v58 = vld [vmem:[#allocation2 + $0x8d8] sm:$0xff] }
 0x8f8   :  { %v12281_v59 = vld [vmem:[#allocation2 + $0xd68] sm:$0xff]  ;;  %v12289_v41 = vld [vmem:[#allocation2 + $0x420] sm:$0xff]  ;;  %v12297_v6 = vld [vmem:[#allocation2 + $0x5f8] sm:$0xff] }
 0x8f9   :  { %9044 = vmatpush.bf16.msra.mxu0 %v12248_v45  ;;  %9057 = vmatpush.bf16.msra.mxu1 %v12256_v7  ;;  %v12305_v47 = vld [vmem:[#allocation2 + $0xc58] sm:$0xff]  ;;  %v12280_v11 = vld [vmem:[#allocation2 + $0xbd0] sm:$0xff]  ;;  %v12296_v44 = vld [vmem:[#allocation2 + $0x700] sm:$0xff] }
 0x8fa   :  { %9070 = vmatpush.bf16.msra.mxu2 %v12264_v36  ;;  %v12288_v3 = vld [vmem:[#allocation2 + $0xfd8] sm:$0xff]  ;;  %v12304_v19 = vld [vmem:[#allocation2 + $0xb80] sm:$0xff]  ;;  %v12279_v45 = vld [vmem:[#allocation2 + $0x910] sm:$0xff] }
 0x8fb   :  { %9083 = vmatpush.bf16.msra.mxu3 %v12272_v62  ;;  %v12287_v7 = vld [vmem:[#allocation2 + $0x528] sm:$0xff]  ;;  %v12295_v36 = vld [vmem:[#allocation2 + $0x320] sm:$0xff]  ;;  %vm20512_vm1 = vmmov %vm20509_vm2 }
 0x8fc   :  { %v12303_v62 = vld [vmem:[#allocation2 + $0xa88] sm:$0xff]  ;;  %vm20513_vm3 = vmmov %vm20512_vm1 }
 0x8fd   :  { %9045 = vmatpush.bf16.msra.mxu0 %v12247_v17  ;;  %9058 = vmatpush.bf16.msra.mxu1 %v12255_v26  ;;  %v12278_v17 = vld [vmem:[#allocation2 + $0xa90] sm:$0xff]  ;;  %v12286_v26 = vld [vmem:[#allocation2 + $0x18] sm:$0xff]  ;;  %vm20514_vm8 = vmmov %vm20512_vm1 }
 0x8fe   :  { %9071 = vmatpush.bf16.msra.mxu2 %v12263_v61  ;;  %v12294_v61 = vld [vmem:[#allocation2 + $0x8b0] sm:$0xff]  ;;  %v4607_v25 = vsel %vm20514_vm8, %v4599_v8, %v4603_v28  ;;  %vm20515_vm11 = vmmov %vm20512_vm1  ;;  %v4609_v8 = vrot.slane %v18702_v32, 4  ;;  %v4613_v28 = vrot.slane %v18720_v18, 3 }
 0x8ff   :  { %9084 = vmatpush.bf16.msra.mxu3 %v12271_v42  ;;  %v12302_v42 = vld [vmem:[#allocation2 + $0x678] sm:$0xff]  ;;  %v4597_v24 = vsel %vm20515_vm11, %v4589_v35, %v4593_v1  ;;  %v4619_v35 = vrot.slane %v18702_v32, 5  ;;  %v4623_v1 = vrot.slane %v18720_v18, 4  ;;  %vm20516_vm14 = vmmov %vm20512_vm1 }
 0x900   :  { %vm20517_vm9 = vmmov %vm20512_vm1 }
 0x901   :  { %9046 = vmatpush.bf16.msra.mxu0 %v12246_v21  ;;  %9059 = vmatpush.bf16.msra.mxu1 %v12254_v23  ;;  %v4598_v21 = vrot.slane %v18684_v38, 3  ;;  %v4602_v23 = vrot.slane %v18714_v0, 2  ;;  %vm20518_vm5 = vmmov %vm20512_vm1 }
 0x902   :  { %9072 = vmatpush.bf16.msra.mxu2 %v12262_v31  ;;  %v4588_v31 = vrot.slane %v18684_v38, 2  ;;  %vm20519_vm7 = vmmov %vm20512_vm1 }
 0x903   :  { %9085 = vmatpush.bf16.msra.mxu3 %v12270_v14  ;;  %v4592_v14 = vrot.slane %v18714_v0, 1  ;;  %v4606_v27 = vsel %vm20512_vm1, %v4598_v21, %v4602_v23  ;;  %v4608_v21 = vrot.slane %v18684_v38, 4  ;;  %v4612_v23 = vrot.slane %v18714_v0, 3  ;;  %vm20520_vm0 = vmmov %vm20512_vm1 }
 0x904   :  { %vm20521_vm12 = vmmov %vm20520_vm0 }
 0x905   :  { %9047 = vmatpush.bf16.msra.mxu0 %v12245_v39  ;;  %9060 = vmatpush.bf16.msra.mxu1 %v12253_v5  ;;  %v12277_v39 = vld [vmem:[#allocation2 + $0x9d0] sm:$0xff]  ;;  %v12285_v5 = vld [vmem:[#allocation2 + $0xcd8] sm:$0xff]  ;;  %v4596_v48 = vsel %vm20513_vm3, %v4588_v31, %v4592_v14  ;;  %v4618_v31 = vrot.slane %v18684_v38, 5  ;;  %v4622_v14 = vrot.slane %v18714_v0, 4  ;;  %vm20522_vm4 = vmmov %vm20520_vm0 }
 0x906   :  { %9073 = vmatpush.bf16.msra.mxu2 %v12261_v22  ;;  %v12293_v22 = vld [vmem:[#allocation2 + $0x8e8] sm:$0xff]  ;;  %vm20523_vm10 = vmmov %vm20520_vm0 }
 0x907   :  { %9086 = vmatpush.bf16.msra.mxu3 %v12269_v56  ;;  %v12301_v56 = vld [vmem:[#allocation2 + $0x70] sm:$0xff]  ;;  %vm20524_vm15 = vmmov %vm20520_vm0 }
 0x908   :  { %9048 = vmatmul.bf16.vlgmr.msra.gmra.mxu0 %v4876_v12  ;;  %9061 = vmatmul.bf16.vlgmr.msra.gmra.mxu1 %v4877_v51  ;;  %v4880_v12 = vpack.c.bf16 %v4596_v48, %v4596_v48  ;;  %v4881_v51 = vpack.c.bf16 %v4597_v24, %v4597_v24  ;;  %v4626_v48 = vsel %vm20517_vm9, %v4618_v31, %v4622_v14  ;;  %v4638_v31 = vrot.slane %v18684_v38, 7  ;;  %vm20525_vm2 = vmmov %vm20520_vm0 }
 0x909   :  { %9092 = vmatpush.bf16.msrb.mxu0 %v12284_v9  ;;  %9105 = vmatpush.bf16.msrb.mxu1 %v12292_v55  ;;  %v12316_v9 = vld [vmem:[#allocation2 + $0xd60] sm:$0xff]  ;;  %v12324_v55 = vld [vmem:[#allocation2 + $0x6d8] sm:$0xff]  ;;  %v4627_v24 = vsel %vm20519_vm7, %v4619_v35, %v4623_v1  ;;  %v4642_v14 = vrot.slane %v18714_v0, 6  ;;  %v4639_v35 = vrot.slane %v18702_v32, 7  ;;  %v4643_v1 = vrot.slane %v18720_v18, 6  ;;  %vm20526_vm6 = vmmov %vm20520_vm0 }
 0x90a   :  { %9118 = vmatpush.bf16.msrb.mxu2 %v12300_v43  ;;  %9087 = vmatmul.bf16.vlgmr.msra.gmra.mxu3 %v4879_v40  ;;  %v12332_v43 = vld [vmem:[#allocation2 + $0x90] sm:$0xff]  ;;  %v4883_v40 = vpack.c.bf16 %v4607_v25, %v4607_v25  ;;  %v4617_v25 = vsel %vm20518_vm5, %v4609_v8, %v4613_v28  ;;  %v4629_v8 = vrot.slane %v18702_v32, 6  ;;  %v4633_v28 = vrot.slane %v18720_v18, 5  ;;  %v12404_v18 = vld [vmem:[#allocation2 + $0x1f8] sm:$0xff]  ;;  %vm20527_vm13 = vmmov %vm20520_vm0 }
 0x90b   :  { %9131 = vmatpush.bf16.msrb.mxu3 %v12308_v52  ;;  %9074 = vmatmul.bf16.vlgmr.msra.gmra.mxu2 %v4878_v20  ;;  %v12340_v52 = vld [vmem:[#allocation2 + $0x2e0] sm:$0xff]  ;;  %v4882_v20 = vpack.c.bf16 %v4606_v27, %v4606_v27  ;;  %v4616_v27 = vsel %vm20516_vm14, %v4608_v21, %v4612_v23  ;;  %v4628_v21 = vrot.slane %v18684_v38, 6  ;;  %v4632_v23 = vrot.slane %v18714_v0, 5  ;;  %vm20528_vm1 = vmmov %vm20520_vm0 }
 0x90c   :  { %v4646_v0 = vsel %vm20521_vm12, %v4638_v31, %v4642_v14  ;;  %v4647_v32 = vsel %vm20523_vm10, %v4639_v35, %v4643_v1  ;;  %v12389_v31 = vld [vmem:[#allocation2 + $0xc40] sm:$0xff]  ;;  %v12397_v14 = vld [vmem:[#allocation2 + $0x688] sm:$0xff]  ;;  %v12412_v35 = vld [vmem:[#allocation2 + $0xd90] sm:$0xff] }
 0x90d   :  { %9093 = vmatpush.bf16.msrb.mxu0 %v12283_v63  ;;  %9106 = vmatpush.bf16.msrb.mxu1 %v12291_v34  ;;  %v12315_v63 = vld [vmem:[#allocation2 + $0x488] sm:$0xff]  ;;  %v12323_v34 = vld [vmem:[#allocation2 + $0x660] sm:$0xff]  ;;  %v4636_v38 = vsel %vm20520_vm0, %v4628_v21, %v4632_v23  ;;  %v12381_v23 = vld [vmem:[#allocation2 + $0x950] sm:$0xff] }
 0x90e   :  { %9119 = vmatpush.bf16.msrb.mxu2 %v12299_v37  ;;  %v12331_v37 = vld [vmem:[#allocation2 + $0x650] sm:$0xff]  ;;  %v12373_v21 = vld [vmem:[#allocation2 + $0x1c0] sm:$0xff]  ;;  %v12420_v1 = vld [vmem:[#allocation2 + $0x768] sm:$0xff] }
 0x90f   :  { %9132 = vmatpush.bf16.msrb.mxu3 %v12307_v33  ;;  %v12339_v33 = vld [vmem:[#allocation2 + $0x230] sm:$0xff]  ;;  %vm20529_vm3 = vmmov %vm20520_vm0 }
 0x910   :  { %vm20530_vm8 = vmmov %vm20520_vm0 }
 0x911   :  { %9094 = vmatpush.bf16.msrb.mxu0 %v12282_v60  ;;  %9107 = vmatpush.bf16.msrb.mxu1 %v12290_v29  ;;  %v12314_v60 = vld [vmem:[#allocation2 + $0x490] sm:$0xff]  ;;  %vm20531_vm11 = vmmov %vm20520_vm0 }
 0x912   :  { %9120 = vmatpush.bf16.msrb.mxu2 %v12298_v4  ;;  %v12322_v29 = vld [vmem:[#allocation2 + $0xdb0] sm:$0xff]  ;;  %v12330_v4 = vld [vmem:[#allocation2 + $0x188] sm:$0xff]  ;;  %vm20532_vm14 = vmmov %vm20520_vm0 }
 0x913   :  { %9133 = vmatpush.bf16.msrb.mxu3 %v12306_v58  ;;  %v12338_v58 = vld [vmem:[#allocation2 + $0xc00] sm:$0xff]  ;;  %vm20533_vm9 = vmmov %vm20520_vm0 }
 0x914   :  { %vm20534_vm5 = vmmov %vm20520_vm0 }
 0x915   :  { %9095 = vmatpush.bf16.msrb.mxu0 %v12281_v59  ;;  %9108 = vmatpush.bf16.msrb.mxu1 %v12289_v41  ;;  %v12313_v59 = vld [vmem:[#allocation2 + $0x358] sm:$0xff]  ;;  %v12321_v41 = vld [vmem:[#allocation2 + $0xec8] sm:$0xff]  ;;  %vm20535_vm7 = vmmov %vm20520_vm0 }
 0x916   :  { %9121 = vmatpush.bf16.msrb.mxu2 %v12297_v6  ;;  %v12329_v6 = vld [vmem:[#allocation2 + $0x1b8] sm:$0xff]  ;;  %vm20536_vm12 = vmmov %vm20520_vm0 }
 0x917   :  { %9134 = vmatpush.bf16.msrb.mxu3 %v12305_v47  ;;  %v12337_v47 = vld [vmem:[#allocation2 + $0x8e0] sm:$0xff]  ;;  %vm20538_vm10 = vmmov %vm20520_vm0 }
 0x919   :  { %9096 = vmatpush.bf16.msrb.mxu0 %v12280_v11  ;;  %9109 = vmatpush.bf16.msrb.mxu1 %v12288_v3  ;;  %v12312_v11 = vld [vmem:[#allocation2 + $0xd30] sm:$0xff]  ;;  %v12320_v3 = vld [vmem:[#allocation2 + $0x158] sm:$0xff] }
 0x91a   :  { %9122 = vmatpush.bf16.msrb.mxu2 %v12296_v44  ;;  %v12328_v44 = vld [vmem:[#allocation2 + $0xa48] sm:$0xff] }
 0x91b   :  { %9135 = vmatpush.bf16.msrb.mxu3 %v12304_v19  ;;  %v12336_v19 = vld [vmem:[#allocation2 + $0x288] sm:$0xff] }
 0x91d   :  { %9097 = vmatpush.bf16.msrb.mxu0 %v12279_v45  ;;  %9110 = vmatpush.bf16.msrb.mxu1 %v12287_v7  ;;  %v12311_v45 = vld [vmem:[#allocation2 + $0xbe8] sm:$0xff] }
 0x91e   :  { %9123 = vmatpush.bf16.msrb.mxu2 %v12295_v36  ;;  %v12319_v7 = vld [vmem:[#allocation2 + $0x208] sm:$0xff]  ;;  %v12327_v36 = vld [vmem:[#allocation2 + $0x98] sm:$0xff] }
 0x91f   :  { %9136 = vmatpush.bf16.msrb.mxu3 %v12303_v62  ;;  %v12335_v62 = vld [vmem:[#allocation2 + $0x180] sm:$0xff] }
 0x921   :  { %9098 = vmatpush.bf16.msrb.mxu0 %v12278_v17  ;;  %9111 = vmatpush.bf16.msrb.mxu1 %v12286_v26  ;;  %v12310_v17 = vld [vmem:[#allocation2 + $0x6f0] sm:$0xff]  ;;  %v12318_v26 = vld [vmem:[#allocation2 + $0x580] sm:$0xff] }
 0x922   :  { %9124 = vmatpush.bf16.msrb.mxu2 %v12294_v61  ;;  %v12326_v61 = vld [vmem:[#allocation2 + $0xf38] sm:$0xff] }
 0x923   :  { %9137 = vmatpush.bf16.msrb.mxu3 %v12302_v42  ;;  %v12334_v42 = vld [vmem:[#allocation2 + $0x9b0] sm:$0xff] }
 0x925   :  { %9099 = vmatpush.bf16.msrb.mxu0 %v12277_v39  ;;  %9112 = vmatpush.bf16.msrb.mxu1 %v12285_v5  ;;  %v12309_v39 = vld [vmem:[#allocation2 + $0xe68] sm:$0xff]  ;;  %v12317_v5 = vld [vmem:[#allocation2 + $0xbd8] sm:$0xff] }
 0x926   :  { %9125 = vmatpush.bf16.msrb.mxu2 %v12293_v22  ;;  %v12325_v22 = vld [vmem:[#allocation2 + $0xbc8] sm:$0xff] }
 0x927   :  { %9138 = vmatpush.bf16.msrb.mxu3 %v12301_v56  ;;  %v12333_v56 = vld [vmem:[#allocation2 + $0xdf0] sm:$0xff] }
 0x928   :  { %9100 = vmatmul.bf16.vlgmr.msrb.gmra.mxu0 %v4880_v12  ;;  %9113 = vmatmul.bf16.vlgmr.msrb.gmra.mxu1 %v4881_v51  ;;  %v4886_v12 = vpack.c.bf16 %v4626_v48, %v4626_v48  ;;  %v4887_v51 = vpack.c.bf16 %v4627_v24, %v4627_v24  ;;  %v12388_v48 = vld [vmem:[#allocation2 + $0x8] sm:$0xff]  ;;  %v4890_v24 = vpack.c.bf16 %v4646_v0, %v4646_v0 }
 0x929   :  { %9144 = vmatpush.bf16.msra.mxu0 %v12316_v9  ;;  %9157 = vmatpush.bf16.msra.mxu1 %v12324_v55  ;;  %v12348_v9 = vld [vmem:[#allocation2 + $0xae0] sm:$0xff]  ;;  %v12356_v55 = vld [vmem:[#allocation2 + $0x78] sm:$0xff] }
 0x92a   :  { %9170 = vmatpush.bf16.msra.mxu2 %v12332_v43  ;;  %9139 = vmatmul.bf16.vlgmr.msrb.gmra.mxu3 %v4883_v40  ;;  %v12364_v43 = vld [vmem:[#allocation2 + $0xbb8] sm:$0xff]  ;;  %v4885_v40 = vpack.c.bf16 %v4617_v25, %v4617_v25  ;;  %v4888_v25 = vpack.c.bf16 %v4636_v38, %v4636_v38 }
 0x92b   :  { %9183 = vmatpush.bf16.msra.mxu3 %v12340_v52  ;;  %9126 = vmatmul.bf16.vlgmr.msrb.gmra.mxu2 %v4882_v20  ;;  %v12372_v52 = vld [vmem:[#allocation2 + $0xd8] sm:$0xff]  ;;  %v4884_v20 = vpack.c.bf16 %v4616_v27, %v4616_v27  ;;  %v12380_v27 = vld [vmem:[#allocation2 + $0xc80] sm:$0xff] }
 0x92d   :  { %9145 = vmatpush.bf16.msra.mxu0 %v12315_v63  ;;  %9158 = vmatpush.bf16.msra.mxu1 %v12323_v34  ;;  %v12347_v63 = vld [vmem:[#allocation2 + $0xa58] sm:$0xff]  ;;  %v12355_v34 = vld [vmem:[#allocation2 + $0x100] sm:$0xff] }
 0x92e   :  { %9171 = vmatpush.bf16.msra.mxu2 %v12331_v37  ;;  %v12363_v37 = vld [vmem:[#allocation2 + $0xd50] sm:$0xff] }
 0x92f   :  { %9184 = vmatpush.bf16.msra.mxu3 %v12339_v33  ;;  %v12371_v33 = vld [vmem:[#allocation2 + $0x310] sm:$0xff] }
 0x931   :  { %9146 = vmatpush.bf16.msra.mxu0 %v12314_v60  ;;  %9159 = vmatpush.bf16.msra.mxu1 %v12322_v29  ;;  %v12346_v60 = vld [vmem:[#allocation2 + $0x380] sm:$0xff] }
 0x932   :  { %9172 = vmatpush.bf16.msra.mxu2 %v12330_v4  ;;  %v12354_v29 = vld [vmem:[#allocation2 + $0x9e0] sm:$0xff] }
 0x933   :  { %9185 = vmatpush.bf16.msra.mxu3 %v12338_v58  ;;  %v12362_v4 = vld [vmem:[#allocation2 + $0xa20] sm:$0xff] }
 0x934   :  { %v12370_v58 = vld [vmem:[#allocation2 + $0x960] sm:$0xff] }
 0x935   :  { %9147 = vmatpush.bf16.msra.mxu0 %v12313_v59  ;;  %9160 = vmatpush.bf16.msra.mxu1 %v12321_v41  ;;  %v12345_v59 = vld [vmem:[#allocation2 + $0x250] sm:$0xff]  ;;  %v12353_v41 = vld [vmem:[#allocation2 + $0x760] sm:$0xff] }
 0x936   :  { %9173 = vmatpush.bf16.msra.mxu2 %v12329_v6  ;;  %v12361_v6 = vld [vmem:[#allocation2 + $0xa28] sm:$0xff] }
 0x937   :  { %9186 = vmatpush.bf16.msra.mxu3 %v12337_v47  ;;  %v12369_v47 = vld [vmem:[#allocation2 + $0xb10] sm:$0xff] }
 0x939   :  { %9148 = vmatpush.bf16.msra.mxu0 %v12312_v11  ;;  %9161 = vmatpush.bf16.msra.mxu1 %v12320_v3  ;;  %v12344_v11 = vld [vmem:[#allocation2 + $0xe80] sm:$0xff]  ;;  %v12352_v3 = vld [vmem:[#allocation2 + $0x410] sm:$0xff] }
 0x93a   :  { %9174 = vmatpush.bf16.msra.mxu2 %v12328_v44  ;;  %v12360_v44 = vld [vmem:[#allocation2 + $0xaf8] sm:$0xff] }
 0x93b   :  { %9187 = vmatpush.bf16.msra.mxu3 %v12336_v19  ;;  %v12368_v19 = vld [vmem:[#allocation2 + $0x990] sm:$0xff] }
 0x93d   :  { %9149 = vmatpush.bf16.msra.mxu0 %v12311_v45  ;;  %9162 = vmatpush.bf16.msra.mxu1 %v12319_v7  ;;  %v12343_v45 = vld [vmem:[#allocation2 + $0xe48] sm:$0xff]  ;;  %v12351_v7 = vld [vmem:[#allocation2 + $0x418] sm:$0xff] }
 0x93e   :  { %9175 = vmatpush.bf16.msra.mxu2 %v12327_v36  ;;  %v12359_v36 = vld [vmem:[#allocation2 + $0xca8] sm:$0xff] }
 0x93f   :  { %9188 = vmatpush.bf16.msra.mxu3 %v12335_v62  ;;  %v12367_v62 = vld [vmem:[#allocation2 + $0x980] sm:$0xff] }
 0x941   :  { %9150 = vmatpush.bf16.msra.mxu0 %v12310_v17  ;;  %9163 = vmatpush.bf16.msra.mxu1 %v12318_v26  ;;  %v12342_v17 = vld [vmem:[#allocation2 + $0x428] sm:$0xff]  ;;  %v12350_v26 = vld [vmem:[#allocation2 + $0x9c0] sm:$0xff] }
 0x942   :  { %9176 = vmatpush.bf16.msra.mxu2 %v12326_v61  ;;  %v12358_v61 = vld [vmem:[#allocation2 + $0x438] sm:$0xff] }
 0x943   :  { %9189 = vmatpush.bf16.msra.mxu3 %v12334_v42  ;;  %v12366_v42 = vld [vmem:[#allocation2 + $0x5e0] sm:$0xff] }
 0x945   :  { %9151 = vmatpush.bf16.msra.mxu0 %v12309_v39  ;;  %9164 = vmatpush.bf16.msra.mxu1 %v12317_v5  ;;  %v12341_v39 = vld [vmem:[#allocation2 + $0x708] sm:$0xff] }
 0x946   :  { %9177 = vmatpush.bf16.msra.mxu2 %v12325_v22  ;;  %v12349_v5 = vld [vmem:[#allocation2 + $0xea8] sm:$0xff]  ;;  %v12357_v22 = vld [vmem:[#allocation2 + $0xec0] sm:$0xff] }
 0x947   :  { %9190 = vmatpush.bf16.msra.mxu3 %v12333_v56  ;;  %v12365_v56 = vld [vmem:[#allocation2 + $0x3d8] sm:$0xff] }
 0x948   :  { %9152 = vmatmul.bf16.vlgmr.msra.gmra.mxu0 %v4884_v20  ;;  %9165 = vmatmul.bf16.vlgmr.msra.gmra.mxu1 %v4885_v40  ;;  %v12379_v20 = vld [vmem:[#allocation2 + $0xed8] sm:$0xff]  ;;  %v12395_v40 = vld [vmem:[#allocation2 + $0xd00] sm:$0xff] }
 0x949   :  { %9196 = vmatpush.bf16.msrb.mxu0 %v12348_v9  ;;  %9209 = vmatpush.bf16.msrb.mxu1 %v12356_v55  ;;  %v4637_v9 = vsel %vm20522_vm4, %v4629_v8, %v4633_v28  ;;  %v12396_v55 = vld [vmem:[#allocation2 + $0x498] sm:$0xff]  ;;  %vm20537_vm4 = vmmov %vm20520_vm0 }
 0x94a   :  { %9222 = vmatpush.bf16.msrb.mxu2 %v12364_v43  ;;  %9191 = vmatmul.bf16.vlgmr.msra.gmra.mxu3 %v4887_v51  ;;  %v4889_v43 = vpack.c.bf16 %v4637_v9, %v4637_v9  ;;  %v12403_v51 = vld [vmem:[#allocation2 + $0x780] sm:$0xff]  ;;  %v12411_v9 = vld [vmem:[#allocation2 + $0x7c8] sm:$0xff] }
 0x94b   :  { %9235 = vmatpush.bf16.msrb.mxu3 %v12372_v52  ;;  %9178 = vmatmul.bf16.vlgmr.msra.gmra.mxu2 %v4886_v12  ;;  %v4891_v52 = vpack.c.bf16 %v4647_v32, %v4647_v32  ;;  %v12387_v12 = vld [vmem:[#allocation2 + $0xf20] sm:$0xff] }
 0x94c   :  { %v12419_v32 = vld [vmem:[#allocation2 + $0x840] sm:$0xff] }
 0x94d   :  { %9197 = vmatpush.bf16.msrb.mxu0 %v12347_v63  ;;  %9210 = vmatpush.bf16.msrb.mxu1 %v12355_v34  ;;  %v12378_v63 = vld [vmem:[#allocation2 + $0xb60] sm:$0xff]  ;;  %v12386_v34 = vld [vmem:[#allocation2 + $0x458] sm:$0xff] }
 0x94e   :  { %9223 = vmatpush.bf16.msrb.mxu2 %v12363_v37  ;;  %v12394_v37 = vld [vmem:[#allocation2 + $0x228] sm:$0xff] }
 0x94f   :  { %9236 = vmatpush.bf16.msrb.mxu3 %v12371_v33  ;;  %v12402_v33 = vld [vmem:[#allocation2 + $0xc70] sm:$0xff] }
 0x951   :  { %9198 = vmatpush.bf16.msrb.mxu0 %v12346_v60  ;;  %9211 = vmatpush.bf16.msrb.mxu1 %v12354_v29  ;;  %v12377_v60 = vld [vmem:[#allocation2 + $0xe20] sm:$0xff]  ;;  %v12385_v29 = vld [vmem:[#allocation2 + $0xb90] sm:$0xff] }
 0x952   :  { %9224 = vmatpush.bf16.msrb.mxu2 %v12362_v4  ;;  %v12393_v4 = vld [vmem:[#allocation2 + $0x3d0] sm:$0xff] }
 0x953   :  { %9237 = vmatpush.bf16.msrb.mxu3 %v12370_v58  ;;  %v12401_v58 = vld [vmem:[#allocation2 + $0x6f8] sm:$0xff] }
 0x955   :  { %9199 = vmatpush.bf16.msrb.mxu0 %v12345_v59  ;;  %9212 = vmatpush.bf16.msrb.mxu1 %v12353_v41  ;;  %v12376_v59 = vld [vmem:[#allocation2 + $0x8c8] sm:$0xff]  ;;  %v12384_v41 = vld [vmem:[#allocation2 + $0xf18] sm:$0xff] }
 0x956   :  { %9225 = vmatpush.bf16.msrb.mxu2 %v12361_v6  ;;  %v12392_v6 = vld [vmem:[#allocation2 + $0x6b0] sm:$0xff] }
 0x957   :  { %9238 = vmatpush.bf16.msrb.mxu3 %v12369_v47  ;;  %v12400_v47 = vld [vmem:[#allocation2 + $0x478] sm:$0xff] }
 0x959   :  { %9200 = vmatpush.bf16.msrb.mxu0 %v12344_v11  ;;  %9213 = vmatpush.bf16.msrb.mxu1 %v12352_v3  ;;  %v12375_v11 = vld [vmem:[#allocation2 + $0x820] sm:$0xff]  ;;  %v12383_v3 = vld [vmem:[#allocation2 + $0x2d0] sm:$0xff] }
 0x95a   :  { %9226 = vmatpush.bf16.msrb.mxu2 %v12360_v44  ;;  %v12391_v44 = vld [vmem:[#allocation2 + $0x7b8] sm:$0xff] }
 0x95b   :  { %9239 = vmatpush.bf16.msrb.mxu3 %v12368_v19  ;;  %v12399_v19 = vld [vmem:[#allocation2 + $0x858] sm:$0xff] }
 0x95d   :  { %9201 = vmatpush.bf16.msrb.mxu0 %v12343_v45  ;;  %9214 = vmatpush.bf16.msrb.mxu1 %v12351_v7  ;;  %v12374_v45 = vld [vmem:[#allocation2 + $0xac8] sm:$0xff]  ;;  %v12382_v7 = vld [vmem:[#allocation2 + $0x698] sm:$0xff] }
 0x95e   :  { %9227 = vmatpush.bf16.msrb.mxu2 %v12359_v36  ;;  %v12390_v36 = vld [vmem:[#allocation2 + $0xd48] sm:$0xff] }
 0x95f   :  { %9240 = vmatpush.bf16.msrb.mxu3 %v12367_v62  ;;  %v12398_v62 = vld [vmem:[#allocation2 + $0x5c0] sm:$0xff] }
 0x961   :  { %9202 = vmatpush.bf16.msrb.mxu0 %v12342_v17  ;;  %9215 = vmatpush.bf16.msrb.mxu1 %v12350_v26  ;;  %v4650_v17 = vrot.slane %v18718_v30, 7  ;;  %v4658_v26 = vrot.slane %v18691_v49, 1 }
 0x962   :  { %9228 = vmatpush.bf16.msrb.mxu2 %v12358_v61  ;;  %v4651_v61 = vrot.slane %v18726_v50, 7 }
 0x963   :  { %9241 = vmatpush.bf16.msrb.mxu3 %v12366_v42  ;;  %v4659_v42 = vrot.slane %v18705_v57, 1  ;;  %v4654_v8 = vsel %vm20524_vm15, %v18691_v49, %v4650_v17  ;;  %v4662_v28 = vsel %vm20525_vm2, %v4658_v26, %v18718_v30  ;;  %v12414_v17 = vld [vmem:[#allocation2 + $0x9c8] sm:$0xff]  ;;  %v12422_v26 = vld [vmem:[#allocation2 + $0xb30] sm:$0xff]  ;;  %vm20539_vm15 = vmmov %vm20520_vm0 }
 0x964   :  { %v4892_v38 = vpack.c.bf16 %v4654_v8, %v4654_v8  ;;  %v4894_v0 = vpack.c.bf16 %v4662_v28, %v4662_v28  ;;  %v4665_v8 = vrot.slane %v18705_v57, 2  ;;  %v4669_v28 = vrot.slane %v18726_v50, 1  ;;  %vm20540_vm2 = vmmov %vm20520_vm0 }
 0x965   :  { %9203 = vmatpush.bf16.msrb.mxu0 %v12341_v39  ;;  %9216 = vmatpush.bf16.msrb.mxu1 %v12349_v5  ;;  %v4655_v39 = vsel %vm20526_vm6, %v18705_v57, %v4651_v61  ;;  %v4663_v5 = vsel %vm20527_vm13, %v4659_v42, %v18726_v50  ;;  %v12430_v61 = vld [vmem:[#allocation2 + $0x970] sm:$0xff]  ;;  %v4664_v42 = vrot.slane %v18691_v49, 2  ;;  %vm20541_vm6 = vmmov %vm20520_vm0 }
 0x966   :  { %9229 = vmatpush.bf16.msrb.mxu2 %v12357_v22  ;;  %v12428_v22 = vld [vmem:[#allocation2 + $0xc28] sm:$0xff]  ;;  %vm20542_vm13 = vmmov %vm20520_vm0 }
 0x967   :  { %9242 = vmatpush.bf16.msrb.mxu3 %v12365_v56  ;;  %v12436_v56 = vld [vmem:[#allocation2 + $0x2e8] sm:$0xff] }
 0x968   :  { %9204 = vmatmul.bf16.vlgmr.msrb.gmra.mxu0 %v4888_v25  ;;  %9217 = vmatmul.bf16.vlgmr.msrb.gmra.mxu1 %v4889_v43  ;;  %v12410_v25 = vld [vmem:[#allocation2 + $0x3b0] sm:$0xff]  ;;  %v12770_v43 = vld [vmem:[%s19136_s11] ss:$0 sm:$0xff] }
 0x969   :  { %9248 = vmatpush.bf16.msra.mxu0 %v12380_v27  ;;  %9261 = vmatpush.bf16.msra.mxu1 %v12388_v48  ;;  %v4893_v27 = vpack.c.bf16 %v4655_v39, %v4655_v39  ;;  %v4895_v48 = vpack.c.bf16 %v4663_v5, %v4663_v5  ;;  %v12405_v5 = vld [vmem:[#allocation2 + $0xbc0] sm:$0xff] }
 0x96a   :  { %9274 = vmatpush.bf16.msra.mxu2 %v12396_v55  ;;  %9243 = vmatmul.bf16.vlgmr.msrb.gmra.mxu3 %v4891_v52  ;;  %v12427_v55 = vld [vmem:[#allocation2 + $0xe00] sm:$0xff]  ;;  %v12426_v52 = vld [vmem:[#allocation2 + $0xd08] sm:$0xff] }
 0x96b   :  { %9287 = vmatpush.bf16.msra.mxu3 %v12404_v18  ;;  %9230 = vmatmul.bf16.vlgmr.msrb.gmra.mxu2 %v4890_v24  ;;  %v12435_v18 = vld [vmem:[#allocation2 + $0x370] sm:$0xff]  ;;  %v12418_v24 = vld [vmem:[#allocation2 + $0xb98] sm:$0xff] }
 0x96d   :  { %9249 = vmatpush.bf16.msra.mxu0 %v12379_v20  ;;  %9262 = vmatpush.bf16.msra.mxu1 %v12387_v12  ;;  %v12434_v20 = vld [vmem:[#allocation2 + $0xef8] sm:$0xff] }
 0x96e   :  { %9275 = vmatpush.bf16.msra.mxu2 %v12395_v40  ;;  %v12409_v40 = vld [vmem:[#allocation2 + $0x38] sm:$0xff] }
 0x96f   :  { %9288 = vmatpush.bf16.msra.mxu3 %v12403_v51  ;;  %v12417_v51 = vld [vmem:[#allocation2 + $0xfe0] sm:$0xff] }
 0x971   :  { %9250 = vmatpush.bf16.msra.mxu0 %v12378_v63  ;;  %9263 = vmatpush.bf16.msra.mxu1 %v12386_v34 }
 0x972   :  { %9276 = vmatpush.bf16.msra.mxu2 %v12394_v37  ;;  %v12425_v37 = vld [vmem:[#allocation2 + $0xf00] sm:$0xff] }
 0x973   :  { %9289 = vmatpush.bf16.msra.mxu3 %v12402_v33  ;;  %v12433_v33 = vld [vmem:[#allocation2 + $0x920] sm:$0xff] }
 0x975   :  { %9251 = vmatpush.bf16.msra.mxu0 %v12377_v60  ;;  %9264 = vmatpush.bf16.msra.mxu1 %v12385_v29  ;;  %v12408_v29 = vld [vmem:[#allocation2 + $0x4c8] sm:$0xff] }
 0x976   :  { %9277 = vmatpush.bf16.msra.mxu2 %v12393_v4  ;;  %v12416_v4 = vld [vmem:[#allocation2 + $0x5d0] sm:$0xff] }
 0x977   :  { %9290 = vmatpush.bf16.msra.mxu3 %v12401_v58  ;;  %v12424_v58 = vld [vmem:[#allocation2 + $0x138] sm:$0xff] }
 0x979   :  { %9252 = vmatpush.bf16.msra.mxu0 %v12376_v59  ;;  %9265 = vmatpush.bf16.msra.mxu1 %v12384_v41  ;;  %v12432_v59 = vld [vmem:[#allocation2 + $0xb50] sm:$0xff] }
 0x97a   :  { %9278 = vmatpush.bf16.msra.mxu2 %v12392_v6 }
 0x97b   :  { %9291 = vmatpush.bf16.msra.mxu3 %v12400_v47 }
 0x97d   :  { %9253 = vmatpush.bf16.msra.mxu0 %v12375_v11  ;;  %9266 = vmatpush.bf16.msra.mxu1 %v12383_v3  ;;  %v12407_v3 = vld [vmem:[#allocation2 + $0x4b8] sm:$0xff] }
 0x97e   :  { %9279 = vmatpush.bf16.msra.mxu2 %v12391_v44  ;;  %v12415_v44 = vld [vmem:[#allocation2 + $0x2f0] sm:$0xff] }
 0x97f   :  { %9292 = vmatpush.bf16.msra.mxu3 %v12399_v19 }
 0x981   :  { %9254 = vmatpush.bf16.msra.mxu0 %v12374_v45  ;;  %9267 = vmatpush.bf16.msra.mxu1 %v12382_v7  ;;  %v12423_v7 = vld [vmem:[#allocation2 + $0x9f8] sm:$0xff] }
 0x982   :  { %9280 = vmatpush.bf16.msra.mxu2 %v12390_v36  ;;  %v12431_v36 = vld [vmem:[#allocation2 + $0x628] sm:$0xff] }
 0x983   :  { %9293 = vmatpush.bf16.msra.mxu3 %v12398_v62  ;;  %v12406_v62 = vld [vmem:[#allocation2 + $0x788] sm:$0xff] }
 0x985   :  { %9255 = vmatpush.bf16.msra.mxu0 %v12373_v21  ;;  %9268 = vmatpush.bf16.msra.mxu1 %v12381_v23  ;;  %v9049_v12 = vpop.f32.mrf.mxu0  ;;  %v9062_v34 = vpop.f32.mrf.mxu1  ;;  %v4668_v21 = vrot.slane %v18718_v30, 1  ;;  %v4674_v23 = vrot.slane %v18691_v49, 3 }
 0x986   :  { %9281 = vmatpush.bf16.msra.mxu2 %v12389_v31  ;;  %v9050_v63 = vadd.f32 %v12770_v43, %v9049_v12  ;;  %v4678_v31 = vrot.slane %v18718_v30, 2  ;;  %v12443_v12 = vld [vmem:[#allocation2 + $0x598] sm:$0xff] }
 0x987   :  { %9294 = vmatpush.bf16.msra.mxu3 %v12397_v14 }
 0x988   :  { %9256 = vmatmul.bf16.vlgmr.msra.gmra.mxu0 %v4892_v38  ;;  %9269 = vmatmul.bf16.vlgmr.msra.gmra.mxu1 %v4893_v27  ;;  %v9063_v60 = vadd.f32 %v9062_v34, %v9050_v63  ;;  %v12429_v38 = vld [vmem:[#allocation2 + $0x6e0] sm:$0xff]  ;;  %v4682_v27 = vsel %vm20529_vm3, %v4674_v23, %v4678_v31  ;;  %v12442_v34 = vld [vmem:[#allocation2 + $0x8f8] sm:$0xff]  ;;  %v12455_v23 = vld [vmem:[#allocation2 + $0x470] sm:$0xff] }
 0x989   :  { %9300 = vmatpush.bf16.msrb.mxu0 %v12412_v35  ;;  %9313 = vmatpush.bf16.msrb.mxu1 %v12420_v1  ;;  %v4675_v35 = vrot.slane %v18705_v57, 3  ;;  %v4679_v1 = vrot.slane %v18726_v50, 2  ;;  %v4898_v43 = vpack.c.bf16 %v4682_v27, %v4682_v27  ;;  %v12467_v63 = vld [vmem:[#allocation2 + $0xb20] sm:$0xff]  ;;  %v12463_v31 = vld [vmem:[#allocation2 + $0xe90] sm:$0xff]  ;;  %v4695_v27 = vrot.slane %v18705_v57, 5  ;;  %vm20544_vm3 = vmmov %vm20520_vm0 }
 0x98a   :  { %9326 = vmatpush.bf16.msrb.mxu2 %v12428_v22  ;;  %9295 = vmatmul.bf16.vlgmr.msra.gmra.mxu3 %v4895_v48  ;;  %v12413_v22 = vld [vmem:[#allocation2 + $0xba8] sm:$0xff]  ;;  %v12444_v48 = vld [vmem:[#allocation2 + $0x750] sm:$0xff] }
 0x98b   :  { %9339 = vmatpush.bf16.msrb.mxu3 %v12436_v56  ;;  %9282 = vmatmul.bf16.vlgmr.msra.gmra.mxu2 %v4894_v0  ;;  %v12421_v56 = vld [vmem:[#allocation2 + $0x568] sm:$0xff]  ;;  %v4672_v0 = vsel %vm20528_vm1, %v4664_v42, %v4668_v21  ;;  %vm20543_vm1 = vmmov %vm20520_vm0 }
 0x98d   :  { %9301 = vmatpush.bf16.msrb.mxu0 %v12411_v9  ;;  %9314 = vmatpush.bf16.msrb.mxu1 %v12419_v32  ;;  %v9088_v47 = vpop.f32.mrf.mxu3  ;;  %v9051_v11 = vpop.f32.mrf.mxu0  ;;  %v12452_v9 = vld [vmem:[#allocation2 + $0x50] sm:$0xff]  ;;  %v4673_v32 = vsel %vm20530_vm8, %v4665_v8, %v4669_v28  ;;  %v12446_v8 = vld [vmem:[#allocation2 + $0xde8] sm:$0xff]  ;;  %v12454_v28 = vld [vmem:[#allocation2 + $0xa60] sm:$0xff] }
 0x98e   :  { %9327 = vmatpush.bf16.msrb.mxu2 %v12427_v55  ;;  %v9075_v41 = vpop.f32.mrf.mxu2  ;;  %v9064_v45 = vpop.f32.mrf.mxu1  ;;  %v4683_v55 = vsel %vm20531_vm11, %v4675_v35, %v4679_v1  ;;  %v12462_v35 = vld [vmem:[#allocation2 + $0x7c0] sm:$0xff]  ;;  %v4684_v1 = vrot.slane %v18691_v49, 4  ;;  %vm20545_vm8 = vmmov %vm20520_vm0 }
 0x98f   :  { %9340 = vmatpush.bf16.msrb.mxu3 %v12435_v18  ;;  %v9076_v6 = vadd.f32 %v9075_v41, %v9063_v60  ;;  %v12460_v18 = vld [vmem:[#allocation2 + $0x6a8] sm:$0xff]  ;;  %vm20546_vm11 = vmmov %vm20520_vm0 }
 0x990   :  { %v12466_v60 = vld [vmem:[#allocation2 + $0xc48] sm:$0xff] }
 0x991   :  { %9302 = vmatpush.bf16.msrb.mxu0 %v12410_v25  ;;  %9315 = vmatpush.bf16.msrb.mxu1 %v12418_v24  ;;  %v18800_v19 = vadd.f32 %v9088_v47, %v9076_v6  ;;  %v12468_v25 = vld [vmem:[#allocation2 + $0x30] sm:$0xff]  ;;  %v4896_v24 = vpack.c.bf16 %v4672_v0, %v4672_v0  ;;  %v12457_v6 = vld [vmem:[#allocation2 + $0x8a0] sm:$0xff]  ;;  %v12465_v47 = vld [vmem:[#allocation2 + $0xb8] sm:$0xff]  ;;  %v4689_v0 = vrot.slane %v18726_v50, 3 }
 0x992   :  { %9328 = vmatpush.bf16.msrb.mxu2 %v12426_v52  ;;  %v4897_v52 = vpack.c.bf16 %v4673_v32, %v4673_v32  ;;  %v12456_v45 = vld [vmem:[#allocation2 + $0x928] sm:$0xff]  ;;  %v12437_v32 = vld [vmem:[#allocation2 + $0x398] sm:$0xff] }
 0x993   :  { %9341 = vmatpush.bf16.msrb.mxu3 %v12434_v20  ;;  %v4899_v20 = vpack.c.bf16 %v4683_v55, %v4683_v55  ;;  %v12445_v55 = vld [vmem:[#allocation2 + $0xb08] sm:$0xff] }
 0x995   :  { %9303 = vmatpush.bf16.msrb.mxu0 %v12409_v40  ;;  %9316 = vmatpush.bf16.msrb.mxu1 %v12417_v51  ;;  %v9090_v39 = vpop.f32.mrf.mxu3  ;;  %v12451_v40 = vld [vmem:[#allocation2 + $0x610] sm:$0xff]  ;;  %v12459_v51 = vld [vmem:[#allocation2 + $0xb68] sm:$0xff] }
 0x996   :  { %9329 = vmatpush.bf16.msrb.mxu2 %v12425_v37  ;;  %v9077_v14 = vpop.f32.mrf.mxu2  ;;  %v12450_v37 = vld [vmem:[#allocation2 + $0x268] sm:$0xff]  ;;  %v4688_v39 = vrot.slane %v18718_v30, 3 }
 0x997   :  { %9342 = vmatpush.bf16.msrb.mxu3 %v12433_v33  ;;  %v12458_v33 = vld [vmem:[#allocation2 + $0xe88] sm:$0xff]  ;;  %v12438_v14 = vld [vmem:[#allocation2 + $0xe0] sm:$0xff] }
 0x999   :  { %9304 = vmatpush.bf16.msrb.mxu0 %v12408_v29  ;;  %9317 = vmatpush.bf16.msrb.mxu1 %v12416_v4  ;;  %v12441_v4 = vld [vmem:[#allocation2 + $0x270] sm:$0xff] }
 0x99a   :  { %9330 = vmatpush.bf16.msrb.mxu2 %v12424_v58  ;;  %v12449_v58 = vld [vmem:[#allocation2 + $0xe98] sm:$0xff] }
 0x99b   :  { %9343 = vmatpush.bf16.msrb.mxu3 %v12432_v59 }
 0x99d   :  { %9305 = vmatpush.bf16.msrb.mxu0 %v12407_v3  ;;  %9318 = vmatpush.bf16.msrb.mxu1 %v12415_v44  ;;  %v12440_v3 = vld [vmem:[#allocation2 + $0xf90] sm:$0xff]  ;;  %v12448_v44 = vld [vmem:[#allocation2 + $0x9a8] sm:$0xff] }
 0x99e   :  { %9331 = vmatpush.bf16.msrb.mxu2 %v12423_v7  ;;  %v12464_v7 = vld [vmem:[#allocation2 + $0xc38] sm:$0xff] }
 0x99f   :  { %9344 = vmatpush.bf16.msrb.mxu3 %v12431_v36 }
 0x9a1   :  { %9306 = vmatpush.bf16.msrb.mxu0 %v12406_v62  ;;  %9319 = vmatpush.bf16.msrb.mxu1 %v12414_v17 }
 0x9a2   :  { %9332 = vmatpush.bf16.msrb.mxu2 %v12422_v26 }
 0x9a3   :  { %9345 = vmatpush.bf16.msrb.mxu3 %v12430_v61  ;;  %v12447_v61 = vld [vmem:[#allocation2 + $0x308] sm:$0xff] }
 0x9a5   :  { %9307 = vmatpush.bf16.msrb.mxu0 %v12405_v5  ;;  %9320 = vmatpush.bf16.msrb.mxu1 %v12413_v22  ;;  %v9101_v29 = vpop.f32.mrf.mxu0  ;;  %v9114_v41 = vpop.f32.mrf.mxu1  ;;  %v4694_v5 = vrot.slane %v18691_v49, 5  ;;  %v4698_v22 = vrot.slane %v18718_v30, 4 }
 0x9a6   :  { %9333 = vmatpush.bf16.msrb.mxu2 %v12421_v56  ;;  %v9102_v59 = vadd.f32 %v9101_v29, %v18800_v19  ;;  %v12439_v19 = vld [vmem:[#allocation2 + $0x1e0] sm:$0xff]  ;;  %v12475_v29 = vld [vmem:[#allocation2 + $0xc88] sm:$0xff] }
 0x9a7   :  { %9346 = vmatpush.bf16.msrb.mxu3 %v12429_v38  ;;  %v4685_v38 = vrot.slane %v18705_v57, 4 }
 0x9a8   :  { %9308 = vmatmul.bf16.vlgmr.msrb.gmra.mxu0 %v4896_v24  ;;  %9321 = vmatmul.bf16.vlgmr.msrb.gmra.mxu1 %v4897_v52  ;;  %v9115_v11 = vadd.f32 %v9114_v41, %v9102_v59  ;;  %v4692_v24 = vsel %vm20532_vm14, %v4684_v1, %v4688_v39  ;;  %v12476_v52 = vld [vmem:[#allocation2 + $0xab8] sm:$0xff]  ;;  %v12499_v59 = vld [vmem:[#allocation2 + $0xba0] sm:$0xff]  ;;  %vm20547_vm14 = vmmov %vm20520_vm0 }
 0x9a9   :  { %9352 = vmatpush.bf16.msra.mxu0 %v12444_v48  ;;  %9365 = vmatpush.bf16.msra.mxu1 %v12452_v9  ;;  %v4699_v48 = vrot.slane %v18726_v50, 4  ;;  %v12474_v41 = vld [vmem:[#allocation2 + $0x998] sm:$0xff] }
 0x9aa   :  { %9378 = vmatpush.bf16.msra.mxu2 %v12460_v18  ;;  %9347 = vmatmul.bf16.vlgmr.msrb.gmra.mxu3 %v4899_v20  ;;  %v12453_v18 = vld [vmem:[#allocation2 + $0x6d0] sm:$0xff]  ;;  %v12484_v20 = vld [vmem:[#allocation2 + $0xb40] sm:$0xff]  ;;  %v12479_v1 = vld [vmem:[#allocation2 + $0xb18] sm:$0xff] }
 0x9ab   :  { %9391 = vmatpush.bf16.msra.mxu3 %v12468_v25  ;;  %9334 = vmatmul.bf16.vlgmr.msrb.gmra.mxu2 %v4898_v43  ;;  %v12461_v25 = vld [vmem:[#allocation2 + $0xe50] sm:$0xff]  ;;  %v4702_v43 = vsel %vm20533_vm9, %v4694_v5, %v4698_v22  ;;  %v12487_v5 = vld [vmem:[#allocation2 + $0xcb8] sm:$0xff]  ;;  %v12495_v22 = vld [vmem:[#allocation2 + $0x200] sm:$0xff] }
 0x9ac   :  { %vm20548_vm9 = vmmov %vm20520_vm0 }
 0x9ad   :  { %9353 = vmatpush.bf16.msra.mxu0 %v12443_v12  ;;  %9366 = vmatpush.bf16.msra.mxu1 %v12451_v40  ;;  %v9140_v17 = vpop.f32.mrf.mxu3  ;;  %v9103_v26 = vpop.f32.mrf.mxu0  ;;  %v4693_v12 = vsel %vm20534_vm5, %v4685_v38, %v4689_v0  ;;  %v4703_v40 = vsel %vm20535_vm7, %v4695_v27, %v4699_v48  ;;  %v12478_v38 = vld [vmem:[#allocation2 + $0x668] sm:$0xff]  ;;  %v12486_v0 = vld [vmem:[#allocation2 + $0x838] sm:$0xff]  ;;  %v4704_v48 = vrot.slane %v18691_v49, 6  ;;  %vm20549_vm5 = vmmov %vm20520_vm0 }
 0x9ae   :  { %9379 = vmatpush.bf16.msra.mxu2 %v12459_v51  ;;  %v9127_v36 = vpop.f32.mrf.mxu2  ;;  %v9116_v21 = vpop.f32.mrf.mxu1  ;;  %v12492_v51 = vld [vmem:[#allocation2 + $0xe08] sm:$0xff]  ;;  %v12494_v27 = vld [vmem:[#allocation2 + $0x618] sm:$0xff]  ;;  %vm20550_vm7 = vmmov %vm20520_vm0 }
 0x9af   :  { %9392 = vmatpush.bf16.msra.mxu3 %v12467_v63  ;;  %v9128_v62 = vadd.f32 %v9127_v36, %v9115_v11  ;;  %v12500_v63 = vld [vmem:[#allocation2 + $0xd0] sm:$0xff]  ;;  %v12498_v11 = vld [vmem:[#allocation2 + $0xc0] sm:$0xff]  ;;  %v12488_v21 = vld [vmem:[#allocation2 + $0xe28] sm:$0xff] }
 0x9b1   :  { %9354 = vmatpush.bf16.msra.mxu0 %v12442_v34  ;;  %9367 = vmatpush.bf16.msra.mxu1 %v12450_v37  ;;  %v18815_v42 = vadd.f32 %v9140_v17, %v9128_v62  ;;  %v4900_v34 = vpack.c.bf16 %v4692_v24, %v4692_v24  ;;  %v4902_v37 = vpack.c.bf16 %v4702_v43, %v4702_v43  ;;  %v12489_v62 = vld [vmem:[#allocation2 + $0x500] sm:$0xff]  ;;  %v4709_v24 = vrot.slane %v18726_v50, 5 }
 0x9b2   :  { %9380 = vmatpush.bf16.msra.mxu2 %v12458_v33  ;;  %v4901_v33 = vpack.c.bf16 %v4693_v12, %v4693_v12  ;;  %v12497_v17 = vld [vmem:[#allocation2 + $0x140] sm:$0xff]  ;;  %v4715_v43 = vrot.slane %v18705_v57, 7  ;;  %v12469_v12 = vld [vmem:[#allocation2 + $0xc8] sm:$0xff] }
 0x9b3   :  { %9393 = vmatpush.bf16.msra.mxu3 %v12466_v60  ;;  %v4903_v60 = vpack.c.bf16 %v4703_v40, %v4703_v40  ;;  %v12477_v40 = vld [vmem:[#allocation2 + $0x5a8] sm:$0xff] }
 0x9b5   :  { %9355 = vmatpush.bf16.msra.mxu0 %v12441_v4  ;;  %9368 = vmatpush.bf16.msra.mxu1 %v12449_v58  ;;  %v9142_v9 = vpop.f32.mrf.mxu3  ;;  %v12483_v4 = vld [vmem:[#allocation2 + $0x570] sm:$0xff]  ;;  %v12491_v58 = vld [vmem:[#allocation2 + $0x8c0] sm:$0xff] }
 0x9b6   :  { %9381 = vmatpush.bf16.msra.mxu2 %v12457_v6  ;;  %v9129_v56 = vpop.f32.mrf.mxu2  ;;  %v12482_v6 = vld [vmem:[#allocation2 + $0x600] sm:$0xff]  ;;  %v4708_v9 = vrot.slane %v18718_v30, 5 }
 0x9b7   :  { %9394 = vmatpush.bf16.msra.mxu3 %v12465_v47  ;;  %v12490_v47 = vld [vmem:[#allocation2 + $0xe60] sm:$0xff]  ;;  %v12470_v56 = vld [vmem:[#allocation2 + $0x2b8] sm:$0xff] }
 0x9b9   :  { %9356 = vmatpush.bf16.msra.mxu0 %v12440_v3  ;;  %9369 = vmatpush.bf16.msra.mxu1 %v12448_v44 }
 0x9ba   :  { %9382 = vmatpush.bf16.msra.mxu2 %v12456_v45  ;;  %v12473_v45 = vld [vmem:[#allocation2 + $0x210] sm:$0xff] }
 0x9bb   :  { %9395 = vmatpush.bf16.msra.mxu3 %v12464_v7  ;;  %v12481_v7 = vld [vmem:[#allocation2 + $0x578] sm:$0xff] }
 0x9bd   :  { %9357 = vmatpush.bf16.msra.mxu0 %v12439_v19  ;;  %9370 = vmatpush.bf16.msra.mxu1 %v12447_v61  ;;  %v12472_v19 = vld [vmem:[#allocation2 + $0xf78] sm:$0xff]  ;;  %v12480_v61 = vld [vmem:[#allocation2 + $0x468] sm:$0xff] }
 0x9be   :  { %9383 = vmatpush.bf16.msra.mxu2 %v12455_v23  ;;  %v12496_v23 = vld [vmem:[#allocation2 + $0x5b0] sm:$0xff] }
 0x9bf   :  { %9396 = vmatpush.bf16.msra.mxu3 %v12463_v31 }
 0x9c1   :  { %9358 = vmatpush.bf16.msra.mxu0 %v12438_v14  ;;  %9371 = vmatpush.bf16.msra.mxu1 %v12446_v8 }
 0x9c2   :  { %9384 = vmatpush.bf16.msra.mxu2 %v12454_v28 }
 0x9c3   :  { %9397 = vmatpush.bf16.msra.mxu3 %v12462_v35  ;;  %v12471_v35 = vld [vmem:[#allocation2 + $0x2a8] sm:$0xff] }
 0x9c5   :  { %9359 = vmatpush.bf16.msra.mxu0 %v12437_v32  ;;  %9372 = vmatpush.bf16.msra.mxu1 %v12445_v55  ;;  %v9153_v3 = vpop.f32.mrf.mxu0  ;;  %v9166_v36 = vpop.f32.mrf.mxu1  ;;  %v4714_v32 = vrot.slane %v18691_v49, 7  ;;  %v4718_v55 = vrot.slane %v18718_v30, 6  ;;  %v12493_v49 = vld [vmem:[#allocation2 + $0xb58] sm:$0xff]  ;;  %v4712_v30 = vsel %vm20520_vm0, %v4704_v48, %v4708_v9  ;;  %v12502_v48 = vld [vmem:[#allocation2 + $0x448] sm:$0xff]  ;;  %v12510_v9 = vld [vmem:[#allocation2 + $0xeb0] sm:$0xff] }
 0x9c6   :  { %9385 = vmatpush.bf16.msra.mxu2 %v12453_v18  ;;  %v9154_v44 = vadd.f32 %v9153_v3, %v18815_v42  ;;  %v12506_v3 = vld [vmem:[#allocation2 + $0xde0] sm:$0xff] }
 0x9c7   :  { %9398 = vmatpush.bf16.msra.mxu3 %v12461_v25  ;;  %v4705_v25 = vrot.slane %v18705_v57, 6 }
 0x9c8   :  { %9360 = vmatmul.bf16.vlgmr.msra.gmra.mxu0 %v4900_v34  ;;  %9373 = vmatmul.bf16.vlgmr.msra.gmra.mxu1 %v4901_v33  ;;  %v9167_v26 = vadd.f32 %v9166_v36, %v9154_v44  ;;  %v12508_v34 = vld [vmem:[#allocation2 + $0x690] sm:$0xff]  ;;  %v12514_v44 = vld [vmem:[#allocation2 + $0x758] sm:$0xff] }
 0x9c9   :  { %9404 = vmatpush.bf16.msrb.mxu0 %v12476_v52  ;;  %9417 = vmatpush.bf16.msrb.mxu1 %v12484_v20  ;;  %v4719_v52 = vrot.slane %v18726_v50, 6  ;;  %v4713_v33 = vsel %vm20537_vm4, %v4705_v25, %v4709_v24  ;;  %v12524_v50 = vld [vmem:[#allocation2 + $0x278] sm:$0xff]  ;;  %v4734_v25 = vrot.slane %v18694_v53, 1  ;;  %vm20552_vm4 = vmmov %vm20520_vm0 }
 0x9ca   :  { %9430 = vmatpush.bf16.msrb.mxu2 %v12492_v51  ;;  %9399 = vmatmul.bf16.vlgmr.msra.gmra.mxu3 %v4903_v60  ;;  %v12485_v51 = vld [vmem:[#allocation2 + $0x170] sm:$0xff]  ;;  %v12532_v60 = vld [vmem:[#allocation2 + $0xc20] sm:$0xff] }
 0x9cb   :  { %9443 = vmatpush.bf16.msrb.mxu3 %v12500_v63  ;;  %9386 = vmatmul.bf16.vlgmr.msra.gmra.mxu2 %v4902_v37  ;;  %v4722_v63 = vsel %vm20536_vm12, %v4714_v32, %v4718_v55  ;;  %v12516_v37 = vld [vmem:[#allocation2 + $0xb00] sm:$0xff]  ;;  %v4723_v57 = vsel %vm20538_vm10, %v4715_v43, %v4719_v52  ;;  %v12518_v32 = vld [vmem:[#allocation2 + $0xee8] sm:$0xff]  ;;  %v4727_v43 = vrot.slane %v18732_v15, 7  ;;  %v4735_v52 = vrot.slane %v18708_v10, 1  ;;  %vm20551_vm12 = vmmov %vm20520_vm0 }
 0x9cc   :  { %v12526_v55 = vld [vmem:[#allocation2 + $0x120] sm:$0xff]  ;;  %vm20553_vm10 = vmmov %vm20520_vm0 }
 0x9cd   :  { %9405 = vmatpush.bf16.msrb.mxu0 %v12475_v29  ;;  %9418 = vmatpush.bf16.msrb.mxu1 %v12483_v4  ;;  %v9192_v8 = vpop.f32.mrf.mxu3  ;;  %v9155_v42 = vpop.f32.mrf.mxu0  ;;  %v4904_v29 = vpack.c.bf16 %v4712_v30, %v4712_v30  ;;  %v4906_v4 = vpack.c.bf16 %v4722_v63, %v4722_v63  ;;  %v4738_v63 = vsel %vm20540_vm2, %v4734_v25, %v18724_v54  ;;  %vm20555_vm2 = vmmov %vm20520_vm0 }
 0x9ce   :  { %9431 = vmatpush.bf16.msrb.mxu2 %v12491_v58  ;;  %v9179_v31 = vpop.f32.mrf.mxu2  ;;  %v9168_v39 = vpop.f32.mrf.mxu1  ;;  %v4905_v58 = vpack.c.bf16 %v4713_v33, %v4713_v33  ;;  %v12528_v42 = vld [vmem:[#allocation2 + $0x718] sm:$0xff]  ;;  %v4731_v33 = vsel %vm20541_vm6, %v18708_v10, %v4727_v43  ;;  %v4745_v43 = vrot.slane %v18732_v15, 1  ;;  %vm20556_vm6 = vmmov %vm20520_vm0 }
 0x9cf   :  { %9444 = vmatpush.bf16.msrb.mxu3 %v12499_v59  ;;  %v9180_v14 = vadd.f32 %v9179_v31, %v9167_v26  ;;  %v4907_v59 = vpack.c.bf16 %v4723_v57, %v4723_v57  ;;  %v12513_v26 = vld [vmem:[#allocation2 + $0xff8] sm:$0xff]  ;;  %v12504_v31 = vld [vmem:[#allocation2 + $0xc60] sm:$0xff]  ;;  %v4739_v57 = vsel %vm20542_vm13, %v4735_v52, %v18732_v15  ;;  %v4751_v52 = vrot.slane %v18708_v10, 3  ;;  %vm20557_vm13 = vmmov %vm20520_vm0 }
 0x9d1   :  { %9406 = vmatpush.bf16.msrb.mxu0 %v12474_v41  ;;  %9419 = vmatpush.bf16.msrb.mxu1 %v12482_v6  ;;  %v18830_v28 = vadd.f32 %v9192_v8, %v9180_v14  ;;  %v12507_v41 = vld [vmem:[#allocation2 + $0x118] sm:$0xff]  ;;  %v12515_v6 = vld [vmem:[#allocation2 + $0x590] sm:$0xff]  ;;  %v12512_v14 = vld [vmem:[#allocation2 + $0xcc8] sm:$0xff] }
 0x9d2   :  { %9432 = vmatpush.bf16.msrb.mxu2 %v12490_v47  ;;  %v12523_v47 = vld [vmem:[#allocation2 + $0x7f8] sm:$0xff] }
 0x9d3   :  { %9445 = vmatpush.bf16.msrb.mxu3 %v12498_v11  ;;  %v12531_v11 = vld [vmem:[#allocation2 + $0x2f8] sm:$0xff] }
 0x9d4   :  { %v12520_v8 = vld [vmem:[#allocation2 + $0xe78] sm:$0xff] }
 0x9d5   :  { %9407 = vmatpush.bf16.msrb.mxu0 %v12473_v45  ;;  %9420 = vmatpush.bf16.msrb.mxu1 %v12481_v7  ;;  %v9194_v20 = vpop.f32.mrf.mxu3  ;;  %v12522_v45 = vld [vmem:[#allocation2 + $0x258] sm:$0xff]  ;;  %v12530_v7 = vld [vmem:[#allocation2 + $0x7f0] sm:$0xff] }
 0x9d6   :  { %9433 = vmatpush.bf16.msrb.mxu2 %v12489_v62  ;;  %v9181_v18 = vpop.f32.mrf.mxu2 }
 0x9d7   :  { %9446 = vmatpush.bf16.msrb.mxu3 %v12497_v17  ;;  %v12505_v17 = vld [vmem:[#allocation2 + $0x360] sm:$0xff]  ;;  %v4726_v18 = vrot.slane %v18724_v54, 7 }
 0x9d9   :  { %9408 = vmatpush.bf16.msrb.mxu0 %v12472_v19  ;;  %9421 = vmatpush.bf16.msrb.mxu1 %v12480_v61  ;;  %v12521_v61 = vld [vmem:[#allocation2 + $0x640] sm:$0xff]  ;;  %v4730_v30 = vsel %vm20539_vm15, %v18694_v53, %v4726_v18  ;;  %v4754_v18 = vrot.slane %v18724_v54, 2  ;;  %vm20554_vm15 = vmmov %vm20520_vm0 }
 0x9da   :  { %9434 = vmatpush.bf16.msrb.mxu2 %v12488_v21  ;;  %v12529_v21 = vld [vmem:[#allocation2 + $0x968] sm:$0xff] }
 0x9db   :  { %9447 = vmatpush.bf16.msrb.mxu3 %v12496_v23 }
 0x9dd   :  { %9409 = vmatpush.bf16.msrb.mxu0 %v12471_v35  ;;  %9422 = vmatpush.bf16.msrb.mxu1 %v12479_v1 }
 0x9de   :  { %9435 = vmatpush.bf16.msrb.mxu2 %v12487_v5 }
 0x9df   :  { %9448 = vmatpush.bf16.msrb.mxu3 %v12495_v22  ;;  %v12503_v22 = vld [vmem:[#allocation2 + $0x5a0] sm:$0xff] }
 0x9e1   :  { %9410 = vmatpush.bf16.msrb.mxu0 %v12470_v56  ;;  %9423 = vmatpush.bf16.msrb.mxu1 %v12478_v38  ;;  %v12511_v56 = vld [vmem:[#allocation2 + $0x860] sm:$0xff] }
 0x9e2   :  { %9436 = vmatpush.bf16.msrb.mxu2 %v12486_v0  ;;  %v12519_v0 = vld [vmem:[#allocation2 + $0x848] sm:$0xff] }
 0x9e3   :  { %9449 = vmatpush.bf16.msrb.mxu3 %v12494_v27  ;;  %v12527_v27 = vld [vmem:[#allocation2 + $0x330] sm:$0xff] }
 0x9e5   :  { %9411 = vmatpush.bf16.msrb.mxu0 %v12469_v12  ;;  %9424 = vmatpush.bf16.msrb.mxu1 %v12477_v40  ;;  %v9205_v36 = vpop.f32.mrf.mxu0  ;;  %v9218_v19 = vpop.f32.mrf.mxu1  ;;  %v12501_v12 = vld [vmem:[#allocation2 + $0xd70] sm:$0xff]  ;;  %v12509_v40 = vld [vmem:[#allocation2 + $0xb48] sm:$0xff] }
 0x9e6   :  { %9437 = vmatpush.bf16.msrb.mxu2 %v12485_v51  ;;  %v9206_v62 = vadd.f32 %v9205_v36, %v18830_v28  ;;  %v12517_v51 = vld [vmem:[#allocation2 + $0x6c8] sm:$0xff] }
 0x9e7   :  { %9450 = vmatpush.bf16.msrb.mxu3 %v12493_v49  ;;  %v12525_v49 = vld [vmem:[#allocation2 + $0x648] sm:$0xff] }
 0x9e8   :  { %9412 = vmatmul.bf16.vlgmr.msrb.gmra.mxu0 %v4904_v29  ;;  %9425 = vmatmul.bf16.vlgmr.msrb.gmra.mxu1 %v4905_v58  ;;  %v9219_v23 = vadd.f32 %v9218_v19, %v9206_v62  ;;  %v4908_v29 = vpack.c.bf16 %v4730_v30, %v4730_v30  ;;  %v4909_v58 = vpack.c.bf16 %v4731_v33, %v4731_v33  ;;  %v12537_v62 = vld [vmem:[#allocation2 + $0xad8] sm:$0xff]  ;;  %v12557_v30 = vld [vmem:[#allocation2 + $0x550] sm:$0xff] }
 0x9e9   :  { %9456 = vmatpush.bf16.msra.mxu0 %v12508_v34  ;;  %9469 = vmatpush.bf16.msra.mxu1 %v12516_v37  ;;  %v12540_v34 = vld [vmem:[#allocation2 + $0xda8] sm:$0xff]  ;;  %v12548_v37 = vld [vmem:[#allocation2 + $0x318] sm:$0xff] }
 0x9ea   :  { %9482 = vmatpush.bf16.msra.mxu2 %v12524_v50  ;;  %9451 = vmatmul.bf16.vlgmr.msrb.gmra.mxu3 %v4907_v59  ;;  %v12556_v50 = vld [vmem:[#allocation2 + $0xa0] sm:$0xff]  ;;  %v4911_v59 = vpack.c.bf16 %v4739_v57, %v4739_v57  ;;  %v12553_v19 = vld [vmem:[#allocation2 + $0xa38] sm:$0xff] }
 0x9eb   :  { %9495 = vmatpush.bf16.msra.mxu3 %v12532_v60  ;;  %9438 = vmatmul.bf16.vlgmr.msrb.gmra.mxu2 %v4906_v4  ;;  %v12564_v60 = vld [vmem:[#allocation2 + $0xe40] sm:$0xff]  ;;  %v4910_v4 = vpack.c.bf16 %v4738_v63, %v4738_v63  ;;  %v12572_v33 = vld [vmem:[#allocation2 + $0xdb8] sm:$0xff] }
 0x9ec   :  { %v12580_v57 = vld [vmem:[#allocation2 + $0x1a0] sm:$0xff] }
 0x9ed   :  { %9457 = vmatpush.bf16.msra.mxu0 %v12507_v41  ;;  %9470 = vmatpush.bf16.msra.mxu1 %v12515_v6  ;;  %v9244_v39 = vpop.f32.mrf.mxu3  ;;  %v9207_v28 = vpop.f32.mrf.mxu0  ;;  %v12539_v41 = vld [vmem:[#allocation2 + $0x80] sm:$0xff]  ;;  %v12547_v6 = vld [vmem:[#allocation2 + $0x88] sm:$0xff] }
 0x9ee   :  { %9483 = vmatpush.bf16.msra.mxu2 %v12523_v47  ;;  %v9231_v35 = vpop.f32.mrf.mxu2  ;;  %v9220_v38 = vpop.f32.mrf.mxu1  ;;  %v12555_v47 = vld [vmem:[#allocation2 + $0xd80] sm:$0xff] }
 0x9ef   :  { %9496 = vmatpush.bf16.msra.mxu3 %v12531_v11  ;;  %v9232_v1 = vadd.f32 %v9231_v35, %v9219_v23  ;;  %v12563_v11 = vld [vmem:[#allocation2 + $0x828] sm:$0xff]  ;;  %v12544_v23 = vld [vmem:[#allocation2 + $0x20] sm:$0xff] }
 0x9f0   :  { %v12534_v38 = vld [vmem:[#allocation2 + $0xe8] sm:$0xff] }
 0x9f1   :  { %9458 = vmatpush.bf16.msra.mxu0 %v12506_v3  ;;  %9471 = vmatpush.bf16.msra.mxu1 %v12514_v44  ;;  %v18845_v5 = vadd.f32 %v9244_v39, %v9232_v1  ;;  %v12538_v3 = vld [vmem:[#allocation2 + $0x878] sm:$0xff]  ;;  %v12535_v1 = vld [vmem:[#allocation2 + $0xfd0] sm:$0xff] }
 0x9f2   :  { %9484 = vmatpush.bf16.msra.mxu2 %v12522_v45  ;;  %v12546_v44 = vld [vmem:[#allocation2 + $0xeb8] sm:$0xff]  ;;  %v12554_v45 = vld [vmem:[#allocation2 + $0x588] sm:$0xff]  ;;  %v12543_v39 = vld [vmem:[#allocation2 + $0x530] sm:$0xff] }
 0x9f3   :  { %9497 = vmatpush.bf16.msra.mxu3 %v12530_v7  ;;  %v12562_v7 = vld [vmem:[#allocation2 + $0xf48] sm:$0xff] }
 0x9f5   :  { %9459 = vmatpush.bf16.msra.mxu0 %v12505_v17  ;;  %9472 = vmatpush.bf16.msra.mxu1 %v12513_v26  ;;  %v9246_v20 = vpop.f32.mrf.mxu3  ;;  %v12545_v17 = vld [vmem:[#allocation2 + $0xf70] sm:$0xff] }
 0x9f6   :  { %9485 = vmatpush.bf16.msra.mxu2 %v12521_v61  ;;  %v9233_v24 = vpop.f32.mrf.mxu2  ;;  %v12561_v61 = vld [vmem:[#allocation2 + $0xfc8] sm:$0xff]  ;;  %v4755_v20 = vrot.slane %v18732_v15, 2 }
 0x9f7   :  { %9498 = vmatpush.bf16.msra.mxu3 %v12529_v21  ;;  %v12536_v21 = vld [vmem:[#allocation2 + $0x8a8] sm:$0xff]  ;;  %v4741_v24 = vrot.slane %v18708_v10, 2 }
 0x9f9   :  { %9460 = vmatpush.bf16.msra.mxu0 %v12504_v31  ;;  %9473 = vmatpush.bf16.msra.mxu1 %v12512_v14  ;;  %v12552_v31 = vld [vmem:[#allocation2 + $0x4b0] sm:$0xff]  ;;  %v12560_v14 = vld [vmem:[#allocation2 + $0xce0] sm:$0xff] }
 0x9fa   :  { %9486 = vmatpush.bf16.msra.mxu2 %v12520_v8 }
 0x9fb   :  { %9499 = vmatpush.bf16.msra.mxu3 %v12528_v42 }
 0x9fd   :  { %9461 = vmatpush.bf16.msra.mxu0 %v12503_v22  ;;  %9474 = vmatpush.bf16.msra.mxu1 %v12511_v56  ;;  %v12551_v22 = vld [vmem:[#allocation2 + $0x8b8] sm:$0xff] }
 0x9fe   :  { %9487 = vmatpush.bf16.msra.mxu2 %v12519_v0  ;;  %v12559_v56 = vld [vmem:[#allocation2 + $0x4f8] sm:$0xff]  ;;  %v12542_v0 = vld [vmem:[#allocation2 + $0xda0] sm:$0xff] }
 0x9ff   :  { %9500 = vmatpush.bf16.msra.mxu3 %v12527_v27  ;;  %v12550_v27 = vld [vmem:[#allocation2 + $0x430] sm:$0xff] }
 0xa01   :  { %9462 = vmatpush.bf16.msra.mxu0 %v12502_v48  ;;  %9475 = vmatpush.bf16.msra.mxu1 %v12510_v9  ;;  %v12558_v48 = vld [vmem:[#allocation2 + $0xf98] sm:$0xff]  ;;  %v4740_v9 = vrot.slane %v18694_v53, 2 }
 0xa02   :  { %9488 = vmatpush.bf16.msra.mxu2 %v12518_v32  ;;  %v4744_v32 = vrot.slane %v18724_v54, 1 }
 0xa03   :  { %9501 = vmatpush.bf16.msra.mxu3 %v12526_v55  ;;  %v4750_v55 = vrot.slane %v18694_v53, 3 }
 0xa04   :  { %v4748_v63 = vsel %vm20543_vm1, %v4740_v9, %v4744_v32  ;;  %v12575_v9 = vld [vmem:[#allocation2 + $0xa78] sm:$0xff]  ;;  %vm20558_vm1 = vmmov %vm20520_vm0 }
 0xa05   :  { %9463 = vmatpush.bf16.msra.mxu0 %v12501_v12  ;;  %9476 = vmatpush.bf16.msra.mxu1 %v12509_v40  ;;  %v9257_v36 = vpop.f32.mrf.mxu0  ;;  %v18859_v26 = vpop.f32.mrf.mxu1  ;;  %v12533_v40 = vld [vmem:[#allocation2] sm:$0xff] }
 0xa06   :  { %9489 = vmatpush.bf16.msra.mxu2 %v12517_v51  ;;  %v12541_v51 = vld [vmem:[#allocation2 + $0x670] sm:$0xff] }
 0xa07   :  { %9502 = vmatpush.bf16.msra.mxu3 %v12525_v49  ;;  %v12549_v49 = vld [vmem:[#allocation2 + $0x520] sm:$0xff] }
 0xa08   :  { %9464 = vmatmul.bf16.vlgmr.msra.gmra.mxu0 %v4908_v29  ;;  %9477 = vmatmul.bf16.vlgmr.msra.gmra.mxu1 %v4909_v58  ;;  %v12588_v29 = vld [vmem:[#allocation2 + $0x560] sm:$0xff]  ;;  %v4912_v58 = vpack.c.bf16 %v4748_v63, %v4748_v63  ;;  %v4765_v63 = vrot.slane %v18732_v15, 3 }
 0xa09   :  { %9508 = vmatpush.bf16.msrb.mxu0 %v12540_v34  ;;  %9521 = vmatpush.bf16.msrb.mxu1 %v12548_v37  ;;  %v4758_v34 = vsel %vm20544_vm3, %v4750_v55, %v4754_v18  ;;  %v9258_v37 = vadd.f32 %v9257_v36, %v18845_v5  ;;  %v12571_v5 = vld [vmem:[#allocation2 + $0xfb0] sm:$0xff]  ;;  %v12578_v36 = vld [vmem:[#allocation2 + $0x908] sm:$0xff]  ;;  %vm20559_vm3 = vmmov %vm20520_vm0 }
 0xa0a   :  { %9534 = vmatpush.bf16.msrb.mxu2 %v12556_v50  ;;  %9503 = vmatmul.bf16.vlgmr.msra.gmra.mxu3 %v4911_v59  ;;  %v4749_v50 = vsel %vm20545_vm8, %v4741_v24, %v4745_v43  ;;  %v4914_v59 = vpack.c.bf16 %v4758_v34, %v4758_v34  ;;  %v12583_v55 = vld [vmem:[#allocation2 + $0xcb0] sm:$0xff]  ;;  %v12591_v18 = vld [vmem:[#allocation2 + $0x128] sm:$0xff]  ;;  %v12582_v43 = vld [vmem:[#allocation2 + $0xfa0] sm:$0xff]  ;;  %v4771_v34 = vrot.slane %v18708_v10, 5 }
 0xa0b   :  { %9547 = vmatpush.bf16.msrb.mxu3 %v12564_v60  ;;  %9490 = vmatmul.bf16.vlgmr.msra.gmra.mxu2 %v4910_v4  ;;  %v4759_v60 = vsel %vm20546_vm11, %v4751_v52, %v4755_v20  ;;  %v12596_v4 = vld [vmem:[#allocation2 + $0xa8] sm:$0xff]  ;;  %v4760_v20 = vrot.slane %v18694_v53, 4  ;;  %vm20560_vm8 = vmmov %vm20520_vm0 }
 0xa0c   :  { %v12574_v24 = vld [vmem:[#allocation2 + $0x388] sm:$0xff]  ;;  %vm20561_vm11 = vmmov %vm20520_vm0 }
 0xa0d   :  { %9509 = vmatpush.bf16.msrb.mxu0 %v12539_v41  ;;  %9522 = vmatpush.bf16.msrb.mxu1 %v12547_v6  ;;  %v18863_v42 = vpop.f32.mrf.mxu3  ;;  %v9259_v35 = vpop.f32.mrf.mxu0  ;;  %v4913_v41 = vpack.c.bf16 %v4749_v50, %v4749_v50  ;;  %v4915_v6 = vpack.c.bf16 %v4759_v60, %v4759_v60  ;;  %v12590_v52 = vld [vmem:[#allocation2 + $0x608] sm:$0xff]  ;;  %v12573_v50 = vld [vmem:[#allocation2 + $0x350] sm:$0xff] }
 0xa0e   :  { %9535 = vmatpush.bf16.msrb.mxu2 %v12555_v47  ;;  %v18861_v8 = vpop.f32.mrf.mxu2  ;;  %v9272_v28 = vpop.f32.mrf.mxu1  ;;  %v9271_v47 = vadd.f32 %v18859_v26, %v9258_v37  ;;  %v4775_v37 = vrot.slane %v18732_v15, 4  ;;  %v12581_v60 = vld [vmem:[#allocation2 + $0x4d0] sm:$0xff] }
 0xa0f   :  { %9548 = vmatpush.bf16.msrb.mxu3 %v12563_v11  ;;  %v12579_v11 = vld [vmem:[#allocation2 + $0xc10] sm:$0xff]  ;;  %v12584_v28 = vld [vmem:[#allocation2 + $0x168] sm:$0xff] }
 0xa11   :  { %9510 = vmatpush.bf16.msrb.mxu0 %v12538_v3  ;;  %9523 = vmatpush.bf16.msrb.mxu1 %v12546_v44  ;;  %v12587_v3 = vld [vmem:[#allocation2 + $0xdc8] sm:$0xff]  ;;  %v12595_v44 = vld [vmem:[#allocation2 + $0x130] sm:$0xff] }
 0xa12   :  { %9536 = vmatpush.bf16.msrb.mxu2 %v12554_v45  ;;  %v9284_v45 = vadd.f32 %v18861_v8, %v9271_v47  ;;  %v12593_v8 = vld [vmem:[#allocation2 + $0xf8] sm:$0xff]  ;;  %v4779_v47 = vsel %vm20550_vm7, %v4771_v34, %v4775_v37  ;;  %v4794_v34 = vrot.slane %v18724_v54, 6  ;;  %vm20565_vm7 = vmmov %vm20520_vm0 }
 0xa13   :  { %9549 = vmatpush.bf16.msrb.mxu3 %v12562_v7  ;;  %v12570_v7 = vld [vmem:[#allocation2 + $0xdc0] sm:$0xff] }
 0xa14   :  { %v9297_v26 = vadd.f32 %v18863_v42, %v9284_v45  ;;  %v12592_v42 = vld [vmem:[#allocation2 + $0x178] sm:$0xff] }
 0xa15   :  { %9511 = vmatpush.bf16.msrb.mxu0 %v12537_v62  ;;  %9524 = vmatpush.bf16.msrb.mxu1 %v12545_v17  ;;  %v9298_v12 = vpop.f32.mrf.mxu3  ;;  %v12586_v62 = vld [vmem:[#allocation2 + $0xf88] sm:$0xff]  ;;  %v12594_v17 = vld [vmem:[#allocation2 + $0x8d0] sm:$0xff] }
 0xa16   :  { %9537 = vmatpush.bf16.msrb.mxu2 %v12553_v19  ;;  %v9285_v25 = vpop.f32.mrf.mxu2  ;;  %v4764_v12 = vrot.slane %v18724_v54, 3 }
 0xa17   :  { %9550 = vmatpush.bf16.msrb.mxu3 %v12561_v61  ;;  %v12566_v25 = vld [vmem:[#allocation2 + $0x3e0] sm:$0xff] }
 0xa19   :  { %9512 = vmatpush.bf16.msrb.mxu0 %v12536_v21  ;;  %9525 = vmatpush.bf16.msrb.mxu1 %v12544_v23  ;;  %v12569_v21 = vld [vmem:[#allocation2 + $0x1b0] sm:$0xff]  ;;  %v12577_v23 = vld [vmem:[#allocation2 + $0xf40] sm:$0xff] }
 0xa1a   :  { %9538 = vmatpush.bf16.msrb.mxu2 %v12552_v31 }
 0xa1b   :  { %9551 = vmatpush.bf16.msrb.mxu3 %v12560_v14  ;;  %v12585_v14 = vld [vmem:[#allocation2 + $0xf28] sm:$0xff] }
 0xa1d   :  { %9513 = vmatpush.bf16.msrb.mxu0 %v12535_v1  ;;  %9526 = vmatpush.bf16.msrb.mxu1 %v12543_v39  ;;  %v12568_v1 = vld [vmem:[#allocation2 + $0xf50] sm:$0xff]  ;;  %v12576_v39 = vld [vmem:[#allocation2 + $0xcc0] sm:$0xff] }
 0xa1e   :  { %9539 = vmatpush.bf16.msrb.mxu2 %v12551_v22 }
 0xa1f   :  { %9552 = vmatpush.bf16.msrb.mxu3 %v12559_v56 }
 0xa21   :  { %9514 = vmatpush.bf16.msrb.mxu0 %v12534_v38  ;;  %9527 = vmatpush.bf16.msrb.mxu1 %v12542_v0 }
 0xa22   :  { %9540 = vmatpush.bf16.msrb.mxu2 %v12550_v27 }
 0xa23   :  { %9553 = vmatpush.bf16.msrb.mxu3 %v12558_v48  ;;  %v12567_v48 = vld [vmem:[#allocation2 + $0xf80] sm:$0xff] }
 0xa25   :  { %9515 = vmatpush.bf16.msrb.mxu0 %v12533_v40  ;;  %9528 = vmatpush.bf16.msrb.mxu1 %v12541_v51  ;;  %v9309_v19 = vpop.f32.mrf.mxu0  ;;  %v9322_v31 = vpop.f32.mrf.mxu1  ;;  %v4770_v40 = vrot.slane %v18694_v53, 5  ;;  %v4774_v51 = vrot.slane %v18724_v54, 4 }
 0xa26   :  { %9541 = vmatpush.bf16.msrb.mxu2 %v12549_v49  ;;  %v9310_v61 = vadd.f32 %v9309_v19, %v9297_v26  ;;  %v12627_v26 = vld [vmem:[#allocation2 + $0x7d8] sm:$0xff] }
 0xa27   :  { %9554 = vmatpush.bf16.msrb.mxu3 %v12557_v30  ;;  %v4761_v30 = vrot.slane %v18708_v10, 4  ;;  %v12602_v19 = vld [vmem:[#allocation2 + $0x958] sm:$0xff] }
 0xa28   :  { %9516 = vmatmul.bf16.vlgmr.msrb.gmra.mxu0 %v4912_v58  ;;  %9529 = vmatmul.bf16.vlgmr.msrb.gmra.mxu1 %v4913_v41  ;;  %v9323_v35 = vadd.f32 %v9322_v31, %v9310_v61  ;;  %v4778_v58 = vsel %vm20548_vm9, %v4770_v40, %v4774_v51  ;;  %v12612_v41 = vld [vmem:[#allocation2 + $0x48] sm:$0xff]  ;;  %v12610_v61 = vld [vmem:[#allocation2 + $0x240] sm:$0xff]  ;;  %v12622_v51 = vld [vmem:[#allocation2 + $0xc98] sm:$0xff] }
 0xa29   :  { %9560 = vmatpush.bf16.msra.mxu0 %v12572_v33  ;;  %9573 = vmatpush.bf16.msra.mxu1 %v12580_v57  ;;  %v12565_v57 = vld [vmem:[#allocation2 + $0x978] sm:$0xff]  ;;  %v12614_v40 = vld [vmem:[#allocation2 + $0x220] sm:$0xff]  ;;  %vm20563_vm9 = vmmov %vm20520_vm0 }
 0xa2a   :  { %9586 = vmatpush.bf16.msra.mxu2 %v12588_v29  ;;  %9555 = vmatmul.bf16.vlgmr.msrb.gmra.mxu3 %v4915_v6  ;;  %v12589_v29 = vld [vmem:[#allocation2 + $0x888] sm:$0xff]  ;;  %v4769_v6 = vsel %vm20549_vm5, %v4761_v30, %v4765_v63  ;;  %v4784_v30 = vrot.slane %v18724_v54, 5  ;;  %v4790_v63 = vrot.slane %v18694_v53, 7  ;;  %vm20564_vm5 = vmmov %vm20520_vm0 }
 0xa2b   :  { %9599 = vmatpush.bf16.msra.mxu3 %v12596_v4  ;;  %9542 = vmatmul.bf16.vlgmr.msrb.gmra.mxu2 %v4914_v59  ;;  %v4768_v4 = vsel %vm20547_vm14, %v4760_v20, %v4764_v12  ;;  %v12604_v59 = vld [vmem:[#allocation2 + $0xad0] sm:$0xff]  ;;  %v4917_v45 = vpack.c.bf16 %v4769_v6, %v4769_v6  ;;  %v12598_v20 = vld [vmem:[#allocation2 + $0xe58] sm:$0xff]  ;;  %v12606_v12 = vld [vmem:[#allocation2 + $0x300] sm:$0xff] }
 0xa2c   :  { %v12636_v6 = vld [vmem:[#allocation2 + $0x7e8] sm:$0xff]  ;;  %vm20562_vm14 = vmmov %vm20520_vm0 }
 0xa2d   :  { %9561 = vmatpush.bf16.msra.mxu0 %v12571_v5  ;;  %9574 = vmatpush.bf16.msra.mxu1 %v12579_v11  ;;  %v9348_v38 = vpop.f32.mrf.mxu3  ;;  %v9311_v0 = vpop.f32.mrf.mxu0  ;;  %v12620_v5 = vld [vmem:[#allocation2 + $0x3f0] sm:$0xff]  ;;  %v12628_v11 = vld [vmem:[#allocation2 + $0x68] sm:$0xff] }
 0xa2e   :  { %9587 = vmatpush.bf16.msra.mxu2 %v12587_v3  ;;  %v9335_v22 = vpop.f32.mrf.mxu2  ;;  %v9324_v32 = vpop.f32.mrf.mxu1  ;;  %v4916_v3 = vpack.c.bf16 %v4768_v4, %v4768_v4  ;;  %v12624_v0 = vld [vmem:[#allocation2 + $0xa08] sm:$0xff]  ;;  %v12597_v4 = vld [vmem:[#allocation2 + $0x1d8] sm:$0xff] }
 0xa2f   :  { %9600 = vmatpush.bf16.msra.mxu3 %v12595_v44  ;;  %v9336_v56 = vadd.f32 %v9335_v22, %v9323_v35  ;;  %v4918_v44 = vpack.c.bf16 %v4778_v58, %v4778_v58  ;;  %v12609_v35 = vld [vmem:[#allocation2 + $0x480] sm:$0xff]  ;;  %v12600_v22 = vld [vmem:[#allocation2 + $0x870] sm:$0xff]  ;;  %v12605_v58 = vld [vmem:[#allocation2 + $0xa18] sm:$0xff] }
 0xa31   :  { %9562 = vmatpush.bf16.msra.mxu0 %v12570_v7  ;;  %9575 = vmatpush.bf16.msra.mxu1 %v12578_v36  ;;  %v18881_v27 = vadd.f32 %v9348_v38, %v9336_v56  ;;  %v4919_v7 = vpack.c.bf16 %v4779_v47, %v4779_v47  ;;  %v12603_v36 = vld [vmem:[#allocation2 + $0xbe0] sm:$0xff]  ;;  %v12608_v56 = vld [vmem:[#allocation2 + $0xd28] sm:$0xff]  ;;  %v12616_v38 = vld [vmem:[#allocation2 + $0x3b8] sm:$0xff] }
 0xa32   :  { %9588 = vmatpush.bf16.msra.mxu2 %v12586_v62  ;;  %v12611_v62 = vld [vmem:[#allocation2 + $0xcf0] sm:$0xff]  ;;  %v12644_v47 = vld [vmem:[#allocation2 + $0x720] sm:$0xff] }
 0xa33   :  { %9601 = vmatpush.bf16.msra.mxu3 %v12594_v17  ;;  %v12619_v17 = vld [vmem:[#allocation2 + $0x248] sm:$0xff] }
 0xa35   :  { %9563 = vmatpush.bf16.msra.mxu0 %v12569_v21  ;;  %9576 = vmatpush.bf16.msra.mxu1 %v12577_v23  ;;  %v9350_v33 = vpop.f32.mrf.mxu3  ;;  %v12618_v21 = vld [vmem:[#allocation2 + $0xe10] sm:$0xff]  ;;  %v12626_v23 = vld [vmem:[#allocation2 + $0x378] sm:$0xff] }
 0xa36   :  { %9589 = vmatpush.bf16.msra.mxu2 %v12585_v14  ;;  %v9337_v49 = vpop.f32.mrf.mxu2  ;;  %v4781_v33 = vrot.slane %v18708_v10, 6 }
 0xa37   :  { %9602 = vmatpush.bf16.msra.mxu3 %v12593_v8  ;;  %v12601_v8 = vld [vmem:[#allocation2 + $0xa40] sm:$0xff]  ;;  %v4780_v49 = vrot.slane %v18694_v53, 6  ;;  %v12621_v53 = vld [vmem:[#allocation2 + $0x3c8] sm:$0xff] }
 0xa39   :  { %9564 = vmatpush.bf16.msra.mxu0 %v12568_v1  ;;  %9577 = vmatpush.bf16.msra.mxu1 %v12576_v39  ;;  %v12617_v39 = vld [vmem:[#allocation2 + $0x3e8] sm:$0xff]  ;;  %v4788_v54 = vsel %vm20520_vm0, %v4780_v49, %v4784_v30  ;;  %v4802_v49 = vrot.slane %v18730_v16, 7  ;;  %v4810_v30 = vrot.slane %v18700_v2, 1 }
 0xa3a   :  { %9590 = vmatpush.bf16.msra.mxu2 %v12584_v28  ;;  %v12625_v28 = vld [vmem:[#allocation2 + $0x540] sm:$0xff] }
 0xa3b   :  { %9603 = vmatpush.bf16.msra.mxu3 %v12592_v42 }
 0xa3d   :  { %9565 = vmatpush.bf16.msra.mxu0 %v12567_v48  ;;  %9578 = vmatpush.bf16.msra.mxu1 %v12575_v9 }
 0xa3e   :  { %9591 = vmatpush.bf16.msra.mxu2 %v12583_v55 }
 0xa3f   :  { %9604 = vmatpush.bf16.msra.mxu3 %v12591_v18  ;;  %v12599_v18 = vld [vmem:[#allocation2 + $0x638] sm:$0xff] }
 0xa41   :  { %9566 = vmatpush.bf16.msra.mxu0 %v12566_v25  ;;  %9579 = vmatpush.bf16.msra.mxu1 %v12574_v24  ;;  %v12607_v25 = vld [vmem:[#allocation2 + $0xa10] sm:$0xff] }
 0xa42   :  { %9592 = vmatpush.bf16.msra.mxu2 %v12582_v43  ;;  %v12615_v43 = vld [vmem:[#allocation2 + $0x890] sm:$0xff] }
 0xa43   :  { %9605 = vmatpush.bf16.msra.mxu3 %v12590_v52  ;;  %v12623_v52 = vld [vmem:[#allocation2 + $0x280] sm:$0xff] }
 0xa45   :  { %9567 = vmatpush.bf16.msra.mxu0 %v12565_v57  ;;  %9580 = vmatpush.bf16.msra.mxu1 %v12573_v50  ;;  %v9361_v31 = vpop.f32.mrf.mxu0  ;;  %v9374_v1 = vpop.f32.mrf.mxu1  ;;  %v4785_v57 = vrot.slane %v18732_v15, 5  ;;  %v4791_v50 = vrot.slane %v18708_v10, 7 }
 0xa46   :  { %9593 = vmatpush.bf16.msra.mxu2 %v12581_v60  ;;  %v9362_v14 = vadd.f32 %v9361_v31, %v18881_v27  ;;  %v4795_v60 = vrot.slane %v18732_v15, 6  ;;  %v12652_v15 = vld [vmem:[#allocation2 + $0xae8] sm:$0xff] }
 0xa47   :  { %9606 = vmatpush.bf16.msra.mxu3 %v12589_v29 }
 0xa48   :  { %9568 = vmatmul.bf16.vlgmr.msra.gmra.mxu0 %v4916_v3  ;;  %9581 = vmatmul.bf16.vlgmr.msra.gmra.mxu1 %v4917_v45  ;;  %v9375_v42 = vadd.f32 %v9374_v1, %v9362_v14  ;;  %v4799_v10 = vsel %vm20553_vm10, %v4791_v50, %v4795_v60  ;;  %v4920_v3 = vpack.c.bf16 %v4788_v54, %v4788_v54  ;;  %v12637_v50 = vld [vmem:[#allocation2 + $0xc68] sm:$0xff]  ;;  %v12645_v60 = vld [vmem:[#allocation2 + $0x5d8] sm:$0xff]  ;;  %vm20568_vm10 = vmmov %vm20520_vm0 }
 0xa49   :  { %9612 = vmatpush.bf16.msrb.mxu0 %v12604_v59  ;;  %9625 = vmatpush.bf16.msrb.mxu1 %v12612_v41  ;;  %v12613_v59 = vld [vmem:[#allocation2 + $0x4e8] sm:$0xff]  ;;  %v4798_v41 = vsel %vm20551_vm12, %v4790_v63, %v4794_v34  ;;  %v4803_v34 = vrot.slane %v18735_v13, 7  ;;  %vm20566_vm12 = vmmov %vm20520_vm0 }
 0xa4a   :  { %9638 = vmatpush.bf16.msrb.mxu2 %v12620_v5  ;;  %9607 = vmatmul.bf16.vlgmr.msra.gmra.mxu3 %v4919_v7  ;;  %v4789_v5 = vsel %vm20552_vm4, %v4781_v33, %v4785_v57  ;;  %v4923_v7 = vpack.c.bf16 %v4799_v10, %v4799_v10  ;;  %v12629_v57 = vld [vmem:[#allocation2 + $0xd38] sm:$0xff]  ;;  %vm20567_vm4 = vmmov %vm20520_vm0 }
 0xa4b   :  { %9651 = vmatpush.bf16.msrb.mxu3 %v12628_v11  ;;  %9594 = vmatmul.bf16.vlgmr.msra.gmra.mxu2 %v4918_v44  ;;  %v12660_v11 = vld [vmem:[#allocation2 + $0x9b8] sm:$0xff]  ;;  %v4922_v44 = vpack.c.bf16 %v4798_v41, %v4798_v41  ;;  %v4921_v45 = vpack.c.bf16 %v4789_v5, %v4789_v5  ;;  %v4807_v54 = vsel %vm20556_vm6, %v18712_v46, %v4803_v34  ;;  %v4827_v34 = vrot.slane %v18712_v46, 3 }
 0xa4d   :  { %9613 = vmatpush.bf16.msrb.mxu0 %v12603_v36  ;;  %9626 = vmatpush.bf16.msrb.mxu1 %v12611_v62  ;;  %v9400_v32 = vpop.f32.mrf.mxu3  ;;  %v9363_v27 = vpop.f32.mrf.mxu0  ;;  %v12635_v36 = vld [vmem:[#allocation2 + $0x408] sm:$0xff]  ;;  %v12643_v62 = vld [vmem:[#allocation2 + $0xff0] sm:$0xff] }
 0xa4e   :  { %9639 = vmatpush.bf16.msrb.mxu2 %v12619_v17  ;;  %v9387_v48 = vpop.f32.mrf.mxu2  ;;  %v9376_v24 = vpop.f32.mrf.mxu1  ;;  %v12651_v17 = vld [vmem:[#allocation2 + $0x6c0] sm:$0xff] }
 0xa4f   :  { %9652 = vmatpush.bf16.msrb.mxu3 %v12627_v26  ;;  %v9388_v9 = vadd.f32 %v9387_v48, %v9375_v42  ;;  %v12659_v26 = vld [vmem:[#allocation2 + $0x3a0] sm:$0xff] }
 0xa51   :  { %9614 = vmatpush.bf16.msrb.mxu0 %v12602_v19  ;;  %9627 = vmatpush.bf16.msrb.mxu1 %v12610_v61  ;;  %v18896_v55 = vadd.f32 %v9400_v32, %v9388_v9  ;;  %v12634_v19 = vld [vmem:[#allocation2 + $0x2a0] sm:$0xff] }
 0xa52   :  { %9640 = vmatpush.bf16.msrb.mxu2 %v12618_v21  ;;  %v12642_v61 = vld [vmem:[#allocation2 + $0x440] sm:$0xff] }
 0xa53   :  { %9653 = vmatpush.bf16.msrb.mxu3 %v12626_v23  ;;  %v12650_v21 = vld [vmem:[#allocation2 + $0x60] sm:$0xff]  ;;  %v12658_v23 = vld [vmem:[#allocation2 + $0xdd0] sm:$0xff] }
 0xa55   :  { %9615 = vmatpush.bf16.msrb.mxu0 %v12601_v8  ;;  %9628 = vmatpush.bf16.msrb.mxu1 %v12609_v35  ;;  %v9402_v29 = vpop.f32.mrf.mxu3  ;;  %v12633_v8 = vld [vmem:[#allocation2 + $0xc08] sm:$0xff] }
 0xa56   :  { %9641 = vmatpush.bf16.msrb.mxu2 %v12617_v39  ;;  %v9389_v37 = vpop.f32.mrf.mxu2  ;;  %v12641_v35 = vld [vmem:[#allocation2 + $0x5e8] sm:$0xff]  ;;  %v12653_v29 = vld [vmem:[#allocation2 + $0xfb8] sm:$0xff] }
 0xa57   :  { %9654 = vmatpush.bf16.msrb.mxu3 %v12625_v28  ;;  %v12649_v39 = vld [vmem:[#allocation2 + $0x808] sm:$0xff]  ;;  %v12657_v28 = vld [vmem:[#allocation2 + $0x1d0] sm:$0xff]  ;;  %v4811_v37 = vrot.slane %v18712_v46, 1 }
 0xa59   :  { %9616 = vmatpush.bf16.msrb.mxu0 %v12600_v22  ;;  %9629 = vmatpush.bf16.msrb.mxu1 %v12608_v56  ;;  %v12632_v22 = vld [vmem:[#allocation2 + $0x1e8] sm:$0xff]  ;;  %v12640_v56 = vld [vmem:[#allocation2 + $0xfc0] sm:$0xff]  ;;  %v4815_v41 = vsel %vm20557_vm13, %v4811_v37, %v18735_v13  ;;  %v4831_v37 = vrot.slane %v18735_v13, 2 }
 0xa5a   :  { %9642 = vmatpush.bf16.msrb.mxu2 %v12616_v38  ;;  %v12648_v38 = vld [vmem:[#allocation2 + $0x738] sm:$0xff] }
 0xa5b   :  { %9655 = vmatpush.bf16.msrb.mxu3 %v12624_v0  ;;  %v12656_v0 = vld [vmem:[#allocation2 + $0xa30] sm:$0xff] }
 0xa5d   :  { %9617 = vmatpush.bf16.msrb.mxu0 %v12599_v18  ;;  %9630 = vmatpush.bf16.msrb.mxu1 %v12607_v25  ;;  %v12631_v18 = vld [vmem:[#allocation2 + $0x548] sm:$0xff]  ;;  %v12639_v25 = vld [vmem:[#allocation2 + $0xf60] sm:$0xff] }
 0xa5e   :  { %9643 = vmatpush.bf16.msrb.mxu2 %v12615_v43  ;;  %v12647_v43 = vld [vmem:[#allocation2 + $0x2c8] sm:$0xff] }
 0xa5f   :  { %9656 = vmatpush.bf16.msrb.mxu3 %v12623_v52  ;;  %v12655_v52 = vld [vmem:[#allocation2 + $0xdd8] sm:$0xff] }
 0xa61   :  { %9618 = vmatpush.bf16.msrb.mxu0 %v12598_v20  ;;  %9631 = vmatpush.bf16.msrb.mxu1 %v12606_v12  ;;  %v12630_v20 = vld [vmem:[#allocation2 + $0x190] sm:$0xff]  ;;  %v12638_v12 = vld [vmem:[#allocation2 + $0x658] sm:$0xff] }
 0xa62   :  { %9644 = vmatpush.bf16.msrb.mxu2 %v12614_v40  ;;  %v12646_v40 = vld [vmem:[#allocation2 + $0xb70] sm:$0xff] }
 0xa63   :  { %9657 = vmatpush.bf16.msrb.mxu3 %v12622_v51  ;;  %v12654_v51 = vld [vmem:[#allocation2 + $0xb0] sm:$0xff] }
 0xa65   :  { %9619 = vmatpush.bf16.msrb.mxu0 %v12597_v4  ;;  %9632 = vmatpush.bf16.msrb.mxu1 %v12605_v58  ;;  %v9413_v31 = vpop.f32.mrf.mxu0  ;;  %v9426_v1 = vpop.f32.mrf.mxu1  ;;  %v4806_v4 = vsel %vm20554_vm15, %v18700_v2, %v4802_v49  ;;  %v4814_v58 = vsel %vm20555_vm2, %v4810_v30, %v18730_v16  ;;  %v4817_v30 = vrot.slane %v18712_v46, 2  ;;  %vm9931_vm15 = vcmask 523264  }
 0xa66   :  { %9645 = vmatpush.bf16.msrb.mxu2 %v12613_v59  ;;  %v9414_v14 = vadd.f32 %v9413_v31, %v18896_v55  ;;  %v12668_v59 = vld [vmem:[#allocation2 + $0x148] sm:$0xff]  ;;  %v4924_v5 = vpack.c.bf16 %v4806_v4, %v4806_v4  ;;  %v4926_v10 = vpack.c.bf16 %v4814_v58, %v4814_v58 }
 0xa67   :  { %9658 = vmatpush.bf16.msrb.mxu3 %v12621_v53  ;;  %v12676_v53 = vld [vmem:[#allocation2 + $0x9f0] sm:$0xff] }
 0xa68   :  { %9620 = vmatmul.bf16.vlgmr.msrb.gmra.mxu0 %v4920_v3  ;;  %9633 = vmatmul.bf16.vlgmr.msrb.gmra.mxu1 %v4921_v45  ;;  %v9427_v42 = vadd.f32 %v9426_v1, %v9414_v14  ;;  %v12667_v3 = vld [vmem:[#allocation2 + $0xef0] sm:$0xff]  ;;  %v12681_v14 = vld [vmem:[#allocation2 + $0x28] sm:$0xff]  ;;  %v12664_v1 = vld [vmem:[#allocation2 + $0x7a0] sm:$0xff] }
 0xa69   :  { %9664 = vmatpush.bf16.msra.mxu0 %v12636_v6  ;;  %9677 = vmatpush.bf16.msra.mxu1 %v12644_v47  ;;  %v12684_v6 = vld [vmem:[#allocation2 + $0x4e0] sm:$0xff]  ;;  %v12692_v47 = vld [vmem:[#allocation2 + $0x110] sm:$0xff] }
 0xa6a   :  { %9690 = vmatpush.bf16.msra.mxu2 %v12652_v15  ;;  %9659 = vmatmul.bf16.vlgmr.msrb.gmra.mxu3 %v4923_v7  ;;  %v4925_v15 = vpack.c.bf16 %v4807_v54, %v4807_v54  ;;  %v12683_v45 = vld [vmem:[#allocation2 + $0x290] sm:$0xff]  ;;  %v12691_v7 = vld [vmem:[#allocation2 + $0x368] sm:$0xff] }
 0xa6b   :  { %9703 = vmatpush.bf16.msra.mxu3 %v12660_v11  ;;  %9646 = vmatmul.bf16.vlgmr.msrb.gmra.mxu2 %v4922_v44  ;;  %v4927_v11 = vpack.c.bf16 %v4815_v41, %v4815_v41  ;;  %v12675_v44 = vld [vmem:[#allocation2 + $0x518] sm:$0xff]  ;;  %v4835_v41 = vsel %vm20561_vm11, %v4827_v34, %v4831_v37  ;;  %v4847_v34 = vrot.slane %v18712_v46, 5  ;;  %v4851_v37 = vrot.slane %v18735_v13, 4 }
 0xa6d   :  { %9665 = vmatpush.bf16.msra.mxu0 %v12635_v36  ;;  %9678 = vmatpush.bf16.msra.mxu1 %v12643_v62  ;;  %v9452_v32 = vpop.f32.mrf.mxu3  ;;  %v9415_v27 = vpop.f32.mrf.mxu0  ;;  %v12666_v36 = vld [vmem:[#allocation2 + $0xd88] sm:$0xff]  ;;  %v12674_v62 = vld [vmem:[#allocation2 + $0xe18] sm:$0xff] }
 0xa6e   :  { %9691 = vmatpush.bf16.msra.mxu2 %v12651_v17  ;;  %v9439_v48 = vpop.f32.mrf.mxu2  ;;  %v9428_v24 = vpop.f32.mrf.mxu1  ;;  %v12682_v17 = vld [vmem:[#allocation2 + $0xc18] sm:$0xff] }
 0xa6f   :  { %9704 = vmatpush.bf16.msra.mxu3 %v12659_v26  ;;  %v9440_v9 = vadd.f32 %v9439_v48, %v9427_v42  ;;  %v12690_v26 = vld [vmem:[#allocation2 + $0x778] sm:$0xff]  ;;  %v12688_v42 = vld [vmem:[#allocation2 + $0x680] sm:$0xff] }
 0xa70   :  { %v12670_v24 = vld [vmem:[#allocation2 + $0xf58] sm:$0xff] }
 0xa71   :  { %9666 = vmatpush.bf16.msra.mxu0 %v12634_v19  ;;  %9679 = vmatpush.bf16.msra.mxu1 %v12642_v61  ;;  %v18911_v55 = vadd.f32 %v9452_v32, %v9440_v9  ;;  %v12663_v9 = vld [vmem:[#allocation2 + $0x5f0] sm:$0xff] }
 0xa72   :  { %9692 = vmatpush.bf16.msra.mxu2 %v12650_v21  ;;  %v12665_v21 = vld [vmem:[#allocation2 + $0x1f0] sm:$0xff] }
 0xa73   :  { %9705 = vmatpush.bf16.msra.mxu3 %v12658_v23  ;;  %v12673_v23 = vld [vmem:[#allocation2 + $0x7d0] sm:$0xff] }
 0xa74   :  { %v12671_v32 = vld [vmem:[#allocation2 + $0xa70] sm:$0xff] }
 0xa75   :  { %9667 = vmatpush.bf16.msra.mxu0 %v12633_v8  ;;  %9680 = vmatpush.bf16.msra.mxu1 %v12641_v35  ;;  %v9454_v33 = vpop.f32.mrf.mxu3  ;;  %v12689_v8 = vld [vmem:[#allocation2 + $0x108] sm:$0xff] }
 0xa76   :  { %9693 = vmatpush.bf16.msra.mxu2 %v12649_v39  ;;  %v9441_v63 = vpop.f32.mrf.mxu2  ;;  %v12672_v39 = vld [vmem:[#allocation2 + $0xe70] sm:$0xff] }
 0xa77   :  { %9706 = vmatpush.bf16.msra.mxu3 %v12657_v28  ;;  %v12680_v28 = vld [vmem:[#allocation2 + $0x58] sm:$0xff]  ;;  %v4821_v63 = vrot.slane %v18735_v13, 1 }
 0xa79   :  { %9668 = vmatpush.bf16.msra.mxu0 %v12632_v22  ;;  %9681 = vmatpush.bf16.msra.mxu1 %v12640_v56  ;;  %v4825_v54 = vsel %vm20560_vm8, %v4817_v30, %v4821_v63  ;;  %v4837_v30 = vrot.slane %v18712_v46, 4  ;;  %v4841_v63 = vrot.slane %v18735_v13, 3 }
 0xa7a   :  { %9694 = vmatpush.bf16.msra.mxu2 %v12648_v38 }
 0xa7b   :  { %9707 = vmatpush.bf16.msra.mxu3 %v12656_v0 }
 0xa7d   :  { %9669 = vmatpush.bf16.msra.mxu0 %v12631_v18  ;;  %9682 = vmatpush.bf16.msra.mxu1 %v12639_v25  ;;  %v12687_v18 = vld [vmem:[#allocation2 + $0xf30] sm:$0xff] }
 0xa7e   :  { %9695 = vmatpush.bf16.msra.mxu2 %v12647_v43  ;;  %v12662_v25 = vld [vmem:[#allocation2 + $0xcd0] sm:$0xff] }
 0xa7f   :  { %9708 = vmatpush.bf16.msra.mxu3 %v12655_v52  ;;  %v12678_v43 = vld [vmem:[#allocation2 + $0xf0] sm:$0xff]  ;;  %v12686_v52 = vld [vmem:[#allocation2 + $0xa68] sm:$0xff] }
 0xa81   :  { %9670 = vmatpush.bf16.msra.mxu0 %v12630_v20  ;;  %9683 = vmatpush.bf16.msra.mxu1 %v12638_v12  ;;  %v4816_v20 = vrot.slane %v18700_v2, 2  ;;  %v4820_v12 = vrot.slane %v18730_v16, 1 }
 0xa82   :  { %9696 = vmatpush.bf16.msra.mxu2 %v12646_v40  ;;  %v4826_v40 = vrot.slane %v18700_v2, 3 }
 0xa83   :  { %9709 = vmatpush.bf16.msra.mxu3 %v12654_v51  ;;  %v4830_v51 = vrot.slane %v18730_v16, 2  ;;  %v4824_v4 = vsel %vm20558_vm1, %v4816_v20, %v4820_v12  ;;  %v4836_v20 = vrot.slane %v18700_v2, 4  ;;  %v4840_v12 = vrot.slane %v18730_v16, 3 }
 0xa84   :  { %vm10043_vm1 = vcmask 1024  }
 0xa85   :  { %9671 = vmatpush.bf16.msra.mxu0 %v12629_v57  ;;  %9684 = vmatpush.bf16.msra.mxu1 %v12637_v50  ;;  %v9465_v19 = vpop.f32.mrf.mxu0  ;;  %v9478_v31 = vpop.f32.mrf.mxu1  ;;  %v12661_v57 = vld [vmem:[#allocation2 + $0x198] sm:$0xff]  ;;  %v4834_v58 = vsel %vm20559_vm3, %v4826_v40, %v4830_v51  ;;  %v4846_v40 = vrot.slane %v18700_v2, 5  ;;  %v4850_v51 = vrot.slane %v18730_v16, 4 }
 0xa86   :  { %9697 = vmatpush.bf16.msra.mxu2 %v12645_v60  ;;  %v9466_v61 = vadd.f32 %v9465_v19, %v18911_v55  ;;  %v12679_v55 = vld [vmem:[#allocation2 + $0x218] sm:$0xff]  ;;  %v12677_v60 = vld [vmem:[#allocation2 + $0x6a0] sm:$0xff] }
 0xa87   :  { %9710 = vmatpush.bf16.msra.mxu3 %v12653_v29  ;;  %v12669_v50 = vld [vmem:[#allocation2 + $0x6b8] sm:$0xff]  ;;  %v12685_v29 = vld [vmem:[#allocation2 + $0x10] sm:$0xff] }
 0xa88   :  { %9672 = vmatmul.bf16.vlgmr.msra.gmra.mxu0 %v4924_v5  ;;  %9685 = vmatmul.bf16.vlgmr.msra.gmra.mxu1 %v4925_v15  ;;  %v9479_v35 = vadd.f32 %v9478_v31, %v9466_v61  ;;  %v4928_v5 = vpack.c.bf16 %v4824_v4, %v4824_v4  ;;  %v4929_v15 = vpack.c.bf16 %v4825_v54, %v4825_v54 }
 0xa89   :  { %9716 = vmatpush.bf16.msrb.mxu0 %v12668_v59  ;;  %9729 = vmatpush.bf16.msrb.mxu1 %v12676_v53  ;;  %v12700_v59 = vld [vmem:[#allocation2 + $0x850] sm:$0xff]  ;;  %v12708_v53 = vld [vmem:[#allocation2 + $0xd40] sm:$0xff]  ;;  %v4844_v4 = vsel %vm20562_vm14, %v4836_v20, %v4840_v12  ;;  %v4845_v54 = vsel %vm20564_vm5, %v4837_v30, %v4841_v63  ;;  %v4857_v20 = vrot.slane %v18712_v46, 6  ;;  %v4861_v12 = vrot.slane %v18735_v13, 5 }
 0xa8a   :  { %9742 = vmatpush.bf16.msrb.mxu2 %v12684_v6  ;;  %9711 = vmatmul.bf16.vlgmr.msra.gmra.mxu3 %v4927_v11  ;;  %v12716_v6 = vld [vmem:[#allocation2 + $0x2d8] sm:$0xff]  ;;  %v4931_v11 = vpack.c.bf16 %v4835_v41, %v4835_v41  ;;  %v4855_v41 = vsel %vm20565_vm7, %v4847_v34, %v4851_v37  ;;  %v4870_v30 = vrot.slane %v18730_v16, 6  ;;  %v4867_v63 = vrot.slane %v18712_v46, 7 }
 0xa8b   :  { %9755 = vmatpush.bf16.msrb.mxu3 %v12692_v47  ;;  %9698 = vmatmul.bf16.vlgmr.msra.gmra.mxu2 %v4926_v10  ;;  %v12724_v47 = vld [vmem:[#allocation2 + $0x7b0] sm:$0xff]  ;;  %v4930_v10 = vpack.c.bf16 %v4834_v58, %v4834_v58  ;;  %v4854_v58 = vsel %vm20563_vm9, %v4846_v40, %v4850_v51  ;;  %v12742_v40 = vld [vmem:[#allocation2 + $0xce8] sm:$0xff]  ;;  %v4871_v34 = vrot.slane %v18735_v13, 6 }
 0xa8c   :  { %v12750_v51 = vld [vmem:[#allocation2 + $0x150] sm:$0xff] }
 0xa8d   :  { %9717 = vmatpush.bf16.msrb.mxu0 %v12667_v3  ;;  %9730 = vmatpush.bf16.msrb.mxu1 %v12675_v44  ;;  %v9504_v38 = vpop.f32.mrf.mxu3  ;;  %v9467_v0 = vpop.f32.mrf.mxu0  ;;  %v12699_v3 = vld [vmem:[#allocation2 + $0x4f0] sm:$0xff]  ;;  %v12707_v44 = vld [vmem:[#allocation2 + $0xd18] sm:$0xff]  ;;  %v4875_v46 = vsel %vm20568_vm10, %v4867_v63, %v4871_v34 }
 0xa8e   :  { %9743 = vmatpush.bf16.msrb.mxu2 %v12683_v45  ;;  %v9491_v22 = vpop.f32.mrf.mxu2  ;;  %v9480_v27 = vpop.f32.mrf.mxu1  ;;  %v12715_v45 = vld [vmem:[#allocation2 + $0xc78] sm:$0xff] }
 0xa8f   :  { %9756 = vmatpush.bf16.msrb.mxu3 %v12691_v7  ;;  %v9492_v56 = vadd.f32 %v9491_v22, %v9479_v35  ;;  %v12723_v7 = vld [vmem:[#allocation2 + $0xa50] sm:$0xff] }
 0xa91   :  { %9718 = vmatpush.bf16.msrb.mxu0 %v12666_v36  ;;  %9731 = vmatpush.bf16.msrb.mxu1 %v12674_v62  ;;  %v18926_v48 = vadd.f32 %v9504_v38, %v9492_v56  ;;  %v12698_v36 = vld [vmem:[#allocation2 + $0x880] sm:$0xff] }
 0xa92   :  { %9744 = vmatpush.bf16.msrb.mxu2 %v12682_v17  ;;  %v12706_v62 = vld [vmem:[#allocation2 + $0xa00] sm:$0xff]  ;;  %v12714_v17 = vld [vmem:[#allocation2 + $0xa98] sm:$0xff] }
 0xa93   :  { %9757 = vmatpush.bf16.msrb.mxu3 %v12690_v26  ;;  %v12722_v26 = vld [vmem:[#allocation2 + $0x328] sm:$0xff] }
 0xa95   :  { %9719 = vmatpush.bf16.msrb.mxu0 %v12665_v21  ;;  %9732 = vmatpush.bf16.msrb.mxu1 %v12673_v23  ;;  %v9506_v33 = vpop.f32.mrf.mxu3  ;;  %v12697_v21 = vld [vmem:[#allocation2 + $0xf68] sm:$0xff]  ;;  %v12705_v23 = vld [vmem:[#allocation2 + $0x238] sm:$0xff] }
 0xa96   :  { %9745 = vmatpush.bf16.msrb.mxu2 %v12681_v14  ;;  %v9493_v49 = vpop.f32.mrf.mxu2  ;;  %v12713_v14 = vld [vmem:[#allocation2 + $0xfa8] sm:$0xff] }
 0xa97   :  { %9758 = vmatpush.bf16.msrb.mxu3 %v12689_v8  ;;  %v12721_v8 = vld [vmem:[#allocation2 + $0x538] sm:$0xff] }
 0xa99   :  { %9720 = vmatpush.bf16.msrb.mxu0 %v12664_v1  ;;  %9733 = vmatpush.bf16.msrb.mxu1 %v12672_v39  ;;  %v12696_v1 = vld [vmem:[#allocation2 + $0x3a8] sm:$0xff]  ;;  %v12704_v39 = vld [vmem:[#allocation2 + $0x798] sm:$0xff] }
 0xa9a   :  { %9746 = vmatpush.bf16.msrb.mxu2 %v12680_v28  ;;  %v12712_v28 = vld [vmem:[#allocation2 + $0xaa8] sm:$0xff] }
 0xa9b   :  { %9759 = vmatpush.bf16.msrb.mxu3 %v12688_v42  ;;  %v12720_v42 = vld [vmem:[#allocation2 + $0x898] sm:$0xff] }
 0xa9d   :  { %9721 = vmatpush.bf16.msrb.mxu0 %v12663_v9  ;;  %9734 = vmatpush.bf16.msrb.mxu1 %v12671_v32  ;;  %v12695_v9 = vld [vmem:[#allocation2 + $0x260] sm:$0xff]  ;;  %v12703_v32 = vld [vmem:[#allocation2 + $0x8f0] sm:$0xff] }
 0xa9e   :  { %9747 = vmatpush.bf16.msrb.mxu2 %v12679_v55  ;;  %v12711_v55 = vld [vmem:[#allocation2 + $0x740] sm:$0xff] }
 0xa9f   :  { %9760 = vmatpush.bf16.msrb.mxu3 %v12687_v18  ;;  %v12719_v18 = vld [vmem:[#allocation2 + $0x460] sm:$0xff] }
 0xaa1   :  { %9722 = vmatpush.bf16.msrb.mxu0 %v12662_v25  ;;  %9735 = vmatpush.bf16.msrb.mxu1 %v12670_v24  ;;  %v12694_v25 = vld [vmem:[#allocation2 + $0xee0] sm:$0xff]  ;;  %v12702_v24 = vld [vmem:[#allocation2 + $0xb38] sm:$0xff] }
 0xaa2   :  { %9748 = vmatpush.bf16.msrb.mxu2 %v12678_v43  ;;  %v12710_v43 = vld [vmem:[#allocation2 + $0x2b0] sm:$0xff] }
 0xaa3   :  { %9761 = vmatpush.bf16.msrb.mxu3 %v12686_v52  ;;  %v12718_v52 = vld [vmem:[#allocation2 + $0xf10] sm:$0xff] }
 0xaa5   :  { %9723 = vmatpush.bf16.msrb.mxu0 %v12661_v57  ;;  %9736 = vmatpush.bf16.msrb.mxu1 %v12669_v50  ;;  %v9517_v19 = vpop.f32.mrf.mxu0  ;;  %v9530_v31 = vpop.f32.mrf.mxu1  ;;  %v12693_v57 = vld [vmem:[#allocation2 + $0xaa0] sm:$0xff]  ;;  %v12701_v50 = vld [vmem:[#allocation2 + $0xd10] sm:$0xff] }
 0xaa6   :  { %9749 = vmatpush.bf16.msrb.mxu2 %v12677_v60  ;;  %v9518_v61 = vadd.f32 %v9517_v19, %v18926_v48  ;;  %v12709_v60 = vld [vmem:[#allocation2 + $0xa80] sm:$0xff] }
 0xaa7   :  { %9762 = vmatpush.bf16.msrb.mxu3 %v12685_v29  ;;  %v12717_v29 = vld [vmem:[#allocation2 + $0xc30] sm:$0xff] }
 0xaa8   :  { %9724 = vmatmul.bf16.vlgmr.msrb.gmra.mxu0 %v4928_v5  ;;  %9737 = vmatmul.bf16.vlgmr.msrb.gmra.mxu1 %v4929_v15  ;;  %v9531_v35 = vadd.f32 %v9530_v31, %v9518_v61  ;;  %v4932_v5 = vpack.c.bf16 %v4844_v4, %v4844_v4  ;;  %v4933_v15 = vpack.c.bf16 %v4845_v54, %v4845_v54  ;;  %v12741_v4 = vld [vmem:[#allocation2 + $0xc90] sm:$0xff] }
 0xaa9   :  { %9768 = vmatpush.bf16.msra.mxu0 %v12700_v59  ;;  %9781 = vmatpush.bf16.msra.mxu1 %v12708_v53  ;;  %v12732_v59 = vld [vmem:[#allocation2 + $0x710] sm:$0xff]  ;;  %v12740_v53 = vld [vmem:[#allocation2 + $0x348] sm:$0xff] }
 0xaaa   :  { %9794 = vmatpush.bf16.msra.mxu2 %v12716_v6  ;;  %9763 = vmatmul.bf16.vlgmr.msrb.gmra.mxu3 %v4931_v11  ;;  %v12748_v6 = vld [vmem:[#allocation2 + $0xfe8] sm:$0xff]  ;;  %v4935_v11 = vpack.c.bf16 %v4855_v41, %v4855_v41 }
 0xaab   :  { %9807 = vmatpush.bf16.msra.mxu3 %v12724_v47  ;;  %9750 = vmatmul.bf16.vlgmr.msrb.gmra.mxu2 %v4930_v10  ;;  %v12756_v47 = vld [vmem:[#allocation2 + $0x4a0] sm:$0xff]  ;;  %v4934_v10 = vpack.c.bf16 %v4854_v58, %v4854_v58 }
 0xaad   :  { %9769 = vmatpush.bf16.msra.mxu0 %v12699_v3  ;;  %9782 = vmatpush.bf16.msra.mxu1 %v12707_v44  ;;  %v9556_v38 = vpop.f32.mrf.mxu3  ;;  %v9519_v0 = vpop.f32.mrf.mxu0  ;;  %v12731_v3 = vld [vmem:[#allocation2 + $0x4c0] sm:$0xff]  ;;  %v12739_v44 = vld [vmem:[#allocation2 + $0x988] sm:$0xff] }
 0xaae   :  { %9795 = vmatpush.bf16.msra.mxu2 %v12715_v45  ;;  %v9543_v22 = vpop.f32.mrf.mxu2  ;;  %v9532_v27 = vpop.f32.mrf.mxu1  ;;  %v12747_v45 = vld [vmem:[#allocation2 + $0x1c8] sm:$0xff] }
 0xaaf   :  { %9808 = vmatpush.bf16.msra.mxu3 %v12723_v7  ;;  %v9544_v56 = vadd.f32 %v9543_v22, %v9531_v35  ;;  %v12755_v7 = vld [vmem:[#allocation2 + $0x2c0] sm:$0xff] }
 0xab1   :  { %9770 = vmatpush.bf16.msra.mxu0 %v12698_v36  ;;  %9783 = vmatpush.bf16.msra.mxu1 %v12706_v62  ;;  %v18941_v48 = vadd.f32 %v9556_v38, %v9544_v56  ;;  %v12730_v36 = vld [vmem:[#allocation2 + $0x900] sm:$0xff]  ;;  %v12738_v62 = vld [vmem:[#allocation2 + $0x930] sm:$0xff] }
 0xab2   :  { %9796 = vmatpush.bf16.msra.mxu2 %v12714_v17  ;;  %v12746_v17 = vld [vmem:[#allocation2 + $0x40] sm:$0xff] }
 0xab3   :  { %9809 = vmatpush.bf16.msra.mxu3 %v12722_v26  ;;  %v12754_v26 = vld [vmem:[#allocation2 + $0x3c0] sm:$0xff] }
 0xab5   :  { %9771 = vmatpush.bf16.msra.mxu0 %v12697_v21  ;;  %9784 = vmatpush.bf16.msra.mxu1 %v12705_v23  ;;  %v9558_v33 = vpop.f32.mrf.mxu3  ;;  %v12729_v21 = vld [vmem:[#allocation2 + $0x7e0] sm:$0xff] }
 0xab6   :  { %9797 = vmatpush.bf16.msra.mxu2 %v12713_v14  ;;  %v9545_v49 = vpop.f32.mrf.mxu2  ;;  %v12737_v23 = vld [vmem:[#allocation2 + $0xac0] sm:$0xff]  ;;  %v12745_v14 = vld [vmem:[#allocation2 + $0x4a8] sm:$0xff] }
 0xab7   :  { %9810 = vmatpush.bf16.msra.mxu3 %v12721_v8  ;;  %v12753_v8 = vld [vmem:[#allocation2 + $0x730] sm:$0xff]  ;;  %v4866_v49 = vrot.slane %v18700_v2, 7 }
 0xab9   :  { %9772 = vmatpush.bf16.msra.mxu0 %v12696_v1  ;;  %9785 = vmatpush.bf16.msra.mxu1 %v12704_v39  ;;  %v12728_v1 = vld [vmem:[#allocation2 + $0x390] sm:$0xff]  ;;  %v12736_v39 = vld [vmem:[#allocation2 + $0x558] sm:$0xff] }
 0xaba   :  { %9798 = vmatpush.bf16.msra.mxu2 %v12712_v28  ;;  %v12744_v28 = vld [vmem:[#allocation2 + $0x1a8] sm:$0xff] }
 0xabb   :  { %9811 = vmatpush.bf16.msra.mxu3 %v12720_v42  ;;  %v12752_v42 = vld [vmem:[#allocation2 + $0x298] sm:$0xff] }
 0xabd   :  { %9773 = vmatpush.bf16.msra.mxu0 %v12695_v9  ;;  %9786 = vmatpush.bf16.msra.mxu1 %v12703_v32  ;;  %v12727_v9 = vld [vmem:[#allocation2 + $0xe38] sm:$0xff] }
 0xabe   :  { %9799 = vmatpush.bf16.msra.mxu2 %v12711_v55  ;;  %v12735_v32 = vld [vmem:[#allocation2 + $0x938] sm:$0xff] }
 0xabf   :  { %9812 = vmatpush.bf16.msra.mxu3 %v12719_v18  ;;  %v12743_v55 = vld [vmem:[#allocation2 + $0xcf8] sm:$0xff]  ;;  %v12751_v18 = vld [vmem:[#allocation2 + $0x400] sm:$0xff] }
 0xac1   :  { %9774 = vmatpush.bf16.msra.mxu0 %v12694_v25  ;;  %9787 = vmatpush.bf16.msra.mxu1 %v12702_v24  ;;  %v12726_v25 = vld [vmem:[#allocation2 + $0x9a0] sm:$0xff]  ;;  %v12734_v24 = vld [vmem:[#allocation2 + $0x9e8] sm:$0xff] }
 0xac2   :  { %9800 = vmatpush.bf16.msra.mxu2 %v12710_v43  ;;  %v4856_v43 = vrot.slane %v18700_v2, 6  ;;  %v12749_v2 = vld [vmem:[#allocation2 + $0xd98] sm:$0xff] }
 0xac3   :  { %9813 = vmatpush.bf16.msra.mxu3 %v12718_v52  ;;  %v4860_v52 = vrot.slane %v18730_v16, 5  ;;  %v4874_v16 = vsel %vm20567_vm4, %v4866_v49, %v4870_v30  ;;  %v9876_v49 = vld [vmem:[%s19137_s12 + $0x18] sm:$0xff]  ;;  %v9875_v30 = vld [vmem:[%s19137_s12 + $0x10] sm:$0xff] }
 0xac5   :  { %9775 = vmatpush.bf16.msra.mxu0 %v12693_v57  ;;  %9788 = vmatpush.bf16.msra.mxu1 %v12701_v50  ;;  %v9569_v19 = vpop.f32.mrf.mxu0  ;;  %v9582_v31 = vpop.f32.mrf.mxu1  ;;  %v12725_v57 = vld [vmem:[#allocation2 + $0xdf8] sm:$0xff]  ;;  %v12733_v50 = vld [vmem:[#allocation2 + $0x508] sm:$0xff] }
 0xac6   :  { %9801 = vmatpush.bf16.msra.mxu2 %v12709_v60  ;;  %v9570_v61 = vadd.f32 %v9569_v19, %v18941_v48  ;;  %v4864_v60 = vsel %vm20520_vm0, %v4856_v43, %v4860_v52  ;;  %v9880_v43 = vld [vmem:[%s19137_s12 + $0x38] sm:$0xff]  ;;  %v9879_v52 = vld [vmem:[%s19137_s12 + $0x30] sm:$0xff] }
 0xac7   :  { %9814 = vmatpush.bf16.msra.mxu3 %v12717_v29  ;;  %v4865_v29 = vsel %vm20566_vm12, %v4857_v20, %v4861_v12  ;;  %v4936_v58 = vpack.c.bf16 %v4864_v60, %v4864_v60  ;;  %v9878_v20 = vld [vmem:[%s19137_s12 + $0x28] sm:$0xff]  ;;  %v9873_v60 = vld [vmem:[%s19137_s12] sm:$0xff] }
 0xac8   :  { %9776 = vmatmul.bf16.vlgmr.msra.gmra.mxu0 %v4932_v5  ;;  %9789 = vmatmul.bf16.vlgmr.msra.gmra.mxu1 %v4933_v15  ;;  %v9583_v35 = vadd.f32 %v9582_v31, %v9570_v61  ;;  %v4937_v13 = vpack.c.bf16 %v4865_v29, %v4865_v29 }
 0xac9   :  { %9820 = vmatpush.bf16.msrb.mxu0 %v12732_v59  ;;  %9833 = vmatpush.bf16.msrb.mxu1 %v12740_v53  ;;  %v4938_v59 = vpack.c.bf16 %v4874_v16, %v4874_v16  ;;  %v4939_v53 = vpack.c.bf16 %v4875_v46, %v4875_v46  ;;  %v9930_v46 = vld [vmem:[%s19140_s15 + $0x38] sm:$0xff] }
 0xaca   :  { %9846 = vmatpush.bf16.msrb.mxu2 %v12748_v6  ;;  %9815 = vmatmul.bf16.vlgmr.msra.gmra.mxu3 %v4935_v11 }
 0xacb   :  { %9859 = vmatpush.bf16.msrb.mxu3 %v12756_v47  ;;  %9802 = vmatmul.bf16.vlgmr.msra.gmra.mxu2 %v4934_v10 }
 0xacd   :  { %9821 = vmatpush.bf16.msrb.mxu0 %v12731_v3  ;;  %9834 = vmatpush.bf16.msrb.mxu1 %v12739_v44  ;;  %v9608_v38 = vpop.f32.mrf.mxu3  ;;  %v9571_v0 = vpop.f32.mrf.mxu0 }
 0xace   :  { %9847 = vmatpush.bf16.msrb.mxu2 %v12747_v45  ;;  %v9595_v22 = vpop.f32.mrf.mxu2  ;;  %v9584_v27 = vpop.f32.mrf.mxu1 }
 0xacf   :  { %9860 = vmatpush.bf16.msrb.mxu3 %v12755_v7  ;;  %v9596_v56 = vadd.f32 %v9595_v22, %v9583_v35  ;;  %v9888_v22 = vld [vmem:[%s19137_s12 + $0x78] sm:$0xff] }
 0xad1   :  { %9822 = vmatpush.bf16.msrb.mxu0 %v12730_v36  ;;  %9835 = vmatpush.bf16.msrb.mxu1 %v12738_v62  ;;  %v9609_v48 = vadd.f32 %v9608_v38, %v9596_v56  ;;  %v9887_v56 = vld [vmem:[%s19137_s12 + $0x70] sm:$0xff] }
 0xad2   :  { %9848 = vmatpush.bf16.msrb.mxu2 %v12746_v17 }
 0xad3   :  { %9861 = vmatpush.bf16.msrb.mxu3 %v12754_v26 }
 0xad5   :  { %9823 = vmatpush.bf16.msrb.mxu0 %v12729_v21  ;;  %9836 = vmatpush.bf16.msrb.mxu1 %v12737_v23  ;;  %v9610_v33 = vpop.f32.mrf.mxu3 }
 0xad6   :  { %9849 = vmatpush.bf16.msrb.mxu2 %v12745_v14  ;;  %v9597_v37 = vpop.f32.mrf.mxu2  ;;  %v9874_v33 = vld [vmem:[%s19137_s12 + $0x8] sm:$0xff] }
 0xad7   :  { %9862 = vmatpush.bf16.msrb.mxu3 %v12753_v8 }
 0xad9   :  { %9824 = vmatpush.bf16.msrb.mxu0 %v12728_v1  ;;  %9837 = vmatpush.bf16.msrb.mxu1 %v12736_v39 }
 0xada   :  { %9850 = vmatpush.bf16.msrb.mxu2 %v12744_v28 }
 0xadb   :  { %9863 = vmatpush.bf16.msrb.mxu3 %v12752_v42 }
 0xadd   :  { %9825 = vmatpush.bf16.msrb.mxu0 %v12727_v9  ;;  %9838 = vmatpush.bf16.msrb.mxu1 %v12735_v32  ;;  %v9885_v9 = vld [vmem:[%s19137_s12 + $0x60] sm:$0xff]  ;;  %v9884_v32 = vld [vmem:[%s19137_s12 + $0x58] sm:$0xff] }
 0xade   :  { %9851 = vmatpush.bf16.msrb.mxu2 %v12743_v55 }
 0xadf   :  { %9864 = vmatpush.bf16.msrb.mxu3 %v12751_v18  ;;  %v9883_v18 = vld [vmem:[%s19137_s12 + $0x50] sm:$0xff] }
 0xae1   :  { %9826 = vmatpush.bf16.msrb.mxu0 %v12726_v25  ;;  %9839 = vmatpush.bf16.msrb.mxu1 %v12734_v24  ;;  %v9882_v25 = vld [vmem:[%s19137_s12 + $0x48] sm:$0xff]  ;;  %v9881_v24 = vld [vmem:[%s19137_s12 + $0x40] sm:$0xff] }
 0xae2   :  { %9852 = vmatpush.bf16.msrb.mxu2 %v12742_v40  ;;  %v9877_v40 = vld [vmem:[%s19137_s12 + $0x20] sm:$0xff] }
 0xae3   :  { %9865 = vmatpush.bf16.msrb.mxu3 %v12750_v51 }
 0xae5   :  { %9827 = vmatpush.bf16.msrb.mxu0 %v12725_v57  ;;  %9840 = vmatpush.bf16.msrb.mxu1 %v12733_v50  ;;  %v9621_v54 = vpop.f32.mrf.mxu0  ;;  %v9634_v6 = vpop.f32.mrf.mxu1 }
 0xae6   :  { %9853 = vmatpush.bf16.msrb.mxu2 %v12741_v4  ;;  %v9622_v41 = vadd.f32 %v9621_v54, %v9609_v48  ;;  %v9886_v48 = vld [vmem:[%s19137_s12 + $0x68] sm:$0xff]  ;;  %v9921_v4 = vld [vmem:[%s19139_s14 + $0x38] sm:$0xff] }
 0xae7   :  { %9866 = vmatpush.bf16.msrb.mxu3 %v12749_v2  ;;  %v9920_v2 = vld [vmem:[%s19139_s14 + $0x30] sm:$0xff]  ;;  %v9928_v54 = vld [vmem:[%s19140_s15 + $0x28] sm:$0xff] }
 0xae8   :  { %9828 = vmatmul.bf16.vlgmr.msrb.gmra.mxu0 %v4936_v58  ;;  %9841 = vmatmul.bf16.vlgmr.msrb.gmra.mxu1 %v4937_v13  ;;  %v9635_v47 = vadd.f32 %v9634_v6, %v9622_v41  ;;  %v9929_v58 = vld [vmem:[%s19140_s15 + $0x30] sm:$0xff]  ;;  %v9918_v41 = vld [vmem:[%s19139_s14 + $0x20] sm:$0xff] }
 0xae9   :  { %9854 = vmatmul.bf16.vlgmr.msrb.gmra.mxu2 %v4938_v59  ;;  %9893 = vmatpush.msra.mxu0 %v9888_v22  ;;  %v9919_v59 = vld [vmem:[%s19139_s14 + $0x28] sm:$0xff]  ;;  %v9999_v22 = vld [vmem:[%s19142_s17 + $0x78] sm:$0xff] }
 0xaea   :  { %9867 = vmatmul.bf16.vlgmr.msrb.gmra.mxu3 %v4939_v53  ;;  %9966 = vmatpush.msra.mxu2 %v9921_v4  ;;  %v12773_v4 = vld [vmem:[#allocation4] ss:$0 sm:$0xff] }
 0xaeb   :  { %9894 = vmatpush.msra.mxu0 %v9887_v56  ;;  %9943 = vmatpush.msra.mxu1 %v9930_v46  ;;  %v9998_v56 = vld [vmem:[%s19142_s17 + $0x70] sm:$0xff] }
 0xaec   :  { %9967 = vmatpush.msra.mxu2 %v9920_v2  ;;  %10004 = vmatpush.msra.mxu3 %v9999_v22 }
 0xaed   :  { %v9660_v15 = vpop.f32.mrf.mxu3  ;;  %v9623_v11 = vpop.f32.mrf.mxu0  ;;  %9895 = vmatpush.msra.mxu0 %v9886_v48  ;;  %9944 = vmatpush.msra.mxu1 %v9929_v58  ;;  %v9997_v48 = vld [vmem:[%s19142_s17 + $0x68] sm:$0xff] }
 0xaee   :  { %v9647_v5 = vpop.f32.mrf.mxu2  ;;  %v9636_v44 = vpop.f32.mrf.mxu1  ;;  %9968 = vmatpush.msra.mxu2 %v9919_v59  ;;  %10005 = vmatpush.msra.mxu3 %v9998_v56 }
 0xaef   :  { %v9648_v10 = vadd.f32 %v9647_v5, %v9635_v47  ;;  %9896 = vmatpush.msra.mxu0 %v9885_v9  ;;  %v9917_v47 = vld [vmem:[%s19139_s14 + $0x18] sm:$0xff]  ;;  %9945 = vmatpush.msra.mxu1 %v9928_v54  ;;  %v9996_v9 = vld [vmem:[%s19142_s17 + $0x60] sm:$0xff] }
 0xaf0   :  { %9969 = vmatpush.msra.mxu2 %v9918_v41  ;;  %10006 = vmatpush.msra.mxu3 %v9997_v48 }
 0xaf1   :  { %v9661_v3 = vadd.f32 %v9660_v15, %v9648_v10  ;;  %9897 = vmatpush.msra.mxu0 %v9884_v32  ;;  %v9916_v10 = vld [vmem:[%s19139_s14 + $0x10] sm:$0xff]  ;;  %v9995_v32 = vld [vmem:[%s19142_s17 + $0x58] sm:$0xff] }
 0xaf2   :  { %9970 = vmatpush.msra.mxu2 %v9917_v47  ;;  %10007 = vmatpush.msra.mxu3 %v9996_v9 }
 0xaf3   :  { %9898 = vmatpush.msra.mxu0 %v9883_v18  ;;  %v9992_v18 = vld [vmem:[%s19142_s17 + $0x40] sm:$0xff] }
 0xaf4   :  { %9971 = vmatpush.msra.mxu2 %v9916_v10  ;;  %10008 = vmatpush.msra.mxu3 %v9995_v32 }
 0xaf5   :  { %v9662_v7 = vpop.f32.mrf.mxu3  ;;  %9899 = vmatpush.msra.mxu0 %v9882_v25  ;;  %v9991_v25 = vld [vmem:[%s19142_s17 + $0x38] sm:$0xff] }
 0xaf6   :  { %v9649_v45 = vpop.f32.mrf.mxu2 }
 0xaf7   :  { %9900 = vmatpush.msra.mxu0 %v9881_v24  ;;  %v9990_v24 = vld [vmem:[%s19142_s17 + $0x30] sm:$0xff] }
 0xaf9   :  { %9901 = vmatpush.msra.mxu0 %v9880_v43  ;;  %v9989_v43 = vld [vmem:[%s19142_s17 + $0x28] sm:$0xff] }
 0xafb   :  { %9902 = vmatpush.msra.mxu0 %v9879_v52  ;;  %v9988_v52 = vld [vmem:[%s19142_s17 + $0x20] sm:$0xff] }
 0xafd   :  { %9903 = vmatpush.msra.mxu0 %v9878_v20  ;;  %v12771_v20 = vld [vmem:[%s19138_s13] ss:$0 sm:$0xff] }
 0xaff   :  { %9904 = vmatpush.msra.mxu0 %v9877_v40 }
 0xb01   :  { %9905 = vmatpush.msra.mxu0 %v9876_v49  ;;  %v9987_v49 = vld [vmem:[%s19142_s17 + $0x18] sm:$0xff] }
 0xb03   :  { %9906 = vmatpush.msra.mxu0 %v9875_v30  ;;  %v9986_v30 = vld [vmem:[%s19142_s17 + $0x10] sm:$0xff] }
 0xb05   :  { %v9673_v36 = vpop.f32.mrf.mxu0  ;;  %v9686_v17 = vpop.f32.mrf.mxu1  ;;  %9907 = vmatpush.msra.mxu0 %v9874_v33  ;;  %v12772_v33 = vld [vmem:[%s19141_s16] ss:$0 sm:$0xff] }
 0xb06   :  { %v9674_v62 = vadd.f32 %v9673_v36, %v9661_v3 }
 0xb07   :  { %9908 = vmatpush.msra.mxu0 %v9873_v60 }
 0xb08   :  { %v9687_v26 = vadd.f32 %v9686_v17, %v9674_v62 }
 0xb0d   :  { %v9712_v21 = vpop.f32.mrf.mxu3  ;;  %v9675_v23 = vpop.f32.mrf.mxu0 }
 0xb0e   :  { %v9699_v19 = vpop.f32.mrf.mxu2  ;;  %v9688_v14 = vpop.f32.mrf.mxu1 }
 0xb0f   :  { %v9700_v61 = vadd.f32 %v9699_v19, %v9687_v26 }
 0xb11   :  { %v9713_v31 = vadd.f32 %v9712_v21, %v9700_v61 }
 0xb15   :  { %v9714_v35 = vpop.f32.mrf.mxu3 }
 0xb16   :  { %v9701_v8 = vpop.f32.mrf.mxu2  ;;  %v9915_v35 = vld [vmem:[%s19139_s14 + $0x8] sm:$0xff] }
 0xb17   :  { %v9927_v8 = vld [vmem:[%s19140_s15 + $0x20] sm:$0xff]  ;;  %9972 = vmatpush.msra.mxu2 %v9915_v35 }
 0xb18   :  { %9946 = vmatpush.msra.mxu1 %v9927_v8 }
 0xb25   :  { %v9725_v1 = vpop.f32.mrf.mxu0  ;;  %v9738_v39 = vpop.f32.mrf.mxu1 }
 0xb26   :  { %v9726_v34 = vadd.f32 %v9725_v1, %v9713_v31  ;;  %v9926_v1 = vld [vmem:[%s19140_s15 + $0x18] sm:$0xff] }
 0xb27   :  { %9947 = vmatpush.msra.mxu1 %v9926_v1 }
 0xb28   :  { %v9739_v29 = vadd.f32 %v9738_v39, %v9726_v34  ;;  %v9914_v39 = vld [vmem:[%s19139_s14] sm:$0xff] }
 0xb29   :  { %9973 = vmatpush.msra.mxu2 %v9914_v39  ;;  %v9984_v34 = vld [vmem:[%s19142_s17] sm:$0xff] }
 0xb2d   :  { %v9764_v42 = vpop.f32.mrf.mxu3  ;;  %v9727_v38 = vpop.f32.mrf.mxu0 }
 0xb2e   :  { %v9751_v28 = vpop.f32.mrf.mxu2  ;;  %v9740_v0 = vpop.f32.mrf.mxu1  ;;  %v9923_v38 = vld [vmem:[%s19140_s15] sm:$0xff] }
 0xb2f   :  { %v9752_v16 = vadd.f32 %v9751_v28, %v9739_v29  ;;  %v9925_v28 = vld [vmem:[%s19140_s15 + $0x10] sm:$0xff]  ;;  %v9922_v0 = vld [vmem:[%s20569_s0] sm:$0x3] }
 0xb30   :  { %9948 = vmatpush.msra.mxu1 %v9925_v28 }
 0xb31   :  { %v9765_v6 = vadd.f32 %v9764_v42, %v9752_v16  ;;  %v9924_v42 = vld [vmem:[%s19140_s15 + $0x8] sm:$0xff] }
 0xb32   :  { %9949 = vmatpush.msra.mxu1 %v9924_v42 }
 0xb34   :  { %9950 = vmatpush.msra.mxu1 %v9923_v38 }
 0xb35   :  { %v9766_v55 = vpop.f32.mrf.mxu3  ;;  %12227 = vmatmul.msk.f32.vlgmr.msra.gmra.mxu1 %vm9931_vm15, %v9922_v0 }
 0xb36   :  { %v9753_v27 = vpop.f32.mrf.mxu2  ;;  %v9993_v55 = vld [vmem:[%s19142_s17 + $0x48] sm:$0xff] }
 0xb37   :  { %v9994_v27 = vld [vmem:[%s19142_s17 + $0x50] sm:$0xff] }
 0xb38   :  { %10009 = vmatpush.msra.mxu3 %v9994_v27 }
 0xb3a   :  { %10010 = vmatpush.msra.mxu3 %v9993_v55 }
 0xb3c   :  { %10011 = vmatpush.msra.mxu3 %v9992_v18 }
 0xb3e   :  { %10012 = vmatpush.msra.mxu3 %v9991_v25 }
 0xb40   :  { %10013 = vmatpush.msra.mxu3 %v9990_v24 }
 0xb42   :  { %10014 = vmatpush.msra.mxu3 %v9989_v43 }
 0xb44   :  { %10015 = vmatpush.msra.mxu3 %v9988_v52 }
 0xb45   :  { %v9777_v12 = vpop.f32.mrf.mxu0  ;;  %v9790_v51 = vpop.f32.mrf.mxu1 }
 0xb46   :  { %v9778_v5 = vadd.f32 %v9777_v12, %v9765_v6  ;;  %10016 = vmatpush.msra.mxu3 %v9987_v49 }
 0xb48   :  { %v9791_v15 = vadd.f32 %v9790_v51, %v9778_v5  ;;  %10017 = vmatpush.msra.mxu3 %v9986_v30 }
 0xb4d   :  { %v9816_v37 = vpop.f32.mrf.mxu3  ;;  %v9779_v57 = vpop.f32.mrf.mxu0 }
 0xb4e   :  { %v9803_v63 = vpop.f32.mrf.mxu2  ;;  %v9792_v50 = vpop.f32.mrf.mxu1 }
 0xb4f   :  { %v9804_v11 = vadd.f32 %v9803_v63, %v9791_v15  ;;  %v9985_v63 = vld [vmem:[%s19142_s17 + $0x8] sm:$0xff] }
 0xb50   :  { %10018 = vmatpush.msra.mxu3 %v9985_v63 }
 0xb51   :  { %v9817_v3 = vadd.f32 %v9816_v37, %v9804_v11 }
 0xb52   :  { %10019 = vmatpush.msra.mxu3 %v9984_v34 }
 0xb55   :  { %v9818_v53 = vpop.f32.mrf.mxu3 }
 0xb56   :  { %v9805_v13 = vpop.f32.mrf.mxu2 }
 0xb65   :  { %v9829_v44 = vpop.f32.mrf.mxu0  ;;  %v9842_v45 = vpop.f32.mrf.mxu1 }
 0xb66   :  { %v9830_v7 = vadd.f32 %v9829_v44, %v9817_v3 }
 0xb68   :  { %v9843_v36 = vadd.f32 %v9842_v45, %v9830_v7 }
 0xb6c   :  { %v9855_v62 = vpop.f32.mrf.mxu2 }
 0xb6d   :  { %v9868_v17 = vpop.f32.mrf.mxu3  ;;  %v9856_v26 = vadd.f32 %v9855_v62, %v9843_v36  ;;  %v9831_v19 = vpop.f32.mrf.mxu0 }
 0xb6e   :  { %v9844_v61 = vpop.f32.mrf.mxu1 }
 0xb6f   :  { %v9869_v21 = vadd.f32 %v9868_v17, %v9856_v26 }
 0xb71   :  { %v9872_v23 = vmax.f32 %v9869_v21, 0.0 }
 0xb73   :  { %9909 = vmatmul.f32.vlgmr.msra.gmra.mxu0 %v9872_v23 }
 0xb74   :  { %v9857_v31 = vpop.f32.mrf.mxu2 }
 0xb75   :  { %v9870_v14 = vpop.f32.mrf.mxu3 }
 0xbb2   :  { %v9952_v37 = vpop.f32.mrf.mxu1 }
 0xbf0   :  { %v9910_v12 = vpop.f32.mrf.mxu0 }
 0xbf1   :  { %v9911_v40 = vadd.f32 %v12771_v20, %v9910_v12 }
 0xbf3   :  { %v9913_v51 = vmax.f32 %v9911_v40, 0.0 }
 0xbf5   :  { %12228 = vmatmul.msk.f32.vlgmr.msra.gmra.mxu2 %vm9931_vm15, %v9913_v51 }
 0xc78   :  { %v9975_v57 = vpop.f32.mrf.mxu2 }
 0xc79   :  { %v9976_v50 = vadd.f32 %v9975_v57, %v9952_v37 }
 0xc7b   :  { %v9982_v60 = vadd.f32 %v12772_v33, %v9976_v50 }
 0xc7d   :  { %v9983_v29 = vmax.f32 %v9982_v60, 0.0 }
 0xc7f   :  { %10020 = vmatmul.f32.vlgmr.msra.gmra.mxu3 %v9983_v29 }
 0xd02   :  { %v10021_v2 = vpop.f32.mrf.mxu3 }
 0xd03   :  { %v10022_v16 = vadd.f32 %v12773_v4, %v10021_v2 }
 0xd05   :  { %v10024_v46 = vsub.f32 0.0, %v10022_v16 }
 0xd07   :  { %v10025_v58 = vmul.f32 1.442695, %v10024_v46 }
 0xd09   :  { %12774 = vpow2.f32 %v10025_v58 }
 0xd0f   :  { %v12775_v13 = vpop.eup %12774 }
 0xd10   :  { %v10027_v59 = vadd.f32 1.0, %v12775_v13 }
 0xd12   :  { %12776 = vrcp.f32 %v10027_v59  ;;  %v10039_v6 = vand.u32 2147483648, %v10027_v59  ;;  %v10037_v5 = vand.u32 2147483647, %v10027_v59  ;;  %vm10033_vm6 = vweird.f32 %v10027_v59 }
 0xd14   :  { %v10040_v15 = vor.u32 1.1754944e-38, %v10039_v6  ;;  %vm10038_vm3 = vcmp.eq.f32.partialorder %v10037_v5, 8.507059e+37 }
 0xd18   :  { %v12777_v53 = vpop.eup %12776 }
 0xd19   :  { %v10029_v54 = vmul.f32 %v12777_v53, %v10027_v59  ;;  %vm10034_vm2 = vweird.f32 %v12777_v53 }
 0xd1a   :  { %vm10035_vm13 = vmor %vm10033_vm6, %vm10034_vm2 }
 0xd1b   :  { %v10030_v41 = vsub.f32 1.0, %v10029_v54 }
 0xd1d   :  { %v10031_v47 = vmul.f32 %v12777_v53, %v10030_v41 }
 0xd1f   :  { %v10032_v10 = vadd.f32 %v12777_v53, %v10031_v47 }
 0xd21   :  { %v10036_v11 = vsel %vm10035_vm13, %v12777_v53, %v10032_v10 }
 0xd22   :  { %v10041_v3 = vsel %vm10038_vm3, %v10040_v15, %v10036_v11 }
 0xd23   :  { %10044 = vst.msk [vmem:[%s19144_s19] sm:$0x3] %vm10043_vm1, %v10041_v3 }
 0xd24   :  { %10049 = vsyncmov [#allocation3] }
 0xd27   :  { %s10050_s15 = vpop.sfrf %10049 }
 0xd28   :  { %p12229_p0 = scmp.ne.s32.totalorder %s10050_s15, 0 }
 0xd2a   :  { %10054 = shalt.err (%p12229_p0)  }

</bundles_post_ra>
